<compile_context>
chip_gen: v7x
topology: tpu7x:2x2x1
jax: 0.10.0
libtpu: 0.0.40
codegen_flags: <defaults>
</compile_context>

<pallas_src>
import math

import jax
import jax.numpy as jnp
import numpy as np
from jax.experimental import pallas as pl
from jax.experimental.pallas import tpu as pltpu

LN_EPS = 1e-5                   # nn.LayerNorm default
RESCALE_OUTPUT_FACTOR = 1.0     # rescale_output_factor default


def _pick_ff_chunk(ff_inner, max_chunk=1024):
    """Largest multiple of 128 that divides ff_inner and is <= max_chunk."""
    best = 128
    for c in range(128, min(ff_inner, max_chunk) + 1, 128):
        if ff_inner % c == 0:
            best = c
    return best


def _make_kernel(num_heads, dim_head, f, c, ff_chunk):
    scale = 1.0 / math.sqrt(dim_head)
    ff_inner = 4 * c            # FeedForward mult=4 (diffusers default)

    def layer_norm(h, g_ref, b_ref):
        # h: (TN, F, C) f32; gamma/beta refs: (1, C) f32
        mu = jnp.mean(h, axis=-1, keepdims=True)
        d = h - mu
        var = jnp.mean(d * d, axis=-1, keepdims=True)
        return (d * jax.lax.rsqrt(var + LN_EPS)
                * g_ref[...][None, :, :] + b_ref[...][None, :, :])

    def kernel(x_ref, pe_ref,
               ln1g_ref, ln1b_ref, wqkv1_ref, wo1_ref, bo1_ref,
               ln2g_ref, ln2b_ref, wqkv2_ref, wo2_ref, bo2_ref,
               lnfg_ref, lnfb_ref, wff1_ref, bff1_ref, wff2_ref, bff2_ref,
               o_ref):
        tn = x_ref.shape[0]
        tnf = tn * f

        x = x_ref[...].astype(jnp.float32)            # (TN, F, C) f32
        pe = pe_ref[...][None, :, :]                  # (1, F, C)  f32

        def attention(h, wqkv_ref, wo_ref, bo_ref):
            # h: (TN, F, C) f32 = LayerNorm(x) + positional encoding
            h2 = h.reshape(tnf, c).astype(jnp.bfloat16)
            # fused q/k/v projection: one (TNF, C) x (C, 3C) MXU matmul
            qkv = jnp.dot(h2, wqkv_ref[...],
                          preferred_element_type=jnp.float32)     # (TNF, 3C) f32
            # cast q/k/v to bf16 ONCE (hoisted out of the head loop)
            q = qkv[:, 0 * c:1 * c].reshape(tn, f, c).astype(jnp.bfloat16)
            k = qkv[:, 1 * c:2 * c].reshape(tn, f, c).astype(jnp.bfloat16)
            v = qkv[:, 2 * c:3 * c].reshape(tn, f, c).astype(jnp.bfloat16)

            heads_out = []
            for hd in range(num_heads):                # small static head loop
                lo = hd * dim_head
                hi = lo + dim_head
                s = jnp.einsum('nfd,ngd->nfg', q[:, :, lo:hi], k[:, :, lo:hi],
                               preferred_element_type=jnp.float32) * scale
                s = s - jnp.max(s, axis=-1, keepdims=True)         # stable softmax
                p = jnp.exp(s)
                p = p / jnp.sum(p, axis=-1, keepdims=True)
                oh = jnp.einsum('nfg,ngd->nfd', p.astype(jnp.bfloat16),
                                v[:, :, lo:hi],
                                preferred_element_type=jnp.float32)
                heads_out.append(oh.astype(jnp.bfloat16))
            # single fused (TNF, C) x (C, C) output projection (full MXU
            # contraction depth) instead of num_heads K=dim_head matmuls.
            concat = jnp.concatenate(heads_out, axis=-1).reshape(tnf, c)
            out = jnp.dot(concat, wo_ref[...],
                          preferred_element_type=jnp.float32) + bo_ref[...]
            if RESCALE_OUTPUT_FACTOR != 1.0:           # dead multiply dropped
                out = out / RESCALE_OUTPUT_FACTOR
            return out.reshape(tn, f, c)

        # --- temporal self-attention block 1 (LN -> +pe -> attn -> residual) ---
        hn = layer_norm(x, ln1g_ref, ln1b_ref)
        x = x + attention(hn + pe, wqkv1_ref, wo1_ref, bo1_ref)

        # --- temporal self-attention block 2 ---
        hn = layer_norm(x, ln2g_ref, ln2b_ref)
        x = x + attention(hn + pe, wqkv2_ref, wo2_ref, bo2_ref)

        # --- GEGLU feed-forward, chunked along ff_inner so the (TNF, 8C) f32
        #     proj intermediate is never materialized (dropout p=0 -> identity) ---
        hn2 = layer_norm(x, lnfg_ref, lnfb_ref).reshape(tnf, c).astype(jnp.bfloat16)
        ff_acc = jnp.zeros((tnf, c), jnp.float32)
        for j in range(ff_inner // ff_chunk):
            lo = j * ff_chunk
            hi = lo + ff_chunk
            val = jnp.dot(hn2, wff1_ref[:, lo:hi],
                          preferred_element_type=jnp.float32) + bff1_ref[:, lo:hi]
            gate = (jnp.dot(hn2, wff1_ref[:, ff_inner + lo:ff_inner + hi],
                            preferred_element_type=jnp.float32)
                    + bff1_ref[:, ff_inner + lo:ff_inner + hi])
            # TODO(synk): PyTorch F.gelu default is exact (erf); tanh approximation used here.
            mid = val * jax.nn.gelu(gate, approximate=True)
            ff_acc = ff_acc + jnp.dot(mid.astype(jnp.bfloat16), wff2_ref[lo:hi, :],
                                      preferred_element_type=jnp.float32)
        x = x + (ff_acc + bff2_ref[...]).reshape(tn, f, c)

        o_ref[...] = x.astype(o_ref.dtype)

    return kernel


def prepare_params(params):
    """One-time conversion of raw f32 params into kernel-ready fused/bf16 arrays
    (done once, NOT per call)."""
    f32, bf16 = jnp.float32, jnp.bfloat16
    row = lambda v: v.reshape(1, -1).astype(f32)
    p = {"pe": params["pe"].astype(f32)}
    for i in (1, 2):
        p[f"wqkv{i}"] = jnp.concatenate(
            [params[f"wq{i}"], params[f"wk{i}"], params[f"wv{i}"]],
            axis=1).astype(bf16)
        p[f"wo{i}"] = params[f"wo{i}"].astype(bf16)
        p[f"bo{i}"] = row(params[f"bo{i}"])
        p[f"ln{i}_g"] = row(params[f"ln{i}_g"])
        p[f"ln{i}_b"] = row(params[f"ln{i}_b"])
    p["lnf_g"] = row(params["lnf_g"])
    p["lnf_b"] = row(params["lnf_b"])
    p["wff1"] = params["wff1"].astype(bf16)
    p["bff1"] = row(params["bff1"])
    p["wff2"] = params["wff2"].astype(bf16)
    p["bff2"] = row(params["bff2"])
    return p


def temporal_transformer_block(hidden_states, prep, *, num_heads,
                               tile_n=None, use_pos_encoding=True,
                               vmem_budget_bytes=48 * 2**20):
    """hidden_states: (N, F, C) with N = batch*height*width (same layout the
    PyTorch module receives after `b c f h w -> (b h w) f c`). Returns bf16."""
    N, F, C = hidden_states.shape
    assert C % num_heads == 0
    assert C % 128 == 0, "keep the channel (lane) dim a multiple of 128"
    dim_head = C // num_heads
    ff_inner = 4 * C
    ff_chunk = _pick_ff_chunk(ff_inner)

    f32, bf16 = jnp.float32, jnp.bfloat16
    # bf16 at the kernel boundary halves x / output HBM traffic.
    x = hidden_states.astype(bf16)
    if use_pos_encoding:
        assert F <= prep["pe"].shape[0]
        pe = prep["pe"][:F].astype(f32)
    else:
        pe = jnp.zeros((F, C), f32)

    args = (
        x, pe,
        prep["ln1_g"], prep["ln1_b"], prep["wqkv1"], prep["wo1"], prep["bo1"],
        prep["ln2_g"], prep["ln2_b"], prep["wqkv2"], prep["wo2"], prep["bo2"],
        prep["lnf_g"], prep["lnf_b"], prep["wff1"], prep["bff1"],
        prep["wff2"], prep["bff2"],
    )

    # --- VMEM accounting (drives tile_n and vmem_limit_bytes) ---------------
    weight_bytes = int(sum(int(np.prod(a.shape)) * a.dtype.itemsize
                           for a in args[1:]))
    # per row of N: in/out tiles (bf16, double-buffered) + ~20 live f32 (F,C)
    # temporaries + the chunked GEGLU val/gate/mid slabs.
    per_row_bytes = F * (8 * C + 80 * C + 16 * ff_chunk)

    if tile_n is None:
        avail = max(vmem_budget_bytes - 2 * weight_bytes, per_row_bytes)
        cap = max(1, avail // per_row_bytes)
        cap = min(cap, max(1, N // 4))      # keep >= 4 grid steps for overlap
        divs = [t for t in range(1, N + 1) if N % t == 0 and t <= cap]
        even = [t for t in divs if (N // t) % 2 == 0]   # v7x: even grid length
        tile_n = max(even) if even else max(divs)
    assert N % tile_n == 0, "pad N to a multiple of tile_n"
    grid = (N // tile_n,)

    vmem_limit = int(min(128 * 2**20,
                         2 * weight_bytes + tile_n * per_row_bytes + (16 << 20)))

    # --- cost estimate (lets XLA schedule around the long custom call) ------
    flops = 40 * N * F * C * C + 8 * N * F * F * C
    transcendentals = 2 * N * num_heads * F * F + 4 * N * F * C
    bytes_accessed = 2 * N * F * C * 2 + weight_bytes       # bf16 in + out + weights
    cost = pl.CostEstimate(flops=int(flops),
                           transcendentals=int(transcendentals),
                           bytes_accessed=int(bytes_accessed))

    def const_spec(a):
        # constant index map (never re-fetched); single-buffer to halve the
        # resident weight VMEM footprint.
        nd = a.ndim
        imap = lambda n, _nd=nd: (0,) * _nd
        try:
            return pl.BlockSpec(a.shape, imap, pipeline_mode=pl.Buffered(1))
        except TypeError:
            return pl.BlockSpec(a.shape, imap)

    # TODO(synk): at very large C (e.g. 1280 on v7x, ~40*C^2 bytes of weights)
    # stream wff1/wff2 (grid axis over ff_inner) or split into per-stage
    # pallas_calls instead of keeping every weight VMEM-resident.
    in_specs = [pl.BlockSpec((tile_n, F, C), lambda n: (n, 0, 0))]
    in_specs += [const_spec(a) for a in args[1:]]

    kernel = _make_kernel(num_heads, dim_head, F, C, ff_chunk)

    return pl.pallas_call(
        kernel,
        out_shape=jax.ShapeDtypeStruct((N, F, C), bf16),
        grid=grid,
        in_specs=in_specs,
        out_specs=pl.BlockSpec((tile_n, F, C), lambda n: (n, 0, 0)),
        compiler_params=pltpu.CompilerParams(
            dimension_semantics=("parallel",),
            vmem_limit_bytes=vmem_limit),
        cost_estimate=cost,
    )(*args)


def init_params(key, C, num_heads, max_len=32):
    """PyTorch-default-like initialization; linear weights stored as (in, out)."""
    ff_inner = 4 * C
    ks = jax.random.split(key, 4)

    def linear(k, fan_in, fan_out, bias=True):
        bound = 1.0 / math.sqrt(fan_in)
        kw, kb = jax.random.split(k)
        w = jax.random.uniform(kw, (fan_in, fan_out), jnp.float32, -bound, bound)
        b = (jax.random.uniform(kb, (fan_out,), jnp.float32, -bound, bound)
             if bias else None)
        return w, b

    # sinusoidal PositionalEncoding buffer (max_len, C)
    position = jnp.arange(max_len, dtype=jnp.float32)[:, None]
    div_term = jnp.exp(jnp.arange(0, C, 2, dtype=jnp.float32)
                       * (-math.log(10000.0) / C))
    pe = jnp.zeros((max_len, C), jnp.float32)
    pe = pe.at[:, 0::2].set(jnp.sin(position * div_term))
    pe = pe.at[:, 1::2].set(jnp.cos(position * div_term))

    p = {"pe": pe}
    for i, kblk in zip((1, 2), (ks[0], ks[1])):
        kq, kk, kv, ko = jax.random.split(kblk, 4)
        wq, _ = linear(kq, C, C, bias=False)      # attention_bias=False
        wk, _ = linear(kk, C, C, bias=False)
        wv, _ = linear(kv, C, C, bias=False)
        wo, bo = linear(ko, C, C, bias=True)      # to_out[0] has bias
        p.update({f"wq{i}": wq, f"wk{i}": wk, f"wv{i}": wv,
                  f"wo{i}": wo, f"bo{i}": bo,
                  f"ln{i}_g": jnp.ones((C,), jnp.float32),
                  f"ln{i}_b": jnp.zeros((C,), jnp.float32)})
    wff1, bff1 = linear(ks[2], C, 2 * ff_inner, bias=True)   # GEGLU proj
    wff2, bff2 = linear(ks[3], ff_inner, C, bias=True)
    p.update({"wff1": wff1, "bff1": bff1, "wff2": wff2, "bff2": bff2,
              "lnf_g": jnp.ones((C,), jnp.float32),
              "lnf_b": jnp.zeros((C,), jnp.float32)})
    return p


def reference_forward(x, params, *, num_heads, use_pos_encoding=True):
    """Pure-JAX f32 reference mirroring the PyTorch module's math."""
    N, F, C = x.shape
    dh = C // num_heads
    pe = (params["pe"][:F] if use_pos_encoding
          else jnp.zeros((F, C), jnp.float32))

    def ln(h, g, b):
        mu = jnp.mean(h, axis=-1, keepdims=True)
        var = jnp.mean((h - mu) ** 2, axis=-1, keepdims=True)
        return (h - mu) / jnp.sqrt(var + LN_EPS) * g + b

    def attn(h, i):
        q, k, v = (h @ params[f"wq{i}"], h @ params[f"wk{i}"], h @ params[f"wv{i}"])
        split = lambda t: t.reshape(N, F, num_heads, dh).transpose(0, 2, 1, 3)
        q, k, v = split(q), split(k), split(v)
        s = jnp.einsum('nhfd,nhgd->nhfg', q, k) / math.sqrt(dh)
        p = jax.nn.softmax(s, axis=-1)
        o = jnp.einsum('nhfg,nhgd->nhfd', p, v).transpose(0, 2, 1, 3).reshape(N, F, C)
        return (o @ params[f"wo{i}"] + params[f"bo{i}"]) / RESCALE_OUTPUT_FACTOR

    h = x
    for i in (1, 2):
        n = ln(h, params[f"ln{i}_g"], params[f"ln{i}_b"])
        h = attn(n + pe[None], i) + h
    n = ln(h, params["lnf_g"], params["lnf_b"])
    proj = n @ params["wff1"] + params["bff1"]
    val, gate = jnp.split(proj, 2, axis=-1)
    mid = val * jax.nn.gelu(gate, approximate=True)
    return mid @ params["wff2"] + params["bff2"] + h


if __name__ == "__main__":
    # Small shapes consistent with the module: (b h w) rows, frames on the
    # sequence axis, dim divisible by num_heads and lane-dense (128).
    B, Fr, H, W = 2, 8, 4, 4
    C, heads = 128, 4
    N = B * H * W                      # 32 rows -> grid of 4 tiles of 8

    key = jax.random.PRNGKey(0)
    kx, kp = jax.random.split(key)
    hidden_states = jax.random.normal(kx, (N, Fr, C), jnp.float32)
    params = init_params(kp, C, heads)
    prep = prepare_params(params)      # one-time weight fuse + bf16 cast

    x_bf16 = hidden_states.astype(jnp.bfloat16)
    out = temporal_transformer_block(x_bf16, prep, num_heads=heads)
    out = jax.block_until_ready(out)

    # Reference sees the same bf16-rounded input; kernel uses bf16 matmul
    # operands (f32 accumulation) and a bf16 output, so use bf16-level tolerance.
    ref = reference_forward(x_bf16.astype(jnp.float32), params, num_heads=heads)
    assert out.shape == hidden_states.shape and out.dtype == jnp.bfloat16
    np.testing.assert_allclose(np.asarray(out.astype(jnp.float32)),
                               np.asarray(ref), atol=6e-2, rtol=6e-2)
    print("KERNEL_OK")
</pallas_src>

<mosaic_0001>
module attributes {stable_mosaic.version = 11 : i64} {
  func.func @kernel(%arg0: i32, %arg1: memref<8x8x128xbf16, #tpu.memory_space<vmem>>, %arg2: memref<8x128xf32, #tpu.memory_space<vmem>>, %arg3: memref<1x128xf32, #tpu.memory_space<vmem>>, %arg4: memref<1x128xf32, #tpu.memory_space<vmem>>, %arg5: memref<128x384xbf16, #tpu.memory_space<vmem>>, %arg6: memref<128x128xbf16, #tpu.memory_space<vmem>>, %arg7: memref<1x128xf32, #tpu.memory_space<vmem>>, %arg8: memref<1x128xf32, #tpu.memory_space<vmem>>, %arg9: memref<1x128xf32, #tpu.memory_space<vmem>>, %arg10: memref<128x384xbf16, #tpu.memory_space<vmem>>, %arg11: memref<128x128xbf16, #tpu.memory_space<vmem>>, %arg12: memref<1x128xf32, #tpu.memory_space<vmem>>, %arg13: memref<1x128xf32, #tpu.memory_space<vmem>>, %arg14: memref<1x128xf32, #tpu.memory_space<vmem>>, %arg15: memref<128x1024xbf16, #tpu.memory_space<vmem>>, %arg16: memref<1x1024xf32, #tpu.memory_space<vmem>>, %arg17: memref<512x128xbf16, #tpu.memory_space<vmem>>, %arg18: memref<1x128xf32, #tpu.memory_space<vmem>>, %arg19: memref<8x8x128xbf16, #tpu.memory_space<vmem>>) attributes {dimension_semantics = [#tpu.dimension_semantics<parallel>], iteration_bounds = array<i64: 4>, scalar_prefetch = 0 : i64, scratch_operands = 0 : i64, tpu.core_type = #tpu.core_type<tc>, window_params = [{transform_indices = @transform_0, window_bounds = array<i64: 8, 8, 128>}, {pipeline_mode = #tpu.pipeline_mode<synchronous>, transform_indices = @transform_1, window_bounds = array<i64: 8, 128>}, {pipeline_mode = #tpu.pipeline_mode<synchronous>, transform_indices = @transform_2, window_bounds = array<i64: 1, 128>}, {pipeline_mode = #tpu.pipeline_mode<synchronous>, transform_indices = @transform_3, window_bounds = array<i64: 1, 128>}, {pipeline_mode = #tpu.pipeline_mode<synchronous>, transform_indices = @transform_4, window_bounds = array<i64: 128, 384>}, {pipeline_mode = #tpu.pipeline_mode<synchronous>, transform_indices = @transform_5, window_bounds = array<i64: 128, 128>}, {pipeline_mode = #tpu.pipeline_mode<synchronous>, transform_indices = @transform_6, window_bounds = array<i64: 1, 128>}, {pipeline_mode = #tpu.pipeline_mode<synchronous>, transform_indices = @transform_7, window_bounds = array<i64: 1, 128>}, {pipeline_mode = #tpu.pipeline_mode<synchronous>, transform_indices = @transform_8, window_bounds = array<i64: 1, 128>}, {pipeline_mode = #tpu.pipeline_mode<synchronous>, transform_indices = @transform_9, window_bounds = array<i64: 128, 384>}, {pipeline_mode = #tpu.pipeline_mode<synchronous>, transform_indices = @transform_10, window_bounds = array<i64: 128, 128>}, {pipeline_mode = #tpu.pipeline_mode<synchronous>, transform_indices = @transform_11, window_bounds = array<i64: 1, 128>}, {pipeline_mode = #tpu.pipeline_mode<synchronous>, transform_indices = @transform_12, window_bounds = array<i64: 1, 128>}, {pipeline_mode = #tpu.pipeline_mode<synchronous>, transform_indices = @transform_13, window_bounds = array<i64: 1, 128>}, {pipeline_mode = #tpu.pipeline_mode<synchronous>, transform_indices = @transform_14, window_bounds = array<i64: 128, 1024>}, {pipeline_mode = #tpu.pipeline_mode<synchronous>, transform_indices = @transform_15, window_bounds = array<i64: 1, 1024>}, {pipeline_mode = #tpu.pipeline_mode<synchronous>, transform_indices = @transform_16, window_bounds = array<i64: 512, 128>}, {pipeline_mode = #tpu.pipeline_mode<synchronous>, transform_indices = @transform_17, window_bounds = array<i64: 1, 128>}, {transform_indices = @transform_18, window_bounds = array<i64: 8, 8, 128>}]} {
    %c0 = arith.constant 0 : index
    %c0_0 = arith.constant 0 : index
    %c0_1 = arith.constant 0 : index
    %0 = vector.load %arg1[%c0, %c0_0, %c0_1] : memref<8x8x128xbf16, #tpu.memory_space<vmem>>, vector<8x8x128xbf16>
    %1 = arith.extf %0 : vector<8x8x128xbf16> to vector<8x8x128xf32>
    %c0_2 = arith.constant 0 : index
    %c0_3 = arith.constant 0 : index
    %2 = vector.load %arg2[%c0_2, %c0_3] : memref<8x128xf32, #tpu.memory_space<vmem>>, vector<8x128xf32>
    %3 = vector.shape_cast %2 : vector<8x128xf32> to vector<1x8x128xf32>
    %cst = arith.constant dense<0.000000e+00> : vector<8x8xf32>
    %4 = vector.multi_reduction <add>, %1, %cst [2] : vector<8x8x128xf32> to vector<8x8xf32>
    %5 = vector.shape_cast %4 : vector<8x8xf32> to vector<8x8x1xf32>
    %cst_4 = arith.constant 1.280000e+02 : f32
    %6 = vector.broadcast %cst_4 : f32 to vector<8x8x1xf32>
    %7 = arith.divf %5, %6 : vector<8x8x1xf32>
    %8 = vector.broadcast %7 : vector<8x8x1xf32> to vector<8x8x128xf32>
    %9 = arith.subf %1, %8 : vector<8x8x128xf32>
    %10 = arith.mulf %9, %9 : vector<8x8x128xf32>
    %cst_5 = arith.constant dense<0.000000e+00> : vector<8x8xf32>
    %11 = vector.multi_reduction <add>, %10, %cst_5 [2] : vector<8x8x128xf32> to vector<8x8xf32>
    %12 = vector.shape_cast %11 : vector<8x8xf32> to vector<8x8x1xf32>
    %cst_6 = arith.constant 1.280000e+02 : f32
    %13 = vector.broadcast %cst_6 : f32 to vector<8x8x1xf32>
    %14 = arith.divf %12, %13 : vector<8x8x1xf32>
    %cst_7 = arith.constant 9.99999974E-6 : f32
    %15 = vector.broadcast %cst_7 : f32 to vector<8x8x1xf32>
    %16 = arith.addf %14, %15 : vector<8x8x1xf32>
    %17 = math.rsqrt %16 : vector<8x8x1xf32>
    %18 = vector.broadcast %17 : vector<8x8x1xf32> to vector<8x8x128xf32>
    %19 = arith.mulf %9, %18 : vector<8x8x128xf32>
    %c0_8 = arith.constant 0 : index
    %c0_9 = arith.constant 0 : index
    %20 = vector.load %arg3[%c0_8, %c0_9] : memref<1x128xf32, #tpu.memory_space<vmem>>, vector<1x128xf32>
    %21 = vector.shape_cast %20 : vector<1x128xf32> to vector<1x1x128xf32>
    %22 = vector.broadcast %21 : vector<1x1x128xf32> to vector<8x8x128xf32>
    %23 = arith.mulf %19, %22 : vector<8x8x128xf32>
    %c0_10 = arith.constant 0 : index
    %c0_11 = arith.constant 0 : index
    %24 = vector.load %arg4[%c0_10, %c0_11] : memref<1x128xf32, #tpu.memory_space<vmem>>, vector<1x128xf32>
    %25 = vector.shape_cast %24 : vector<1x128xf32> to vector<1x1x128xf32>
    %26 = vector.broadcast %25 : vector<1x1x128xf32> to vector<8x8x128xf32>
    %27 = arith.addf %23, %26 : vector<8x8x128xf32>
    %28 = vector.broadcast %3 : vector<1x8x128xf32> to vector<8x8x128xf32>
    %29 = arith.addf %27, %28 : vector<8x8x128xf32>
    %30 = vector.shape_cast %29 : vector<8x8x128xf32> to vector<64x128xf32>
    %31 = arith.truncf %30 : vector<64x128xf32> to vector<64x128xbf16>
    %c0_12 = arith.constant 0 : index
    %c0_13 = arith.constant 0 : index
    %32 = vector.load %arg5[%c0_12, %c0_13] : memref<128x384xbf16, #tpu.memory_space<vmem>>, vector<128x384xbf16>
    %cst_14 = arith.constant dense<0.000000e+00> : vector<64x384xf32>
    %33 = tpu.matmul %31, %32, %cst_14 {dimension_numbers = #tpu.dot_dimension_numbers<[1], [0], [0], [1], [0, 0, 1, 1], [], []>} : vector<64x128xbf16>, vector<128x384xbf16>, vector<64x384xf32> -> vector<64x384xf32>
    %34 = vector.extract_strided_slice %33 {offsets = [0, 0], sizes = [64, 128], strides = [1, 1]} : vector<64x384xf32> to vector<64x128xf32>
    %35 = vector.shape_cast %34 : vector<64x128xf32> to vector<8x8x128xf32>
    %36 = arith.truncf %35 : vector<8x8x128xf32> to vector<8x8x128xbf16>
    %37 = vector.extract_strided_slice %33 {offsets = [0, 128], sizes = [64, 128], strides = [1, 1]} : vector<64x384xf32> to vector<64x128xf32>
    %38 = vector.shape_cast %37 : vector<64x128xf32> to vector<8x8x128xf32>
    %39 = arith.truncf %38 : vector<8x8x128xf32> to vector<8x8x128xbf16>
    %40 = vector.extract_strided_slice %33 {offsets = [0, 256], sizes = [64, 128], strides = [1, 1]} : vector<64x384xf32> to vector<64x128xf32>
    %41 = vector.shape_cast %40 : vector<64x128xf32> to vector<8x8x128xf32>
    %42 = arith.truncf %41 : vector<8x8x128xf32> to vector<8x8x128xbf16>
    %43 = vector.extract_strided_slice %36 {offsets = [0, 0, 0], sizes = [8, 8, 32], strides = [1, 1, 1]} : vector<8x8x128xbf16> to vector<8x8x32xbf16>
    %44 = vector.extract_strided_slice %39 {offsets = [0, 0, 0], sizes = [8, 8, 32], strides = [1, 1, 1]} : vector<8x8x128xbf16> to vector<8x8x32xbf16>
    "tpu.trace_start"() <{level = 10 : i32, message = "nfd,ngd->nfg"}> : () -> ()
    %cst_15 = arith.constant dense<0.000000e+00> : vector<8x8x8xf32>
    %45 = tpu.matmul %43, %44, %cst_15 {dimension_numbers = #tpu.dot_dimension_numbers<[2], [2], [1], [1], [0, 0, 0, 1, 1, 1], [0], [0]>} : vector<8x8x32xbf16>, vector<8x8x32xbf16>, vector<8x8x8xf32> -> vector<8x8x8xf32>
    "tpu.trace_stop"() : () -> ()
    %cst_16 = arith.constant 0.176776692 : f32
    %46 = vector.broadcast %cst_16 : f32 to vector<8x8x8xf32>
    %47 = arith.mulf %45, %46 : vector<8x8x8xf32>
    %cst_17 = arith.constant dense<0xFF800000> : vector<8x8xf32>
    %48 = vector.multi_reduction <maximumf>, %47, %cst_17 [2] : vector<8x8x8xf32> to vector<8x8xf32>
    %49 = vector.shape_cast %48 : vector<8x8xf32> to vector<8x8x1xf32>
    %50 = vector.broadcast %49 : vector<8x8x1xf32> to vector<8x8x8xf32>
    %51 = arith.subf %47, %50 : vector<8x8x8xf32>
    %52 = math.exp %51 : vector<8x8x8xf32>
    %cst_18 = arith.constant dense<0.000000e+00> : vector<8x8xf32>
    %53 = vector.multi_reduction <add>, %52, %cst_18 [2] : vector<8x8x8xf32> to vector<8x8xf32>
    %54 = vector.shape_cast %53 : vector<8x8xf32> to vector<8x8x1xf32>
    %55 = vector.broadcast %54 : vector<8x8x1xf32> to vector<8x8x8xf32>
    %56 = arith.divf %52, %55 : vector<8x8x8xf32>
    %57 = arith.truncf %56 : vector<8x8x8xf32> to vector<8x8x8xbf16>
    %58 = vector.extract_strided_slice %42 {offsets = [0, 0, 0], sizes = [8, 8, 32], strides = [1, 1, 1]} : vector<8x8x128xbf16> to vector<8x8x32xbf16>
    "tpu.trace_start"() <{level = 10 : i32, message = "nfg,ngd->nfd"}> : () -> ()
    %cst_19 = arith.constant dense<0.000000e+00> : vector<8x8x32xf32>
    %59 = tpu.matmul %57, %58, %cst_19 {dimension_numbers = #tpu.dot_dimension_numbers<[2], [1], [1], [2], [0, 0, 0, 1, 1, 2], [0], [0]>} : vector<8x8x8xbf16>, vector<8x8x32xbf16>, vector<8x8x32xf32> -> vector<8x8x32xf32>
    "tpu.trace_stop"() : () -> ()
    %60 = arith.truncf %59 : vector<8x8x32xf32> to vector<8x8x32xbf16>
    %61 = vector.extract_strided_slice %36 {offsets = [0, 0, 32], sizes = [8, 8, 32], strides = [1, 1, 1]} : vector<8x8x128xbf16> to vector<8x8x32xbf16>
    %62 = vector.extract_strided_slice %39 {offsets = [0, 0, 32], sizes = [8, 8, 32], strides = [1, 1, 1]} : vector<8x8x128xbf16> to vector<8x8x32xbf16>
    "tpu.trace_start"() <{level = 10 : i32, message = "nfd,ngd->nfg"}> : () -> ()
    %cst_20 = arith.constant dense<0.000000e+00> : vector<8x8x8xf32>
    %63 = tpu.matmul %61, %62, %cst_20 {dimension_numbers = #tpu.dot_dimension_numbers<[2], [2], [1], [1], [0, 0, 0, 1, 1, 1], [0], [0]>} : vector<8x8x32xbf16>, vector<8x8x32xbf16>, vector<8x8x8xf32> -> vector<8x8x8xf32>
    "tpu.trace_stop"() : () -> ()
    %cst_21 = arith.constant 0.176776692 : f32
    %64 = vector.broadcast %cst_21 : f32 to vector<8x8x8xf32>
    %65 = arith.mulf %63, %64 : vector<8x8x8xf32>
    %cst_22 = arith.constant dense<0xFF800000> : vector<8x8xf32>
    %66 = vector.multi_reduction <maximumf>, %65, %cst_22 [2] : vector<8x8x8xf32> to vector<8x8xf32>
    %67 = vector.shape_cast %66 : vector<8x8xf32> to vector<8x8x1xf32>
    %68 = vector.broadcast %67 : vector<8x8x1xf32> to vector<8x8x8xf32>
    %69 = arith.subf %65, %68 : vector<8x8x8xf32>
    %70 = math.exp %69 : vector<8x8x8xf32>
    %cst_23 = arith.constant dense<0.000000e+00> : vector<8x8xf32>
    %71 = vector.multi_reduction <add>, %70, %cst_23 [2] : vector<8x8x8xf32> to vector<8x8xf32>
    %72 = vector.shape_cast %71 : vector<8x8xf32> to vector<8x8x1xf32>
    %73 = vector.broadcast %72 : vector<8x8x1xf32> to vector<8x8x8xf32>
    %74 = arith.divf %70, %73 : vector<8x8x8xf32>
    %75 = arith.truncf %74 : vector<8x8x8xf32> to vector<8x8x8xbf16>
    %76 = vector.extract_strided_slice %42 {offsets = [0, 0, 32], sizes = [8, 8, 32], strides = [1, 1, 1]} : vector<8x8x128xbf16> to vector<8x8x32xbf16>
    "tpu.trace_start"() <{level = 10 : i32, message = "nfg,ngd->nfd"}> : () -> ()
    %cst_24 = arith.constant dense<0.000000e+00> : vector<8x8x32xf32>
    %77 = tpu.matmul %75, %76, %cst_24 {dimension_numbers = #tpu.dot_dimension_numbers<[2], [1], [1], [2], [0, 0, 0, 1, 1, 2], [0], [0]>} : vector<8x8x8xbf16>, vector<8x8x32xbf16>, vector<8x8x32xf32> -> vector<8x8x32xf32>
    "tpu.trace_stop"() : () -> ()
    %78 = arith.truncf %77 : vector<8x8x32xf32> to vector<8x8x32xbf16>
    %79 = vector.extract_strided_slice %36 {offsets = [0, 0, 64], sizes = [8, 8, 32], strides = [1, 1, 1]} : vector<8x8x128xbf16> to vector<8x8x32xbf16>
    %80 = vector.extract_strided_slice %39 {offsets = [0, 0, 64], sizes = [8, 8, 32], strides = [1, 1, 1]} : vector<8x8x128xbf16> to vector<8x8x32xbf16>
    "tpu.trace_start"() <{level = 10 : i32, message = "nfd,ngd->nfg"}> : () -> ()
    %cst_25 = arith.constant dense<0.000000e+00> : vector<8x8x8xf32>
    %81 = tpu.matmul %79, %80, %cst_25 {dimension_numbers = #tpu.dot_dimension_numbers<[2], [2], [1], [1], [0, 0, 0, 1, 1, 1], [0], [0]>} : vector<8x8x32xbf16>, vector<8x8x32xbf16>, vector<8x8x8xf32> -> vector<8x8x8xf32>
    "tpu.trace_stop"() : () -> ()
    %cst_26 = arith.constant 0.176776692 : f32
    %82 = vector.broadcast %cst_26 : f32 to vector<8x8x8xf32>
    %83 = arith.mulf %81, %82 : vector<8x8x8xf32>
    %cst_27 = arith.constant dense<0xFF800000> : vector<8x8xf32>
    %84 = vector.multi_reduction <maximumf>, %83, %cst_27 [2] : vector<8x8x8xf32> to vector<8x8xf32>
    %85 = vector.shape_cast %84 : vector<8x8xf32> to vector<8x8x1xf32>
    %86 = vector.broadcast %85 : vector<8x8x1xf32> to vector<8x8x8xf32>
    %87 = arith.subf %83, %86 : vector<8x8x8xf32>
    %88 = math.exp %87 : vector<8x8x8xf32>
    %cst_28 = arith.constant dense<0.000000e+00> : vector<8x8xf32>
    %89 = vector.multi_reduction <add>, %88, %cst_28 [2] : vector<8x8x8xf32> to vector<8x8xf32>
    %90 = vector.shape_cast %89 : vector<8x8xf32> to vector<8x8x1xf32>
    %91 = vector.broadcast %90 : vector<8x8x1xf32> to vector<8x8x8xf32>
    %92 = arith.divf %88, %91 : vector<8x8x8xf32>
    %93 = arith.truncf %92 : vector<8x8x8xf32> to vector<8x8x8xbf16>
    %94 = vector.extract_strided_slice %42 {offsets = [0, 0, 64], sizes = [8, 8, 32], strides = [1, 1, 1]} : vector<8x8x128xbf16> to vector<8x8x32xbf16>
    "tpu.trace_start"() <{level = 10 : i32, message = "nfg,ngd->nfd"}> : () -> ()
    %cst_29 = arith.constant dense<0.000000e+00> : vector<8x8x32xf32>
    %95 = tpu.matmul %93, %94, %cst_29 {dimension_numbers = #tpu.dot_dimension_numbers<[2], [1], [1], [2], [0, 0, 0, 1, 1, 2], [0], [0]>} : vector<8x8x8xbf16>, vector<8x8x32xbf16>, vector<8x8x32xf32> -> vector<8x8x32xf32>
    "tpu.trace_stop"() : () -> ()
    %96 = arith.truncf %95 : vector<8x8x32xf32> to vector<8x8x32xbf16>
    %97 = vector.extract_strided_slice %36 {offsets = [0, 0, 96], sizes = [8, 8, 32], strides = [1, 1, 1]} : vector<8x8x128xbf16> to vector<8x8x32xbf16>
    %98 = vector.extract_strided_slice %39 {offsets = [0, 0, 96], sizes = [8, 8, 32], strides = [1, 1, 1]} : vector<8x8x128xbf16> to vector<8x8x32xbf16>
    "tpu.trace_start"() <{level = 10 : i32, message = "nfd,ngd->nfg"}> : () -> ()
    %cst_30 = arith.constant dense<0.000000e+00> : vector<8x8x8xf32>
    %99 = tpu.matmul %97, %98, %cst_30 {dimension_numbers = #tpu.dot_dimension_numbers<[2], [2], [1], [1], [0, 0, 0, 1, 1, 1], [0], [0]>} : vector<8x8x32xbf16>, vector<8x8x32xbf16>, vector<8x8x8xf32> -> vector<8x8x8xf32>
    "tpu.trace_stop"() : () -> ()
    %cst_31 = arith.constant 0.176776692 : f32
    %100 = vector.broadcast %cst_31 : f32 to vector<8x8x8xf32>
    %101 = arith.mulf %99, %100 : vector<8x8x8xf32>
    %cst_32 = arith.constant dense<0xFF800000> : vector<8x8xf32>
    %102 = vector.multi_reduction <maximumf>, %101, %cst_32 [2] : vector<8x8x8xf32> to vector<8x8xf32>
    %103 = vector.shape_cast %102 : vector<8x8xf32> to vector<8x8x1xf32>
    %104 = vector.broadcast %103 : vector<8x8x1xf32> to vector<8x8x8xf32>
    %105 = arith.subf %101, %104 : vector<8x8x8xf32>
    %106 = math.exp %105 : vector<8x8x8xf32>
    %cst_33 = arith.constant dense<0.000000e+00> : vector<8x8xf32>
    %107 = vector.multi_reduction <add>, %106, %cst_33 [2] : vector<8x8x8xf32> to vector<8x8xf32>
    %108 = vector.shape_cast %107 : vector<8x8xf32> to vector<8x8x1xf32>
    %109 = vector.broadcast %108 : vector<8x8x1xf32> to vector<8x8x8xf32>
    %110 = arith.divf %106, %109 : vector<8x8x8xf32>
    %111 = arith.truncf %110 : vector<8x8x8xf32> to vector<8x8x8xbf16>
    %112 = vector.extract_strided_slice %42 {offsets = [0, 0, 96], sizes = [8, 8, 32], strides = [1, 1, 1]} : vector<8x8x128xbf16> to vector<8x8x32xbf16>
    "tpu.trace_start"() <{level = 10 : i32, message = "nfg,ngd->nfd"}> : () -> ()
    %cst_34 = arith.constant dense<0.000000e+00> : vector<8x8x32xf32>
    %113 = tpu.matmul %111, %112, %cst_34 {dimension_numbers = #tpu.dot_dimension_numbers<[2], [1], [1], [2], [0, 0, 0, 1, 1, 2], [0], [0]>} : vector<8x8x8xbf16>, vector<8x8x32xbf16>, vector<8x8x32xf32> -> vector<8x8x32xf32>
    "tpu.trace_stop"() : () -> ()
    %114 = arith.truncf %113 : vector<8x8x32xf32> to vector<8x8x32xbf16>
    %115 = tpu.concatenate %60, %78, %96, %114 in 2 : vector<8x8x32xbf16>, vector<8x8x32xbf16>, vector<8x8x32xbf16>, vector<8x8x32xbf16> -> vector<8x8x128xbf16>
    %116 = vector.shape_cast %115 : vector<8x8x128xbf16> to vector<64x128xbf16>
    %c0_35 = arith.constant 0 : index
    %c0_36 = arith.constant 0 : index
    %117 = vector.load %arg6[%c0_35, %c0_36] : memref<128x128xbf16, #tpu.memory_space<vmem>>, vector<128x128xbf16>
    %cst_37 = arith.constant dense<0.000000e+00> : vector<64x128xf32>
    %118 = tpu.matmul %116, %117, %cst_37 {dimension_numbers = #tpu.dot_dimension_numbers<[1], [0], [0], [1], [0, 0, 1, 1], [], []>} : vector<64x128xbf16>, vector<128x128xbf16>, vector<64x128xf32> -> vector<64x128xf32>
    %c0_38 = arith.constant 0 : index
    %c0_39 = arith.constant 0 : index
    %119 = vector.load %arg7[%c0_38, %c0_39] : memref<1x128xf32, #tpu.memory_space<vmem>>, vector<1x128xf32>
    %120 = vector.broadcast %119 : vector<1x128xf32> to vector<64x128xf32>
    %121 = arith.addf %118, %120 : vector<64x128xf32>
    %122 = vector.shape_cast %121 : vector<64x128xf32> to vector<8x8x128xf32>
    %123 = arith.addf %1, %122 : vector<8x8x128xf32>
    %cst_40 = arith.constant dense<0.000000e+00> : vector<8x8xf32>
    %124 = vector.multi_reduction <add>, %123, %cst_40 [2] : vector<8x8x128xf32> to vector<8x8xf32>
    %125 = vector.shape_cast %124 : vector<8x8xf32> to vector<8x8x1xf32>
    %cst_41 = arith.constant 1.280000e+02 : f32
    %126 = vector.broadcast %cst_41 : f32 to vector<8x8x1xf32>
    %127 = arith.divf %125, %126 : vector<8x8x1xf32>
    %128 = vector.broadcast %127 : vector<8x8x1xf32> to vector<8x8x128xf32>
    %129 = arith.subf %123, %128 : vector<8x8x128xf32>
    %130 = arith.mulf %129, %129 : vector<8x8x128xf32>
    %cst_42 = arith.constant dense<0.000000e+00> : vector<8x8xf32>
    %131 = vector.multi_reduction <add>, %130, %cst_42 [2] : vector<8x8x128xf32> to vector<8x8xf32>
    %132 = vector.shape_cast %131 : vector<8x8xf32> to vector<8x8x1xf32>
    %cst_43 = arith.constant 1.280000e+02 : f32
    %133 = vector.broadcast %cst_43 : f32 to vector<8x8x1xf32>
    %134 = arith.divf %132, %133 : vector<8x8x1xf32>
    %cst_44 = arith.constant 9.99999974E-6 : f32
    %135 = vector.broadcast %cst_44 : f32 to vector<8x8x1xf32>
    %136 = arith.addf %134, %135 : vector<8x8x1xf32>
    %137 = math.rsqrt %136 : vector<8x8x1xf32>
    %138 = vector.broadcast %137 : vector<8x8x1xf32> to vector<8x8x128xf32>
    %139 = arith.mulf %129, %138 : vector<8x8x128xf32>
    %c0_45 = arith.constant 0 : index
    %c0_46 = arith.constant 0 : index
    %140 = vector.load %arg8[%c0_45, %c0_46] : memref<1x128xf32, #tpu.memory_space<vmem>>, vector<1x128xf32>
    %141 = vector.shape_cast %140 : vector<1x128xf32> to vector<1x1x128xf32>
    %142 = vector.broadcast %141 : vector<1x1x128xf32> to vector<8x8x128xf32>
    %143 = arith.mulf %139, %142 : vector<8x8x128xf32>
    %c0_47 = arith.constant 0 : index
    %c0_48 = arith.constant 0 : index
    %144 = vector.load %arg9[%c0_47, %c0_48] : memref<1x128xf32, #tpu.memory_space<vmem>>, vector<1x128xf32>
    %145 = vector.shape_cast %144 : vector<1x128xf32> to vector<1x1x128xf32>
    %146 = vector.broadcast %145 : vector<1x1x128xf32> to vector<8x8x128xf32>
    %147 = arith.addf %143, %146 : vector<8x8x128xf32>
    %148 = vector.broadcast %3 : vector<1x8x128xf32> to vector<8x8x128xf32>
    %149 = arith.addf %147, %148 : vector<8x8x128xf32>
    %150 = vector.shape_cast %149 : vector<8x8x128xf32> to vector<64x128xf32>
    %151 = arith.truncf %150 : vector<64x128xf32> to vector<64x128xbf16>
    %c0_49 = arith.constant 0 : index
    %c0_50 = arith.constant 0 : index
    %152 = vector.load %arg10[%c0_49, %c0_50] : memref<128x384xbf16, #tpu.memory_space<vmem>>, vector<128x384xbf16>
    %cst_51 = arith.constant dense<0.000000e+00> : vector<64x384xf32>
    %153 = tpu.matmul %151, %152, %cst_51 {dimension_numbers = #tpu.dot_dimension_numbers<[1], [0], [0], [1], [0, 0, 1, 1], [], []>} : vector<64x128xbf16>, vector<128x384xbf16>, vector<64x384xf32> -> vector<64x384xf32>
    %154 = vector.extract_strided_slice %153 {offsets = [0, 0], sizes = [64, 128], strides = [1, 1]} : vector<64x384xf32> to vector<64x128xf32>
    %155 = vector.shape_cast %154 : vector<64x128xf32> to vector<8x8x128xf32>
    %156 = arith.truncf %155 : vector<8x8x128xf32> to vector<8x8x128xbf16>
    %157 = vector.extract_strided_slice %153 {offsets = [0, 128], sizes = [64, 128], strides = [1, 1]} : vector<64x384xf32> to vector<64x128xf32>
    %158 = vector.shape_cast %157 : vector<64x128xf32> to vector<8x8x128xf32>
    %159 = arith.truncf %158 : vector<8x8x128xf32> to vector<8x8x128xbf16>
    %160 = vector.extract_strided_slice %153 {offsets = [0, 256], sizes = [64, 128], strides = [1, 1]} : vector<64x384xf32> to vector<64x128xf32>
    %161 = vector.shape_cast %160 : vector<64x128xf32> to vector<8x8x128xf32>
    %162 = arith.truncf %161 : vector<8x8x128xf32> to vector<8x8x128xbf16>
    %163 = vector.extract_strided_slice %156 {offsets = [0, 0, 0], sizes = [8, 8, 32], strides = [1, 1, 1]} : vector<8x8x128xbf16> to vector<8x8x32xbf16>
    %164 = vector.extract_strided_slice %159 {offsets = [0, 0, 0], sizes = [8, 8, 32], strides = [1, 1, 1]} : vector<8x8x128xbf16> to vector<8x8x32xbf16>
    "tpu.trace_start"() <{level = 10 : i32, message = "nfd,ngd->nfg"}> : () -> ()
    %cst_52 = arith.constant dense<0.000000e+00> : vector<8x8x8xf32>
    %165 = tpu.matmul %163, %164, %cst_52 {dimension_numbers = #tpu.dot_dimension_numbers<[2], [2], [1], [1], [0, 0, 0, 1, 1, 1], [0], [0]>} : vector<8x8x32xbf16>, vector<8x8x32xbf16>, vector<8x8x8xf32> -> vector<8x8x8xf32>
    "tpu.trace_stop"() : () -> ()
    %cst_53 = arith.constant 0.176776692 : f32
    %166 = vector.broadcast %cst_53 : f32 to vector<8x8x8xf32>
    %167 = arith.mulf %165, %166 : vector<8x8x8xf32>
    %cst_54 = arith.constant dense<0xFF800000> : vector<8x8xf32>
    %168 = vector.multi_reduction <maximumf>, %167, %cst_54 [2] : vector<8x8x8xf32> to vector<8x8xf32>
    %169 = vector.shape_cast %168 : vector<8x8xf32> to vector<8x8x1xf32>
    %170 = vector.broadcast %169 : vector<8x8x1xf32> to vector<8x8x8xf32>
    %171 = arith.subf %167, %170 : vector<8x8x8xf32>
    %172 = math.exp %171 : vector<8x8x8xf32>
    %cst_55 = arith.constant dense<0.000000e+00> : vector<8x8xf32>
    %173 = vector.multi_reduction <add>, %172, %cst_55 [2] : vector<8x8x8xf32> to vector<8x8xf32>
    %174 = vector.shape_cast %173 : vector<8x8xf32> to vector<8x8x1xf32>
    %175 = vector.broadcast %174 : vector<8x8x1xf32> to vector<8x8x8xf32>
    %176 = arith.divf %172, %175 : vector<8x8x8xf32>
    %177 = arith.truncf %176 : vector<8x8x8xf32> to vector<8x8x8xbf16>
    %178 = vector.extract_strided_slice %162 {offsets = [0, 0, 0], sizes = [8, 8, 32], strides = [1, 1, 1]} : vector<8x8x128xbf16> to vector<8x8x32xbf16>
    "tpu.trace_start"() <{level = 10 : i32, message = "nfg,ngd->nfd"}> : () -> ()
    %cst_56 = arith.constant dense<0.000000e+00> : vector<8x8x32xf32>
    %179 = tpu.matmul %177, %178, %cst_56 {dimension_numbers = #tpu.dot_dimension_numbers<[2], [1], [1], [2], [0, 0, 0, 1, 1, 2], [0], [0]>} : vector<8x8x8xbf16>, vector<8x8x32xbf16>, vector<8x8x32xf32> -> vector<8x8x32xf32>
    "tpu.trace_stop"() : () -> ()
    %180 = arith.truncf %179 : vector<8x8x32xf32> to vector<8x8x32xbf16>
    %181 = vector.extract_strided_slice %156 {offsets = [0, 0, 32], sizes = [8, 8, 32], strides = [1, 1, 1]} : vector<8x8x128xbf16> to vector<8x8x32xbf16>
    %182 = vector.extract_strided_slice %159 {offsets = [0, 0, 32], sizes = [8, 8, 32], strides = [1, 1, 1]} : vector<8x8x128xbf16> to vector<8x8x32xbf16>
    "tpu.trace_start"() <{level = 10 : i32, message = "nfd,ngd->nfg"}> : () -> ()
    %cst_57 = arith.constant dense<0.000000e+00> : vector<8x8x8xf32>
    %183 = tpu.matmul %181, %182, %cst_57 {dimension_numbers = #tpu.dot_dimension_numbers<[2], [2], [1], [1], [0, 0, 0, 1, 1, 1], [0], [0]>} : vector<8x8x32xbf16>, vector<8x8x32xbf16>, vector<8x8x8xf32> -> vector<8x8x8xf32>
    "tpu.trace_stop"() : () -> ()
    %cst_58 = arith.constant 0.176776692 : f32
    %184 = vector.broadcast %cst_58 : f32 to vector<8x8x8xf32>
    %185 = arith.mulf %183, %184 : vector<8x8x8xf32>
    %cst_59 = arith.constant dense<0xFF800000> : vector<8x8xf32>
    %186 = vector.multi_reduction <maximumf>, %185, %cst_59 [2] : vector<8x8x8xf32> to vector<8x8xf32>
    %187 = vector.shape_cast %186 : vector<8x8xf32> to vector<8x8x1xf32>
    %188 = vector.broadcast %187 : vector<8x8x1xf32> to vector<8x8x8xf32>
    %189 = arith.subf %185, %188 : vector<8x8x8xf32>
    %190 = math.exp %189 : vector<8x8x8xf32>
    %cst_60 = arith.constant dense<0.000000e+00> : vector<8x8xf32>
    %191 = vector.multi_reduction <add>, %190, %cst_60 [2] : vector<8x8x8xf32> to vector<8x8xf32>
    %192 = vector.shape_cast %191 : vector<8x8xf32> to vector<8x8x1xf32>
    %193 = vector.broadcast %192 : vector<8x8x1xf32> to vector<8x8x8xf32>
    %194 = arith.divf %190, %193 : vector<8x8x8xf32>
    %195 = arith.truncf %194 : vector<8x8x8xf32> to vector<8x8x8xbf16>
    %196 = vector.extract_strided_slice %162 {offsets = [0, 0, 32], sizes = [8, 8, 32], strides = [1, 1, 1]} : vector<8x8x128xbf16> to vector<8x8x32xbf16>
    "tpu.trace_start"() <{level = 10 : i32, message = "nfg,ngd->nfd"}> : () -> ()
    %cst_61 = arith.constant dense<0.000000e+00> : vector<8x8x32xf32>
    %197 = tpu.matmul %195, %196, %cst_61 {dimension_numbers = #tpu.dot_dimension_numbers<[2], [1], [1], [2], [0, 0, 0, 1, 1, 2], [0], [0]>} : vector<8x8x8xbf16>, vector<8x8x32xbf16>, vector<8x8x32xf32> -> vector<8x8x32xf32>
    "tpu.trace_stop"() : () -> ()
    %198 = arith.truncf %197 : vector<8x8x32xf32> to vector<8x8x32xbf16>
    %199 = vector.extract_strided_slice %156 {offsets = [0, 0, 64], sizes = [8, 8, 32], strides = [1, 1, 1]} : vector<8x8x128xbf16> to vector<8x8x32xbf16>
    %200 = vector.extract_strided_slice %159 {offsets = [0, 0, 64], sizes = [8, 8, 32], strides = [1, 1, 1]} : vector<8x8x128xbf16> to vector<8x8x32xbf16>
    "tpu.trace_start"() <{level = 10 : i32, message = "nfd,ngd->nfg"}> : () -> ()
    %cst_62 = arith.constant dense<0.000000e+00> : vector<8x8x8xf32>
    %201 = tpu.matmul %199, %200, %cst_62 {dimension_numbers = #tpu.dot_dimension_numbers<[2], [2], [1], [1], [0, 0, 0, 1, 1, 1], [0], [0]>} : vector<8x8x32xbf16>, vector<8x8x32xbf16>, vector<8x8x8xf32> -> vector<8x8x8xf32>
    "tpu.trace_stop"() : () -> ()
    %cst_63 = arith.constant 0.176776692 : f32
    %202 = vector.broadcast %cst_63 : f32 to vector<8x8x8xf32>
    %203 = arith.mulf %201, %202 : vector<8x8x8xf32>
    %cst_64 = arith.constant dense<0xFF800000> : vector<8x8xf32>
    %204 = vector.multi_reduction <maximumf>, %203, %cst_64 [2] : vector<8x8x8xf32> to vector<8x8xf32>
    %205 = vector.shape_cast %204 : vector<8x8xf32> to vector<8x8x1xf32>
    %206 = vector.broadcast %205 : vector<8x8x1xf32> to vector<8x8x8xf32>
    %207 = arith.subf %203, %206 : vector<8x8x8xf32>
    %208 = math.exp %207 : vector<8x8x8xf32>
    %cst_65 = arith.constant dense<0.000000e+00> : vector<8x8xf32>
    %209 = vector.multi_reduction <add>, %208, %cst_65 [2] : vector<8x8x8xf32> to vector<8x8xf32>
    %210 = vector.shape_cast %209 : vector<8x8xf32> to vector<8x8x1xf32>
    %211 = vector.broadcast %210 : vector<8x8x1xf32> to vector<8x8x8xf32>
    %212 = arith.divf %208, %211 : vector<8x8x8xf32>
    %213 = arith.truncf %212 : vector<8x8x8xf32> to vector<8x8x8xbf16>
    %214 = vector.extract_strided_slice %162 {offsets = [0, 0, 64], sizes = [8, 8, 32], strides = [1, 1, 1]} : vector<8x8x128xbf16> to vector<8x8x32xbf16>
    "tpu.trace_start"() <{level = 10 : i32, message = "nfg,ngd->nfd"}> : () -> ()
    %cst_66 = arith.constant dense<0.000000e+00> : vector<8x8x32xf32>
    %215 = tpu.matmul %213, %214, %cst_66 {dimension_numbers = #tpu.dot_dimension_numbers<[2], [1], [1], [2], [0, 0, 0, 1, 1, 2], [0], [0]>} : vector<8x8x8xbf16>, vector<8x8x32xbf16>, vector<8x8x32xf32> -> vector<8x8x32xf32>
    "tpu.trace_stop"() : () -> ()
    %216 = arith.truncf %215 : vector<8x8x32xf32> to vector<8x8x32xbf16>
    %217 = vector.extract_strided_slice %156 {offsets = [0, 0, 96], sizes = [8, 8, 32], strides = [1, 1, 1]} : vector<8x8x128xbf16> to vector<8x8x32xbf16>
    %218 = vector.extract_strided_slice %159 {offsets = [0, 0, 96], sizes = [8, 8, 32], strides = [1, 1, 1]} : vector<8x8x128xbf16> to vector<8x8x32xbf16>
    "tpu.trace_start"() <{level = 10 : i32, message = "nfd,ngd->nfg"}> : () -> ()
    %cst_67 = arith.constant dense<0.000000e+00> : vector<8x8x8xf32>
    %219 = tpu.matmul %217, %218, %cst_67 {dimension_numbers = #tpu.dot_dimension_numbers<[2], [2], [1], [1], [0, 0, 0, 1, 1, 1], [0], [0]>} : vector<8x8x32xbf16>, vector<8x8x32xbf16>, vector<8x8x8xf32> -> vector<8x8x8xf32>
    "tpu.trace_stop"() : () -> ()
    %cst_68 = arith.constant 0.176776692 : f32
    %220 = vector.broadcast %cst_68 : f32 to vector<8x8x8xf32>
    %221 = arith.mulf %219, %220 : vector<8x8x8xf32>
    %cst_69 = arith.constant dense<0xFF800000> : vector<8x8xf32>
    %222 = vector.multi_reduction <maximumf>, %221, %cst_69 [2] : vector<8x8x8xf32> to vector<8x8xf32>
    %223 = vector.shape_cast %222 : vector<8x8xf32> to vector<8x8x1xf32>
    %224 = vector.broadcast %223 : vector<8x8x1xf32> to vector<8x8x8xf32>
    %225 = arith.subf %221, %224 : vector<8x8x8xf32>
    %226 = math.exp %225 : vector<8x8x8xf32>
    %cst_70 = arith.constant dense<0.000000e+00> : vector<8x8xf32>
    %227 = vector.multi_reduction <add>, %226, %cst_70 [2] : vector<8x8x8xf32> to vector<8x8xf32>
    %228 = vector.shape_cast %227 : vector<8x8xf32> to vector<8x8x1xf32>
    %229 = vector.broadcast %228 : vector<8x8x1xf32> to vector<8x8x8xf32>
    %230 = arith.divf %226, %229 : vector<8x8x8xf32>
    %231 = arith.truncf %230 : vector<8x8x8xf32> to vector<8x8x8xbf16>
    %232 = vector.extract_strided_slice %162 {offsets = [0, 0, 96], sizes = [8, 8, 32], strides = [1, 1, 1]} : vector<8x8x128xbf16> to vector<8x8x32xbf16>
    "tpu.trace_start"() <{level = 10 : i32, message = "nfg,ngd->nfd"}> : () -> ()
    %cst_71 = arith.constant dense<0.000000e+00> : vector<8x8x32xf32>
    %233 = tpu.matmul %231, %232, %cst_71 {dimension_numbers = #tpu.dot_dimension_numbers<[2], [1], [1], [2], [0, 0, 0, 1, 1, 2], [0], [0]>} : vector<8x8x8xbf16>, vector<8x8x32xbf16>, vector<8x8x32xf32> -> vector<8x8x32xf32>
    "tpu.trace_stop"() : () -> ()
    %234 = arith.truncf %233 : vector<8x8x32xf32> to vector<8x8x32xbf16>
    %235 = tpu.concatenate %180, %198, %216, %234 in 2 : vector<8x8x32xbf16>, vector<8x8x32xbf16>, vector<8x8x32xbf16>, vector<8x8x32xbf16> -> vector<8x8x128xbf16>
    %236 = vector.shape_cast %235 : vector<8x8x128xbf16> to vector<64x128xbf16>
    %c0_72 = arith.constant 0 : index
    %c0_73 = arith.constant 0 : index
    %237 = vector.load %arg11[%c0_72, %c0_73] : memref<128x128xbf16, #tpu.memory_space<vmem>>, vector<128x128xbf16>
    %cst_74 = arith.constant dense<0.000000e+00> : vector<64x128xf32>
    %238 = tpu.matmul %236, %237, %cst_74 {dimension_numbers = #tpu.dot_dimension_numbers<[1], [0], [0], [1], [0, 0, 1, 1], [], []>} : vector<64x128xbf16>, vector<128x128xbf16>, vector<64x128xf32> -> vector<64x128xf32>
    %c0_75 = arith.constant 0 : index
    %c0_76 = arith.constant 0 : index
    %239 = vector.load %arg12[%c0_75, %c0_76] : memref<1x128xf32, #tpu.memory_space<vmem>>, vector<1x128xf32>
    %240 = vector.broadcast %239 : vector<1x128xf32> to vector<64x128xf32>
    %241 = arith.addf %238, %240 : vector<64x128xf32>
    %242 = vector.shape_cast %241 : vector<64x128xf32> to vector<8x8x128xf32>
    %243 = arith.addf %123, %242 : vector<8x8x128xf32>
    %cst_77 = arith.constant dense<0.000000e+00> : vector<8x8xf32>
    %244 = vector.multi_reduction <add>, %243, %cst_77 [2] : vector<8x8x128xf32> to vector<8x8xf32>
    %245 = vector.shape_cast %244 : vector<8x8xf32> to vector<8x8x1xf32>
    %cst_78 = arith.constant 1.280000e+02 : f32
    %246 = vector.broadcast %cst_78 : f32 to vector<8x8x1xf32>
    %247 = arith.divf %245, %246 : vector<8x8x1xf32>
    %248 = vector.broadcast %247 : vector<8x8x1xf32> to vector<8x8x128xf32>
    %249 = arith.subf %243, %248 : vector<8x8x128xf32>
    %250 = arith.mulf %249, %249 : vector<8x8x128xf32>
    %cst_79 = arith.constant dense<0.000000e+00> : vector<8x8xf32>
    %251 = vector.multi_reduction <add>, %250, %cst_79 [2] : vector<8x8x128xf32> to vector<8x8xf32>
    %252 = vector.shape_cast %251 : vector<8x8xf32> to vector<8x8x1xf32>
    %cst_80 = arith.constant 1.280000e+02 : f32
    %253 = vector.broadcast %cst_80 : f32 to vector<8x8x1xf32>
    %254 = arith.divf %252, %253 : vector<8x8x1xf32>
    %cst_81 = arith.constant 9.99999974E-6 : f32
    %255 = vector.broadcast %cst_81 : f32 to vector<8x8x1xf32>
    %256 = arith.addf %254, %255 : vector<8x8x1xf32>
    %257 = math.rsqrt %256 : vector<8x8x1xf32>
    %258 = vector.broadcast %257 : vector<8x8x1xf32> to vector<8x8x128xf32>
    %259 = arith.mulf %249, %258 : vector<8x8x128xf32>
    %c0_82 = arith.constant 0 : index
    %c0_83 = arith.constant 0 : index
    %260 = vector.load %arg13[%c0_82, %c0_83] : memref<1x128xf32, #tpu.memory_space<vmem>>, vector<1x128xf32>
    %261 = vector.shape_cast %260 : vector<1x128xf32> to vector<1x1x128xf32>
    %262 = vector.broadcast %261 : vector<1x1x128xf32> to vector<8x8x128xf32>
    %263 = arith.mulf %259, %262 : vector<8x8x128xf32>
    %c0_84 = arith.constant 0 : index
    %c0_85 = arith.constant 0 : index
    %264 = vector.load %arg14[%c0_84, %c0_85] : memref<1x128xf32, #tpu.memory_space<vmem>>, vector<1x128xf32>
    %265 = vector.shape_cast %264 : vector<1x128xf32> to vector<1x1x128xf32>
    %266 = vector.broadcast %265 : vector<1x1x128xf32> to vector<8x8x128xf32>
    %267 = arith.addf %263, %266 : vector<8x8x128xf32>
    %268 = vector.shape_cast %267 : vector<8x8x128xf32> to vector<64x128xf32>
    %269 = arith.truncf %268 : vector<64x128xf32> to vector<64x128xbf16>
    %cst_86 = arith.constant 0.000000e+00 : f32
    %270 = vector.broadcast %cst_86 : f32 to vector<64x128xf32>
    %c0_87 = arith.constant 0 : index
    %c0_88 = arith.constant 0 : index
    %271 = vector.load %arg15[%c0_87, %c0_88] : memref<128x1024xbf16, #tpu.memory_space<vmem>>, vector<128x512xbf16>
    %cst_89 = arith.constant dense<0.000000e+00> : vector<64x512xf32>
    %272 = tpu.matmul %269, %271, %cst_89 {dimension_numbers = #tpu.dot_dimension_numbers<[1], [0], [0], [1], [0, 0, 1, 1], [], []>} : vector<64x128xbf16>, vector<128x512xbf16>, vector<64x512xf32> -> vector<64x512xf32>
    %c0_90 = arith.constant 0 : index
    %c0_91 = arith.constant 0 : index
    %273 = vector.load %arg16[%c0_90, %c0_91] : memref<1x1024xf32, #tpu.memory_space<vmem>>, vector<1x512xf32>
    %274 = vector.broadcast %273 : vector<1x512xf32> to vector<64x512xf32>
    %275 = arith.addf %272, %274 : vector<64x512xf32>
    %c0_92 = arith.constant 0 : index
    %c512 = arith.constant 512 : index
    %276 = vector.load %arg15[%c0_92, %c512] : memref<128x1024xbf16, #tpu.memory_space<vmem>>, vector<128x512xbf16>
    %cst_93 = arith.constant dense<0.000000e+00> : vector<64x512xf32>
    %277 = tpu.matmul %269, %276, %cst_93 {dimension_numbers = #tpu.dot_dimension_numbers<[1], [0], [0], [1], [0, 0, 1, 1], [], []>} : vector<64x128xbf16>, vector<128x512xbf16>, vector<64x512xf32> -> vector<64x512xf32>
    %c0_94 = arith.constant 0 : index
    %c512_95 = arith.constant 512 : index
    %278 = vector.load %arg16[%c0_94, %c512_95] : memref<1x1024xf32, #tpu.memory_space<vmem>>, vector<1x512xf32>
    %279 = vector.broadcast %278 : vector<1x512xf32> to vector<64x512xf32>
    %280 = arith.addf %277, %279 : vector<64x512xf32>
    %281 = arith.mulf %280, %280 : vector<64x512xf32>
    %282 = arith.mulf %280, %281 : vector<64x512xf32>
    %cst_96 = arith.constant 4.471500e-02 : f32
    %283 = vector.broadcast %cst_96 : f32 to vector<64x512xf32>
    %284 = arith.mulf %283, %282 : vector<64x512xf32>
    %285 = arith.addf %280, %284 : vector<64x512xf32>
    %cst_97 = arith.constant 0.797884583 : f32
    %286 = vector.broadcast %cst_97 : f32 to vector<64x512xf32>
    %287 = arith.mulf %286, %285 : vector<64x512xf32>
    %288 = math.tanh %287 : vector<64x512xf32>
    %cst_98 = arith.constant 1.000000e+00 : f32
    %289 = vector.broadcast %cst_98 : f32 to vector<64x512xf32>
    %290 = arith.addf %289, %288 : vector<64x512xf32>
    %cst_99 = arith.constant 5.000000e-01 : f32
    %291 = vector.broadcast %cst_99 : f32 to vector<64x512xf32>
    %292 = arith.mulf %291, %290 : vector<64x512xf32>
    %293 = arith.mulf %280, %292 : vector<64x512xf32>
    %294 = arith.mulf %275, %293 : vector<64x512xf32>
    %295 = arith.truncf %294 : vector<64x512xf32> to vector<64x512xbf16>
    %c0_100 = arith.constant 0 : index
    %c0_101 = arith.constant 0 : index
    %296 = vector.load %arg17[%c0_100, %c0_101] : memref<512x128xbf16, #tpu.memory_space<vmem>>, vector<512x128xbf16>
    %cst_102 = arith.constant dense<0.000000e+00> : vector<64x128xf32>
    %297 = tpu.matmul %295, %296, %cst_102 {dimension_numbers = #tpu.dot_dimension_numbers<[1], [0], [0], [1], [0, 0, 1, 1], [], []>} : vector<64x512xbf16>, vector<512x128xbf16>, vector<64x128xf32> -> vector<64x128xf32>
    %298 = arith.addf %270, %297 : vector<64x128xf32>
    %c0_103 = arith.constant 0 : index
    %c0_104 = arith.constant 0 : index
    %299 = vector.load %arg18[%c0_103, %c0_104] : memref<1x128xf32, #tpu.memory_space<vmem>>, vector<1x128xf32>
    %300 = vector.broadcast %299 : vector<1x128xf32> to vector<64x128xf32>
    %301 = arith.addf %298, %300 : vector<64x128xf32>
    %302 = vector.shape_cast %301 : vector<64x128xf32> to vector<8x8x128xf32>
    %303 = arith.addf %243, %302 : vector<8x8x128xf32>
    %304 = arith.truncf %303 : vector<8x8x128xf32> to vector<8x8x128xbf16>
    %c0_105 = arith.constant 0 : index
    %c0_106 = arith.constant 0 : index
    %c0_107 = arith.constant 0 : index
    %305 = vector.load %arg19[%c0_105, %c0_106, %c0_107] : memref<8x8x128xbf16, #tpu.memory_space<vmem>>, vector<8x8x128xbf16>
    tpu.vector_store %arg19[%c0_105, %c0_106, %c0_107], %304 {strides = array<i32>} : memref<8x8x128xbf16, #tpu.memory_space<vmem>>, vector<8x8x128xbf16>,
    return
  }
  func.func @transform_0(%arg0: i32) -> (i32, i32, i32) {
    %c0_i32 = arith.constant 0 : i32
    %c0_i32_0 = arith.constant 0 : i32
    %c0_i32_1 = arith.constant 0 : i32
    return %arg0, %c0_i32, %c0_i32_0 : i32, i32, i32
  }
  func.func @transform_1(%arg0: i32) -> (i32, i32) {
    %c0_i32 = arith.constant 0 : i32
    %c0_i32_0 = arith.constant 0 : i32
    %c0_i32_1 = arith.constant 0 : i32
    return %c0_i32, %c0_i32_0 : i32, i32
  }
  func.func @transform_2(%arg0: i32) -> (i32, i32) {
    %c0_i32 = arith.constant 0 : i32
    %c0_i32_0 = arith.constant 0 : i32
    %c0_i32_1 = arith.constant 0 : i32
    return %c0_i32, %c0_i32_0 : i32, i32
  }
  func.func @transform_3(%arg0: i32) -> (i32, i32) {
    %c0_i32 = arith.constant 0 : i32
    %c0_i32_0 = arith.constant 0 : i32
    %c0_i32_1 = arith.constant 0 : i32
    return %c0_i32, %c0_i32_0 : i32, i32
  }
  func.func @transform_4(%arg0: i32) -> (i32, i32) {
    %c0_i32 = arith.constant 0 : i32
    %c0_i32_0 = arith.constant 0 : i32
    %c0_i32_1 = arith.constant 0 : i32
    return %c0_i32, %c0_i32_0 : i32, i32
  }
  func.func @transform_5(%arg0: i32) -> (i32, i32) {
    %c0_i32 = arith.constant 0 : i32
    %c0_i32_0 = arith.constant 0 : i32
    %c0_i32_1 = arith.constant 0 : i32
    return %c0_i32, %c0_i32_0 : i32, i32
  }
  func.func @transform_6(%arg0: i32) -> (i32, i32) {
    %c0_i32 = arith.constant 0 : i32
    %c0_i32_0 = arith.constant 0 : i32
    %c0_i32_1 = arith.constant 0 : i32
    return %c0_i32, %c0_i32_0 : i32, i32
  }
  func.func @transform_7(%arg0: i32) -> (i32, i32) {
    %c0_i32 = arith.constant 0 : i32
    %c0_i32_0 = arith.constant 0 : i32
    %c0_i32_1 = arith.constant 0 : i32
    return %c0_i32, %c0_i32_0 : i32, i32
  }
  func.func @transform_8(%arg0: i32) -> (i32, i32) {
    %c0_i32 = arith.constant 0 : i32
    %c0_i32_0 = arith.constant 0 : i32
    %c0_i32_1 = arith.constant 0 : i32
    return %c0_i32, %c0_i32_0 : i32, i32
  }
  func.func @transform_9(%arg0: i32) -> (i32, i32) {
    %c0_i32 = arith.constant 0 : i32
    %c0_i32_0 = arith.constant 0 : i32
    %c0_i32_1 = arith.constant 0 : i32
    return %c0_i32, %c0_i32_0 : i32, i32
  }
  func.func @transform_10(%arg0: i32) -> (i32, i32) {
    %c0_i32 = arith.constant 0 : i32
    %c0_i32_0 = arith.constant 0 : i32
    %c0_i32_1 = arith.constant 0 : i32
    return %c0_i32, %c0_i32_0 : i32, i32
  }
  func.func @transform_11(%arg0: i32) -> (i32, i32) {
    %c0_i32 = arith.constant 0 : i32
    %c0_i32_0 = arith.constant 0 : i32
    %c0_i32_1 = arith.constant 0 : i32
    return %c0_i32, %c0_i32_0 : i32, i32
  }
  func.func @transform_12(%arg0: i32) -> (i32, i32) {
    %c0_i32 = arith.constant 0 : i32
    %c0_i32_0 = arith.constant 0 : i32
    %c0_i32_1 = arith.constant 0 : i32
    return %c0_i32, %c0_i32_0 : i32, i32
  }
  func.func @transform_13(%arg0: i32) -> (i32, i32) {
    %c0_i32 = arith.constant 0 : i32
    %c0_i32_0 = arith.constant 0 : i32
    %c0_i32_1 = arith.constant 0 : i32
    return %c0_i32, %c0_i32_0 : i32, i32
  }
  func.func @transform_14(%arg0: i32) -> (i32, i32) {
    %c0_i32 = arith.constant 0 : i32
    %c0_i32_0 = arith.constant 0 : i32
    %c0_i32_1 = arith.constant 0 : i32
    return %c0_i32, %c0_i32_0 : i32, i32
  }
  func.func @transform_15(%arg0: i32) -> (i32, i32) {
    %c0_i32 = arith.constant 0 : i32
    %c0_i32_0 = arith.constant 0 : i32
    %c0_i32_1 = arith.constant 0 : i32
    return %c0_i32, %c0_i32_0 : i32, i32
  }
  func.func @transform_16(%arg0: i32) -> (i32, i32) {
    %c0_i32 = arith.constant 0 : i32
    %c0_i32_0 = arith.constant 0 : i32
    %c0_i32_1 = arith.constant 0 : i32
    return %c0_i32, %c0_i32_0 : i32, i32
  }
  func.func @transform_17(%arg0: i32) -> (i32, i32) {
    %c0_i32 = arith.constant 0 : i32
    %c0_i32_0 = arith.constant 0 : i32
    %c0_i32_1 = arith.constant 0 : i32
    return %c0_i32, %c0_i32_0 : i32, i32
  }
  func.func @transform_18(%arg0: i32) -> (i32, i32, i32) {
    %c0_i32 = arith.constant 0 : i32
    %c0_i32_0 = arith.constant 0 : i32
    %c0_i32_1 = arith.constant 0 : i32
    return %arg0, %c0_i32, %c0_i32_0 : i32, i32, i32
  }
}

</mosaic_0001>

<bundles_post_ra>
// kernel: tpu_custom_call.1
= control target key start
LH: loop header
LB: loop body
LE: loop exit
PB: predicated region body
PF: predicated region fallthrough
CT: control target
= control target key end

     0   :  { %s17001_s0 = inlined_call_operand.hbm [shape: bf16[32,8,128], index: 0, kind: input, shape index: {}]   ;;  %s17002_s1 = inlined_call_operand.hbm [shape: f32[8,128], index: 1, kind: input, shape index: {}]   ;;  %s17003_s2 = inlined_call_operand.vmem [shape: f32[1,128], index: 2, kind: input, shape index: {}]   ;;  %s17004_s3 = inlined_call_operand.vmem [shape: f32[1,128], index: 3, kind: input, shape index: {}]   ;;  %s17005_s4 = inlined_call_operand.hbm [shape: bf16[128,384], index: 4, kind: input, shape index: {}]   ;;  %s17006_s5 = inlined_call_operand.hbm [shape: bf16[128,128], index: 5, kind: input, shape index: {}]   ;;  %s17007_s6 = inlined_call_operand.vmem [shape: f32[1,128], index: 6, kind: input, shape index: {}]   ;;  %s17008_s7 = inlined_call_operand.vmem [shape: f32[1,128], index: 7, kind: input, shape index: {}]   ;;  %s17009_s8 = inlined_call_operand.vmem [shape: f32[1,128], index: 8, kind: input, shape index: {}]   ;;  %s17010_s9 = inlined_call_operand.hbm [shape: bf16[128,384], index: 9, kind: input, shape index: {}]   ;;  %s17011_s10 = inlined_call_operand.hbm [shape: bf16[128,128], index: 10, kind: input, shape index: {}]   ;;  %s17012_s11 = inlined_call_operand.vmem [shape: f32[1,128], index: 11, kind: input, shape index: {}]   ;;  %s17013_s12 = inlined_call_operand.vmem [shape: f32[1,128], index: 12, kind: input, shape index: {}]   ;;  %s17014_s13 = inlined_call_operand.vmem [shape: f32[1,128], index: 13, kind: input, shape index: {}]   ;;  %s17015_s14 = inlined_call_operand.hbm [shape: bf16[128,1024], index: 14, kind: input, shape index: {}]   ;;  %s17016_s15 = inlined_call_operand.vmem [shape: f32[1,1024], index: 15, kind: input, shape index: {}]   ;;  %s17017_s16 = inlined_call_operand.hbm [shape: bf16[512,128], index: 16, kind: input, shape index: {}]   ;;  %s17018_s17 = inlined_call_operand.vmem [shape: f32[1,128], index: 17, kind: input, shape index: {}]   ;;  %s17019_s18 = inlined_call_operand.hbm [shape: bf16[32,8,128], index: 18, kind: output, shape index: {}]  }
   0x1   :  { %17067 = sst [smem:[#allocation59_spill]] %s17001_s0 }
   0x2   :  { %17068 = sst [smem:[#allocation60_spill]] %s17002_s1 }
   0x3   :  { %17069 = sst [smem:[#allocation61_spill]] %s17003_s2 }
   0x4   :  { %17070 = sst [smem:[#allocation62_spill]] %s17005_s4 }
   0x5   :  { %17071 = sst [smem:[#allocation63_spill]] %s17006_s5 }
   0x6   :  { %17072 = sst [smem:[#allocation64_spill]] %s17010_s9 }
   0x7   :  { %17073 = sst [smem:[#allocation65_spill]] %s17011_s10 }
   0x8   :  { %17074 = sst [smem:[#allocation66_spill]] %s17012_s11 }
   0x9   :  { %17075 = sst [smem:[#allocation67_spill]] %s17013_s12 }
   0xa   :  { %17076 = sst [smem:[#allocation68_spill]] %s17014_s13 }
   0xb   :  { %17077 = sst [smem:[#allocation69_spill]] %s17016_s15 }
   0xc   :  { %17078 = sst [smem:[#allocation70_spill]] %s17018_s17 }
   0xd   :  { %17079 = sst [smem:[#allocation71_spill]] %s17019_s18 }
   0xe   :  { %23 = vsyncpa [#allocation3], 0 }
   0xf   :  { %25 = vsyncpa [#allocation3 + $0x1], 0 }
  0x10   :  { %26 = vsyncpa [#allocation6], 0 }
  0x11   :  { %27 = vsyncpa [#allocation9], 0 }
  0x12   :  { %28 = vsyncpa [#allocation12], 0 }
  0x13   :  { %29 = vsyncpa [#allocation15], 0 }
  0x14   :  { %30 = vsyncpa [#allocation4], 0 }
  0x15   :  { %32 = vsyncpa [#allocation4 + $0x1], 0  ;;  %s13764_s27 = smov 0   ;;  %s13766_s28 = smov 0  }
  0x16   :  { %s13768_s29 = smov 0   ;;  %s13770_s30 = smov 0  }
  0x17 LB: > { %s13647_s0 = smov [#allocation5]   ;;  %s13785_s1 = sadd.s32 4294967295, %s13645_s30   ;;  %s13645_s30 = sphi %s13770_s30, %s17222_s30   ;;  %s13641_s29 = sphi %s13768_s29, %s17221_s29   ;;  %s13637_s28 = sphi %s13766_s28, %s17220_s28   ;;  %s13633_s27 = sphi %s13764_s27, %s17219_s27  }
  0x18   : > { %s465_s19 = sshll.u32 %s13647_s0, 4  ;;  %p11086_p0 = scmp.ge.s32.totalorder %s13645_s30, 1  ;;  %s466_s19 = int_to_ptr.vmem [resolvable:$true] %s465_s19 }
  0x19   : > { %p17024_p1 = scmp.eq.s32.totalorder %s13785_s1, 0  ;;  %p452_p2 = scmp.lt.s32.totalorder %s13645_s30, 5 }
  0x1a   : > { %s13648_s21 = smov [#allocation8]   ;;  %s13649_s23 = smov [#allocation11]  }
  0x1b   : > { %p13790_p3 = pnand %p11086_p0, %p452_p2  ;;  %s494_s22 = sshll.u32 %s13648_s21, 4  ;;  %s13796_s22 = int_to_ptr.vmem [resolvable:$true] %s494_s22 }
  0x1c   : > { %s529_s24 = sshll.u32 %s13649_s23, 4  ;;  %s17082_s0 = sld [smem:[#allocation60_spill]]  ;;  %s13804_s24 = int_to_ptr.vmem [resolvable:$true] %s529_s24 }
  0x1d   : > { %s17080_s20 = scalar_select %p13790_p3, 1, 0 }
  0x1e   : > { %p12758_p4 = pneg %p13790_p3 }
  0x20   : > { %p13800_p5 = pnand %p12758_p4, %p17024_p1 }
  0x22   : > { %s13337_s18 = scalar_lea.hbm %s17082_s0, 128  ;;  %p13814_p7 = pneg %p13800_p5 }
  0x23   : > { %p13338_p6 = scmp.ne.s32.totalorder %s17082_s0, %s13337_s18  ;;  %p13344_p10 = scmp.lt.u32.totalorder %s13337_s18, %s17082_s0 }
  0x25   : > { %p13340_p8 = pnand %p13814_p7, %p13338_p6 }
  0x27   : > { %p13341_p9 = pneg %p13340_p8 }
  0x29   : > { %p13346_p11 = pnand %p13344_p10, %p13341_p9 }
  0x2b   : > { %13349 = shalt.err (!%p13346_p11)
}
  0x2c   : > { %s13350_s25 = scalar_lea.vmem %s466_s19, 128  ;;  %p13358_p2 = scmp.lt.s32.totalorder %s466_s19, %s466_s19 }
  0x2d   : > { %p13351_p12 = scmp.ne.s32.totalorder %s466_s19, %s13350_s25  ;;  %p13359_p4 = scmp.lt.s32.totalorder %s13350_s25, %s13350_s25 }
  0x2f   : > { %p13353_p13 = pnand %p13351_p12, %p13814_p7  ;;  %p13360_p1 = por %p13359_p4, %p13358_p2 }
  0x31   : > { %p13354_p0 = pneg %p13353_p13 }
  0x33   : > { %p13361_p3 = pnand %p13360_p1, %p13354_p0 }
  0x35   : > { %13364 = shalt.err (!%p13361_p3)
}
  0x36   : > { %12761 = dma.hbm_to_vmem [thread:$0]  (!%p13800_p5), %s17082_s0, 128, %s466_s19, [#allocation6]  }
  0x37   : > { %s17084_s5 = sld [smem:[#allocation63_spill]] }
  0x3d   : > { %s13365_s26 = scalar_lea.hbm %s17084_s5, 1024 }
  0x3e   : > { %p13366_p6 = scmp.ne.s32.totalorder %s17084_s5, %s13365_s26  ;;  %p13372_p1 = scmp.lt.u32.totalorder %s13365_s26, %s17084_s5 }
  0x40   : > { %p13368_p8 = pnand %p13366_p6, %p13814_p7 }
  0x42   : > { %p13369_p9 = pneg %p13368_p8 }
  0x44   : > { %p13374_p3 = pnand %p13372_p1, %p13369_p9 }
  0x46   : > { %13377 = shalt.err (!%p13374_p3)
}
  0x47   : > { %s13378_s19 = scalar_lea.vmem %s13796_s22, 1024  ;;  %p13386_p13 = scmp.lt.s32.totalorder %s13796_s22, %s13796_s22 }
  0x48   : > { %p13379_p10 = scmp.ne.s32.totalorder %s13796_s22, %s13378_s19  ;;  %p13387_p0 = scmp.lt.s32.totalorder %s13378_s19, %s13378_s19 }
  0x4a   : > { %p13381_p11 = pnand %p13379_p10, %p13814_p7  ;;  %p13388_p2 = por %p13387_p0, %p13386_p13 }
  0x4c   : > { %p13382_p12 = pneg %p13381_p11 }
  0x4e   : > { %p13389_p4 = pnand %p13388_p2, %p13382_p12 }
  0x50   : > { %13392 = shalt.err (!%p13389_p4)
}
  0x51   : > { %s17027_s12 = smov 64   ;;  %s17029_s11 = smov 4  }
  0x52   : > { %12767 = dma.hbm_to_vmem [thread:$0]  (!%p13800_p5), %s17084_s5, 1024, %s13796_s22, [#allocation9], %s17027_s12, %s17027_s12, %s17029_s11  }
  0x53   : > { %s17085_s10 = sld [smem:[#allocation65_spill]] }
  0x59   : > { %s13393_s26 = scalar_lea.hbm %s17085_s10, 1024 }
  0x5a   : > { %p13394_p6 = scmp.ne.s32.totalorder %s17085_s10, %s13393_s26  ;;  %p13400_p1 = scmp.lt.u32.totalorder %s13393_s26, %s17085_s10 }
  0x5c   : > { %p13396_p8 = pnand %p13394_p6, %p13814_p7 }
  0x5e   : > { %p13397_p9 = pneg %p13396_p8 }
  0x60   : > { %p13402_p3 = pnand %p13400_p1, %p13397_p9 }
  0x62   : > { %13405 = shalt.err (!%p13402_p3)
}
  0x63   : > { %s13406_s22 = scalar_lea.vmem %s13804_s24, 1024  ;;  %p13414_p13 = scmp.lt.s32.totalorder %s13804_s24, %s13804_s24 }
  0x64   : > { %p13407_p10 = scmp.ne.s32.totalorder %s13804_s24, %s13406_s22  ;;  %p13415_p0 = scmp.lt.s32.totalorder %s13406_s22, %s13406_s22 }
  0x66   : > { %p13409_p11 = pnand %p13407_p10, %p13814_p7  ;;  %p13416_p2 = por %p13415_p0, %p13414_p13 }
  0x68   : > { %p13410_p12 = pneg %p13409_p11 }
  0x6a   : > { %p13417_p4 = pnand %p13416_p2, %p13410_p12 }
  0x6c   : > { %13420 = shalt.err (!%p13417_p4)
}
  0x6d   : > { %12773 = dma.hbm_to_vmem [thread:$0]  (!%p13800_p5), %s17085_s10, 1024, %s13804_s24, [#allocation12], %s17027_s12, %s17027_s12, %s17029_s11  }
  0x6e   : > { %s13652_s17 = smov [#allocation7]   ;;  %s17086_s4 = sld [smem:[#allocation62_spill]] }
  0x6f   : > { %s481_s13 = sshll.u32 %s13652_s17, 4  ;;  %s482_s13 = int_to_ptr.vmem [resolvable:$true] %s481_s13 }
  0x74   : > { %s13421_s23 = scalar_lea.hbm %s17086_s4, 3072 }
  0x75   : > { %p13422_p6 = scmp.ne.s32.totalorder %s17086_s4, %s13421_s23  ;;  %p13428_p1 = scmp.lt.u32.totalorder %s13421_s23, %s17086_s4 }
  0x77   : > { %p13424_p8 = pnand %p13422_p6, %p13814_p7 }
  0x79   : > { %p13425_p9 = pneg %p13424_p8 }
  0x7b   : > { %p13430_p3 = pnand %p13428_p1, %p13425_p9 }
  0x7d   : > { %13433 = shalt.err (!%p13430_p3)
}
  0x7e   : > { %s13434_s24 = scalar_lea.vmem %s482_s13, 3072  ;;  %p13442_p13 = scmp.lt.s32.totalorder %s482_s13, %s482_s13 }
  0x7f   : > { %p13435_p10 = scmp.ne.s32.totalorder %s482_s13, %s13434_s24  ;;  %p13443_p0 = scmp.lt.s32.totalorder %s13434_s24, %s13434_s24 }
  0x81   : > { %p13437_p11 = pnand %p13435_p10, %p13814_p7  ;;  %p13444_p2 = por %p13443_p0, %p13442_p13 }
  0x83   : > { %p13438_p12 = pneg %p13437_p11 }
  0x85   : > { %p13445_p4 = pnand %p13444_p2, %p13438_p12 }
  0x87   : > { %13448 = shalt.err (!%p13445_p4)
}
  0x88   : > { %s13653_s0 = smov 192   ;;  %s13654_s15 = smov 12  }
  0x89   : > { %12764 = dma.hbm_to_vmem [thread:$0]  (!%p13800_p5), %s17086_s4, 3072, %s482_s13, [#allocation6], %s13653_s0, %s13653_s0, %s13654_s15  }
  0x8a   : > { %s13655_s18 = smov [#allocation10]   ;;  %s13656_s23 = smov [#allocation13]  }
  0x8b   : > { %s516_s26 = sshll.u32 %s13655_s18, 4  ;;  %s551_s25 = sshll.u32 %s13656_s23, 4  ;;  %s517_s26 = int_to_ptr.vmem [resolvable:$true] %s516_s26  ;;  %s13900_s25 = int_to_ptr.vmem [resolvable:$true] %s551_s25 }
  0x8c   : > { %s17087_s9 = sld [smem:[#allocation64_spill]] }
  0x92   : > { %s13449_s24 = scalar_lea.hbm %s17087_s9, 3072 }
  0x93   : > { %p13450_p6 = scmp.ne.s32.totalorder %s17087_s9, %s13449_s24  ;;  %p13456_p1 = scmp.lt.u32.totalorder %s13449_s24, %s17087_s9 }
  0x95   : > { %p13452_p8 = pnand %p13450_p6, %p13814_p7 }
  0x97   : > { %p13453_p9 = pneg %p13452_p8 }
  0x99   : > { %p13458_p3 = pnand %p13456_p1, %p13453_p9 }
  0x9b   : > { %13461 = shalt.err (!%p13458_p3)
}
  0x9c   : > { %s13462_s17 = scalar_lea.vmem %s517_s26, 3072  ;;  %p13470_p13 = scmp.lt.s32.totalorder %s517_s26, %s517_s26 }
  0x9d   : > { %p13463_p10 = scmp.ne.s32.totalorder %s517_s26, %s13462_s17  ;;  %p13471_p0 = scmp.lt.s32.totalorder %s13462_s17, %s13462_s17 }
  0x9f   : > { %p13465_p11 = pnand %p13463_p10, %p13814_p7  ;;  %p13472_p2 = por %p13471_p0, %p13470_p13 }
  0xa1   : > { %p13466_p12 = pneg %p13465_p11 }
  0xa3   : > { %p13473_p4 = pnand %p13472_p2, %p13466_p12 }
  0xa5   : > { %13476 = shalt.err (!%p13473_p4)
}
  0xa6   : > { %12770 = dma.hbm_to_vmem [thread:$0]  (!%p13800_p5), %s17087_s9, 3072, %s517_s26, [#allocation9], %s13653_s0, %s13653_s0, %s13654_s15  }
  0xa7   : > { %s13477_s19 = scalar_lea.hbm %s17015_s14, 8192 }
  0xa8   : > { %p13478_p6 = scmp.ne.s32.totalorder %s17015_s14, %s13477_s19  ;;  %p13484_p1 = scmp.lt.u32.totalorder %s13477_s19, %s17015_s14 }
  0xaa   : > { %p13480_p8 = pnand %p13478_p6, %p13814_p7 }
  0xac   : > { %p13481_p9 = pneg %p13480_p8 }
  0xae   : > { %p13486_p3 = pnand %p13484_p1, %p13481_p9 }
  0xb0   : > { %13489 = shalt.err (!%p13486_p3)
}
  0xb1   : > { %s13490_s0 = scalar_lea.vmem %s13900_s25, 8192  ;;  %p13498_p13 = scmp.lt.s32.totalorder %s13900_s25, %s13900_s25 }
  0xb2   : > { %p13491_p10 = scmp.ne.s32.totalorder %s13900_s25, %s13490_s0  ;;  %p13499_p0 = scmp.lt.s32.totalorder %s13490_s0, %s13490_s0 }
  0xb4   : > { %p13493_p11 = pnand %p13491_p10, %p13814_p7  ;;  %p13500_p2 = por %p13499_p0, %p13498_p13 }
  0xb6   : > { %p13494_p12 = pneg %p13493_p11 }
  0xb8   : > { %p13501_p4 = pnand %p13500_p2, %p13494_p12 }
  0xba   : > { %13504 = shalt.err (!%p13501_p4)
}
  0xbb   : > { %s13657_s15 = smov 512   ;;  %s13658_s26 = smov 32  }
  0xbc   : > { %12776 = dma.hbm_to_vmem [thread:$0]  (!%p13800_p5), %s17015_s14, 8192, %s13900_s25, [#allocation12], %s13657_s15, %s13657_s15, %s13658_s26  }
  0xbd   : > { %s13659_s11 = smov [#allocation14]   ;;  %s13505_s22 = scalar_lea.hbm %s17017_s16, 4096 }
  0xbe   : > { %s567_s18 = sshll.u32 %s13659_s11, 4  ;;  %p13506_p6 = scmp.ne.s32.totalorder %s17017_s16, %s13505_s22  ;;  %s568_s18 = int_to_ptr.vmem [resolvable:$true] %s567_s18 }
  0xbf   : > { %p13512_p1 = scmp.lt.u32.totalorder %s13505_s22, %s17017_s16 }
  0xc0   : > { %p13508_p8 = pnand %p13506_p6, %p13814_p7 }
  0xc2   : > { %p13509_p9 = pneg %p13508_p8 }
  0xc4   : > { %p13514_p3 = pnand %p13512_p1, %p13509_p9 }
  0xc6   : > { %13517 = shalt.err (!%p13514_p3)
}
  0xc7   : > { %s13518_s25 = scalar_lea.vmem %s568_s18, 4096  ;;  %p13526_p13 = scmp.lt.s32.totalorder %s568_s18, %s568_s18 }
  0xc8   : > { %p13519_p10 = scmp.ne.s32.totalorder %s568_s18, %s13518_s25  ;;  %p13527_p0 = scmp.lt.s32.totalorder %s13518_s25, %s13518_s25 }
  0xca   : > { %p13521_p11 = pnand %p13519_p10, %p13814_p7  ;;  %p13528_p2 = por %p13527_p0, %p13526_p13 }
  0xcc   : > { %p13522_p12 = pneg %p13521_p11 }
  0xce   : > { %p13529_p4 = pnand %p13528_p2, %p13522_p12 }
  0xd0   : > { %13532 = shalt.err (!%p13529_p4)
}
  0xd1   : > { %s17088_s15 = smov 4   ;;  %s17089_s26 = smov 64  }
  0xd2   : > { %12779 = dma.hbm_to_vmem [thread:$0]  (!%p13800_p5), %s17017_s16, 4096, %s568_s18, [#allocation15], %s17089_s26, %s17089_s26, %s17088_s15  }
  0xd3   : > { %s11085_s2 = sadd.s32 4294967294, %s13645_s30   ;;  %s13966_s21 = sadd.s32 1, %s13645_s30  }
  0xd4   : > { %s45_s11 = sadd.s32 1, %s13641_s29  ;;  %s42_s23 = ssub.s32 %s13645_s30, %s13966_s21 }
  0xd5   : > { %p52_p7 = scmp.ne.s32.totalorder %s13641_s29, %s13637_s28  ;;  %p43_p6 = scmp.eq.s32.totalorder %s42_s23, 0 }
  0xd6   : > { %p53_p8 = scmp.eq.s32.totalorder %s13645_s30, 0  ;;  %p58_p9 = scmp.ne.s32.totalorder %s13637_s28, %s13633_s27 }
  0xd7   : > { %p439_p1 = scmp.eq.s32.totalorder %s13785_s1, 3  ;;  %p17090_p10 = scmp.eq.s32.totalorder %s13785_s1, 0 }
  0xd8   : > { %s13978_s19 = scalar_select %p43_p6, %s13641_s29, %s45_s11  }
  0xd9   : > { %p54_p3 = por %p53_p8, %p52_p7  ;;  %p13982_p11 = por %p17090_p10, %p58_p9 }
  0xda   : > { %p13986_p5 = por %p439_p1, %p52_p7  ;;  %p445_p12 = scmp.eq.s32.totalorder %s11085_s2, 3 }
  0xdb   : > { %p12795_p13 = scmp.lt.s32.totalorder %s13645_s30, 4  ;;  %s584_s24 = sand.u32 1, %s13641_s29  }
  0xdc   : > { %s17092_s18 = scalar_select %p13986_p5, 1, 0 }
  0xdd   : > { %p13992_p0 = por %p445_p12, %p58_p9  ;;  %s11095_s13 = sshll.u32 %s584_s24, 5 }
  0xde   : > { %s11418_s0 = sshll.u32 %s13645_s30, 9  ;;  %s17094_s12 = sld [smem:[#allocation59_spill]] }
  0xdf   : > { %s17093_s5 = scalar_select %p13992_p0, 1, 0 }
  0xe0   : > { %s588_s23 = scalar_lea.vmem [#allocation2], %s11095_s13  ;;  %p14002_p2 = pnand %p12795_p13, %p54_p3 }
  0xe1   : > { %s595_s4 = sshll.u32 %s588_s23, 4  ;;  %s14008_s9 = scalar_lea.sflag [#allocation3], %s584_s24  ;;  %s14006_s4 = int_to_ptr.vmem [resolvable:$true] %s595_s4 }
  0xe2   : > { %p13535_p7 = pneg %p14002_p2 }
  0xe4   : > { %s14000_s11 = scalar_lea.hbm %s17094_s12, %s11418_s0  ;;  %s13538_s25 = scalar_lea.hbm %s17094_s12, 2048 }
  0xe5   : > { %s13533_s10 = scalar_lea.hbm %s14000_s11, 512  ;;  %p13539_p9 = scmp.lt.u32.totalorder %s14000_s11, %s17094_s12 }
  0xe6   : > { %p13534_p4 = scmp.ne.s32.totalorder %s14000_s11, %s13533_s10  ;;  %p13540_p1 = scmp.lt.u32.totalorder %s13538_s25, %s13533_s10 }
  0xe7   : > { %p13542_p10 = scmp.lt.u32.totalorder %s13533_s10, %s14000_s11 }
  0xe8   : > { %p13536_p6 = pnand %p13535_p7, %p13534_p4  ;;  %p13541_p3 = por %p13540_p1, %p13539_p9 }
  0xea   : > { %p13537_p8 = pneg %p13536_p6  ;;  %p13543_p12 = por %p13542_p10, %p13541_p3 }
  0xec   : > { %p13544_p13 = pnand %p13543_p12, %p13537_p8 }
  0xee   : > { %13547 = shalt.err (!%p13544_p13)
}
  0xef   : > { %s13548_s24 = scalar_lea.vmem %s14006_s4, 512  ;;  %s13660_s13 = smov [#allocation2]  }
  0xf0   : > { %p13549_p4 = scmp.ne.s32.totalorder %s14006_s4, %s13548_s24  ;;  %s13553_s0 = sshll.u32 %s13660_s13, 4  ;;  %s13554_s0 = int_to_ptr.vmem [resolvable:$false] %s13553_s0 }
  0xf1   : > { %s13555_s17 = scalar_lea.vmem %s13554_s0, 1024  ;;  %p13556_p5 = scmp.lt.s32.totalorder %s14006_s4, %s13554_s0 }
  0xf2   : > { %p13551_p6 = pnand %p13549_p4, %p13535_p7  ;;  %p13557_p9 = scmp.lt.s32.totalorder %s13555_s17, %s13548_s24 }
  0xf4   : > { %p13552_p0 = pneg %p13551_p6  ;;  %p13558_p1 = por %p13557_p9, %p13556_p5 }
  0xf6   : > { %p13559_p3 = pnand %p13558_p1, %p13552_p0 }
  0xf8   : > { %13562 = shalt.err (!%p13559_p3)
}
  0xf9   : > { %12783 = dma.hbm_to_vmem [thread:$0]  (!%p14002_p2), %s14000_s11, 512, %s14006_s4, %s14008_s9, %s17089_s26, %s17089_s26, %s17088_s15  }
  0xfa   : > { %p17096_p7 = scmp.ne.s32.totalorder %s17080_s20, 0 }
  0xfc   : > { %607 = sbr.rel (%p17096_p7) target bundleno = 8425 (0x20e9), region = 92 }
 0x103   : > { %s14042_s10 = sand.u32 1, %s13637_s28  }
 0x104   : > { %s11099_s25 = sshll.u32 %s14042_s10, 5  ;;  %s610_s23 = scalar_lea.sflag [#allocation3], %s14042_s10 }
 0x105   : > { %s613_s2 = scalar_lea.vmem [#allocation2], %s11099_s25 }
 0x106   : > { %13608 = dma.done.wait (%p13982_p11), %s610_s23, 512  }
 0x107   : > { %13610 = vsyncadd (%p13982_p11), %s610_s23, 4294966784  ;;  %p17097_p5 = scmp.eq.s32.totalorder %s13785_s1, 0 }
 0x109   : > { %13612 = dma.done.wait (%p17097_p5), [#allocation6], 3200   ;;  %p17098_p0 = pmov %p17097_p5 }
 0x10b   : > { %13614 = vsyncadd (%p17098_p0), [#allocation6], 4294964096  ;;  %p17099_p2 = pmov %p17098_p0 }
 0x10c   : > { %p17100_p8 = pmov %p17098_p0 }
 0x10d   : > { %13616 = dma.done.wait (%p17099_p2), [#allocation9], 4096  }
 0x10e   : > { %13618 = vsyncadd (%p17100_p8), [#allocation9], 4294963200  ;;  %p17101_p10 = pmov %p17098_p0 }
 0x10f   : > { %p17102_p12 = pmov %p17098_p0 }
 0x110   : > { %13620 = dma.done.wait (%p17101_p10), [#allocation12], 9216  }
 0x111   : > { %13622 = vsyncadd (%p17102_p12), [#allocation12], 4294958080  ;;  %p17103_p11 = pmov %p17098_p0 }
 0x112   : > { %p17104_p13 = pmov %p17098_p0 }
 0x113   : > { %13624 = dma.done.wait (%p17103_p11), [#allocation15], 4096  }
 0x114   : > { %13626 = vsyncadd (%p17104_p13), [#allocation15], 4294963200  ;;  %v11421_v0 = vld [vmem:[%s613_s2] sm:$0xff]   ;;  %v11456_v1 = vld [vmem:[%s613_s2 + $0x8] sm:$0xff]   ;;  %s17111_s20 = sld [smem:[#allocation61_spill]]  ;;  %vm13663_vm0 = vmmov 0  }
 0x115   : > { %v14068_v2 = vunpack.c.l.bf16 %v11421_v0  ;;  %v14070_v3 = vunpack.c.l.bf16 %v11456_v1  ;;  %v11457_v4 = vld [vmem:[%s613_s2 + $0x10] sm:$0xff]   ;;  %v14074_v5 = vunpack.c.h.bf16 %v11421_v0  ;;  %v14076_v6 = vunpack.c.h.bf16 %v11456_v1  ;;  %v11458_v7 = vld [vmem:[%s613_s2 + $0x18] sm:$0xff]   ;;  %v12861_v47 = vld [vmem:[#allocation7 + $0x18] ss:$12 sps:$4 sm:$0xff]   ;;  %s13664_s22 = smov 96   ;;  %s13665_s11 = smov 64  }
 0x116   : > { %v14080_v8 = vunpack.c.l.bf16 %v11457_v4  ;;  %v14082_v9 = vunpack.c.h.bf16 %v11457_v4  ;;  %v14086_v10 = vunpack.c.l.bf16 %v11458_v7  ;;  %v14088_v11 = vunpack.c.h.bf16 %v11458_v7  ;;  %v12856_v12 = vld [vmem:[#allocation7 + $0x4] ss:$12 sps:$4 sm:$0xff]   ;;  %v12858_v13 = vld [vmem:[#allocation7] ss:$12 sps:$4 sm:$0xff]   ;;  %v12859_v46 = vld [vmem:[#allocation7 + $0x1c] ss:$12 sps:$4 sm:$0xff]  }
 0x117   : > { %17105 = vst [vmem:[#allocation23_spill] sm:$0xff] %v14070_v3  ;;  %714 = vadd.xlane.f32.xlu0 %v14068_v2  ;;  %718 = vadd.xlane.f32.xlu1 %v14070_v3  ;;  %17106 = vst [vmem:[#allocation24_spill] sm:$0xff] %v14076_v6  ;;  %v12862_v48 = vld [vmem:[#allocation7 + $0x34] ss:$12 sps:$4 sm:$0xff]   ;;  %v12864_v49 = vld [vmem:[#allocation7 + $0x30] ss:$12 sps:$4 sm:$0xff]  }
 0x118   : > { %17107 = vst [vmem:[#allocation25_spill] sm:$0xff] %v14080_v8  ;;  %17108 = vst [vmem:[#allocation26_spill] sm:$0xff] %v14082_v9  ;;  %1005 = vmatprep.subr.bf16.mxu0 %v12856_v12  ;;  %v12865_v50 = vld [vmem:[#allocation7 + $0x4c] ss:$12 sps:$4 sm:$0xff]   ;;  %v14132_v51 = vld [vmem:[#allocation7 + $0x8] ss:$12 sps:$4 sm:$0xff]  }
 0x119   : > { %17109 = vst [vmem:[#allocation27_spill] sm:$0xff] %v14086_v10  ;;  %17110 = vst [vmem:[#allocation28_spill] sm:$0xff] %v14088_v11  ;;  %1006 = vmatpush1.bf16.msra.mxu0 %v12858_v13  ;;  %v12868_v52 = vld [vmem:[#allocation7 + $0x48] ss:$12 sps:$4 sm:$0xff]   ;;  %12710 = vmatprep.subr.bf16.mxu1 %v14132_v51  ;;  %v12869_v53 = vld [vmem:[#allocation7 + $0x64] ss:$12 sps:$4 sm:$0xff]  }
 0x11a   : > { %1007 = vmatprep.subr.bf16.mxu0 %v12859_v46  ;;  %12718 = vmatpush3.bf16.msra.mxu1 %v14132_v51  ;;  %v14136_v54 = vld [vmem:[#allocation7 + $0x20] ss:$12 sps:$4 sm:$0xff]   ;;  %v12873_v56 = vld [vmem:[#allocation7 + $0x7c] ss:$12 sps:$4 sm:$0xff]   ;;  %v14140_v57 = vld [vmem:[#allocation7 + $0x38] ss:$12 sps:$4 sm:$0xff]  }
 0x11b   : > { %716 = vadd.xlane.f32.xlu0 %v14074_v5  ;;  %720 = vadd.xlane.f32.xlu1 %v14076_v6  ;;  %v12872_v55 = vld [vmem:[#allocation7 + $0x60] ss:$12 sps:$4 sm:$0xff]   ;;  %v12876_v58 = vld [vmem:[#allocation7 + $0x78] ss:$12 sps:$4 sm:$0xff]   ;;  %v14144_v60 = vld [vmem:[#allocation7 + $0x50] ss:$12 sps:$4 sm:$0xff]  }
 0x11c   : > { %12711 = vmatprep.subr.bf16.mxu1 %v14136_v54  ;;  %v12877_v59 = vld [vmem:[#allocation7 + $0x94] ss:$12 sps:$4 sm:$0xff]   ;;  %v12880_v61 = vld [vmem:[#allocation7 + $0x90] ss:$12 sps:$4 sm:$0xff]   ;;  %v12881_v62 = vld [vmem:[#allocation7 + $0xac] ss:$12 sps:$4 sm:$0xff]  }
 0x11d   : > { %1008 = vmatpush1.bf16.msra.mxu0 %v12861_v47  ;;  %v14146_v63 = vld [vmem:[#allocation7 + $0x68] ss:$12 sps:$4 sm:$0xff]   ;;  %v17032_v1 = vmov 0   ;;  %v14154_v4 = vld [vmem:[#allocation7 + $0x80] ss:$12 sps:$4 sm:$0xff]   ;;  %vm1167_vm1 = vcmask 261120  }
 0x11e   : > { %1009 = vmatprep.subr.bf16.mxu0 %v12862_v48  ;;  %12719 = vmatpush3.bf16.msra.mxu1 %v14136_v54  ;;  %v12884_v0 = vld [vmem:[#allocation7 + $0xa8] ss:$12 sps:$4 sm:$0xff]   ;;  %v14158_v7 = vld [vmem:[#allocation7 + $0x98] ss:$12 sps:$4 sm:$0xff]   ;;  %v14162_v12 = vld [vmem:[#allocation7 + $0xb0] ss:$12 sps:$4 sm:$0xff]  }
 0x11f   : > { %722 = vadd.xlane.f32.xlu0 %v14080_v8  ;;  %724 = vadd.xlane.f32.xlu1 %v14082_v9  ;;  %vm1644_vm2 = vcmask 1043456   ;;  %vm1544_vm3 = vcmask 64512   ;;  %s13666_s24 = smov 32   ;;  %vm4826_vm4 = vcmask 523264   ;;  %vm4843_vm5 = vcmask 785408   ;;  %s17128_s15 = sld [smem:[#allocation66_spill]] }
 0x120   : > { %12712 = vmatprep.subr.bf16.mxu1 %v14140_v57  ;;  %1037 = vmatprep.mubr.bf16.mxu0 %v17032_v1  ;;  %s17146_s17 = sld [smem:[#allocation68_spill]]  ;;  %s17147_s4 = sld [smem:[#allocation69_spill]] }
 0x121   : > { %1010 = vmatpush1.bf16.msra.mxu0 %v12864_v49  ;;  %s11419_s13 = sshll.u32 %s13785_s1, 9  ;;  %s17216_s23 = sld [smem:[#allocation71_spill]] }
 0x122   : > { %1011 = vmatprep.subr.bf16.mxu0 %v12865_v50  ;;  %12720 = vmatpush3.bf16.msra.mxu1 %v14140_v57  ;;  %v11109_v50 = vld [vmem:[%s17004_s3] ss:$0 sm:$0xff]  ;;  %s10932_s9 = scalar_lea.sflag [#allocation4], %s14042_s10  ;;  %p17217_p6 = scmp.ne.s32.totalorder %s17092_s18, 0 }
 0x123   : > { %726 = vadd.xlane.f32.xlu0 %v14086_v10  ;;  %728 = vadd.xlane.f32.xlu1 %v14088_v11  ;;  %s13667_s1 = smov [#allocation16]  }
 0x124   : > { %12713 = vmatprep.subr.bf16.mxu1 %v14144_v60 }
 0x125   : > { %1012 = vmatpush1.bf16.msra.mxu0 %v12868_v52 }
 0x126   : > { %1013 = vmatprep.subr.bf16.mxu0 %v12869_v53  ;;  %12721 = vmatpush3.bf16.msra.mxu1 %v14144_v60 }
 0x127   : > { %12714 = vmatprep.subr.bf16.mxu1 %v14146_v63  ;;  %s16955_s2 = scalar_lea.hbm %s17216_s23, %s11419_s13 }
 0x129   : > { %1014 = vmatpush1.bf16.msra.mxu0 %v12872_v55 }
 0x12a   : > { %1015 = vmatprep.subr.bf16.mxu0 %v12873_v56  ;;  %12722 = vmatpush3.bf16.msra.mxu1 %v14146_v63 }
 0x12b   : > { %12715 = vmatprep.subr.bf16.mxu1 %v14154_v4 }
 0x12d   : > { %1016 = vmatpush1.bf16.msra.mxu0 %v12876_v58 }
 0x12e   : > { %1017 = vmatprep.subr.bf16.mxu0 %v12877_v59  ;;  %12723 = vmatpush3.bf16.msra.mxu1 %v14154_v4 }
 0x12f   : > { %12716 = vmatprep.subr.bf16.mxu1 %v14158_v7 }
 0x131   : > { %1018 = vmatpush1.bf16.msra.mxu0 %v12880_v61 }
 0x132   : > { %1019 = vmatprep.subr.bf16.mxu0 %v12881_v62  ;;  %12724 = vmatpush3.bf16.msra.mxu1 %v14158_v7 }
 0x133   : > { %12717 = vmatprep.subr.bf16.mxu1 %v14162_v12 }
 0x135   : > { %1020 = vmatpush1.bf16.msra.mxu0 %v12884_v0 }
 0x136   : > { %11846 = vmatprep.subr.bf16.mxu0 %v14132_v51  ;;  %12725 = vmatpush3.bf16.msra.mxu1 %v14162_v12 }
 0x1a4   : > { %v715_v14 = vpop.xlane.xlu0 %714  ;;  %v719_v15 = vpop.xlane.xlu1 %718 }
 0x1a5   : > { %v731_v16 = vmul.f32 0.0078125, %v715_v14  ;;  %v733_v17 = vmul.f32 0.0078125, %v719_v15 }
 0x1a7   : > { %v14093_v18 = vsub.f32 %v14068_v2, %v731_v16  ;;  %v14096_v19 = vsub.f32 %v14070_v3, %v733_v17 }
 0x1a8   : > { %v717_v20 = vpop.xlane.xlu0 %716  ;;  %v721_v21 = vpop.xlane.xlu1 %720 }
 0x1a9   : > { %v732_v22 = vmul.f32 0.0078125, %v717_v20  ;;  %v747_v23 = vmul.f32 %v14093_v18, %v14093_v18  ;;  %v734_v24 = vmul.f32 0.0078125, %v721_v21  ;;  %v749_v25 = vmul.f32 %v14096_v19, %v14096_v19 }
 0x1ab   : > { %755 = vadd.xlane.f32.xlu0 %v747_v23  ;;  %v14103_v26 = vsub.f32 %v14074_v5, %v732_v22  ;;  %v14106_v27 = vsub.f32 %v14076_v6, %v734_v24 }
 0x1ac   : > { %v723_v28 = vpop.xlane.xlu0 %722  ;;  %v725_v29 = vpop.xlane.xlu1 %724 }
 0x1ad   : > { %v735_v30 = vmul.f32 0.0078125, %v723_v28  ;;  %v748_v31 = vmul.f32 %v14103_v26, %v14103_v26  ;;  %v736_v32 = vmul.f32 0.0078125, %v725_v29  ;;  %v750_v33 = vmul.f32 %v14106_v27, %v14106_v27 }
 0x1af   : > { %759 = vadd.xlane.f32.xlu0 %v749_v25  ;;  %757 = vadd.xlane.f32.xlu1 %v748_v31  ;;  %v14113_v34 = vsub.f32 %v14080_v8, %v735_v30  ;;  %v14116_v35 = vsub.f32 %v14082_v9, %v736_v32 }
 0x1b0   : > { %v727_v36 = vpop.xlane.xlu0 %726  ;;  %v729_v37 = vpop.xlane.xlu1 %728 }
 0x1b1   : > { %v737_v38 = vmul.f32 0.0078125, %v727_v36  ;;  %v751_v39 = vmul.f32 %v14113_v34, %v14113_v34  ;;  %v738_v40 = vmul.f32 0.0078125, %v729_v37  ;;  %v752_v41 = vmul.f32 %v14116_v35, %v14116_v35 }
 0x1b3   : > { %761 = vadd.xlane.f32.xlu1 %v750_v33  ;;  %763 = vadd.xlane.f32.xlu0 %v751_v39  ;;  %v14123_v42 = vsub.f32 %v14086_v10, %v737_v38  ;;  %v14126_v43 = vsub.f32 %v14088_v11, %v738_v40 }
 0x1b5   : > { %v753_v44 = vmul.f32 %v14123_v42, %v14123_v42  ;;  %v754_v45 = vmul.f32 %v14126_v43, %v14126_v43 }
 0x1b7   : > { %765 = vadd.xlane.f32.xlu1 %v752_v41  ;;  %767 = vadd.xlane.f32.xlu0 %v753_v44  ;;  %v11108_v41 = vld [vmem:[%s17111_s20] ss:$0 sm:$0xff] }
 0x1bb   : > { %769 = vadd.xlane.f32.xlu1 %v754_v45 }
 0x238   : > { %v756_v13 = vpop.xlane.xlu0 %755 }
 0x239   : > { %v771_v14 = vmul.f32 0.0078125, %v756_v13 }
 0x23b   : > { %v779_v15 = vadd.f32 1e-05, %v771_v14 }
 0x23c   : > { %v758_v16 = vpop.xlane.xlu1 %757  ;;  %v760_v17 = vpop.xlane.xlu0 %759 }
 0x23d   : > { %12968 = vrsqrt.f32 %v779_v15  ;;  %v772_v20 = vmul.f32 0.0078125, %v758_v16  ;;  %v773_v21 = vmul.f32 0.0078125, %v760_v17 }
 0x23f   : > { %v780_v22 = vadd.f32 1e-05, %v772_v20  ;;  %v781_v23 = vadd.f32 1e-05, %v773_v21 }
 0x240   : > { %v762_v24 = vpop.xlane.xlu1 %761  ;;  %v764_v25 = vpop.xlane.xlu0 %763 }
 0x241   : > { %12970 = vrsqrt.f32 %v780_v22  ;;  %v774_v28 = vmul.f32 0.0078125, %v762_v24  ;;  %v775_v29 = vmul.f32 0.0078125, %v764_v25 }
 0x242   : > { %12972 = vrsqrt.f32 %v781_v23 }
 0x243   : > { %v782_v30 = vadd.f32 1e-05, %v774_v28  ;;  %v783_v31 = vadd.f32 1e-05, %v775_v29 }
 0x244   : > { %v766_v32 = vpop.xlane.xlu1 %765  ;;  %v768_v33 = vpop.xlane.xlu0 %767 }
 0x245   : > { %12974 = vrsqrt.f32 %v782_v30  ;;  %v776_v36 = vmul.f32 0.0078125, %v766_v32  ;;  %v777_v37 = vmul.f32 0.0078125, %v768_v33 }
 0x246   : > { %12976 = vrsqrt.f32 %v783_v31 }
 0x247   : > { %v12969_v38 = vpop.eup %12968  ;;  %v784_v39 = vadd.f32 1e-05, %v776_v36  ;;  %v785_v40 = vadd.f32 1e-05, %v777_v37 }
 0x248   : > { %v770_v44 = vpop.xlane.xlu1 %769  ;;  %v795_v45 = vmul.f32 %v12969_v38, %v14093_v18  ;;  %v713_v18 = vld [vmem:[#allocation5] sm:$0xff] }
 0x249   : > { %12978 = vrsqrt.f32 %v784_v39  ;;  %v778_v46 = vmul.f32 0.0078125, %v770_v44 }
 0x24a   : > { %12980 = vrsqrt.f32 %v785_v40  ;;  %v810_v47 = vmul.f32 %v11108_v41, %v795_v45 }
 0x24b   : > { %v12971_v48 = vpop.eup %12970  ;;  %v786_v49 = vadd.f32 1e-05, %v778_v46 }
 0x24c   : > { %v12973_v52 = vpop.eup %12972  ;;  %v796_v53 = vmul.f32 %v12971_v48, %v14103_v26  ;;  %v825_v58 = vadd.f32 %v11109_v50, %v810_v47 }
 0x24d   : > { %12982 = vrsqrt.f32 %v786_v49  ;;  %v797_v55 = vmul.f32 %v12973_v52, %v14096_v19 }
 0x24e   : > { %v811_v56 = vmul.f32 %v11108_v41, %v796_v53  ;;  %v833_v15 = vadd.f32 %v825_v58, %v713_v18 }
 0x24f   : > { %v12975_v59 = vpop.eup %12974  ;;  %v812_v13 = vmul.f32 %v11108_v41, %v797_v55 }
 0x250   : > { %v12977_v61 = vpop.eup %12976  ;;  %v826_v62 = vadd.f32 %v11109_v50, %v811_v56  ;;  %v798_v0 = vmul.f32 %v12975_v59, %v14106_v27 }
 0x251   : > { %v799_v14 = vmul.f32 %v12977_v61, %v14113_v34  ;;  %v827_v24 = vadd.f32 %v11109_v50, %v812_v13 }
 0x252   : > { %v834_v16 = vadd.f32 %v826_v62, %v713_v18  ;;  %v813_v17 = vmul.f32 %v11108_v41, %v798_v0 }
 0x253   : > { %v12979_v20 = vpop.eup %12978  ;;  %v814_v21 = vmul.f32 %v11108_v41, %v799_v14  ;;  %v835_v33 = vadd.f32 %v827_v24, %v713_v18 }
 0x254   : > { %v12981_v26 = vpop.eup %12980  ;;  %v841_v22 = vpack.c.bf16 %v834_v16, %v833_v15  ;;  %v828_v23 = vadd.f32 %v11109_v50, %v813_v17  ;;  %v800_v19 = vmul.f32 %v12979_v20, %v14116_v35 }
 0x255   : > { %v801_v25 = vmul.f32 %v12981_v26, %v14123_v42  ;;  %v829_v29 = vadd.f32 %v11109_v50, %v814_v21 }
 0x256   : > { %1038 = vmatmul.mubr.bf16.vlgmr.msra.gmra.mrb[0].mxu0 %v841_v22  ;;  %v815_v28 = vmul.f32 %v11108_v41, %v800_v19  ;;  %v836_v30 = vadd.f32 %v828_v23, %v713_v18 }
 0x257   : > { %v12983_v27 = vpop.eup %12982  ;;  %11847 = vmatpush3.bf16.msra.mxu0 %v14132_v51  ;;  %1047 = vmatprep.mubr.bf16.mxu0 %v17032_v1  ;;  %v816_v34 = vmul.f32 %v11108_v41, %v801_v25  ;;  %v837_v35 = vadd.f32 %v829_v29, %v713_v18 }
 0x258   : > { %11848 = vmatprep.subr.bf16.mxu0 %v14136_v54  ;;  %v830_v31 = vadd.f32 %v11109_v50, %v815_v28  ;;  %v802_v32 = vmul.f32 %v12983_v27, %v14126_v43  ;;  %v842_v38 = vpack.c.bf16 %v836_v30, %v835_v33 }
 0x259   : > { %v831_v42 = vadd.f32 %v11109_v50, %v816_v34 }
 0x25a   : > { %v838_v36 = vadd.f32 %v830_v31, %v713_v18  ;;  %v817_v37 = vmul.f32 %v11108_v41, %v802_v32 }
 0x25b   : > { %11849 = vmatpush3.bf16.msra.mxu0 %v14136_v54  ;;  %v839_v40 = vadd.f32 %v831_v42, %v713_v18  ;;  %v17034_v54 = vmov 0.0  }
 0x25c   : > { %11850 = vmatprep.subr.bf16.mxu0 %v14140_v57  ;;  %v843_v51 = vpack.c.bf16 %v838_v36, %v837_v35  ;;  %v832_v39 = vadd.f32 %v11109_v50, %v817_v37  ;;  %11870 = vmatprep.subr.bf16.mxu1 %v17034_v54 }
 0x25e   : > { %1048 = vmatmul.mubr.bf16.gmra.mrb[4].mxu0 %v842_v38  ;;  %11866 = vmatprep.mubr.bf16.mxu1 %v843_v51  ;;  %v840_v44 = vadd.f32 %v832_v39, %v713_v18 }
 0x25f   : > { %11851 = vmatpush3.bf16.msra.mxu0 %v14140_v57  ;;  %1057 = vmatprep.mubr.bf16.mxu0 %v17032_v1 }
 0x260   : > { %11852 = vmatprep.subr.bf16.mxu0 %v14144_v60  ;;  %v844_v43 = vpack.c.bf16 %v840_v44, %v839_v40 }
 0x262   : > { %11867 = vmatmul.mubr.bf16.vlgmr.msra.gmra.mrb[0].mxu1 %v844_v43 }
 0x263   : > { %11853 = vmatpush3.bf16.msra.mxu0 %v14144_v60  ;;  %11872 = vmatprep.mubr.msk.bf16.mxu1 %vm13663_vm0, %v17034_v54 }
 0x264   : > { %11854 = vmatprep.subr.bf16.mxu0 %v14146_v63 }
 0x266   : > { %1058 = vmatmul.mubr.bf16.gmra.mrb[8].mxu0 %v843_v51 }
 0x267   : > { %11855 = vmatpush3.bf16.msra.mxu0 %v14146_v63  ;;  %1067 = vmatprep.mubr.bf16.mxu0 %v17032_v1 }
 0x268   : > { %11856 = vmatprep.subr.bf16.mxu0 %v14154_v4 }
 0x26b   : > { %11857 = vmatpush3.bf16.msra.mxu0 %v14154_v4 }
 0x26c   : > { %11858 = vmatprep.subr.bf16.mxu0 %v14158_v7 }
 0x26e   : > { %1068 = vmatmul.mubr.bf16.gmra.mrb[12].mxu0 %v844_v43 }
 0x26f   : > { %11859 = vmatpush3.bf16.msra.mxu0 %v14158_v7  ;;  %11862 = vmatprep.mubr.bf16.mxu0 %v841_v22 }
 0x270   : > { %11860 = vmatprep.subr.bf16.mxu0 %v14162_v12 }
 0x273   : > { %11861 = vmatpush3.bf16.msra.mxu0 %v14162_v12 }
 0x274   : > { %11882 = vmatprep.subr.bf16.mxu0 %v17034_v54 }
 0x276   : > { %11863 = vmatmul.mubr.bf16.vlgmr.msra.gmra.mrb[16].mxu0 %v842_v38 }
 0x277   : > { %11884 = vmatprep.mubr.msk.bf16.mxu0 %vm13663_vm0, %v17034_v54 }
 0x329   : > { %v1039_v57 = vpop.f32.mrb[0].mxu0 }
 0x32a   : > { %v1041_v60 = vpop.f32.mrb[1].mxu0  ;;  %v14211_v47 = vpack.c.bf16 %v1039_v57, %v1039_v57 }
 0x32b   : > { %v14204_v63 = vpack.c.bf16 %v1041_v60, %v1041_v60  ;;  %v1043_v4 = vpop.f32.mrb[2].mxu0 }
 0x32c   : > { %v1045_v7 = vpop.f32.mrb[3].mxu0  ;;  %v14235_v0 = vpack.c.bf16 %v1043_v4, %v1043_v4 }
 0x32d   : > { %v1172_v12 = vsel %vm1167_vm1, %v14204_v63, 0  ;;  %v14209_v41 = vpack.c.bf16 %v1045_v7, %v1045_v7 }
 0x32e   : > { %11871 = vmatpush3.bf16.xpose.msra.mxu1 %v1172_v12 }
 0x32f   : > { %11876 = vmatprep.subr.bf16.mxu1 %v17034_v54  ;;  %v1218_v53 = vsel %vm1167_vm1, %v14209_v41, 0 }
 0x331   : > { %v1049_v45 = vpop.f32.mrb[4].mxu0 }
 0x332   : > { %v1051_v46 = vpop.f32.mrb[5].mxu0  ;;  %v14237_v13 = vpack.c.bf16 %v1049_v45, %v1049_v45 }
 0x333   : > { %v14213_v48 = vpack.c.bf16 %v1051_v46, %v1051_v46  ;;  %v1053_v49 = vpop.f32.mrb[6].mxu0 }
 0x334   : > { %v1055_v50 = vpop.f32.mrb[7].mxu0  ;;  %v14257_v23 = vpack.c.bf16 %v1053_v49, %v1053_v49 }
 0x335   : > { %v14215_v52 = vpop.f32.mrb[0].mxu1  ;;  %11873 = vmatmul.mubr.msk.bf16.vlgmr.msra.gmra.mrb[4].mxu1 %vm1167_vm1, %v14211_v47  ;;  %v1264_v55 = vsel %vm1167_vm1, %v14213_v48, 0  ;;  %v14233_v18 = vpack.c.bf16 %v1055_v50, %v1055_v50 }
 0x336   : > { %v14223_v56 = vpop.f32.mrb[1].mxu1  ;;  %11877 = vmatpush3.bf16.xpose.msra.mxu1 %v1218_v53  ;;  %11883 = vmatpush3.bf16.xpose.msra.mxu0 %v1264_v55 }
 0x337   : > { %v14225_v58 = vpop.f32.mrb[2].mxu1  ;;  %11878 = vmatprep.mubr.msk.bf16.mxu1 %vm13663_vm0, %v17034_v54  ;;  %11888 = vmatprep.subr.bf16.mxu1 %v17034_v54  ;;  %v1310_v17 = vsel %vm1167_vm1, %v14233_v18, 0 }
 0x338   : > { %v14230_v59 = vpop.f32.mrb[3].mxu1  ;;  %11894 = vmatprep.subr.bf16.mxu0 %v17034_v54 }
 0x339   : > { %v1059_v61 = vpop.f32.mrb[8].mxu0 }
 0x33a   : > { %v1061_v62 = vpop.f32.mrb[9].mxu0  ;;  %v14259_v19 = vpack.c.bf16 %v1059_v61, %v1059_v61 }
 0x33b   : > { %v14239_v14 = vpack.c.bf16 %v1061_v62, %v1061_v62  ;;  %v1063_v15 = vpop.f32.mrb[10].mxu0 }
 0x33c   : > { %v1065_v16 = vpop.f32.mrb[11].mxu0  ;;  %v14281_v32 = vpack.c.bf16 %v1063_v15, %v1063_v15 }
 0x33d   : > { %11879 = vmatmul.mubr.msk.bf16.vlgmr.msra.gmra.mrb[8].mxu1 %vm1167_vm1, %v14235_v0  ;;  %11885 = vmatmul.mubr.msk.bf16.vlgmr.msra.gmra.mrb[20].mxu0 %vm1167_vm1, %v14237_v13  ;;  %v1356_v20 = vsel %vm1167_vm1, %v14239_v14, 0  ;;  %v14255_v21 = vpack.c.bf16 %v1065_v16, %v1065_v16 }
 0x33e   : > { %11889 = vmatpush3.bf16.xpose.msra.mxu1 %v1310_v17  ;;  %11895 = vmatpush3.bf16.xpose.msra.mxu0 %v1356_v20 }
 0x33f   : > { %11890 = vmatprep.mubr.msk.bf16.mxu1 %vm13663_vm0, %v17034_v54  ;;  %11896 = vmatprep.mubr.msk.bf16.mxu0 %vm13663_vm0, %v17034_v54  ;;  %v1402_v29 = vsel %vm1167_vm1, %v14255_v21, 0 }
 0x340   : > { %11900 = vmatprep.subr.bf16.mxu1 %v17034_v54  ;;  %11906 = vmatprep.subr.bf16.mxu0 %v17034_v54 }
 0x341   : > { %v1069_v26 = vpop.f32.mrb[12].mxu0 }
 0x342   : > { %v1071_v22 = vpop.f32.mrb[13].mxu0  ;;  %v14283_v33 = vpack.c.bf16 %v1069_v26, %v1069_v26 }
 0x343   : > { %v14261_v24 = vpack.c.bf16 %v1071_v22, %v1071_v22  ;;  %v1073_v25 = vpop.f32.mrb[14].mxu0 }
 0x344   : > { %v1075_v28 = vpop.f32.mrb[15].mxu0  ;;  %v14305_v39 = vpack.c.bf16 %v1073_v25, %v1073_v25 }
 0x345   : > { %11891 = vmatmul.mubr.msk.bf16.vlgmr.msra.gmra.mrb[12].mxu1 %vm1167_vm1, %v14257_v23  ;;  %11897 = vmatmul.mubr.msk.bf16.vlgmr.msra.gmra.mrb[24].mxu0 %vm1167_vm1, %v14259_v19  ;;  %v1448_v27 = vsel %vm1167_vm1, %v14261_v24, 0  ;;  %v14277_v34 = vpack.c.bf16 %v1075_v28, %v1075_v28 }
 0x346   : > { %11901 = vmatpush3.bf16.xpose.msra.mxu1 %v1402_v29  ;;  %11907 = vmatpush3.bf16.xpose.msra.mxu0 %v1448_v27 }
 0x347   : > { %11902 = vmatprep.mubr.msk.bf16.mxu1 %vm13663_vm0, %v17034_v54  ;;  %11908 = vmatprep.mubr.msk.bf16.mxu0 %vm13663_vm0, %v17034_v54  ;;  %v1494_v42 = vsel %vm1167_vm1, %v14277_v34, 0 }
 0x348   : > { %11912 = vmatprep.subr.bf16.mxu1 %v17034_v54  ;;  %11918 = vmatprep.subr.bf16.mxu0 %v17034_v54 }
 0x349   : > { %v14279_v30 = vpop.f32.mrb[16].mxu0 }
 0x34a   : > { %v1112_v31 = vpop.f32.mrb[17].mxu0 }
 0x34b   : > { %v14285_v35 = vpack.c.bf16 %v1112_v31, %v1112_v31  ;;  %v14287_v36 = vpop.f32.mrb[18].mxu0 }
 0x34c   : > { %v1115_v37 = vpop.f32.mrb[19].mxu0 }
 0x34d   : > { %11903 = vmatmul.mubr.msk.bf16.vlgmr.msra.gmra.mrb[16].mxu1 %vm1167_vm1, %v14281_v32  ;;  %11909 = vmatmul.mubr.msk.bf16.vlgmr.msra.gmra.mrb[28].mxu0 %vm1167_vm1, %v14283_v33  ;;  %v1646_v38 = vsel %vm1644_vm2, %v14285_v35, 0  ;;  %v14303_v51 = vpack.c.bf16 %v1115_v37, %v1115_v37 }
 0x34e   : > { %11913 = vmatpush3.bf16.xpose.msra.mxu1 %v1494_v42  ;;  %11919 = vmatpush3.bf16.msra.mxu0 %v1646_v38 }
 0x34f   : > { %11914 = vmatprep.mubr.msk.bf16.mxu1 %vm13663_vm0, %v17034_v54  ;;  %11924 = vmatprep.subr.bf16.mxu1 %v17034_v54  ;;  %v1692_v40 = vsel %vm1644_vm2, %v14303_v51, 0 }
 0x350   : > { %11920 = vmatprep.mubr.msk.bf16.mxu0 %vm13663_vm0, %v17034_v54  ;;  %11930 = vmatprep.subr.bf16.mxu0 %v17034_v54 }
 0x355   : > { %11915 = vmatmul.mubr.msk.bf16.vlgmr.msra.gmra.mrb[20].mxu1 %vm1167_vm1, %v14305_v39 }
 0x356   : > { %11925 = vmatpush3.bf16.msra.mxu1 %v1692_v40  ;;  %11926 = vmatprep.mubr.msk.bf16.mxu1 %vm13663_vm0, %v17034_v54 }
 0x357   : > { %11936 = vmatprep.subr.bf16.mxu1 %v17034_v54 }
 0x408   : > { %v1208_v44 = vpop.f32.mrb[4].mxu1 }
 0x409   : > { %v11874_v43 = vpop.f32.mrb[5].mxu1  ;;  %v1536_v57 = vmul.f32 0.17677669, %v1208_v44 }
 0x40a   : > { %v1211_v60 = vpop.f32.mrb[6].mxu1 }
 0x40b   : > { %v11875_v4 = vpop.f32.mrb[7].mxu1  ;;  %v1545_v7 = vsel %vm1544_vm3, %v1536_v57, -inf }
 0x40c   : > { %1546 = vmax.xlane.f32.xlu0 %v1545_v7 }
 0x410   : > { %v1254_v12 = vpop.f32.mrb[8].mxu1  ;;  %v1300_v45 = vpop.f32.mrb[20].mxu0 }
 0x411   : > { %v11880_v46 = vpop.f32.mrb[9].mxu1  ;;  %v11886_v49 = vpop.f32.mrb[21].mxu0  ;;  %v1537_v50 = vmul.f32 0.17677669, %v1254_v12  ;;  %v1538_v53 = vmul.f32 0.17677669, %v1300_v45 }
 0x412   : > { %v1257_v55 = vpop.f32.mrb[10].mxu1  ;;  %v1303_v61 = vpop.f32.mrb[22].mxu0 }
 0x413   : > { %v11881_v62 = vpop.f32.mrb[11].mxu1  ;;  %v11887_v15 = vpop.f32.mrb[23].mxu0  ;;  %v1548_v16 = vsel %vm1544_vm3, %v1537_v50, -inf  ;;  %v1551_v17 = vsel %vm1544_vm3, %v1538_v53, -inf }
 0x414   : > { %1549 = vmax.xlane.f32.xlu1 %v1548_v16  ;;  %1552 = vmax.xlane.f32.xlu0 %v1551_v17 }
 0x418   : > { %v1346_v20 = vpop.f32.mrb[12].mxu1  ;;  %v1392_v26 = vpop.f32.mrb[24].mxu0 }
 0x419   : > { %v11892_v22 = vpop.f32.mrb[13].mxu1  ;;  %v11898_v25 = vpop.f32.mrb[25].mxu0  ;;  %v1539_v28 = vmul.f32 0.17677669, %v1346_v20  ;;  %v1540_v29 = vmul.f32 0.17677669, %v1392_v26 }
 0x41a   : > { %v1349_v27 = vpop.f32.mrb[14].mxu1  ;;  %v1395_v31 = vpop.f32.mrb[26].mxu0 }
 0x41b   : > { %v11893_v37 = vpop.f32.mrb[15].mxu1  ;;  %v11899_v42 = vpop.f32.mrb[27].mxu0  ;;  %v1554_v38 = vsel %vm1544_vm3, %v1539_v28, -inf  ;;  %v1557_v40 = vsel %vm1544_vm3, %v1540_v29, -inf }
 0x41c   : > { %1555 = vmax.xlane.f32.xlu1 %v1554_v38  ;;  %1558 = vmax.xlane.f32.xlu0 %v1557_v40 }
 0x420   : > { %v1438_v44 = vpop.f32.mrb[16].mxu1  ;;  %v1484_v43 = vpop.f32.mrb[28].mxu0 }
 0x421   : > { %v11904_v60 = vpop.f32.mrb[17].mxu1  ;;  %v11910_v4 = vpop.f32.mrb[29].mxu0  ;;  %v1541_v7 = vmul.f32 0.17677669, %v1438_v44  ;;  %v1542_v12 = vmul.f32 0.17677669, %v1484_v43 }
 0x422   : > { %v1441_v45 = vpop.f32.mrb[18].mxu1  ;;  %v1487_v46 = vpop.f32.mrb[30].mxu0 }
 0x423   : > { %v11905_v49 = vpop.f32.mrb[19].mxu1  ;;  %v11911_v55 = vpop.f32.mrb[31].mxu0  ;;  %v1560_v61 = vsel %vm1544_vm3, %v1541_v7, -inf  ;;  %v1563_v62 = vsel %vm1544_vm3, %v1542_v12, -inf }
 0x424   : > { %1561 = vmax.xlane.f32.xlu1 %v1560_v61  ;;  %1564 = vmax.xlane.f32.xlu0 %v1563_v62 }
 0x428   : > { %v1530_v15 = vpop.f32.mrb[20].mxu1 }
 0x429   : > { %v11916_v16 = vpop.f32.mrb[21].mxu1  ;;  %v14321_v17 = vmul.f32 0.17677669, %v1530_v15 }
 0x42a   : > { %v1533_v20 = vpop.f32.mrb[22].mxu1 }
 0x42b   : > { %v11917_v26 = vpop.f32.mrb[23].mxu1  ;;  %v1566_v22 = vsel %vm1544_vm3, %v14321_v17, -inf }
 0x42c   : > { %1567 = vmax.xlane.f32.xlu1 %v1566_v22 }
 0x499   : > { %v1547_v25 = vpop.xlane.xlu0 %1546 }
 0x49a   : > { %v1569_v27 = vsub.f32 %v1536_v57, %v1547_v25 }
 0x49c   : > { %v1577_v31 = vmul.f32 1.442695, %v1569_v27 }
 0x49e   : > { %12984 = vpow2.f32 %v1577_v31 }
 0x4a1   : > { %v1550_v37 = vpop.xlane.xlu1 %1549  ;;  %v1553_v42 = vpop.xlane.xlu0 %1552 }
 0x4a2   : > { %v1570_v38 = vsub.f32 %v1537_v50, %v1550_v37  ;;  %v1571_v40 = vsub.f32 %v1538_v53, %v1553_v42 }
 0x4a4   : > { %v1579_v44 = vmul.f32 1.442695, %v1570_v38  ;;  %v1581_v43 = vmul.f32 1.442695, %v1571_v40 }
 0x4a6   : > { %12986 = vpow2.f32 %v1579_v44 }
 0x4a7   : > { %12988 = vpow2.f32 %v1581_v43 }
 0x4a8   : > { %v14325_v60 = vpop.eup %12984 }
 0x4a9   : > { %v1556_v4 = vpop.xlane.xlu1 %1555  ;;  %v1559_v45 = vpop.xlane.xlu0 %1558  ;;  %v1593_v46 = vsel %vm1544_vm3, %v14325_v60, 0.0 }
 0x4aa   : > { %v1572_v49 = vsub.f32 %v1539_v28, %v1556_v4  ;;  %v1573_v55 = vsub.f32 %v1540_v29, %v1559_v45  ;;  %1594 = vadd.xlane.f32.xlu0 %v1593_v46  ;;  %v14396_v45 = vpack.c.bf16 %v14279_v30, %v14279_v30  ;;  %v14402_v46 = vpack.c.bf16 %v14287_v36, %v14287_v36 }
 0x4ac   : > { %v1583_v57 = vmul.f32 1.442695, %v1572_v49  ;;  %v1585_v61 = vmul.f32 1.442695, %v1573_v55  ;;  %v1738_v36 = vsel %vm1644_vm2, %v14396_v45, 0 }
 0x4ae   : > { %12990 = vpow2.f32 %v1583_v57 }
 0x4af   : > { %12992 = vpow2.f32 %v1585_v61 }
 0x4b0   : > { %v14329_v50 = vpop.eup %12986 }
 0x4b1   : > { %v14331_v53 = vpop.eup %12988  ;;  %v1562_v62 = vpop.xlane.xlu1 %1561  ;;  %v1596_v16 = vsel %vm1544_vm3, %v14329_v50, 0.0 }
 0x4b2   : > { %v1565_v15 = vpop.xlane.xlu0 %1564  ;;  %v1574_v20 = vsub.f32 %v1541_v7, %v1562_v62  ;;  %1597 = vadd.xlane.f32.xlu1 %v1596_v16  ;;  %v1599_v28 = vsel %vm1544_vm3, %v14331_v53, 0.0 }
 0x4b3   : > { %v1575_v26 = vsub.f32 %v1542_v12, %v1565_v15  ;;  %1600 = vadd.xlane.f32.xlu0 %v1599_v28  ;;  %v14416_v28 = vpack.c.bf16 %v14223_v56, %v14223_v56 }
 0x4b4   : > { %v1587_v29 = vmul.f32 1.442695, %v1574_v20 }
 0x4b5   : > { %v1589_v22 = vmul.f32 1.442695, %v1575_v26 }
 0x4b6   : > { %12994 = vpow2.f32 %v1587_v29 }
 0x4b7   : > { %12996 = vpow2.f32 %v1589_v22 }
 0x4b8   : > { %v14337_v25 = vpop.eup %12990 }
 0x4b9   : > { %v14339_v27 = vpop.eup %12992  ;;  %v1602_v31 = vsel %vm1544_vm3, %v14337_v25, 0.0  ;;  %v1568_v40 = vpop.xlane.xlu1 %1567 }
 0x4ba   : > { %1603 = vadd.xlane.f32.xlu1 %v1602_v31  ;;  %v1605_v7 = vsel %vm1544_vm3, %v14339_v27, 0.0  ;;  %v1576_v44 = vsub.f32 %v14321_v17, %v1568_v40  ;;  %v14432_v40 = vpack.c.bf16 %v14230_v59, %v14230_v59 }
 0x4bb   : > { %1606 = vadd.xlane.f32.xlu0 %v1605_v7 }
 0x4bc   : > { %v1591_v43 = vmul.f32 1.442695, %v1576_v44 }
 0x4be   : > { %12998 = vpow2.f32 %v1591_v43  ;;  %v14438_v43 = vpack.c.bf16 %v14215_v52, %v14215_v52 }
 0x4c0   : > { %v14345_v12 = vpop.eup %12994  ;;  %v1922_v59 = vsel %vm1644_vm2, %v14438_v43, 0 }
 0x4c1   : > { %v14347_v37 = vpop.eup %12996  ;;  %v1608_v42 = vsel %vm1544_vm3, %v14345_v12, 0.0 }
 0x4c2   : > { %1609 = vadd.xlane.f32.xlu1 %v1608_v42  ;;  %v1611_v38 = vsel %vm1544_vm3, %v14347_v37, 0.0  ;;  %v1784_v42 = vsel %vm1644_vm2, %v14402_v46, 0 }
 0x4c3   : > { %1612 = vadd.xlane.f32.xlu0 %v1611_v38 }
 0x4c8   : > { %v14374_v4 = vpop.eup %12998 }
 0x4c9   : > { %v1614_v17 = vsel %vm1544_vm3, %v14374_v4, 0.0 }
 0x4d3   : > { %2074 = vrot.lane.b32.xlu1 %v14209_v41, %s13664_s22 }
 0x4d7   : > { %2019 = vrot.lane.b32.xlu1 %v14211_v47, %s13664_s22 }
 0x4d9   : > { %2022 = vrot.lane.b32.xlu0 %v14204_v63, %s13664_s22 }
 0x4dd   : > { %2126 = vrot.lane.b32.xlu0 %v14213_v48, %s13664_s22 }
 0x4e1   : > { %2123 = vrot.lane.b32.xlu0 %v14237_v13, %s13664_s22 }
 0x4e5   : > { %2230 = vrot.lane.b32.xlu0 %v14239_v14, %s13664_s22 }
 0x4e9   : > { %2227 = vrot.lane.b32.xlu0 %v14259_v19, %s13664_s22 }
 0x4ed   : > { %2334 = vrot.lane.b32.xlu0 %v14261_v24, %s13664_s22 }
 0x4f1   : > { %2331 = vrot.lane.b32.xlu0 %v14283_v33, %s13664_s22 }
 0x4f5   : > { %2539 = vrot.lane.b32.xlu0 %v14285_v35, %s13664_s22 }
 0x4fb   : > { %1615 = vadd.xlane.f32.xlu1 %v1614_v17 }
 0x50c   : > { %2071 = vrot.lane.b32.xlu1 %v14235_v0, %s13664_s22 }
 0x510   : > { %2178 = vrot.lane.b32.xlu1 %v14233_v18, %s13664_s22 }
 0x514   : > { %2175 = vrot.lane.b32.xlu1 %v14257_v23, %s13664_s22 }
 0x518   : > { %2282 = vrot.lane.b32.xlu1 %v14255_v21, %s13664_s22 }
 0x51c   : > { %2279 = vrot.lane.b32.xlu1 %v14281_v32, %s13664_s22 }
 0x520   : > { %2386 = vrot.lane.b32.xlu1 %v14277_v34, %s13664_s22 }
 0x524   : > { %2383 = vrot.lane.b32.xlu1 %v14305_v39, %s13664_s22 }
 0x528   : > { %2588 = vrot.lane.b32.xlu1 %v14303_v51, %s13664_s22 }
 0x52c   : > { %2637 = vrot.lane.b32.xlu1 %v14396_v45, %s13664_s22 }
 0x530   : > { %2686 = vrot.lane.b32.xlu1 %v14402_v46, %s13664_s22 }
 0x537   : > { %v1595_v49 = vpop.xlane.xlu0 %1594 }
 0x538   : > { %13000 = vrcp.f32 %v1595_v49 }
 0x53f   : > { %v1598_v55 = vpop.xlane.xlu1 %1597 }
 0x540   : > { %13002 = vrcp.f32 %v1598_v55  ;;  %v1601_v57 = vpop.xlane.xlu0 %1600 }
 0x541   : > { %13004 = vrcp.f32 %v1601_v57 }
 0x542   : > { %v13001_v61 = vpop.eup %13000 }
 0x543   : > { %v1618_v30 = vmul.f32 %v13001_v61, %v14325_v60  ;;  %v1876_v61 = vsel %vm1644_vm2, %v14432_v40, 0 }
 0x545   : > { %v1633_v62 = vpack.c.bf16 %v1618_v30, %v1618_v30  ;;  %v14454_v30 = vpack.c.bf16 %v14225_v58, %v14225_v58 }
 0x547   : > { %v1604_v15 = vpop.xlane.xlu1 %1603  ;;  %11921 = vmatmul.mubr.msk.bf16.vlgmr.msra.gmra.mrb[32].mxu0 %vm1544_vm3, %v1633_v62 }
 0x548   : > { %13006 = vrcp.f32 %v1604_v15  ;;  %11931 = vmatpush3.bf16.msra.mxu0 %v1738_v36  ;;  %v1607_v16 = vpop.xlane.xlu0 %1606  ;;  %11932 = vmatprep.mubr.msk.bf16.mxu0 %vm13663_vm0, %v17034_v54 }
 0x549   : > { %13008 = vrcp.f32 %v1607_v16  ;;  %11942 = vmatprep.subr.bf16.mxu0 %v17034_v54 }
 0x54a   : > { %v13003_v20 = vpop.eup %13002 }
 0x54b   : > { %v13005_v26 = vpop.eup %13004  ;;  %v1620_v60 = vmul.f32 %v13003_v20, %v14329_v50  ;;  %v1830_v50 = vsel %vm1644_vm2, %v14416_v28, 0  ;;  %v1968_v20 = vsel %vm1644_vm2, %v14454_v30, 0 }
 0x54c   : > { %v1622_v29 = vmul.f32 %v13005_v26, %v14331_v53 }
 0x54d   : > { %v1634_v22 = vpack.c.bf16 %v1620_v60, %v1620_v60 }
 0x54e   : > { %v1635_v31 = vpack.c.bf16 %v1622_v29, %v1622_v29 }
 0x54f   : > { %v1610_v7 = vpop.xlane.xlu1 %1609  ;;  %11927 = vmatmul.mubr.msk.bf16.vlgmr.msra.gmra.mrb[24].mxu1 %vm1544_vm3, %v1634_v22 }
 0x550   : > { %13010 = vrcp.f32 %v1610_v7  ;;  %11933 = vmatmul.mubr.msk.bf16.vlgmr.msra.gmra.mrb[36].mxu0 %vm1544_vm3, %v1635_v31  ;;  %v1613_v38 = vpop.xlane.xlu0 %1612  ;;  %11937 = vmatpush3.bf16.msra.mxu1 %v1784_v42 }
 0x551   : > { %11943 = vmatpush3.bf16.msra.mxu0 %v1830_v50  ;;  %13012 = vrcp.f32 %v1613_v38  ;;  %11938 = vmatprep.mubr.msk.bf16.mxu1 %vm13663_vm0, %v17034_v54 }
 0x552   : > { %v13007_v56 = vpop.eup %13006  ;;  %11944 = vmatprep.mubr.msk.bf16.mxu0 %vm13663_vm0, %v17034_v54  ;;  %11948 = vmatprep.subr.bf16.mxu1 %v17034_v54 }
 0x553   : > { %v13009_v53 = vpop.eup %13008  ;;  %11954 = vmatprep.subr.bf16.mxu0 %v17034_v54  ;;  %v1624_v44 = vmul.f32 %v13007_v56, %v14337_v25 }
 0x554   : > { %v2023_v17 = vpop.permute.xlu0 %2022  ;;  %v1626_v49 = vmul.f32 %v13009_v53, %v14339_v27 }
 0x555   : > { %v1636_v55 = vpack.c.bf16 %v1624_v44, %v1624_v44  ;;  %v2028_v58 = vsel %vm1167_vm1, %v2023_v17, 0 }
 0x556   : > { %v1637_v57 = vpack.c.bf16 %v1626_v49, %v1626_v49 }
 0x557   : > { %11939 = vmatmul.mubr.msk.bf16.vlgmr.msra.gmra.mrb[28].mxu1 %vm1544_vm3, %v1636_v55 }
 0x558   : > { %11945 = vmatmul.mubr.msk.bf16.vlgmr.msra.gmra.mrb[40].mxu0 %vm1544_vm3, %v1637_v57  ;;  %11949 = vmatpush3.bf16.msra.mxu1 %v1876_v61  ;;  %v2127_v25 = vpop.permute.xlu0 %2126 }
 0x559   : > { %11955 = vmatpush3.bf16.msra.mxu0 %v1922_v59  ;;  %11950 = vmatprep.mubr.msk.bf16.mxu1 %vm13663_vm0, %v17034_v54  ;;  %v2132_v29 = vsel %vm1167_vm1, %v2127_v25, 0 }
 0x55a   : > { %v13011_v52 = vpop.eup %13010  ;;  %11956 = vmatprep.mubr.msk.bf16.mxu0 %vm13663_vm0, %v17034_v54  ;;  %11960 = vmatprep.subr.bf16.mxu1 %v17034_v54 }
 0x55b   : > { %v13013_v27 = vpop.eup %13012  ;;  %11966 = vmatprep.subr.bf16.mxu0 %v17034_v54  ;;  %v1628_v62 = vmul.f32 %v13011_v52, %v14345_v12  ;;  %v2075_v12 = vpop.permute.xlu1 %2074 }
 0x55c   : > { %v1630_v15 = vmul.f32 %v13013_v27, %v14347_v37  ;;  %v2124_v26 = vpop.permute.xlu0 %2123  ;;  %v2080_v59 = vsel %vm1167_vm1, %v2075_v12, 0 }
 0x55d   : > { %v1638_v36 = vpack.c.bf16 %v1628_v62, %v1628_v62 }
 0x55e   : > { %v1639_v16 = vpack.c.bf16 %v1630_v15, %v1630_v15 }
 0x55f   : > { %11951 = vmatmul.mubr.msk.bf16.vlgmr.msra.gmra.mrb[32].mxu1 %vm1544_vm3, %v1638_v36  ;;  %v2020_v60 = vpop.permute.xlu1 %2019 }
 0x560   : > { %11957 = vmatmul.mubr.msk.bf16.vlgmr.msra.gmra.mrb[44].mxu0 %vm1544_vm3, %v1639_v16  ;;  %11961 = vmatpush3.bf16.msra.mxu1 %v1968_v20  ;;  %v2231_v37 = vpop.permute.xlu0 %2230 }
 0x561   : > { %11968 = vmatprep.mubr.msk.bf16.mxu0 %vm13663_vm0, %v17034_v54  ;;  %11962 = vmatprep.mubr.msk.bf16.mxu1 %vm13663_vm0, %v17034_v54  ;;  %v2236_v31 = vsel %vm1167_vm1, %v2231_v37, 0 }
 0x562   : > { %11967 = vmatpush3.bf16.xpose.msra.mxu0 %v2028_v58  ;;  %11972 = vmatprep.subr.bf16.mxu1 %v17034_v54 }
 0x563   : > { %11978 = vmatprep.subr.bf16.mxu0 %v17034_v54 }
 0x564   : > { %v2228_v22 = vpop.permute.xlu0 %2227 }
 0x568   : > { %v2335_v7 = vpop.permute.xlu0 %2334 }
 0x569   : > { %11969 = vmatmul.mubr.msk.bf16.vlgmr.msra.gmra.mrb[48].mxu0 %vm1167_vm1, %v2020_v60  ;;  %v2340_v50 = vsel %vm1167_vm1, %v2335_v7, 0 }
 0x56a   : > { %11979 = vmatpush3.bf16.xpose.msra.mxu0 %v2132_v29  ;;  %11980 = vmatprep.mubr.msk.bf16.mxu0 %vm13663_vm0, %v17034_v54 }
 0x56b   : > { %11990 = vmatprep.subr.bf16.mxu0 %v17034_v54 }
 0x56c   : > { %v2332_v42 = vpop.permute.xlu0 %2331 }
 0x570   : > { %v2540_v38 = vpop.permute.xlu0 %2539 }
 0x571   : > { %11981 = vmatmul.mubr.msk.bf16.vlgmr.msra.gmra.mrb[52].mxu0 %vm1167_vm1, %v2124_v26  ;;  %v2545_v56 = vsel %vm1644_vm2, %v2540_v38, 0 }
 0x572   : > { %11991 = vmatpush3.bf16.xpose.msra.mxu0 %v2236_v31  ;;  %11992 = vmatprep.mubr.msk.bf16.mxu0 %vm13663_vm0, %v17034_v54 }
 0x573   : > { %12002 = vmatprep.subr.bf16.mxu0 %v17034_v54 }
 0x579   : > { %11993 = vmatmul.mubr.msk.bf16.vlgmr.msra.gmra.mrb[56].mxu0 %vm1167_vm1, %v2228_v22 }
 0x57a   : > { %12003 = vmatpush3.bf16.xpose.msra.mxu0 %v2340_v50  ;;  %12004 = vmatprep.mubr.msk.bf16.mxu0 %vm13663_vm0, %v17034_v54 }
 0x57b   : > { %12014 = vmatprep.subr.bf16.mxu0 %v17034_v54 }
 0x581   : > { %12005 = vmatmul.mubr.msk.bf16.vlgmr.msra.gmra.mrb[60].mxu0 %vm1167_vm1, %v2332_v42 }
 0x582   : > { %12015 = vmatpush3.bf16.msra.mxu0 %v2545_v56  ;;  %12016 = vmatprep.mubr.msk.bf16.mxu0 %vm13663_vm0, %v17034_v54 }
 0x583   : > { %12026 = vmatprep.subr.bf16.mxu0 %v17034_v54 }
 0x588   : > { %v1616_v53 = vpop.xlane.xlu1 %1615 }
 0x589   : > { %13014 = vrcp.f32 %v1616_v53 }
 0x58c   : > { %v2072_v44 = vpop.permute.xlu1 %2071 }
 0x590   : > { %v2179_v17 = vpop.permute.xlu1 %2178 }
 0x591   : > { %v2184_v25 = vsel %vm1167_vm1, %v2179_v17, 0 }
 0x593   : > { %v13015_v49 = vpop.eup %13014 }
 0x594   : > { %v1632_v55 = vmul.f32 %v13015_v49, %v14374_v4  ;;  %v2176_v61 = vpop.permute.xlu1 %2175 }
 0x596   : > { %v1640_v57 = vpack.c.bf16 %v1632_v55, %v1632_v55 }
 0x598   : > { %11963 = vmatmul.mubr.msk.bf16.vlgmr.msra.gmra.mrb[36].mxu1 %vm1544_vm3, %v1640_v57  ;;  %v2283_v52 = vpop.permute.xlu1 %2282 }
 0x599   : > { %11973 = vmatpush3.bf16.xpose.msra.mxu1 %v2080_v59  ;;  %11974 = vmatprep.mubr.msk.bf16.mxu1 %vm13663_vm0, %v17034_v54  ;;  %v2288_v27 = vsel %vm1167_vm1, %v2283_v52, 0 }
 0x59a   : > { %11984 = vmatprep.subr.bf16.mxu1 %v17034_v54 }
 0x59c   : > { %v2280_v4 = vpop.permute.xlu1 %2279 }
 0x5a0   : > { %11975 = vmatmul.mubr.msk.bf16.vlgmr.msra.gmra.mrb[40].mxu1 %vm1167_vm1, %v2072_v44  ;;  %v2387_v62 = vpop.permute.xlu1 %2386 }
 0x5a1   : > { %11985 = vmatpush3.bf16.xpose.msra.mxu1 %v2184_v25  ;;  %11986 = vmatprep.mubr.msk.bf16.mxu1 %vm13663_vm0, %v17034_v54  ;;  %v2392_v36 = vsel %vm1167_vm1, %v2387_v62, 0 }
 0x5a2   : > { %11996 = vmatprep.subr.bf16.mxu1 %v17034_v54 }
 0x5a4   : > { %v2384_v15 = vpop.permute.xlu1 %2383 }
 0x5a8   : > { %11987 = vmatmul.mubr.msk.bf16.vlgmr.msra.gmra.mrb[44].mxu1 %vm1167_vm1, %v2176_v61  ;;  %v2589_v16 = vpop.permute.xlu1 %2588 }
 0x5a9   : > { %11997 = vmatpush3.bf16.xpose.msra.mxu1 %v2288_v27  ;;  %11998 = vmatprep.mubr.msk.bf16.mxu1 %vm13663_vm0, %v17034_v54  ;;  %v2594_v20 = vsel %vm1644_vm2, %v2589_v16, 0 }
 0x5aa   : > { %12008 = vmatprep.subr.bf16.mxu1 %v17034_v54 }
 0x5b0   : > { %11999 = vmatmul.mubr.msk.bf16.vlgmr.msra.gmra.mrb[48].mxu1 %vm1167_vm1, %v2280_v4 }
 0x5b1   : > { %12009 = vmatpush3.bf16.xpose.msra.mxu1 %v2392_v36  ;;  %12010 = vmatprep.mubr.msk.bf16.mxu1 %vm13663_vm0, %v17034_v54 }
 0x5b2   : > { %12020 = vmatprep.subr.bf16.mxu1 %v17034_v54 }
 0x5b8   : > { %12011 = vmatmul.mubr.msk.bf16.vlgmr.msra.gmra.mrb[52].mxu1 %vm1167_vm1, %v2384_v15 }
 0x5b9   : > { %12021 = vmatpush3.bf16.msra.mxu1 %v2594_v20  ;;  %12022 = vmatprep.mubr.msk.bf16.mxu1 %vm13663_vm0, %v17034_v54 }
 0x5ba   : > { %12032 = vmatprep.subr.bf16.mxu1 %v17034_v54 }
 0x61a   : > { %v14516_v26 = vpop.f32.mrb[32].mxu0 }
 0x61b   : > { %v11922_v58 = vpop.f32.mrb[33].mxu0 }
 0x61c   : > { %v1685_v12 = vpop.f32.mrb[34].mxu0 }
 0x61d   : > { %v11923_v37 = vpop.f32.mrb[35].mxu0 }
 0x622   : > { %v14518_v60 = vpop.f32.mrb[24].mxu1 }
 0x623   : > { %v14520_v29 = vpop.f32.mrb[36].mxu0  ;;  %v11928_v22 = vpop.f32.mrb[25].mxu1 }
 0x624   : > { %v11934_v31 = vpop.f32.mrb[37].mxu0  ;;  %v1731_v7 = vpop.f32.mrb[26].mxu1 }
 0x625   : > { %v1777_v42 = vpop.f32.mrb[38].mxu0  ;;  %v11929_v50 = vpop.f32.mrb[27].mxu1 }
 0x626   : > { %v11935_v38 = vpop.f32.mrb[39].mxu0 }
 0x62a   : > { %v14522_v56 = vpop.f32.mrb[28].mxu1 }
 0x62b   : > { %v14524_v53 = vpop.f32.mrb[40].mxu0  ;;  %v11940_v44 = vpop.f32.mrb[29].mxu1 }
 0x62c   : > { %v11946_v17 = vpop.f32.mrb[41].mxu0  ;;  %v1823_v49 = vpop.f32.mrb[30].mxu1 }
 0x62d   : > { %v1869_v55 = vpop.f32.mrb[42].mxu0  ;;  %v11941_v57 = vpop.f32.mrb[31].mxu1 }
 0x62e   : > { %v11947_v61 = vpop.f32.mrb[43].mxu0 }
 0x632   : > { %v14526_v59 = vpop.f32.mrb[32].mxu1 }
 0x633   : > { %v14528_v52 = vpop.f32.mrb[44].mxu0  ;;  %v11952_v25 = vpop.f32.mrb[33].mxu1 }
 0x634   : > { %v11958_v4 = vpop.f32.mrb[45].mxu0  ;;  %v1915_v27 = vpop.f32.mrb[34].mxu1 }
 0x635   : > { %v1961_v62 = vpop.f32.mrb[46].mxu0  ;;  %v11953_v15 = vpop.f32.mrb[35].mxu1 }
 0x636   : > { %v11959_v36 = vpop.f32.mrb[47].mxu0 }
 0x63c   : > { %v2064_v16 = vpop.f32.mrb[48].mxu0 }
 0x63d   : > { %v11970_v20 = vpop.f32.mrb[49].mxu0  ;;  %v2434_v58 = vmul.f32 0.17677669, %v2064_v16 }
 0x63e   : > { %v2067_v12 = vpop.f32.mrb[50].mxu0 }
 0x63f   : > { %v11971_v37 = vpop.f32.mrb[51].mxu0  ;;  %v2442_v22 = vsel %vm1544_vm3, %v2434_v58, -inf }
 0x640   : > { %2443 = vmax.xlane.f32.xlu0 %v2442_v22 }
 0x644   : > { %v2168_v31 = vpop.f32.mrb[52].mxu0 }
 0x645   : > { %v11982_v7 = vpop.f32.mrb[53].mxu0  ;;  %v2436_v42 = vmul.f32 0.17677669, %v2168_v31 }
 0x646   : > { %v2171_v50 = vpop.f32.mrb[54].mxu0 }
 0x647   : > { %v11983_v38 = vpop.f32.mrb[55].mxu0  ;;  %v2448_v44 = vsel %vm1544_vm3, %v2436_v42, -inf }
 0x648   : > { %2449 = vmax.xlane.f32.xlu0 %v2448_v44 }
 0x64c   : > { %v2272_v17 = vpop.f32.mrb[56].mxu0 }
 0x64d   : > { %v11994_v49 = vpop.f32.mrb[57].mxu0 }
 0x64e   : > { %v2275_v55 = vpop.f32.mrb[58].mxu0 }
 0x64f   : > { %v11995_v57 = vpop.f32.mrb[59].mxu0 }
 0x654   : > { %v2376_v61 = vpop.f32.mrb[60].mxu0 }
 0x655   : > { %v12006_v25 = vpop.f32.mrb[61].mxu0 }
 0x656   : > { %v2379_v4 = vpop.f32.mrb[62].mxu0  ;;  %v2438_v25 = vmul.f32 0.17677669, %v2272_v17 }
 0x657   : > { %v12007_v27 = vpop.f32.mrb[63].mxu0 }
 0x658   : > { %v2454_v4 = vsel %vm1544_vm3, %v2438_v25, -inf  ;;  %v14537_v27 = vmul.f32 0.17677669, %v2376_v61 }
 0x66b   : > { %v14532_v62 = vpop.f32.mrb[36].mxu1 }
 0x66c   : > { %v11964_v15 = vpop.f32.mrb[37].mxu1 }
 0x66d   : > { %v2007_v36 = vpop.f32.mrb[38].mxu1 }
 0x66e   : > { %v11965_v16 = vpop.f32.mrb[39].mxu1 }
 0x673   : > { %v2116_v20 = vpop.f32.mrb[40].mxu1 }
 0x674   : > { %v11976_v12 = vpop.f32.mrb[41].mxu1  ;;  %v2435_v37 = vmul.f32 0.17677669, %v2116_v20 }
 0x675   : > { %v2119_v22 = vpop.f32.mrb[42].mxu1 }
 0x676   : > { %v11977_v31 = vpop.f32.mrb[43].mxu1  ;;  %v2445_v7 = vsel %vm1544_vm3, %v2435_v37, -inf  ;;  %v2460_v22 = vsel %vm1544_vm3, %v14537_v27, -inf }
 0x677   : > { %2446 = vmax.xlane.f32.xlu1 %v2445_v7 }
 0x67b   : > { %v2220_v50 = vpop.f32.mrb[44].mxu1 }
 0x67c   : > { %v11988_v38 = vpop.f32.mrb[45].mxu1  ;;  %v2437_v44 = vmul.f32 0.17677669, %v2220_v50 }
 0x67d   : > { %v2223_v49 = vpop.f32.mrb[46].mxu1 }
 0x67e   : > { %v11989_v55 = vpop.f32.mrb[47].mxu1  ;;  %v2451_v57 = vsel %vm1544_vm3, %v2437_v44, -inf }
 0x67f   : > { %2452 = vmax.xlane.f32.xlu0 %v2451_v57 }
 0x683   : > { %2455 = vmax.xlane.f32.xlu0 %v2454_v4  ;;  %v2324_v15 = vpop.f32.mrb[48].mxu1 }
 0x684   : > { %v12000_v36 = vpop.f32.mrb[49].mxu1  ;;  %v2439_v16 = vmul.f32 0.17677669, %v2324_v15 }
 0x685   : > { %v2327_v20 = vpop.f32.mrb[50].mxu1 }
 0x686   : > { %v12001_v12 = vpop.f32.mrb[51].mxu1  ;;  %v2457_v31 = vsel %vm1544_vm3, %v2439_v16, -inf }
 0x687   : > { %2461 = vmax.xlane.f32.xlu0 %v2460_v22  ;;  %2458 = vmax.xlane.f32.xlu1 %v2457_v31 }
 0x68b   : > { %v2428_v7 = vpop.f32.mrb[52].mxu1 }
 0x68c   : > { %v12012_v17 = vpop.f32.mrb[53].mxu1  ;;  %v14546_v61 = vmul.f32 0.17677669, %v2428_v7 }
 0x68d   : > { %v2431_v50 = vpop.f32.mrb[54].mxu1  ;;  %v2638_v17 = vpop.permute.xlu1 %2637 }
 0x68e   : > { %v12013_v38 = vpop.f32.mrb[55].mxu1  ;;  %v2463_v49 = vsel %vm1544_vm3, %v14546_v61, -inf }
 0x691   : > { %v14555_v50 = vpop.permute.xlu1 %2686 }
 0x698   : > { %2784 = vrot.lane.b32.xlu1 %v14432_v40, %s13664_s22 }
 0x69d   : > { %2735 = vrot.lane.b32.xlu0 %v14416_v28, %s13664_s22 }
 0x6bc   : > { %2464 = vmax.xlane.f32.xlu1 %v2463_v49 }
 0x6cd   : > { %v2444_v55 = vpop.xlane.xlu0 %2443 }
 0x6ce   : > { %v2466_v57 = vsub.f32 %v2434_v58, %v2444_v55 }
 0x6d0   : > { %v2474_v4 = vmul.f32 1.442695, %v2466_v57 }
 0x6d2   : > { %13016 = vpow2.f32 %v2474_v4 }
 0x6d5   : > { %v2450_v15 = vpop.xlane.xlu0 %2449 }
 0x6d6   : > { %v2468_v36 = vsub.f32 %v2436_v42, %v2450_v15 }
 0x6d8   : > { %v2478_v20 = vmul.f32 1.442695, %v2468_v36 }
 0x6da   : > { %13018 = vpow2.f32 %v2478_v20 }
 0x6dc   : > { %v13017_v12 = vpop.eup %13016 }
 0x6dd   : > { %v2490_v22 = vsel %vm1544_vm3, %v13017_v12, 0.0 }
 0x6de   : > { %2491 = vadd.xlane.f32.xlu0 %v2490_v22 }
 0x6e4   : > { %v14551_v31 = vpop.eup %13018 }
 0x6e5   : > { %v2496_v7 = vsel %vm1544_vm3, %v14551_v31, 0.0 }
 0x6e6   : > { %2497 = vadd.xlane.f32.xlu0 %v2496_v7 }
 0x704   : > { %v2447_v58 = vpop.xlane.xlu1 %2446 }
 0x705   : > { %v2467_v38 = vsub.f32 %v2435_v37, %v2447_v58 }
 0x707   : > { %v2476_v49 = vmul.f32 1.442695, %v2467_v38 }
 0x709   : > { %13020 = vpow2.f32 %v2476_v49 }
 0x70c   : > { %v2453_v42 = vpop.xlane.xlu0 %2452 }
 0x70d   : > { %v2469_v55 = vsub.f32 %v2437_v44, %v2453_v42 }
 0x70f   : > { %v2480_v57 = vmul.f32 1.442695, %v2469_v55 }
 0x710   : > { %v2456_v4 = vpop.xlane.xlu0 %2455 }
 0x711   : > { %13022 = vpow2.f32 %v2480_v57  ;;  %v2470_v15 = vsub.f32 %v2438_v25, %v2456_v4 }
 0x713   : > { %v14557_v36 = vpop.eup %13020  ;;  %v2482_v20 = vmul.f32 1.442695, %v2470_v15 }
 0x714   : > { %v2493_v22 = vsel %vm1544_vm3, %v14557_v36, 0.0  ;;  %v2459_v25 = vpop.xlane.xlu1 %2458  ;;  %v2462_v49 = vpop.xlane.xlu0 %2461 }
 0x715   : > { %13024 = vpow2.f32 %v2482_v20  ;;  %2494 = vadd.xlane.f32.xlu1 %v2493_v22  ;;  %v2471_v38 = vsub.f32 %v2439_v16, %v2459_v25  ;;  %v2472_v42 = vsub.f32 %v14537_v27, %v2462_v49 }
 0x717   : > { %v2484_v55 = vmul.f32 1.442695, %v2471_v38  ;;  %v2486_v57 = vmul.f32 1.442695, %v2472_v42 }
 0x718   : > { %v2736_v27 = vpop.permute.xlu0 %2735  ;;  %v14584_v16 = vpop.permute.xlu1 %2784 }
 0x719   : > { %13026 = vpow2.f32 %v2484_v55 }
 0x71a   : > { %13028 = vpow2.f32 %v2486_v57 }
 0x71b   : > { %v14561_v7 = vpop.eup %13022 }
 0x71c   : > { %v2499_v37 = vsel %vm1544_vm3, %v14561_v7, 0.0 }
 0x71d   : > { %2500 = vadd.xlane.f32.xlu1 %v2499_v37 }
 0x71f   : > { %v14565_v58 = vpop.eup %13024 }
 0x720   : > { %v2502_v44 = vsel %vm1544_vm3, %v14565_v58, 0.0 }
 0x721   : > { %2503 = vadd.xlane.f32.xlu0 %v2502_v44 }
 0x723   : > { %v14574_v4 = vpop.eup %13026 }
 0x724   : > { %v2505_v15 = vsel %vm1544_vm3, %v14574_v4, 0.0  ;;  %v14578_v20 = vpop.eup %13028 }
 0x725   : > { %v2508_v22 = vsel %vm1544_vm3, %v14578_v20, 0.0 }
 0x72e   : > { %2882 = vrot.lane.b32.xlu1 %v14454_v30, %s13664_s22 }
 0x737   : > { %2833 = vrot.lane.b32.xlu0 %v14438_v43, %s13664_s22 }
 0x749   : > { %v2465_v44 = vpop.xlane.xlu1 %2464 }
 0x74a   : > { %v2473_v25 = vsub.f32 %v14546_v61, %v2465_v44 }
 0x74c   : > { %v2488_v49 = vmul.f32 1.442695, %v2473_v25 }
 0x752   : > { %2506 = vadd.xlane.f32.xlu1 %v2505_v15  ;;  %v2643_v15 = vsel %vm1644_vm2, %v2638_v17, 0  ;;  %v2741_v17 = vsel %vm1644_vm2, %v2736_v27, 0 }
 0x756   : > { %2509 = vadd.xlane.f32.xlu0 %v2508_v22 }
 0x763   : > { %2990 = vrot.lane.b32.xlu1 %v14209_v41, %s13665_s11 }
 0x76b   : > { %v2492_v37 = vpop.xlane.xlu0 %2491 }
 0x76c   : > { %13030 = vrcp.f32 %v2492_v37  ;;  %2940 = vrot.lane.b32.xlu0 %v14204_v63, %s13665_s11 }
 0x770   : > { %2938 = vrot.lane.b32.xlu0 %v14211_v47, %s13665_s11 }
 0x773   : > { %v2498_v38 = vpop.xlane.xlu0 %2497 }
 0x774   : > { %13032 = vrcp.f32 %v2498_v38  ;;  %3040 = vrot.lane.b32.xlu0 %v14213_v48, %s13665_s11 }
 0x775   : > { %13034 = vpow2.f32 %v2488_v49 }
 0x776   : > { %v13031_v42 = vpop.eup %13030 }
 0x777   : > { %v2515_v55 = vmul.f32 %v13031_v42, %v13017_v12 }
 0x778   : > { %3038 = vrot.lane.b32.xlu0 %v14237_v13, %s13665_s11 }
 0x779   : > { %v2530_v57 = vpack.c.bf16 %v2515_v55, %v2515_v55  ;;  %v2692_v55 = vsel %vm1644_vm2, %v14555_v50, 0  ;;  %v2790_v50 = vsel %vm1644_vm2, %v14584_v16, 0 }
 0x77b   : > { %12017 = vmatmul.mubr.msk.bf16.vlgmr.msra.gmra.mrb[64].mxu0 %vm1544_vm3, %v2530_v57 }
 0x77c   : > { %12027 = vmatpush3.bf16.msra.mxu0 %v2643_v15  ;;  %3140 = vrot.lane.b32.xlu0 %v14239_v14, %s13665_s11 }
 0x77d   : > { %12028 = vmatprep.mubr.msk.bf16.mxu0 %vm13663_vm0, %v17034_v54  ;;  %12038 = vmatprep.subr.bf16.mxu0 %v17034_v54 }
 0x77e   : > { %v13033_v61 = vpop.eup %13032 }
 0x77f   : > { %v2519_v12 = vmul.f32 %v13033_v61, %v14551_v31  ;;  %v14605_v37 = vpop.eup %13034 }
 0x780   : > { %3138 = vrot.lane.b32.xlu0 %v14259_v19, %s13665_s11  ;;  %v2511_v31 = vsel %vm1544_vm3, %v14605_v37, 0.0 }
 0x781   : > { %v2532_v22 = vpack.c.bf16 %v2519_v12, %v2519_v12 }
 0x783   : > { %12029 = vmatmul.mubr.msk.bf16.vlgmr.msra.gmra.mrb[68].mxu0 %vm1544_vm3, %v2532_v22 }
 0x784   : > { %12039 = vmatpush3.bf16.msra.mxu0 %v2741_v17  ;;  %3240 = vrot.lane.b32.xlu0 %v14261_v24, %s13665_s11 }
 0x785   : > { %12040 = vmatprep.mubr.msk.bf16.mxu0 %vm13663_vm0, %v17034_v54  ;;  %12050 = vmatprep.subr.bf16.mxu0 %v17034_v54 }
 0x787   : > { %2512 = vadd.xlane.f32.xlu1 %v2511_v31 }
 0x788   : > { %3238 = vrot.lane.b32.xlu0 %v14283_v33, %s13665_s11 }
 0x78c   : > { %3442 = vrot.lane.b32.xlu0 %v14285_v35, %s13665_s11 }
 0x798   : > { %2988 = vrot.lane.b32.xlu1 %v14235_v0, %s13665_s11 }
 0x79c   : > { %3090 = vrot.lane.b32.xlu1 %v14233_v18, %s13665_s11 }
 0x7a0   : > { %3088 = vrot.lane.b32.xlu1 %v14257_v23, %s13665_s11 }
 0x7a2   : > { %v2495_v27 = vpop.xlane.xlu1 %2494 }
 0x7a3   : > { %13036 = vrcp.f32 %v2495_v27 }
 0x7a4   : > { %3190 = vrot.lane.b32.xlu1 %v14255_v21, %s13665_s11 }
 0x7a8   : > { %3188 = vrot.lane.b32.xlu1 %v14281_v32, %s13665_s11 }
 0x7aa   : > { %v2501_v44 = vpop.xlane.xlu1 %2500 }
 0x7ab   : > { %13038 = vrcp.f32 %v2501_v44 }
 0x7ac   : > { %3290 = vrot.lane.b32.xlu1 %v14277_v34, %s13665_s11 }
 0x7ad   : > { %v13037_v25 = vpop.eup %13036 }
 0x7ae   : > { %v2504_v38 = vpop.xlane.xlu0 %2503  ;;  %v2517_v49 = vmul.f32 %v13037_v25, %v14557_v36 }
 0x7af   : > { %13040 = vrcp.f32 %v2504_v38 }
 0x7b0   : > { %3288 = vrot.lane.b32.xlu1 %v14305_v39, %s13665_s11  ;;  %v2531_v42 = vpack.c.bf16 %v2517_v49, %v2517_v49 }
 0x7b2   : > { %12023 = vmatmul.mubr.msk.bf16.vlgmr.msra.gmra.mrb[56].mxu1 %vm1544_vm3, %v2531_v42  ;;  %v2834_v22 = vpop.permute.xlu0 %2833 }
 0x7b3   : > { %12033 = vmatpush3.bf16.msra.mxu1 %v2692_v55  ;;  %12034 = vmatprep.mubr.msk.bf16.mxu1 %vm13663_vm0, %v17034_v54  ;;  %v2839_v17 = vsel %vm1644_vm2, %v2834_v22, 0 }
 0x7b4   : > { %3490 = vrot.lane.b32.xlu1 %v14303_v51, %s13665_s11  ;;  %12044 = vmatprep.subr.bf16.mxu1 %v17034_v54 }
 0x7b5   : > { %v13039_v36 = vpop.eup %13038 }
 0x7b6   : > { %v2521_v57 = vmul.f32 %v13039_v36, %v14561_v7 }
 0x7b8   : > { %3538 = vrot.lane.b32.xlu1 %v14396_v45, %s13665_s11  ;;  %v2533_v15 = vpack.c.bf16 %v2521_v57, %v2521_v57 }
 0x7b9   : > { %v13041_v61 = vpop.eup %13040 }
 0x7ba   : > { %12035 = vmatmul.mubr.msk.bf16.vlgmr.msra.gmra.mrb[60].mxu1 %vm1544_vm3, %v2533_v15  ;;  %v2523_v12 = vmul.f32 %v13041_v61, %v14565_v58  ;;  %v2883_v58 = vpop.permute.xlu1 %2882 }
 0x7bb   : > { %12045 = vmatpush3.bf16.msra.mxu1 %v2790_v50  ;;  %12046 = vmatprep.mubr.msk.bf16.mxu1 %vm13663_vm0, %v17034_v54  ;;  %v2888_v55 = vsel %vm1644_vm2, %v2883_v58, 0 }
 0x7bc   : > { %3586 = vrot.lane.b32.xlu1 %v14402_v46, %s13665_s11  ;;  %v2534_v7 = vpack.c.bf16 %v2523_v12, %v2523_v12  ;;  %12056 = vmatprep.subr.bf16.mxu1 %v17034_v54 }
 0x7be   : > { %12041 = vmatmul.mubr.msk.bf16.vlgmr.msra.gmra.mrb[72].mxu0 %vm1544_vm3, %v2534_v7 }
 0x7bf   : > { %12051 = vmatpush3.bf16.msra.mxu0 %v2839_v17  ;;  %12052 = vmatprep.mubr.msk.bf16.mxu0 %vm13663_vm0, %v17034_v54 }
 0x7c0   : > { %12062 = vmatprep.subr.bf16.mxu0 %v17034_v54 }
 0x7df   : > { %v2507_v16 = vpop.xlane.xlu1 %2506 }
 0x7e0   : > { %13042 = vrcp.f32 %v2507_v16 }
 0x7e3   : > { %v2510_v31 = vpop.xlane.xlu0 %2509  ;;  %v2991_v16 = vpop.permute.xlu1 %2990 }
 0x7e4   : > { %13044 = vrcp.f32 %v2510_v31 }
 0x7e7   : > { %v2941_v27 = vpop.permute.xlu0 %2940 }
 0x7e8   : > { %v2946_v61 = vsel %vm1167_vm1, %v2941_v27, 0 }
 0x7ea   : > { %v13043_v44 = vpop.eup %13042 }
 0x7eb   : > { %v2939_v25 = vpop.permute.xlu0 %2938  ;;  %v2525_v38 = vmul.f32 %v13043_v44, %v14574_v4 }
 0x7ed   : > { %v2535_v49 = vpack.c.bf16 %v2525_v38, %v2525_v38 }
 0x7ee   : > { %v13045_v42 = vpop.eup %13044 }
 0x7ef   : > { %v3041_v36 = vpop.permute.xlu0 %3040  ;;  %12047 = vmatmul.mubr.msk.bf16.vlgmr.msra.gmra.mrb[64].mxu1 %vm1544_vm3, %v2535_v49  ;;  %v2527_v57 = vmul.f32 %v13045_v42, %v14578_v20 }
 0x7f0   : > { %12057 = vmatpush3.bf16.msra.mxu1 %v2888_v55  ;;  %12058 = vmatprep.mubr.msk.bf16.mxu1 %vm13663_vm0, %v17034_v54  ;;  %v3046_v20 = vsel %vm1167_vm1, %v3041_v36, 0 }
 0x7f1   : > { %v2536_v15 = vpack.c.bf16 %v2527_v57, %v2527_v57  ;;  %12068 = vmatprep.subr.bf16.mxu1 %v17034_v54  ;;  %v2996_v57 = vsel %vm1167_vm1, %v2991_v16, 0 }
 0x7f3   : > { %12053 = vmatmul.mubr.msk.bf16.vlgmr.msra.gmra.mrb[76].mxu0 %vm1544_vm3, %v2536_v15  ;;  %v3039_v4 = vpop.permute.xlu0 %3038 }
 0x7f4   : > { %12063 = vmatpush3.bf16.xpose.msra.mxu0 %v2946_v61  ;;  %12064 = vmatprep.mubr.msk.bf16.mxu0 %vm13663_vm0, %v17034_v54 }
 0x7f5   : > { %12074 = vmatprep.subr.bf16.mxu0 %v17034_v54 }
 0x7f7   : > { %v3141_v50 = vpop.permute.xlu0 %3140 }
 0x7f8   : > { %v3146_v22 = vsel %vm1167_vm1, %v3141_v50, 0 }
 0x7fb   : > { %12065 = vmatmul.mubr.msk.bf16.vlgmr.msra.gmra.mrb[80].mxu0 %vm1167_vm1, %v2939_v25  ;;  %v3139_v12 = vpop.permute.xlu0 %3138 }
 0x7fc   : > { %12075 = vmatpush3.bf16.xpose.msra.mxu0 %v3046_v20  ;;  %12076 = vmatprep.mubr.msk.bf16.mxu0 %vm13663_vm0, %v17034_v54 }
 0x7fd   : > { %12086 = vmatprep.subr.bf16.mxu0 %v17034_v54 }
 0x7ff   : > { %v3241_v7 = vpop.permute.xlu0 %3240 }
 0x800   : > { %v3246_v58 = vsel %vm1167_vm1, %v3241_v7, 0 }
 0x803   : > { %12077 = vmatmul.mubr.msk.bf16.vlgmr.msra.gmra.mrb[84].mxu0 %vm1167_vm1, %v3039_v4  ;;  %v3239_v17 = vpop.permute.xlu0 %3238 }
 0x804   : > { %12087 = vmatpush3.bf16.xpose.msra.mxu0 %v3146_v22  ;;  %12088 = vmatprep.mubr.msk.bf16.mxu0 %vm13663_vm0, %v17034_v54 }
 0x805   : > { %12098 = vmatprep.subr.bf16.mxu0 %v17034_v54 }
 0x807   : > { %v3443_v31 = vpop.permute.xlu0 %3442 }
 0x808   : > { %v3448_v27 = vsel %vm1644_vm2, %v3443_v31, 0 }
 0x80b   : > { %12089 = vmatmul.mubr.msk.bf16.vlgmr.msra.gmra.mrb[88].mxu0 %vm1167_vm1, %v3139_v12 }
 0x80c   : > { %12099 = vmatpush3.bf16.xpose.msra.mxu0 %v3246_v58  ;;  %12100 = vmatprep.mubr.msk.bf16.mxu0 %vm13663_vm0, %v17034_v54 }
 0x80d   : > { %12110 = vmatprep.subr.bf16.mxu0 %v17034_v54 }
 0x813   : > { %12101 = vmatmul.mubr.msk.bf16.vlgmr.msra.gmra.mrb[92].mxu0 %vm1167_vm1, %v3239_v17 }
 0x814   : > { %12111 = vmatpush3.bf16.msra.mxu0 %v3448_v27  ;;  %v2513_v44 = vpop.xlane.xlu1 %2512  ;;  %12112 = vmatprep.mubr.msk.bf16.mxu0 %vm13663_vm0, %v17034_v54 }
 0x815   : > { %13046 = vrcp.f32 %v2513_v44  ;;  %12122 = vmatprep.subr.bf16.mxu0 %v17034_v54 }
 0x818   : > { %v2989_v25 = vpop.permute.xlu1 %2988 }
 0x81c   : > { %v3091_v38 = vpop.permute.xlu1 %3090 }
 0x81d   : > { %v3096_v61 = vsel %vm1167_vm1, %v3091_v38, 0 }
 0x81f   : > { %v13047_v49 = vpop.eup %13046 }
 0x820   : > { %v2529_v42 = vmul.f32 %v13047_v49, %v14605_v37  ;;  %v3089_v36 = vpop.permute.xlu1 %3088 }
 0x822   : > { %v2537_v55 = vpack.c.bf16 %v2529_v42, %v2529_v42 }
 0x824   : > { %12059 = vmatmul.mubr.msk.bf16.vlgmr.msra.gmra.mrb[68].mxu1 %vm1544_vm3, %v2537_v55  ;;  %v3191_v15 = vpop.permute.xlu1 %3190 }
 0x825   : > { %12069 = vmatpush3.bf16.xpose.msra.mxu1 %v2996_v57  ;;  %12070 = vmatprep.mubr.msk.bf16.mxu1 %vm13663_vm0, %v17034_v54  ;;  %v3196_v4 = vsel %vm1167_vm1, %v3191_v15, 0 }
 0x826   : > { %12080 = vmatprep.subr.bf16.mxu1 %v17034_v54 }
 0x828   : > { %v3189_v37 = vpop.permute.xlu1 %3188 }
 0x82c   : > { %12071 = vmatmul.mubr.msk.bf16.vlgmr.msra.gmra.mrb[72].mxu1 %vm1167_vm1, %v2989_v25  ;;  %v3291_v50 = vpop.permute.xlu1 %3290 }
 0x82d   : > { %12081 = vmatpush3.bf16.xpose.msra.mxu1 %v3096_v61  ;;  %12082 = vmatprep.mubr.msk.bf16.mxu1 %vm13663_vm0, %v17034_v54  ;;  %v3296_v12 = vsel %vm1167_vm1, %v3291_v50, 0 }
 0x82e   : > { %12092 = vmatprep.subr.bf16.mxu1 %v17034_v54 }
 0x830   : > { %v3289_v20 = vpop.permute.xlu1 %3288 }
 0x834   : > { %12083 = vmatmul.mubr.msk.bf16.vlgmr.msra.gmra.mrb[76].mxu1 %vm1167_vm1, %v3089_v36  ;;  %v3491_v22 = vpop.permute.xlu1 %3490 }
 0x835   : > { %12093 = vmatpush3.bf16.xpose.msra.mxu1 %v3196_v4  ;;  %12094 = vmatprep.mubr.msk.bf16.mxu1 %vm13663_vm0, %v17034_v54  ;;  %v3496_v7 = vsel %vm1644_vm2, %v3491_v22, 0 }
 0x836   : > { %12104 = vmatprep.subr.bf16.mxu1 %v17034_v54 }
 0x83c   : > { %12095 = vmatmul.mubr.msk.bf16.vlgmr.msra.gmra.mrb[80].mxu1 %vm1167_vm1, %v3189_v37 }
 0x83d   : > { %12105 = vmatpush3.bf16.xpose.msra.mxu1 %v3296_v12  ;;  %12106 = vmatprep.mubr.msk.bf16.mxu1 %vm13663_vm0, %v17034_v54 }
 0x83e   : > { %12116 = vmatprep.subr.bf16.mxu1 %v17034_v54 }
 0x844   : > { %12107 = vmatmul.mubr.msk.bf16.vlgmr.msra.gmra.mrb[84].mxu1 %vm1167_vm1, %v3289_v20 }
 0x845   : > { %12117 = vmatpush3.bf16.msra.mxu1 %v3496_v7  ;;  %12118 = vmatprep.mubr.msk.bf16.mxu1 %vm13663_vm0, %v17034_v54 }
 0x846   : > { %12128 = vmatprep.subr.bf16.mxu1 %v17034_v54 }
 0x84e   : > { %v14718_v17 = vpop.f32.mrb[64].mxu0 }
 0x84f   : > { %v12018_v58 = vpop.f32.mrb[65].mxu0 }
 0x850   : > { %v2584_v16 = vpop.f32.mrb[66].mxu0 }
 0x851   : > { %v12019_v31 = vpop.f32.mrb[67].mxu0 }
 0x856   : > { %v14720_v27 = vpop.f32.mrb[68].mxu0 }
 0x857   : > { %v12030_v44 = vpop.f32.mrb[69].mxu0 }
 0x858   : > { %v2682_v25 = vpop.f32.mrb[70].mxu0 }
 0x859   : > { %v12031_v38 = vpop.f32.mrb[71].mxu0 }
 0x885   : > { %v14722_v49 = vpop.f32.mrb[56].mxu1 }
 0x886   : > { %v12024_v42 = vpop.f32.mrb[57].mxu1 }
 0x887   : > { %v2633_v55 = vpop.f32.mrb[58].mxu1 }
 0x888   : > { %v12025_v36 = vpop.f32.mrb[59].mxu1 }
 0x88d   : > { %v14724_v57 = vpop.f32.mrb[60].mxu1 }
 0x88e   : > { %v12036_v15 = vpop.f32.mrb[61].mxu1 }
 0x88f   : > { %v2731_v61 = vpop.f32.mrb[62].mxu1 }
 0x890   : > { %v12037_v37 = vpop.f32.mrb[63].mxu1 }
 0x891   : > { %v14726_v4 = vpop.f32.mrb[72].mxu0 }
 0x892   : > { %v12042_v50 = vpop.f32.mrb[73].mxu0 }
 0x893   : > { %v2780_v20 = vpop.f32.mrb[74].mxu0 }
 0x894   : > { %v12043_v12 = vpop.f32.mrb[75].mxu0 }
 0x8c2   : > { %v14728_v22 = vpop.f32.mrb[64].mxu1 }
 0x8c3   : > { %v12048_v7 = vpop.f32.mrb[65].mxu1 }
 0x8c4   : > { %v2829_v58 = vpop.f32.mrb[66].mxu1 }
 0x8c5   : > { %v12049_v16 = vpop.f32.mrb[67].mxu1 }
 0x8c6   : > { %v14730_v31 = vpop.f32.mrb[76].mxu0 }
 0x8c7   : > { %v12054_v44 = vpop.f32.mrb[77].mxu0 }
 0x8c8   : > { %v2878_v25 = vpop.f32.mrb[78].mxu0 }
 0x8c9   : > { %v12055_v38 = vpop.f32.mrb[79].mxu0 }
 0x8ce   : > { %v2982_v42 = vpop.f32.mrb[80].mxu0 }
 0x8cf   : > { %v14732_v55 = vmul.f32 0.17677669, %v2982_v42  ;;  %v12066_v36 = vpop.f32.mrb[81].mxu0 }
 0x8d0   : > { %v2985_v15 = vpop.f32.mrb[82].mxu0 }
 0x8d1   : > { %v12067_v61 = vpop.f32.mrb[83].mxu0  ;;  %v3346_v37 = vsel %vm1544_vm3, %v14732_v55, -inf }
 0x8d2   : > { %3347 = vmax.xlane.f32.xlu0 %v3346_v37 }
 0x8d6   : > { %v3082_v50 = vpop.f32.mrb[84].mxu0 }
 0x8d7   : > { %v3340_v20 = vmul.f32 0.17677669, %v3082_v50  ;;  %v12078_v12 = vpop.f32.mrb[85].mxu0 }
 0x8d8   : > { %v3085_v7 = vpop.f32.mrb[86].mxu0 }
 0x8d9   : > { %v12079_v58 = vpop.f32.mrb[87].mxu0  ;;  %v3352_v16 = vsel %vm1544_vm3, %v3340_v20, -inf }
 0x8da   : > { %3353 = vmax.xlane.f32.xlu0 %v3352_v16 }
 0x8de   : > { %v3182_v44 = vpop.f32.mrb[88].mxu0 }
 0x8df   : > { %v12090_v25 = vpop.f32.mrb[89].mxu0 }
 0x8e0   : > { %v3185_v38 = vpop.f32.mrb[90].mxu0 }
 0x8e1   : > { %v12091_v42 = vpop.f32.mrb[91].mxu0 }
 0x8e6   : > { %v3282_v1 = vpop.f32.mrb[92].mxu0 }
 0x8e7   : > { %v12102_v36 = vpop.f32.mrb[93].mxu0 }
 0x8e8   : > { %v3285_v15 = vpop.f32.mrb[94].mxu0  ;;  %v3342_v36 = vmul.f32 0.17677669, %v3182_v44 }
 0x8e9   : > { %v12103_v61 = vpop.f32.mrb[95].mxu0 }
 0x8f7   : > { %v14737_v54 = vpop.f32.mrb[68].mxu1 }
 0x8f8   : > { %v12060_v11 = vpop.f32.mrb[69].mxu1 }
 0x8f9   : > { %v2927_v37 = vpop.f32.mrb[70].mxu1  ;;  %v14741_v11 = vmul.f32 0.17677669, %v3282_v1 }
 0x8fa   : > { %v12061_v10 = vpop.f32.mrb[71].mxu1 }
 0x8fb   : > { %v3358_v10 = vsel %vm1544_vm3, %v3342_v36, -inf }
 0x8ff   : > { %v3032_v50 = vpop.f32.mrb[72].mxu1 }
 0x900   : > { %v12072_v12 = vpop.f32.mrb[73].mxu1  ;;  %v3339_v7 = vmul.f32 0.17677669, %v3032_v50 }
 0x901   : > { %v3035_v58 = vpop.f32.mrb[74].mxu1 }
 0x902   : > { %v12073_v9 = vpop.f32.mrb[75].mxu1  ;;  %v3349_v16 = vsel %vm1544_vm3, %v3339_v7, -inf }
 0x903   : > { %3350 = vmax.xlane.f32.xlu1 %v3349_v16  ;;  %v3364_v16 = vsel %vm1544_vm3, %v14741_v11, -inf }
 0x907   : > { %v3132_v25 = vpop.f32.mrb[76].mxu1 }
 0x908   : > { %v12084_v38 = vpop.f32.mrb[77].mxu1  ;;  %v3341_v42 = vmul.f32 0.17677669, %v3132_v25 }
 0x909   : > { %v3135_v8 = vpop.f32.mrb[78].mxu1 }
 0x90a   : > { %v12085_v15 = vpop.f32.mrb[79].mxu1  ;;  %v3355_v61 = vsel %vm1544_vm3, %v3341_v42, -inf }
 0x90b   : > { %3356 = vmax.xlane.f32.xlu0 %v3355_v61 }
 0x90f   : > { %3359 = vmax.xlane.f32.xlu0 %v3358_v10  ;;  %v3232_v37 = vpop.f32.mrb[80].mxu1 }
 0x910   : > { %v3343_v50 = vmul.f32 0.17677669, %v3232_v37  ;;  %v12096_v9 = vpop.f32.mrb[81].mxu1 }
 0x911   : > { %v3235_v12 = vpop.f32.mrb[82].mxu1 }
 0x912   : > { %v12097_v58 = vpop.f32.mrb[83].mxu1  ;;  %v3361_v8 = vsel %vm1544_vm3, %v3343_v50, -inf }
 0x913   : > { %3365 = vmax.xlane.f32.xlu0 %v3364_v16  ;;  %3362 = vmax.xlane.f32.xlu1 %v3361_v8 }
 0x917   : > { %v3332_v44 = vpop.f32.mrb[84].mxu1 }
 0x918   : > { %v12108_v25 = vpop.f32.mrb[85].mxu1  ;;  %v14751_v15 = vmul.f32 0.17677669, %v3332_v44 }
 0x919   : > { %v3335_v38 = vpop.f32.mrb[86].mxu1 }
 0x91a   : > { %v12109_v1 = vpop.f32.mrb[87].mxu1  ;;  %v3367_v61 = vsel %vm1544_vm3, %v14751_v15, -inf }
 0x91b   : > { %v3539_v1 = vpop.permute.xlu1 %3538 }
 0x924   : > { %3682 = vrot.lane.b32.xlu1 %v14432_v40, %s13665_s11 }
 0x929   : > { %3634 = vrot.lane.b32.xlu0 %v14416_v28, %s13665_s11 }
 0x948   : > { %3368 = vmax.xlane.f32.xlu1 %v3367_v61 }
 0x95f   : > { %v3348_v10 = vpop.xlane.xlu0 %3347 }
 0x960   : > { %v3370_v37 = vsub.f32 %v14732_v55, %v3348_v10  ;;  %v14764_v55 = vpop.permute.xlu1 %3586 }
 0x962   : > { %v3378_v9 = vmul.f32 1.442695, %v3370_v37 }
 0x964   : > { %13048 = vpow2.f32 %v3378_v9 }
 0x967   : > { %v3354_v12 = vpop.xlane.xlu0 %3353 }
 0x968   : > { %v3372_v58 = vsub.f32 %v3340_v20, %v3354_v12 }
 0x96a   : > { %v3382_v16 = vmul.f32 1.442695, %v3372_v58 }
 0x96c   : > { %13050 = vpow2.f32 %v3382_v16 }
 0x96e   : > { %v14756_v8 = vpop.eup %13048 }
 0x96f   : > { %v3394_v25 = vsel %vm1544_vm3, %v14756_v8, 0.0 }
 0x970   : > { %3395 = vadd.xlane.f32.xlu0 %v3394_v25 }
 0x976   : > { %v14760_v44 = vpop.eup %13050 }
 0x977   : > { %v3400_v38 = vsel %vm1544_vm3, %v14760_v44, 0.0 }
 0x978   : > { %3401 = vadd.xlane.f32.xlu0 %v3400_v38 }
 0x990   : > { %v3351_v61 = vpop.xlane.xlu1 %3350 }
 0x991   : > { %v3371_v10 = vsub.f32 %v3339_v7, %v3351_v61 }
 0x993   : > { %v3380_v20 = vmul.f32 1.442695, %v3371_v10 }
 0x995   : > { %13052 = vpow2.f32 %v3380_v20 }
 0x998   : > { %v3357_v37 = vpop.xlane.xlu0 %3356 }
 0x999   : > { %v3373_v9 = vsub.f32 %v3341_v42, %v3357_v37 }
 0x99b   : > { %v3384_v12 = vmul.f32 1.442695, %v3373_v9 }
 0x99c   : > { %v3360_v58 = vpop.xlane.xlu0 %3359 }
 0x99d   : > { %13054 = vpow2.f32 %v3384_v12  ;;  %v3374_v16 = vsub.f32 %v3342_v36, %v3360_v58 }
 0x99f   : > { %v14766_v25 = vpop.eup %13052  ;;  %v3386_v6 = vmul.f32 1.442695, %v3374_v16 }
 0x9a0   : > { %v3397_v3 = vsel %vm1544_vm3, %v14766_v25, 0.0  ;;  %v3366_v36 = vpop.xlane.xlu0 %3365 }
 0x9a1   : > { %13056 = vpow2.f32 %v3386_v6  ;;  %3398 = vadd.xlane.f32.xlu1 %v3397_v3  ;;  %v3363_v6 = vpop.xlane.xlu1 %3362  ;;  %v3376_v10 = vsub.f32 %v14741_v11, %v3366_v36 }
 0x9a2   : > { %v3375_v3 = vsub.f32 %v3343_v50, %v3363_v6 }
 0x9a3   : > { %v3390_v37 = vmul.f32 1.442695, %v3376_v10 }
 0x9a4   : > { %v3388_v20 = vmul.f32 1.442695, %v3375_v3  ;;  %v3635_v50 = vpop.permute.xlu0 %3634 }
 0x9a5   : > { %v3683_v11 = vpop.permute.xlu1 %3682 }
 0x9a6   : > { %13058 = vpow2.f32 %v3388_v20 }
 0x9a7   : > { %v14770_v38 = vpop.eup %13054  ;;  %13060 = vpow2.f32 %v3390_v37  ;;  %v3688_v37 = vsel %vm1644_vm2, %v3683_v11, 0 }
 0x9a8   : > { %v3403_v7 = vsel %vm1544_vm3, %v14770_v38, 0.0 }
 0x9a9   : > { %3404 = vadd.xlane.f32.xlu1 %v3403_v7 }
 0x9ab   : > { %v14774_v61 = vpop.eup %13056 }
 0x9ac   : > { %v3406_v42 = vsel %vm1544_vm3, %v14774_v61, 0.0 }
 0x9ad   : > { %3407 = vadd.xlane.f32.xlu0 %v3406_v42 }
 0x9b0   : > { %v14783_v9 = vpop.eup %13058 }
 0x9b1   : > { %v3409_v12 = vsel %vm1544_vm3, %v14783_v9, 0.0  ;;  %v14787_v58 = vpop.eup %13060 }
 0x9b2   : > { %v3412_v16 = vsel %vm1544_vm3, %v14787_v58, 0.0 }
 0x9ba   : > { %3778 = vrot.lane.b32.xlu1 %v14454_v30, %s13665_s11 }
 0x9c3   : > { %3730 = vrot.lane.b32.xlu0 %v14438_v43, %s13665_s11 }
 0x9d5   : > { %v3369_v7 = vpop.xlane.xlu1 %3368 }
 0x9d6   : > { %v3377_v42 = vsub.f32 %v14751_v15, %v3369_v7  ;;  %v3544_v15 = vsel %vm1644_vm2, %v3539_v1, 0  ;;  %v3640_v1 = vsel %vm1644_vm2, %v3635_v50, 0 }
 0x9d8   : > { %v3392_v3 = vmul.f32 1.442695, %v3377_v42 }
 0x9de   : > { %3410 = vadd.xlane.f32.xlu1 %v3409_v12 }
 0x9e2   : > { %3413 = vadd.xlane.f32.xlu0 %v3412_v16 }
 0x9ef   : > { %3886 = vrot.lane.b32.xlu1 %v14209_v41, %s13666_s24 }
 0x9f8   : > { %3836 = vrot.lane.b32.xlu0 %v14204_v63, %s13666_s24 }
 0x9fc   : > { %3834 = vrot.lane.b32.xlu0 %v14211_v47, %s13666_s24 }
 0x9fd   : > { %v3396_v6 = vpop.xlane.xlu0 %3395 }
 0x9fe   : > { %13062 = vrcp.f32 %v3396_v6 }
 0x9ff   : > { %13064 = vpow2.f32 %v3392_v3 }
 0xa00   : > { %3936 = vrot.lane.b32.xlu0 %v14213_v48, %s13666_s24  ;;  %v17112_v48 = vmov 0.0  }
 0xa04   : > { %3934 = vrot.lane.b32.xlu0 %v14237_v13, %s13666_s24 }
 0xa05   : > { %v3402_v41 = vpop.xlane.xlu0 %3401 }
 0xa06   : > { %13066 = vrcp.f32 %v3402_v41 }
 0xa08   : > { %v13063_v63 = vpop.eup %13062  ;;  %4036 = vrot.lane.b32.xlu0 %v14239_v14, %s13666_s24 }
 0xa09   : > { %v3419_v47 = vmul.f32 %v13063_v63, %v14756_v8  ;;  %v14811_v13 = vpop.eup %13064 }
 0xa0b   : > { %v3434_v36 = vpack.c.bf16 %v3419_v47, %v3419_v47 }
 0xa0c   : > { %4034 = vrot.lane.b32.xlu0 %v14259_v19, %s13666_s24  ;;  %v3415_v19 = vsel %vm1544_vm3, %v14811_v13, 0.0 }
 0xa0d   : > { %12113 = vmatmul.mubr.msk.bf16.vlgmr.msra.gmra.mrb[96].mxu0 %vm1544_vm3, %v3434_v36 }
 0xa0e   : > { %12123 = vmatpush3.bf16.msra.mxu0 %v3544_v15  ;;  %12124 = vmatprep.mubr.msk.bf16.mxu0 %vm13663_vm0, %v17112_v48 }
 0xa0f   : > { %12134 = vmatprep.subr.bf16.mxu0 %v17112_v48 }
 0xa10   : > { %v13067_v10 = vpop.eup %13066  ;;  %4136 = vrot.lane.b32.xlu0 %v14261_v24, %s13666_s24 }
 0xa11   : > { %v3423_v14 = vmul.f32 %v13067_v10, %v14760_v44 }
 0xa13   : > { %3416 = vadd.xlane.f32.xlu1 %v3415_v19  ;;  %v3436_v8 = vpack.c.bf16 %v3423_v14, %v3423_v14 }
 0xa14   : > { %4134 = vrot.lane.b32.xlu0 %v14283_v33, %s13666_s24 }
 0xa15   : > { %12125 = vmatmul.mubr.msk.bf16.vlgmr.msra.gmra.mrb[100].mxu0 %vm1544_vm3, %v3436_v8 }
 0xa16   : > { %12135 = vmatpush3.bf16.msra.mxu0 %v3640_v1  ;;  %12136 = vmatprep.mubr.msk.bf16.mxu0 %vm13663_vm0, %v17112_v48 }
 0xa17   : > { %12146 = vmatprep.subr.bf16.mxu0 %v17112_v48 }
 0xa24   : > { %3884 = vrot.lane.b32.xlu1 %v14235_v0, %s13666_s24 }
 0xa28   : > { %3986 = vrot.lane.b32.xlu1 %v14233_v18, %s13666_s24 }
 0xa2c   : > { %3984 = vrot.lane.b32.xlu1 %v14257_v23, %s13666_s24 }
 0xa2e   : > { %v3399_v24 = vpop.xlane.xlu1 %3398 }
 0xa2f   : > { %13068 = vrcp.f32 %v3399_v24 }
 0xa30   : > { %4086 = vrot.lane.b32.xlu1 %v14255_v21, %s13666_s24  ;;  %v3592_v21 = vsel %vm1644_vm2, %v14764_v55, 0 }
 0xa34   : > { %4084 = vrot.lane.b32.xlu1 %v14281_v32, %s13666_s24 }
 0xa36   : > { %v3405_v33 = vpop.xlane.xlu1 %3404 }
 0xa37   : > { %13070 = vrcp.f32 %v3405_v33 }
 0xa38   : > { %4186 = vrot.lane.b32.xlu1 %v14277_v34, %s13666_s24 }
 0xa39   : > { %v13069_v0 = vpop.eup %13068 }
 0xa3a   : > { %v3408_v44 = vpop.xlane.xlu0 %3407  ;;  %v3421_v18 = vmul.f32 %v13069_v0, %v14766_v25 }
 0xa3b   : > { %13072 = vrcp.f32 %v3408_v44 }
 0xa3c   : > { %4184 = vrot.lane.b32.xlu1 %v14305_v39, %s13666_s24  ;;  %v3435_v23 = vpack.c.bf16 %v3421_v18, %v3421_v18 }
 0xa3e   : > { %12119 = vmatmul.mubr.msk.bf16.vlgmr.msra.gmra.mrb[88].mxu1 %vm1544_vm3, %v3435_v23  ;;  %v3731_v55 = vpop.permute.xlu0 %3730 }
 0xa3f   : > { %12129 = vmatpush3.bf16.msra.mxu1 %v3592_v21  ;;  %12130 = vmatprep.mubr.msk.bf16.mxu1 %vm13663_vm0, %v17112_v48  ;;  %v3736_v16 = vsel %vm1644_vm2, %v3731_v55, 0 }
 0xa40   : > { %12140 = vmatprep.subr.bf16.mxu1 %v17112_v48 }
 0xa41   : > { %v13071_v34 = vpop.eup %13070 }
 0xa42   : > { %v3425_v32 = vmul.f32 %v13071_v34, %v14770_v38  ;;  %v3779_v38 = vpop.permute.xlu1 %3778 }
 0xa43   : > { %v3784_v63 = vsel %vm1644_vm2, %v3779_v38, 0 }
 0xa44   : > { %v3437_v25 = vpack.c.bf16 %v3425_v32, %v3425_v32 }
 0xa45   : > { %v13073_v20 = vpop.eup %13072 }
 0xa46   : > { %12131 = vmatmul.mubr.msk.bf16.vlgmr.msra.gmra.mrb[92].mxu1 %vm1544_vm3, %v3437_v25  ;;  %v3427_v39 = vmul.f32 %v13073_v20, %v14774_v61 }
 0xa47   : > { %12141 = vmatpush3.bf16.msra.mxu1 %v3688_v37  ;;  %12142 = vmatprep.mubr.msk.bf16.mxu1 %vm13663_vm0, %v17112_v48 }
 0xa48   : > { %v3438_v12 = vpack.c.bf16 %v3427_v39, %v3427_v39  ;;  %12152 = vmatprep.subr.bf16.mxu1 %v17112_v48 }
 0xa4a   : > { %12137 = vmatmul.mubr.msk.bf16.vlgmr.msra.gmra.mrb[104].mxu0 %vm1544_vm3, %v3438_v12 }
 0xa4b   : > { %12147 = vmatpush3.bf16.msra.mxu0 %v3736_v16  ;;  %12148 = vmatprep.mubr.msk.bf16.mxu0 %vm13663_vm0, %v17112_v48 }
 0xa4c   : > { %12158 = vmatprep.subr.bf16.mxu0 %v17112_v48 }
 0xa6b   : > { %v3411_v61 = vpop.xlane.xlu1 %3410 }
 0xa6c   : > { %13074 = vrcp.f32 %v3411_v61 }
 0xa6f   : > { %v3414_v11 = vpop.xlane.xlu0 %3413  ;;  %v3887_v33 = vpop.permute.xlu1 %3886 }
 0xa70   : > { %13076 = vrcp.f32 %v3414_v11  ;;  %v3892_v25 = vsel %vm1167_vm1, %v3887_v33, 0 }
 0xa73   : > { %v3837_v50 = vpop.permute.xlu0 %3836 }
 0xa74   : > { %v3842_v10 = vsel %vm1167_vm1, %v3837_v50, 0 }
 0xa76   : > { %v13075_v7 = vpop.eup %13074 }
 0xa77   : > { %v3835_v42 = vpop.permute.xlu0 %3834  ;;  %v3429_v6 = vmul.f32 %v13075_v7, %v14783_v9 }
 0xa79   : > { %v3439_v3 = vpack.c.bf16 %v3429_v6, %v3429_v6 }
 0xa7a   : > { %v13077_v41 = vpop.eup %13076 }
 0xa7b   : > { %12143 = vmatmul.mubr.msk.bf16.vlgmr.msra.gmra.mrb[96].mxu1 %vm1544_vm3, %v3439_v3  ;;  %v3431_v47 = vmul.f32 %v13077_v41, %v14787_v58  ;;  %v3937_v36 = vpop.permute.xlu0 %3936 }
 0xa7c   : > { %12153 = vmatpush3.bf16.msra.mxu1 %v3784_v63  ;;  %12154 = vmatprep.mubr.msk.bf16.mxu1 %vm13663_vm0, %v17112_v48  ;;  %v3942_v58 = vsel %vm1167_vm1, %v3937_v36, 0 }
 0xa7d   : > { %v3440_v15 = vpack.c.bf16 %v3431_v47, %v3431_v47  ;;  %12164 = vmatprep.subr.bf16.mxu1 %v17112_v48 }
 0xa7f   : > { %12149 = vmatmul.mubr.msk.bf16.vlgmr.msra.gmra.mrb[108].mxu0 %vm1544_vm3, %v3440_v15  ;;  %v3935_v9 = vpop.permute.xlu0 %3934 }
 0xa80   : > { %12159 = vmatpush3.bf16.xpose.msra.mxu0 %v3842_v10  ;;  %12160 = vmatprep.mubr.msk.bf16.mxu0 %vm13663_vm0, %v17112_v48 }
 0xa81   : > { %12170 = vmatprep.subr.bf16.mxu0 %v17112_v48 }
 0xa83   : > { %v4037_v14 = vpop.permute.xlu0 %4036 }
 0xa84   : > { %v4042_v8 = vsel %vm1167_vm1, %v4037_v14, 0 }
 0xa87   : > { %12161 = vmatmul.mubr.msk.bf16.vlgmr.msra.gmra.mrb[112].mxu0 %vm1167_vm1, %v3835_v42  ;;  %v4035_v19 = vpop.permute.xlu0 %4034 }
 0xa88   : > { %12171 = vmatpush3.bf16.xpose.msra.mxu0 %v3942_v58  ;;  %12172 = vmatprep.mubr.msk.bf16.mxu0 %vm13663_vm0, %v17112_v48 }
 0xa89   : > { %12182 = vmatprep.subr.bf16.mxu0 %v17112_v48 }
 0xa8b   : > { %v4137_v1 = vpop.permute.xlu0 %4136 }
 0xa8c   : > { %v4142_v24 = vsel %vm1167_vm1, %v4137_v1, 0 }
 0xa8f   : > { %12173 = vmatmul.mubr.msk.bf16.vlgmr.msra.gmra.mrb[116].mxu0 %vm1167_vm1, %v3935_v9  ;;  %v4135_v0 = vpop.permute.xlu0 %4134 }
 0xa90   : > { %12183 = vmatpush3.bf16.xpose.msra.mxu0 %v4042_v8  ;;  %12184 = vmatprep.mubr.msk.bf16.mxu0 %vm13663_vm0, %v17112_v48 }
 0xa91   : > { %12194 = vmatprep.subr.bf16.mxu0 %v17112_v48 }
 0xa97   : > { %12185 = vmatmul.mubr.msk.bf16.vlgmr.msra.gmra.mrb[120].mxu0 %vm1167_vm1, %v4035_v19 }
 0xa98   : > { %12195 = vmatpush3.bf16.xpose.msra.mxu0 %v4142_v24  ;;  %12196 = vmatprep.mubr.msk.bf16.mxu0 %vm13663_vm0, %v17112_v48 }
 0xa99   : > { %12206 = vmatprep.subr.bf16.mxu0 %v17112_v48 }
 0xa9f   : > { %12197 = vmatmul.mubr.msk.bf16.vlgmr.msra.gmra.mrb[124].mxu0 %vm1167_vm1, %v4135_v0 }
 0xaa0   : > { %v3417_v44 = vpop.xlane.xlu1 %3416  ;;  %12208 = vmatprep.mubr.msk.bf16.mxu0 %vm13663_vm0, %v17112_v48 }
 0xaa1   : > { %13078 = vrcp.f32 %v3417_v44 }
 0xaa4   : > { %v3885_v18 = vpop.permute.xlu1 %3884 }
 0xaa8   : > { %v3987_v34 = vpop.permute.xlu1 %3986 }
 0xaa9   : > { %v3992_v37 = vsel %vm1167_vm1, %v3987_v34, 0 }
 0xaab   : > { %v13079_v23 = vpop.eup %13078 }
 0xaac   : > { %v3433_v21 = vmul.f32 %v13079_v23, %v14811_v13  ;;  %v3985_v20 = vpop.permute.xlu1 %3984 }
 0xaae   : > { %v3441_v32 = vpack.c.bf16 %v3433_v21, %v3433_v21 }
 0xab0   : > { %12155 = vmatmul.mubr.msk.bf16.vlgmr.msra.gmra.mrb[100].mxu1 %vm1544_vm3, %v3441_v32  ;;  %v4087_v39 = vpop.permute.xlu1 %4086 }
 0xab1   : > { %12165 = vmatpush3.bf16.xpose.msra.mxu1 %v3892_v25  ;;  %12166 = vmatprep.mubr.msk.bf16.mxu1 %vm13663_vm0, %v17112_v48  ;;  %v4092_v55 = vsel %vm1167_vm1, %v4087_v39, 0 }
 0xab2   : > { %12176 = vmatprep.subr.bf16.mxu1 %v17112_v48 }
 0xab4   : > { %v4085_v13 = vpop.permute.xlu1 %4084 }
 0xab8   : > { %12167 = vmatmul.mubr.msk.bf16.vlgmr.msra.gmra.mrb[104].mxu1 %vm1167_vm1, %v3885_v18  ;;  %v4187_v12 = vpop.permute.xlu1 %4186 }
 0xab9   : > { %12177 = vmatpush3.bf16.xpose.msra.mxu1 %v3992_v37  ;;  %12178 = vmatprep.mubr.msk.bf16.mxu1 %vm13663_vm0, %v17112_v48  ;;  %v4192_v16 = vsel %vm1167_vm1, %v4187_v12, 0 }
 0xaba   : > { %12188 = vmatprep.subr.bf16.mxu1 %v17112_v48 }
 0xabc   : > { %v4185_v38 = vpop.permute.xlu1 %4184 }
 0xac0   : > { %12179 = vmatmul.mubr.msk.bf16.vlgmr.msra.gmra.mrb[108].mxu1 %vm1167_vm1, %v3985_v20 }
 0xac1   : > { %12189 = vmatpush3.bf16.xpose.msra.mxu1 %v4092_v55  ;;  %12190 = vmatprep.mubr.msk.bf16.mxu1 %vm13663_vm0, %v17112_v48 }
 0xac2   : > { %12200 = vmatprep.subr.bf16.mxu1 %v17112_v48 }
 0xac8   : > { %12191 = vmatmul.mubr.msk.bf16.vlgmr.msra.gmra.mrb[112].mxu1 %vm1167_vm1, %v4085_v13 }
 0xac9   : > { %12201 = vmatpush3.bf16.xpose.msra.mxu1 %v4192_v16  ;;  %12202 = vmatprep.mubr.msk.bf16.mxu1 %vm13663_vm0, %v17112_v48 }
 0xaca   : > { %12212 = vmatprep.subr.bf16.mxu1 %v17112_v48 }
 0xad0   : > { %12203 = vmatmul.mubr.msk.bf16.vlgmr.msra.gmra.mrb[116].mxu1 %vm1167_vm1, %v4185_v38 }
 0xad1   : > { %12214 = vmatprep.mubr.msk.bf16.mxu1 %vm13663_vm0, %v17112_v48 }
 0xae0   : > { %v14913_v61 = vpop.f32.mrb[96].mxu0 }
 0xae1   : > { %v12114_v11 = vpop.f32.mrb[97].mxu0 }
 0xae2   : > { %v3487_v50 = vpop.f32.mrb[98].mxu0 }
 0xae3   : > { %v12115_v7 = vpop.f32.mrb[99].mxu0 }
 0xae8   : > { %v14915_v42 = vpop.f32.mrb[100].mxu0 }
 0xae9   : > { %v12126_v6 = vpop.f32.mrb[101].mxu0 }
 0xaea   : > { %v3583_v3 = vpop.f32.mrb[102].mxu0 }
 0xaeb   : > { %v12127_v41 = vpop.f32.mrb[103].mxu0 }
 0xb11   : > { %v14917_v63 = vpop.f32.mrb[88].mxu1 }
 0xb12   : > { %v12120_v47 = vpop.f32.mrb[89].mxu1 }
 0xb13   : > { %v3535_v36 = vpop.f32.mrb[90].mxu1 }
 0xb14   : > { %v12121_v15 = vpop.f32.mrb[91].mxu1 }
 0xb19   : > { %v14919_v10 = vpop.f32.mrb[92].mxu1 }
 0xb1a   : > { %v12132_v9 = vpop.f32.mrb[93].mxu1 }
 0xb1b   : > { %v3631_v58 = vpop.f32.mrb[94].mxu1 }
 0xb1c   : > { %v12133_v14 = vpop.f32.mrb[95].mxu1 }
 0xb1d   : > { %v14921_v19 = vpop.f32.mrb[104].mxu0 }
 0xb1e   : > { %v12138_v8 = vpop.f32.mrb[105].mxu0 }
 0xb1f   : > { %v3679_v1 = vpop.f32.mrb[106].mxu0 }
 0xb20   : > { %v12139_v24 = vpop.f32.mrb[107].mxu0 }
 0xb4e   : > { %v14923_v33 = vpop.f32.mrb[96].mxu1 }
 0xb4f   : > { %v12144_v0 = vpop.f32.mrb[97].mxu1 }
 0xb50   : > { %v3727_v44 = vpop.f32.mrb[98].mxu1 }
 0xb51   : > { %v12145_v18 = vpop.f32.mrb[99].mxu1 }
 0xb52   : > { %v14925_v23 = vpop.f32.mrb[108].mxu0 }
 0xb53   : > { %v12150_v21 = vpop.f32.mrb[109].mxu0 }
 0xb54   : > { %v3775_v34 = vpop.f32.mrb[110].mxu0 }
 0xb55   : > { %v12151_v32 = vpop.f32.mrb[111].mxu0 }
 0xb5a   : > { %v3878_v25 = vpop.f32.mrb[112].mxu0 }
 0xb5b   : > { %v14927_v20 = vmul.f32 0.17677669, %v3878_v25  ;;  %v12162_v37 = vpop.f32.mrb[113].mxu0 }
 0xb5c   : > { %v3881_v39 = vpop.f32.mrb[114].mxu0 }
 0xb5d   : > { %v12163_v13 = vpop.f32.mrb[115].mxu0  ;;  %v4242_v55 = vsel %vm1544_vm3, %v14927_v20, -inf }
 0xb5e   : > { %4243 = vmax.xlane.f32.xlu0 %v4242_v55 }
 0xb62   : > { %v3978_v12 = vpop.f32.mrb[116].mxu0 }
 0xb63   : > { %v4236_v16 = vmul.f32 0.17677669, %v3978_v12  ;;  %v12174_v38 = vpop.f32.mrb[117].mxu0 }
 0xb64   : > { %v3981_v11 = vpop.f32.mrb[118].mxu0 }
 0xb65   : > { %v12175_v50 = vpop.f32.mrb[119].mxu0  ;;  %v4248_v7 = vsel %vm1544_vm3, %v4236_v16, -inf }
 0xb66   : > { %4249 = vmax.xlane.f32.xlu0 %v4248_v7 }
 0xb6a   : > { %v4078_v6 = vpop.f32.mrb[120].mxu0 }
 0xb6b   : > { %v12186_v3 = vpop.f32.mrb[121].mxu0  ;;  %v4238_v55 = vmul.f32 0.17677669, %v4078_v6 }
 0xb6c   : > { %v4081_v41 = vpop.f32.mrb[122].mxu0 }
 0xb6d   : > { %v12187_v47 = vpop.f32.mrb[123].mxu0  ;;  %v4254_v50 = vsel %vm1544_vm3, %v4238_v55, -inf }
 0xb72   : > { %v4178_v36 = vpop.f32.mrb[124].mxu0 }
 0xb73   : > { %v12198_v15 = vpop.f32.mrb[125].mxu0  ;;  %v14939_v11 = vmul.f32 0.17677669, %v4178_v36 }
 0xb74   : > { %v4181_v9 = vpop.f32.mrb[126].mxu0 }
 0xb75   : > { %v12199_v58 = vpop.f32.mrb[127].mxu0  ;;  %v4260_v9 = vsel %vm1544_vm3, %v14939_v11, -inf }
 0xb83   : > { %v14932_v14 = vpop.f32.mrb[100].mxu1 }
 0xb84   : > { %v12156_v8 = vpop.f32.mrb[101].mxu1 }
 0xb85   : > { %v3823_v1 = vpop.f32.mrb[102].mxu1 }
 0xb86   : > { %v12157_v24 = vpop.f32.mrb[103].mxu1 }
 0xb8b   : > { %v3928_v0 = vpop.f32.mrb[104].mxu1 }
 0xb8c   : > { %v4235_v44 = vmul.f32 0.17677669, %v3928_v0  ;;  %v12168_v18 = vpop.f32.mrb[105].mxu1 }
 0xb8d   : > { %v3931_v21 = vpop.f32.mrb[106].mxu1 }
 0xb8e   : > { %v12169_v34 = vpop.f32.mrb[107].mxu1  ;;  %v4245_v32 = vsel %vm1544_vm3, %v4235_v44, -inf }
 0xb8f   : > { %4246 = vmax.xlane.f32.xlu1 %v4245_v32 }
 0xb93   : > { %v4028_v25 = vpop.f32.mrb[108].mxu1 }
 0xb94   : > { %v14935_v37 = vmul.f32 0.17677669, %v4028_v25  ;;  %v12180_v39 = vpop.f32.mrb[109].mxu1 }
 0xb95   : > { %v4031_v13 = vpop.f32.mrb[110].mxu1 }
 0xb96   : > { %v12181_v12 = vpop.f32.mrb[111].mxu1  ;;  %v4251_v38 = vsel %vm1544_vm3, %v14935_v37, -inf }
 0xb97   : > { %4252 = vmax.xlane.f32.xlu0 %v4251_v38 }
 0xb9b   : > { %4255 = vmax.xlane.f32.xlu0 %v4254_v50  ;;  %v4128_v7 = vpop.f32.mrb[112].mxu1 }
 0xb9c   : > { %v14942_v3 = vmul.f32 0.17677669, %v4128_v7  ;;  %v12192_v41 = vpop.f32.mrb[113].mxu1 }
 0xb9d   : > { %v4131_v47 = vpop.f32.mrb[114].mxu1 }
 0xb9e   : > { %v12193_v15 = vpop.f32.mrb[115].mxu1  ;;  %v4257_v6 = vsel %vm1544_vm3, %v14942_v3, -inf }
 0xb9f   : > { %4261 = vmax.xlane.f32.xlu0 %v4260_v9  ;;  %4258 = vmax.xlane.f32.xlu1 %v4257_v6 }
 0xba3   : > { %v4228_v58 = vpop.f32.mrb[116].mxu1 }
 0xba4   : > { %v12204_v36 = vpop.f32.mrb[117].mxu1  ;;  %v4241_v24 = vmul.f32 0.17677669, %v4228_v58 }
 0xba5   : > { %v4231_v8 = vpop.f32.mrb[118].mxu1 }
 0xba6   : > { %v12205_v1 = vpop.f32.mrb[119].mxu1  ;;  %v4263_v0 = vsel %vm1544_vm3, %v4241_v24, -inf }
 0xbb0   : > { %4386 = vrot.lane.b32.xlu1 %v14303_v51, %s13666_s24 }
 0xbb5   : > { %4338 = vrot.lane.b32.xlu0 %v14285_v35, %s13666_s24 }
 0xbd4   : > { %4264 = vmax.xlane.f32.xlu1 %v4263_v0 }
 0xbeb   : > { %v4244_v18 = vpop.xlane.xlu0 %4243 }
 0xbec   : > { %v4266_v21 = vsub.f32 %v14927_v20, %v4244_v18 }
 0xbee   : > { %v4274_v34 = vmul.f32 1.442695, %v4266_v21 }
 0xbf0   : > { %13080 = vpow2.f32 %v4274_v34 }
 0xbf3   : > { %v4250_v32 = vpop.xlane.xlu0 %4249 }
 0xbf4   : > { %v4268_v25 = vsub.f32 %v4236_v16, %v4250_v32 }
 0xbf6   : > { %v4278_v39 = vmul.f32 1.442695, %v4268_v25 }
 0xbf8   : > { %13082 = vpow2.f32 %v4278_v39 }
 0xbfa   : > { %v14954_v13 = vpop.eup %13080 }
 0xbfb   : > { %v4290_v51 = vsel %vm1544_vm3, %v14954_v13, 0.0 }
 0xbfc   : > { %4291 = vadd.xlane.f32.xlu0 %v4290_v51 }
 0xc02   : > { %v14958_v35 = vpop.eup %13082 }
 0xc03   : > { %v4296_v12 = vsel %vm1544_vm3, %v14958_v35, 0.0 }
 0xc04   : > { %4297 = vadd.xlane.f32.xlu0 %v4296_v12 }
 0xc1a   : > { %4434 = vrot.lane.b32.xlu0 %v14396_v45, %s13666_s24 }
 0xc1c   : > { %v4247_v20 = vpop.xlane.xlu1 %4246 }
 0xc1d   : > { %v4267_v38 = vsub.f32 %v4235_v44, %v4247_v20  ;;  %v2930_v20 = vpack.c.bf16 %v14718_v17, %v14718_v17 }
 0xc1f   : > { %v4276_v16 = vmul.f32 1.442695, %v4267_v38 }
 0xc21   : > { %13084 = vpow2.f32 %v4276_v16  ;;  %v3828_v16 = vpack.c.bf16 %v14915_v42, %v14915_v42 }
 0xc24   : > { %v4253_v50 = vpop.xlane.xlu0 %4252 }
 0xc25   : > { %v4269_v0 = vsub.f32 %v14935_v37, %v4253_v50 }
 0xc27   : > { %v4280_v18 = vmul.f32 1.442695, %v4269_v0 }
 0xc28   : > { %v4256_v7 = vpop.xlane.xlu0 %4255 }
 0xc29   : > { %v4270_v41 = vsub.f32 %v4238_v55, %v4256_v7 }
 0xc2b   : > { %v14964_v47 = vpop.eup %13084  ;;  %v4282_v15 = vmul.f32 1.442695, %v4270_v41 }
 0xc2c   : > { %v4262_v9 = vpop.xlane.xlu0 %4261  ;;  %v4259_v6 = vpop.xlane.xlu1 %4258  ;;  %v4293_v58 = vsel %vm1544_vm3, %v14964_v47, 0.0 }
 0xc2d   : > { %13086 = vpow2.f32 %v4282_v15  ;;  %4294 = vadd.xlane.f32.xlu1 %v4293_v58  ;;  %v4272_v37 = vsub.f32 %v14939_v11, %v4262_v9  ;;  %v2931_v58 = vpack.c.bf16 %v14722_v49, %v14722_v49 }
 0xc2e   : > { %13088 = vpow2.f32 %v4280_v18 }
 0xc2f   : > { %v4286_v38 = vmul.f32 1.442695, %v4272_v37 }
 0xc30   : > { %v4339_v36 = vpop.permute.xlu0 %4338  ;;  %v4387_v8 = vpop.permute.xlu1 %4386 }
 0xc31   : > { %v4344_v45 = vsel %vm1644_vm2, %v4339_v36, 0  ;;  %v4392_v44 = vsel %vm1644_vm2, %v4387_v8, 0  ;;  %v3827_v36 = vpack.c.bf16 %v14917_v63, %v14917_v63 }
 0xc32   : > { %12207 = vmatpush3.bf16.msra.mxu0 %v4344_v45  ;;  %12213 = vmatpush3.bf16.msra.mxu1 %v4392_v44 }
 0xc33   : > { %12218 = vmatprep.subr.bf16.mxu0 %v17112_v48  ;;  %12224 = vmatprep.subr.bf16.mxu1 %v17112_v48 }
 0xc37   : > { %v14972_v55 = vpop.eup %13086 }
 0xc38   : > { %v4302_v1 = vsel %vm1544_vm3, %v14972_v55, 0.0  ;;  %v14981_v34 = vpop.eup %13088 }
 0xc39   : > { %4303 = vadd.xlane.f32.xlu0 %v4302_v1  ;;  %v4299_v39 = vsel %vm1544_vm3, %v14981_v34, 0.0 }
 0xc3e   : > { %4482 = vrot.lane.b32.xlu1 %v14402_v46, %s13666_s24 }
 0xc42   : > { %4530 = vrot.lane.b32.xlu1 %v14416_v28, %s13666_s24  ;;  %v4271_v28 = vsub.f32 %v14942_v3, %v4259_v6 }
 0xc61   : > { %v4265_v21 = vpop.xlane.xlu1 %4264 }
 0xc62   : > { %v4273_v32 = vsub.f32 %v4241_v24, %v4265_v21  ;;  %v4284_v24 = vmul.f32 1.442695, %v4271_v28 }
 0xc64   : > { %v4288_v25 = vmul.f32 1.442695, %v4273_v32 }
 0xc66   : > { %13090 = vpow2.f32 %v4288_v25  ;;  %4300 = vadd.xlane.f32.xlu1 %v4299_v39 }
 0xc70   : > { %v14985_v51 = vpop.eup %13090 }
 0xc71   : > { %v4311_v46 = vsel %vm1544_vm3, %v14985_v51, 0.0 }
 0xc72   : > { %4312 = vadd.xlane.f32.xlu0 %v4311_v46 }
 0xc77   : > { %4578 = vrot.lane.b32.xlu1 %v14432_v40, %s13666_s24  ;;  %v2932_v40 = vpack.c.bf16 %v14720_v27, %v14720_v27 }
 0xc88   : > { %4626 = vrot.lane.b32.xlu0 %v14438_v43, %s13666_s24  ;;  %v3826_v43 = vpack.c.bf16 %v14913_v61, %v14913_v61 }
 0xc89   : > { %v4292_v12 = vpop.xlane.xlu0 %4291 }
 0xc8a   : > { %13092 = vrcp.f32 %v4292_v12 }
 0xc8b   : > { %13094 = vpow2.f32 %v4284_v24 }
 0xc8c   : > { %4738 = vrot.lane.b32.xlu0 %v2930_v20, %s13666_s24  ;;  %13096 = vpow2.f32 %v4286_v38 }
 0xc90   : > { %4742 = vrot.lane.b32.xlu0 %v2932_v40, %s13666_s24 }
 0xc91   : > { %v4298_v3 = vpop.xlane.xlu0 %4297 }
 0xc92   : > { %13098 = vrcp.f32 %v4298_v3 }
 0xc94   : > { %v13093_v11 = vpop.eup %13092  ;;  %4762 = vrot.lane.b32.xlu0 %v3826_v43, %s13665_s11 }
 0xc95   : > { %v4315_v17 = vmul.f32 %v13093_v11, %v14954_v13  ;;  %v4435_v50 = vpop.permute.xlu0 %4434  ;;  %v15007_v7 = vpop.eup %13094 }
 0xc96   : > { %v4440_v41 = vsel %vm1644_vm2, %v4435_v50, 0  ;;  %v4305_v61 = vsel %vm1544_vm3, %v15007_v7, 0.0  ;;  %v15016_v13 = vpop.eup %13096 }
 0xc97   : > { %v4330_v27 = vpack.c.bf16 %v4315_v17, %v4315_v17  ;;  %v4308_v9 = vsel %vm1544_vm3, %v15016_v13, 0.0 }
 0xc98   : > { %4766 = vrot.lane.b32.xlu0 %v3828_v16, %s13665_s11 }
 0xc99   : > { %12209 = vmatmul.mubr.msk.bf16.vlgmr.msra.gmra.mrb[128].mxu0 %vm1544_vm3, %v4330_v27 }
 0xc9a   : > { %12219 = vmatpush3.bf16.msra.mxu0 %v4440_v41  ;;  %12220 = vmatprep.mubr.msk.bf16.mxu0 %vm13663_vm0, %v17112_v48 }
 0xc9b   : > { %4306 = vadd.xlane.f32.xlu1 %v4305_v61  ;;  %12230 = vmatprep.subr.bf16.mxu0 %v17112_v48  ;;  %v17113_v61 = vmov 0  }
 0xc9c   : > { %v13099_v42 = vpop.eup %13098 }
 0xc9d   : > { %v4319_v15 = vmul.f32 %v13099_v42, %v14958_v35  ;;  %v2933_v35 = vpack.c.bf16 %v14724_v57, %v14724_v57 }
 0xc9f   : > { %4309 = vadd.xlane.f32.xlu1 %v4308_v9  ;;  %v4332_v6 = vpack.c.bf16 %v4319_v15, %v4319_v15 }
 0xca1   : > { %12221 = vmatmul.mubr.msk.bf16.vlgmr.msra.gmra.mrb[132].mxu0 %vm1544_vm3, %v4332_v6 }
 0xca2   : > { %12232 = vmatprep.mubr.msk.bf16.mxu0 %vm13663_vm0, %v17112_v48 }
 0xcb0   : > { %4674 = vrot.lane.b32.xlu1 %v14454_v30, %s13666_s24  ;;  %v3829_v30 = vpack.c.bf16 %v14919_v10, %v14919_v10 }
 0xcb4   : > { %4740 = vrot.lane.b32.xlu1 %v2931_v58, %s13666_s24 }
 0xcb8   : > { %4744 = vrot.lane.b32.xlu1 %v2933_v35, %s13666_s24 }
 0xcba   : > { %v4295_v8 = vpop.xlane.xlu1 %4294 }
 0xcbb   : > { %13100 = vrcp.f32 %v4295_v8 }
 0xcbc   : > { %4764 = vrot.lane.b32.xlu1 %v3827_v36, %s13665_s11 }
 0xcbe   : > { %v4483_v45 = vpop.permute.xlu1 %4482 }
 0xcbf   : > { %v4488_v18 = vsel %vm1644_vm2, %v4483_v45, 0  ;;  %v2936_v45 = vpack.c.bf16 %v14730_v31, %v14730_v31 }
 0xcc0   : > { %4768 = vrot.lane.b32.xlu1 %v3829_v30, %s13665_s11 }
 0xcc2   : > { %v4531_v49 = vpop.permute.xlu1 %4530 }
 0xcc3   : > { %v4536_v44 = vsel %vm1644_vm2, %v4531_v49, 0  ;;  %v3830_v49 = vpack.c.bf16 %v14921_v19, %v14921_v19  ;;  %v12890_v19 = vld [vmem:[#allocation8 + $0x10] sm:$0xff]  }
 0xcc4   : > { %12231 = vmatpush3.bf16.msra.mxu0 %v4536_v44  ;;  %v3832_v44 = vpack.c.bf16 %v14925_v23, %v14925_v23 }
 0xcc5   : > { %v13101_v57 = vpop.eup %13100  ;;  %12242 = vmatprep.subr.bf16.mxu0 %v17112_v48 }
 0xcc6   : > { %v4304_v1 = vpop.xlane.xlu0 %4303  ;;  %v4317_v63 = vmul.f32 %v13101_v57, %v14964_v47 }
 0xcc7   : > { %13102 = vrcp.f32 %v4304_v1 }
 0xcc8   : > { %v4331_v0 = vpack.c.bf16 %v4317_v63, %v4317_v63 }
 0xcca   : > { %12215 = vmatmul.mubr.msk.bf16.vlgmr.msra.gmra.mrb[120].mxu1 %vm1544_vm3, %v4331_v0  ;;  %v12888_v0 = vld [vmem:[#allocation8] sm:$0xff]  }
 0xccb   : > { %12225 = vmatpush3.bf16.msra.mxu1 %v4488_v18  ;;  %12226 = vmatprep.mubr.msk.bf16.mxu1 %vm13663_vm0, %v17112_v48  ;;  %v12889_v18 = vld [vmem:[#allocation8 + $0x8] sm:$0xff]  }
 0xccc   : > { %12236 = vmatprep.subr.bf16.mxu1 %v17112_v48 }
 0xcd1   : > { %v13103_v10 = vpop.eup %13102 }
 0xcd2   : > { %v4323_v21 = vmul.f32 %v13103_v10, %v14972_v55  ;;  %v12891_v10 = vld [vmem:[#allocation8 + $0x18] sm:$0xff]  }
 0xcd4   : > { %v4334_v32 = vpack.c.bf16 %v4323_v21, %v4323_v21 }
 0xcd6   : > { %12233 = vmatmul.mubr.msk.bf16.vlgmr.msra.gmra.mrb[136].mxu0 %vm1544_vm3, %v4334_v32 }
 0xcd7   : > { %12244 = vmatprep.mubr.msk.bf16.mxu0 %vm13663_vm0, %v17112_v48 }
 0xcf3   : > { %v4301_v47 = vpop.xlane.xlu1 %4300 }
 0xcf4   : > { %13104 = vrcp.f32 %v4301_v47 }
 0xcf7   : > { %v4579_v28 = vpop.permute.xlu1 %4578 }
 0xcf8   : > { %v4584_v24 = vsel %vm1644_vm2, %v4579_v28, 0  ;;  %v12894_v28 = vld [vmem:[#allocation8 + $0x30] sm:$0xff]  }
 0xcfe   : > { %v13105_v25 = vpop.eup %13104 }
 0xcff   : > { %v4313_v39 = vpop.xlane.xlu0 %4312  ;;  %v4321_v46 = vmul.f32 %v13105_v25, %v14981_v34  ;;  %v12892_v25 = vld [vmem:[#allocation8 + $0x20] sm:$0xff]  }
 0xd01   : > { %v4333_v37 = vpack.c.bf16 %v4321_v46, %v4321_v46  ;;  %v12893_v46 = vld [vmem:[#allocation8 + $0x28] sm:$0xff]  }
 0xd03   : > { %v4627_v12 = vpop.permute.xlu0 %4626  ;;  %12227 = vmatmul.mubr.msk.bf16.vlgmr.msra.gmra.mrb[124].mxu1 %vm1544_vm3, %v4333_v37  ;;  %v12895_v37 = vld [vmem:[#allocation8 + $0x38] sm:$0xff]  }
 0xd04   : > { %v4632_v55 = vsel %vm1644_vm2, %v4627_v12, 0  ;;  %12237 = vmatpush3.bf16.msra.mxu1 %v4584_v24  ;;  %12238 = vmatprep.mubr.msk.bf16.mxu1 %vm13663_vm0, %v17112_v48 }
 0xd05   : > { %12243 = vmatpush3.bf16.msra.mxu0 %v4632_v55  ;;  %12248 = vmatprep.subr.bf16.mxu1 %v17112_v48 }
 0xd06   : > { %12254 = vmatprep.subr.bf16.mxu0 %v12888_v0 }
 0xd28   : > { %v4307_v20 = vpop.xlane.xlu1 %4306 }
 0xd29   : > { %13106 = vrcp.f32 %v4307_v20 }
 0xd2a   : > { %13108 = vrcp.f32 %v4313_v39 }
 0xd2c   : > { %v4310_v34 = vpop.xlane.xlu1 %4309 }
 0xd2d   : > { %13110 = vrcp.f32 %v4310_v34 }
 0xd30   : > { %v4675_v3 = vpop.permute.xlu1 %4674 }
 0xd31   : > { %v4680_v16 = vsel %vm1644_vm2, %v4675_v3, 0  ;;  %v3831_v3 = vpack.c.bf16 %v14923_v33, %v14923_v33 }
 0xd33   : > { %v13107_v38 = vpop.eup %13106 }
 0xd34   : > { %v4325_v40 = vmul.f32 %v13107_v38, %v15007_v7  ;;  %v13109_v43 = vpop.eup %13108  ;;  %v2935_v38 = vpack.c.bf16 %v14728_v22, %v14728_v22 }
 0xd35   : > { %v4329_v41 = vmul.f32 %v13109_v43, %v14985_v51  ;;  %v2934_v51 = vpack.c.bf16 %v14726_v4, %v14726_v4  ;;  %v3833_v43 = vpack.c.bf16 %v14932_v14, %v14932_v14  ;;  %v2010_v14 = vpack.c.bf16 %v14516_v26, %v14516_v26 }
 0xd36   : > { %v4335_v11 = vpack.c.bf16 %v4325_v40, %v4325_v40  ;;  %v2937_v40 = vpack.c.bf16 %v14737_v54, %v14737_v54 }
 0xd37   : > { %v13111_v17 = vpop.eup %13110  ;;  %v4337_v7 = vpack.c.bf16 %v4329_v41, %v4329_v41 }
 0xd38   : > { %12239 = vmatmul.mubr.msk.bf16.vlgmr.msra.gmra.mrb[128].mxu1 %vm1544_vm3, %v4335_v11  ;;  %v4327_v50 = vmul.f32 %v13111_v17, %v15016_v13  ;;  %v4739_v11 = vpop.permute.xlu0 %4738  ;;  %v4741_v17 = vpop.permute.xlu1 %4740 }
 0xd39   : > { %12249 = vmatpush3.bf16.msra.mxu1 %v4680_v16  ;;  %12250 = vmatprep.mubr.msk.bf16.mxu1 %vm13663_vm0, %v17112_v48 }
 0xd3a   : > { %v4336_v27 = vpack.c.bf16 %v4327_v50, %v4327_v50 }
 0xd3c   : > { %12245 = vmatmul.mubr.msk.bf16.vlgmr.msra.gmra.mrb[140].mxu0 %vm1544_vm3, %v4336_v27  ;;  %v4743_v22 = vpop.permute.xlu0 %4742  ;;  %v4745_v16 = vpop.permute.xlu1 %4744 }
 0xd3d   : > { %12255 = vmatpush3.bf16.msra.mxu0 %v12888_v0 }
 0xd3e   : > { %12256 = vmatprep.subr.bf16.mxu0 %v12889_v18 }
 0xd40   : > { %12251 = vmatmul.mubr.msk.bf16.vlgmr.msra.gmra.mrb[132].mxu1 %vm1544_vm3, %v4337_v7  ;;  %v4763_v50 = vpop.permute.xlu0 %4762  ;;  %v4765_v27 = vpop.permute.xlu1 %4764 }
 0xd41   : > { %5350 = vmatprep.mubr.bf16.mxu1 %v17113_v61  ;;  %12257 = vmatpush3.bf16.msra.mxu0 %v12889_v18 }
 0xd42   : > { %12258 = vmatprep.subr.bf16.mxu0 %v12890_v19 }
 0xd44   : > { %v4767_v54 = vpop.permute.xlu0 %4766 }
 0xd45   : > { %12259 = vmatpush3.bf16.msra.mxu0 %v12890_v19  ;;  %v2012_v19 = vpack.c.bf16 %v14520_v29, %v14520_v29 }
 0xd46   : > { %12260 = vmatprep.subr.bf16.mxu0 %v12891_v10 }
 0xd49   : > { %12261 = vmatpush3.bf16.msra.mxu0 %v12891_v10  ;;  %v2013_v10 = vpack.c.bf16 %v14522_v56, %v14522_v56 }
 0xd4a   : > { %12262 = vmatprep.subr.bf16.mxu0 %v12892_v25 }
 0xd4d   : > { %12263 = vmatpush3.bf16.msra.mxu0 %v12892_v25 }
 0xd4e   : > { %12264 = vmatprep.subr.bf16.mxu0 %v12893_v46 }
 0xd51   : > { %12265 = vmatpush3.bf16.msra.mxu0 %v12893_v46 }
 0xd52   : > { %12266 = vmatprep.subr.bf16.mxu0 %v12894_v28 }
 0xd55   : > { %12267 = vmatpush3.bf16.msra.mxu0 %v12894_v28 }
 0xd56   : > { %12268 = vmatprep.subr.bf16.mxu0 %v12895_v37 }
 0xd59   : > { %12269 = vmatpush3.bf16.msra.mxu0 %v12895_v37 }
 0xd5a   : > { %12314 = vmatprep.subr.bf16.mxu0 %v17112_v48 }
 0xd6c   : > { %v4380_v42 = vpop.f32.mrb[128].mxu0 }
 0xd6d   : > { %v4722_v15 = vpack.c.bf16 %v4380_v42, %v4380_v42  ;;  %v12210_v9 = vpop.f32.mrb[129].mxu0 }
 0xd6e   : > { %v4383_v6 = vpop.f32.mrb[130].mxu0  ;;  %v4769_v9 = vpop.permute.xlu1 %4768 }
 0xd6f   : > { %v12211_v58 = vpop.f32.mrb[131].mxu0  ;;  %4786 = vrot.lane.b32.xlu0 %v4722_v15, %s13664_s22  ;;  %v2011_v6 = vpack.c.bf16 %v14518_v60, %v14518_v60 }
 0xd74   : > { %v4476_v13 = vpop.f32.mrb[132].mxu0 }
 0xd75   : > { %v4724_v35 = vpack.c.bf16 %v4476_v13, %v4476_v13  ;;  %v12222_v36 = vpop.f32.mrb[133].mxu0 }
 0xd76   : > { %v4479_v8 = vpop.f32.mrb[134].mxu0 }
 0xd77   : > { %v12223_v30 = vpop.f32.mrb[135].mxu0  ;;  %4790 = vrot.lane.b32.xlu0 %v4724_v35, %s13664_s22  ;;  %v4804_v8 = vsel %vm1167_vm1, %v2010_v14, %v4739_v11 }
 0xd78   : > { %v4807_v30 = vsel %vm1167_vm1, %v2011_v6, %v4741_v17 }
 0xd7b   : > { %4746 = vrot.lane.b32.xlu0 %v2934_v51, %s13666_s24 }
 0xd7f   : > { %4750 = vrot.lane.b32.xlu0 %v2936_v45, %s13666_s24  ;;  %v4828_v45 = vsel %vm4826_vm4, %v4804_v8, %v4763_v50 }
 0xd83   : > { %4770 = vrot.lane.b32.xlu0 %v3830_v49, %s13665_s11  ;;  %v4830_v49 = vsel %vm4826_vm4, %v4807_v30, %v4765_v27 }
 0xd87   : > { %4774 = vrot.lane.b32.xlu0 %v3832_v44, %s13665_s11 }
 0xd9d   : > { %v4428_v57 = vpop.f32.mrb[120].mxu1 }
 0xd9e   : > { %v4723_v1 = vpack.c.bf16 %v4428_v57, %v4428_v57  ;;  %v12216_v4 = vpop.f32.mrb[121].mxu1 }
 0xd9f   : > { %v4431_v63 = vpop.f32.mrb[122].mxu1 }
 0xda0   : > { %4788 = vrot.lane.b32.xlu1 %v4723_v1, %s13664_s22  ;;  %v12217_v31 = vpop.f32.mrb[123].mxu1 }
 0xda9   : > { %v4572_v21 = vpop.f32.mrb[136].mxu0 }
 0xdaa   : > { %v4726_v23 = vpack.c.bf16 %v4572_v21, %v4572_v21  ;;  %v12234_v32 = vpop.f32.mrb[137].mxu0 }
 0xdab   : > { %v4575_v47 = vpop.f32.mrb[138].mxu0  ;;  %v4813_v32 = vsel %vm1167_vm1, %v2013_v10, %v4745_v16  ;;  %v17120_v10 = vld [vmem:[#allocation25_spill] sm:$0xff] }
 0xdac   : > { %4794 = vrot.lane.b32.xlu0 %v4726_v23, %s13664_s22  ;;  %v12235_v39 = vpop.f32.mrb[139].mxu0  ;;  %v4810_v23 = vsel %vm1167_vm1, %v2012_v19, %v4743_v22  ;;  %v4834_v25 = vsel %vm4826_vm4, %v4813_v32, %v4769_v9  ;;  %v17122_v32 = vld [vmem:[#allocation26_spill] sm:$0xff] }
 0xdad   : > { %v4832_v47 = vsel %vm4826_vm4, %v4810_v23, %v4767_v54 }
 0xdd6   : > { %v4524_v24 = vpop.f32.mrb[124].mxu1 }
 0xdd7   : > { %v4725_v12 = vpack.c.bf16 %v4524_v24, %v4524_v24  ;;  %v12228_v55 = vpop.f32.mrb[125].mxu1 }
 0xdd8   : > { %v4527_v20 = vpop.f32.mrb[126].mxu1 }
 0xdd9   : > { %4792 = vrot.lane.b32.xlu1 %v4725_v12, %s13664_s22  ;;  %v12229_v34 = vpop.f32.mrb[127].mxu1 }
 0xddd   : > { %4748 = vrot.lane.b32.xlu1 %v2935_v38, %s13666_s24 }
 0xde1   : > { %4752 = vrot.lane.b32.xlu1 %v2937_v40, %s13666_s24  ;;  %v4787_v13 = vpop.permute.xlu0 %4786  ;;  %v2014_v40 = vpack.c.bf16 %v14524_v53, %v14524_v53  ;;  %v2016_v53 = vpack.c.bf16 %v14528_v52, %v14528_v52  ;;  %v11198_v52 = vld [vmem:[%s17007_s6] ss:$0 sm:$0xff] }
 0xde2   : > { %v4845_v60 = vsel %vm4843_vm5, %v4828_v45, %v4787_v13 }
 0xde5   : > { %4772 = vrot.lane.b32.xlu1 %v3831_v3, %s13665_s11  ;;  %v2015_v3 = vpack.c.bf16 %v14526_v59, %v14526_v59  ;;  %v2017_v59 = vpack.c.bf16 %v14532_v62, %v14532_v62 }
 0xde9   : > { %4776 = vrot.lane.b32.xlu1 %v3833_v43, %s13665_s11  ;;  %v4791_v21 = vpop.permute.xlu0 %4790 }
 0xdea   : > { %v4849_v46 = vsel %vm4843_vm5, %v4832_v47, %v4791_v21 }
 0xded   : > { %v4747_v29 = vpop.permute.xlu0 %4746 }
 0xdee   : > { %v4816_v11 = vsel %vm1167_vm1, %v2014_v40, %v4747_v29  ;;  %v12898_v29 = vld [vmem:[#allocation10 + $0x4] ss:$12 sps:$4 sm:$0xff]  }
 0xdef   : > { %5318 = vmatprep.subr.bf16.mxu1 %v12898_v29 }
 0xdf1   : > { %v4751_v12 = vpop.permute.xlu0 %4750 }
 0xdf5   : > { %v4771_v55 = vpop.permute.xlu0 %4770 }
 0xdf6   : > { %v4836_v22 = vsel %vm4826_vm4, %v4816_v11, %v4771_v55 }
 0xdf9   : > { %v4775_v34 = vpop.permute.xlu0 %4774 }
 0xe0b   : > { %v4620_v41 = vpop.f32.mrb[128].mxu1 }
 0xe0c   : > { %v4727_v7 = vpack.c.bf16 %v4620_v41, %v4620_v41  ;;  %v12240_v42 = vpop.f32.mrb[129].mxu1 }
 0xe0d   : > { %v4623_v15 = vpop.f32.mrb[130].mxu1  ;;  %v4822_v42 = vsel %vm1167_vm1, %v2016_v53, %v4751_v12  ;;  %v12899_v12 = vld [vmem:[#allocation10 + $0x18] ss:$12 sps:$4 sm:$0xff]   ;;  %v12904_v53 = vld [vmem:[#allocation10 + $0x34] ss:$12 sps:$4 sm:$0xff]  }
 0xe0e   : > { %4796 = vrot.lane.b32.xlu1 %v4727_v7, %s13664_s22  ;;  %v12241_v33 = vpop.f32.mrb[131].mxu1  ;;  %v4840_v9 = vsel %vm4826_vm4, %v4822_v42, %v4775_v34  ;;  %v12905_v42 = vld [vmem:[#allocation10 + $0x48] ss:$12 sps:$4 sm:$0xff]  }
 0xe0f   : > { %v4668_v58 = vpop.f32.mrb[140].mxu0 }
 0xe10   : > { %v4728_v35 = vpack.c.bf16 %v4668_v58, %v4668_v58  ;;  %v12246_v36 = vpop.f32.mrb[141].mxu0 }
 0xe11   : > { %v4671_v51 = vpop.f32.mrb[142].mxu0 }
 0xe12   : > { %4798 = vrot.lane.b32.xlu0 %v4728_v35, %s13664_s22  ;;  %v12247_v26 = vpop.f32.mrb[143].mxu0  ;;  %v4789_v44 = vpop.permute.xlu1 %4788 }
 0xe13   : > { %v4847_v57 = vsel %vm4843_vm5, %v4830_v49, %v4789_v44  ;;  %v4716_v1 = vpop.f32.mrb[132].mxu1  ;;  %v17116_v44 = vld [vmem:[#allocation23_spill] sm:$0xff] }
 0xe14   : > { %v11199_v4 = vcombine.low %v4845_v60, %v4847_v57  ;;  %v4729_v63 = vpack.c.bf16 %v4716_v1, %v4716_v1  ;;  %v12252_v0 = vpop.f32.mrb[133].mxu1  ;;  %v17118_v1 = vld [vmem:[#allocation24_spill] sm:$0xff] }
 0xe15   : > { %v4719_v18 = vpop.f32.mrb[134].mxu1 }
 0xe16   : > { %12270 = vmatprep.mubr.bf16.mxu0 %v11199_v4  ;;  %4800 = vrot.lane.b32.xlu1 %v4729_v63, %s13664_s22  ;;  %v12253_v31 = vpop.f32.mrb[135].mxu1 }
 0xe1e   : > { %v4795_v43 = vpop.permute.xlu0 %4794 }
 0xe1f   : > { %v4853_v27 = vsel %vm4843_vm5, %v4836_v22, %v4795_v43 }
 0xe4b   : > { %v4793_v39 = vpop.permute.xlu1 %4792 }
 0xe4c   : > { %v4851_v28 = vsel %vm4843_vm5, %v4834_v25, %v4793_v39  ;;  %v17124_v25 = vld [vmem:[#allocation27_spill] sm:$0xff] }
 0xe4d   : > { %v11200_v37 = vcombine.low %v4849_v46, %v4851_v28  ;;  %v17126_v46 = vld [vmem:[#allocation28_spill] sm:$0xff] }
 0xe4f   : > { %12271 = vmatmul.mubr.bf16.vlgmr.msra.gmra.mrb[144].mxu0 %v11200_v37  ;;  %v4749_v24 = vpop.permute.xlu1 %4748  ;;  %v12896_v37 = vld [vmem:[#allocation10] ss:$12 sps:$4 sm:$0xff]  }
 0xe50   : > { %v4819_v17 = vsel %vm1167_vm1, %v2015_v3, %v4749_v24  ;;  %v12901_v24 = vld [vmem:[#allocation10 + $0x1c] ss:$12 sps:$4 sm:$0xff]   ;;  %5319 = vmatpush1.bf16.msra.mxu1 %v12896_v37 }
 0xe51   : > { %5320 = vmatprep.subr.bf16.mxu1 %v12901_v24 }
 0xe53   : > { %v4753_v56 = vpop.permute.xlu1 %4752 }
 0xe54   : > { %v4825_v15 = vsel %vm1167_vm1, %v2017_v59, %v4753_v56  ;;  %5321 = vmatpush1.bf16.msra.mxu1 %v12899_v12  ;;  %v12902_v59 = vld [vmem:[#allocation10 + $0x30] ss:$12 sps:$4 sm:$0xff]  }
 0xe55   : > { %5322 = vmatprep.subr.bf16.mxu1 %v12904_v53 }
 0xe57   : > { %v4773_v20 = vpop.permute.xlu1 %4772 }
 0xe58   : > { %v4838_v16 = vsel %vm4826_vm4, %v4819_v17, %v4773_v20  ;;  %5323 = vmatpush1.bf16.msra.mxu1 %v12902_v59 }
 0xe5b   : > { %v4777_v38 = vpop.permute.xlu1 %4776 }
 0xe5c   : > { %v4842_v33 = vsel %vm4826_vm4, %v4825_v15, %v4777_v38  ;;  %v12910_v15 = vld [vmem:[#allocation10 + $0x64] ss:$12 sps:$4 sm:$0xff]  }
 0xe80   : > { %v4797_v50 = vpop.permute.xlu1 %4796 }
 0xe81   : > { %v4855_v41 = vsel %vm4843_vm5, %v4838_v16, %v4797_v50 }
 0xe82   : > { %v11201_v54 = vcombine.low %v4853_v27, %v4855_v41 }
 0xe84   : > { %12274 = vmatprep.mubr.bf16.mxu0 %v11201_v54  ;;  %v4799_v7 = vpop.permute.xlu0 %4798 }
 0xe85   : > { %v4857_v6 = vsel %vm4843_vm5, %v4840_v9, %v4799_v7  ;;  %v12907_v7 = vld [vmem:[#allocation10 + $0x4c] ss:$12 sps:$4 sm:$0xff]  }
 0xe86   : > { %5324 = vmatprep.subr.bf16.mxu1 %v12907_v7  ;;  %v12908_v9 = vld [vmem:[#allocation10 + $0x60] ss:$12 sps:$4 sm:$0xff]  }
 0xe87   : > { %5325 = vmatpush1.bf16.msra.mxu1 %v12905_v42  ;;  %v15235_v42 = vld [vmem:[#allocation5] sm:$0xff] }
 0xe88   : > { %v4801_v14 = vpop.permute.xlu1 %4800  ;;  %5326 = vmatprep.subr.bf16.mxu1 %v12910_v15 }
 0xe89   : > { %v4859_v58 = vsel %vm4843_vm5, %v4842_v33, %v4801_v14  ;;  %v12913_v33 = vld [vmem:[#allocation10 + $0x7c] ss:$12 sps:$4 sm:$0xff]   ;;  %v12911_v14 = vld [vmem:[#allocation10 + $0x78] ss:$12 sps:$4 sm:$0xff]  }
 0xe8a   : > { %v11202_v13 = vcombine.low %v4857_v6, %v4859_v58  ;;  %v12916_v6 = vld [vmem:[#allocation10 + $0x94] ss:$12 sps:$4 sm:$0xff]   ;;  %v12914_v58 = vld [vmem:[#allocation10 + $0x90] ss:$12 sps:$4 sm:$0xff]  }
 0xe8b   : > { %5327 = vmatpush1.bf16.msra.mxu1 %v12908_v9 }
 0xe8c   : > { %12275 = vmatmul.mubr.bf16.gmra.mrb[148].mxu0 %v11202_v13  ;;  %5328 = vmatprep.subr.bf16.mxu1 %v12913_v33  ;;  %v12919_v13 = vld [vmem:[#allocation10 + $0xac] ss:$12 sps:$4 sm:$0xff]  }
 0xe8d   : > { %12316 = vmatprep.mubr.msk.bf16.mxu0 %vm13663_vm0, %v17112_v48 }
 0xe8f   : > { %5329 = vmatpush1.bf16.msra.mxu1 %v12911_v14 }
 0xe90   : > { %5330 = vmatprep.subr.bf16.mxu1 %v12916_v6 }
 0xe93   : > { %5331 = vmatpush1.bf16.msra.mxu1 %v12914_v58  ;;  %v12921_v58 = vld [vmem:[#allocation10 + $0x20] ss:$12 sps:$4 sm:$0xff]  }
 0xe94   : > { %5332 = vmatprep.subr.bf16.mxu1 %v12919_v13 }
 0xf22   : > { %v12272_v62 = vpop.f32.mrb[144].mxu0 }
 0xf23   : > { %v4989_v35 = vpop.f32.mrb[145].mxu0  ;;  %v4998_v51 = vadd.f32 %v12272_v62, %v11198_v52 }
 0xf24   : > { %v4990_v36 = vadd.f32 %v11198_v52, %v4989_v35  ;;  %v12273_v8 = vpop.f32.mrb[146].mxu0 }
 0xf25   : > { %v4992_v30 = vpop.f32.mrb[147].mxu0  ;;  %v15154_v60 = vadd.f32 %v17116_v44, %v4998_v51  ;;  %v5001_v57 = vadd.f32 %v12273_v8, %v11198_v52 }
 0xf26   : > { %v15147_v45 = vadd.f32 %v14068_v2, %v4990_v36  ;;  %v4993_v49 = vadd.f32 %v11198_v52, %v4992_v30 }
 0xf27   : > { %17117 = vst [vmem:[#allocation23_spill] sm:$0xff] %v15154_v60  ;;  %v15159_v4 = vadd.f32 %v17118_v1, %v5001_v57 }
 0xf28   : > { %17114 = vst [vmem:[#allocation29_spill] sm:$0xff] %v15147_v45  ;;  %v15150_v26 = vadd.f32 %v14074_v5, %v4993_v49  ;;  %5028 = vadd.xlane.f32.xlu0 %v15147_v45 }
 0xf29   : > { %17119 = vst [vmem:[#allocation24_spill] sm:$0xff] %v15159_v4 }
 0xf2a   : > { %17115 = vst [vmem:[#allocation30_spill] sm:$0xff] %v15150_v26  ;;  %5030 = vadd.xlane.f32.xlu1 %v15150_v26 }
 0xf2c   : > { %5032 = vadd.xlane.f32.xlu0 %v15154_v60 }
 0xf30   : > { %5034 = vadd.xlane.f32.xlu0 %v15159_v4 }
 0xf5f   : > { %v12276_v2 = vpop.f32.mrb[148].mxu0 }
 0xf60   : > { %v5014_v63 = vadd.f32 %v12276_v2, %v11198_v52  ;;  %v5005_v0 = vpop.f32.mrb[149].mxu0 }
 0xf61   : > { %v5006_v5 = vadd.f32 %v11198_v52, %v5005_v0  ;;  %v12277_v18 = vpop.f32.mrb[150].mxu0 }
 0xf62   : > { %v5017_v31 = vadd.f32 %v12277_v18, %v11198_v52  ;;  %v5008_v19 = vpop.f32.mrb[151].mxu0  ;;  %v15170_v39 = vadd.f32 %v17124_v25, %v5014_v63 }
 0xf63   : > { %v15163_v21 = vadd.f32 %v17120_v10, %v5006_v5  ;;  %v5009_v23 = vadd.f32 %v11198_v52, %v5008_v19  ;;  %v12917_v52 = vld [vmem:[#allocation10 + $0xa8] ss:$12 sps:$4 sm:$0xff]  }
 0xf64   : > { %17125 = vst [vmem:[#allocation27_spill] sm:$0xff] %v15170_v39  ;;  %v15174_v28 = vadd.f32 %v17126_v46, %v5017_v31  ;;  %5333 = vmatpush1.bf16.msra.mxu1 %v12917_v52  ;;  %v12920_v19 = vld [vmem:[#allocation10 + $0x8] ss:$12 sps:$4 sm:$0xff]  }
 0xf65   : > { %17121 = vst [vmem:[#allocation25_spill] sm:$0xff] %v15163_v21  ;;  %v15166_v47 = vadd.f32 %v17122_v32, %v5009_v23  ;;  %5036 = vadd.xlane.f32.xlu0 %v15163_v21  ;;  %12278 = vmatprep.subr.bf16.mxu1 %v12920_v19 }
 0xf66   : > { %17127 = vst [vmem:[#allocation28_spill] sm:$0xff] %v15174_v28 }
 0xf67   : > { %17123 = vst [vmem:[#allocation26_spill] sm:$0xff] %v15166_v47  ;;  %5038 = vadd.xlane.f32.xlu1 %v15166_v47 }
 0xf69   : > { %5040 = vadd.xlane.f32.xlu0 %v15170_v39 }
 0xf6b   : > { %5042 = vadd.xlane.f32.xlu1 %v15174_v28 }
 0xfb5   : > { %v5029_v56 = vpop.xlane.xlu0 %5028 }
 0xfb6   : > { %v5044_v55 = vmul.f32 0.0078125, %v5029_v56 }
 0xfb7   : > { %v5031_v20 = vpop.xlane.xlu1 %5030 }
 0xfb8   : > { %v15179_v34 = vsub.f32 %v15147_v45, %v5044_v55  ;;  %v5045_v38 = vmul.f32 0.0078125, %v5031_v20 }
 0xfb9   : > { %v5033_v40 = vpop.xlane.xlu0 %5032 }
 0xfba   : > { %v15182_v3 = vsub.f32 %v15150_v26, %v5045_v38  ;;  %v5046_v43 = vmul.f32 0.0078125, %v5033_v40  ;;  %v5060_v11 = vmul.f32 %v15179_v34, %v15179_v34  ;;  %v15221_v40 = vld [vmem:[%s17008_s7] ss:$0 sm:$0xff] }
 0xfbc   : > { %v15187_v17 = vsub.f32 %v15154_v60, %v5046_v43  ;;  %5068 = vadd.xlane.f32.xlu0 %v5060_v11  ;;  %v5061_v22 = vmul.f32 %v15182_v3, %v15182_v3 }
 0xfbd   : > { %v5035_v16 = vpop.xlane.xlu0 %5034 }
 0xfbe   : > { %v5047_v50 = vmul.f32 0.0078125, %v5035_v16  ;;  %5070 = vadd.xlane.f32.xlu1 %v5061_v22  ;;  %v5062_v27 = vmul.f32 %v15187_v17, %v15187_v17  ;;  %v15227_v22 = vld [vmem:[%s17009_s8] ss:$0 sm:$0xff] }
 0xfc0   : > { %v15194_v41 = vsub.f32 %v15159_v4, %v5047_v50  ;;  %5072 = vadd.xlane.f32.xlu0 %v5062_v27 }
 0xfc2   : > { %v5063_v54 = vmul.f32 %v15194_v41, %v15194_v41 }
 0xfc4   : > { %5074 = vadd.xlane.f32.xlu1 %v5063_v54 }
 0xff2   : > { %v5037_v62 = vpop.xlane.xlu0 %5036 }
 0xff3   : > { %v5048_v35 = vmul.f32 0.0078125, %v5037_v62 }
 0xff4   : > { %v5039_v36 = vpop.xlane.xlu1 %5038 }
 0xff5   : > { %v15199_v8 = vsub.f32 %v15163_v21, %v5048_v35  ;;  %v5049_v30 = vmul.f32 0.0078125, %v5039_v36  ;;  %v12923_v36 = vld [vmem:[#allocation10 + $0x50] ss:$12 sps:$4 sm:$0xff]  }
 0xff6   : > { %v5041_v51 = vpop.xlane.xlu0 %5040 }
 0xff7   : > { %v15202_v49 = vsub.f32 %v15166_v47, %v5049_v30  ;;  %v5050_v44 = vmul.f32 0.0078125, %v5041_v51  ;;  %v5064_v57 = vmul.f32 %v15199_v8, %v15199_v8  ;;  %v12924_v30 = vld [vmem:[#allocation10 + $0x68] ss:$12 sps:$4 sm:$0xff]   ;;  %v12925_v51 = vld [vmem:[#allocation10 + $0x80] ss:$12 sps:$4 sm:$0xff]  }
 0xff8   : > { %v5043_v1 = vpop.xlane.xlu1 %5042 }
 0xff9   : > { %v15207_v2 = vsub.f32 %v15170_v39, %v5050_v44  ;;  %v5051_v63 = vmul.f32 0.0078125, %v5043_v1  ;;  %5076 = vadd.xlane.f32.xlu0 %v5064_v57  ;;  %v5065_v0 = vmul.f32 %v15202_v49, %v15202_v49  ;;  %v12926_v44 = vld [vmem:[#allocation10 + $0x98] ss:$12 sps:$4 sm:$0xff]   ;;  %v12927_v57 = vld [vmem:[#allocation10 + $0xb0] ss:$12 sps:$4 sm:$0xff]  }
 0xffb   : > { %v15212_v5 = vsub.f32 %v15174_v28, %v5051_v63  ;;  %5078 = vadd.xlane.f32.xlu1 %v5065_v0  ;;  %v5066_v18 = vmul.f32 %v15207_v2, %v15207_v2 }
 0xffd   : > { %5080 = vadd.xlane.f32.xlu0 %v5066_v18  ;;  %v5067_v31 = vmul.f32 %v15212_v5, %v15212_v5 }
 0xfff   : > { %5082 = vadd.xlane.f32.xlu1 %v5067_v31 }
0x1049   : > { %v5069_v10 = vpop.xlane.xlu0 %5068 }
0x104a   : > { %v5084_v23 = vmul.f32 0.0078125, %v5069_v10 }
0x104b   : > { %v5071_v32 = vpop.xlane.xlu1 %5070 }
0x104c   : > { %v5092_v25 = vadd.f32 1e-05, %v5084_v23  ;;  %v5085_v46 = vmul.f32 0.0078125, %v5071_v32 }
0x104d   : > { %v5073_v37 = vpop.xlane.xlu0 %5072 }
0x104e   : > { %13112 = vrsqrt.f32 %v5092_v25  ;;  %v5093_v29 = vadd.f32 1e-05, %v5085_v46  ;;  %v5086_v24 = vmul.f32 0.0078125, %v5073_v37 }
0x1050   : > { %13114 = vrsqrt.f32 %v5093_v29  ;;  %v5094_v12 = vadd.f32 1e-05, %v5086_v24 }
0x1051   : > { %v5075_v56 = vpop.xlane.xlu1 %5074 }
0x1052   : > { %13116 = vrsqrt.f32 %v5094_v12  ;;  %v5087_v55 = vmul.f32 0.0078125, %v5075_v56 }
0x1054   : > { %v5095_v20 = vadd.f32 1e-05, %v5087_v55 }
0x1056   : > { %13118 = vrsqrt.f32 %v5095_v20 }
0x1058   : > { %v13113_v38 = vpop.eup %13112 }
0x1059   : > { %v5108_v43 = vmul.f32 %v13113_v38, %v15179_v34 }
0x105a   : > { %v13115_v11 = vpop.eup %13114 }
0x105b   : > { %v5109_v16 = vmul.f32 %v13115_v11, %v15182_v3  ;;  %v5123_v50 = vmul.f32 %v15221_v40, %v5108_v43 }
0x105c   : > { %v13117_v27 = vpop.eup %13116 }
0x105d   : > { %v5124_v54 = vmul.f32 %v15221_v40, %v5109_v16  ;;  %v5138_v53 = vadd.f32 %v15227_v22, %v5123_v50  ;;  %v5110_v59 = vmul.f32 %v13117_v27, %v15187_v17 }
0x105f   : > { %v5139_v7 = vadd.f32 %v15227_v22, %v5124_v54  ;;  %v5146_v15 = vadd.f32 %v15235_v42, %v5138_v53  ;;  %v5125_v33 = vmul.f32 %v15221_v40, %v5110_v59 }
0x1060   : > { %v13119_v34 = vpop.eup %13118 }
0x1061   : > { %v5147_v9 = vadd.f32 %v15235_v42, %v5139_v7  ;;  %v5111_v3 = vmul.f32 %v13119_v34, %v15194_v41  ;;  %v5140_v17 = vadd.f32 %v15227_v22, %v5125_v33  ;;  %v12922_v41 = vld [vmem:[#allocation10 + $0x38] ss:$12 sps:$4 sm:$0xff]  }
0x1063   : > { %v15241_v14 = vpack.c.bf16 %v5147_v9, %v5146_v15  ;;  %v5126_v6 = vmul.f32 %v15221_v40, %v5111_v3  ;;  %v5148_v62 = vadd.f32 %v15235_v42, %v5140_v17 }
0x1065   : > { %5351 = vmatmul.mubr.bf16.vlgmr.msra.gmra.mrb[136].mxu1 %v15241_v14  ;;  %v5141_v13 = vadd.f32 %v15227_v22, %v5126_v6 }
0x1066   : > { %5360 = vmatprep.mubr.bf16.mxu1 %v17113_v61  ;;  %12279 = vmatpush3.bf16.msra.mxu1 %v12920_v19 }
0x1067   : > { %v5149_v52 = vadd.f32 %v15235_v42, %v5141_v13  ;;  %12280 = vmatprep.subr.bf16.mxu1 %v12921_v58 }
0x1069   : > { %v5155_v35 = vpack.c.bf16 %v5149_v52, %v5148_v62 }
0x106a   : > { %12281 = vmatpush3.bf16.msra.mxu1 %v12921_v58 }
0x106b   : > { %12282 = vmatprep.subr.bf16.mxu1 %v12922_v41 }
0x106d   : > { %5361 = vmatmul.mubr.bf16.gmra.mrb[140].mxu1 %v5155_v35 }
0x106e   : > { %12283 = vmatpush3.bf16.msra.mxu1 %v12922_v41  ;;  %5370 = vmatprep.mubr.bf16.mxu1 %v17113_v61 }
0x106f   : > { %12284 = vmatprep.subr.bf16.mxu1 %v12923_v36 }
0x1072   : > { %12285 = vmatpush3.bf16.msra.mxu1 %v12923_v36 }
0x1073   : > { %12286 = vmatprep.subr.bf16.mxu1 %v12924_v30 }
0x1076   : > { %12287 = vmatpush3.bf16.msra.mxu1 %v12924_v30 }
0x1077   : > { %12288 = vmatprep.subr.bf16.mxu1 %v12925_v51 }
0x107a   : > { %12289 = vmatpush3.bf16.msra.mxu1 %v12925_v51 }
0x107b   : > { %12290 = vmatprep.subr.bf16.mxu1 %v12926_v44 }
0x107e   : > { %12291 = vmatpush3.bf16.msra.mxu1 %v12926_v44 }
0x107f   : > { %12292 = vmatprep.subr.bf16.mxu1 %v12927_v57 }
0x1082   : > { %12293 = vmatpush3.bf16.msra.mxu1 %v12927_v57 }
0x1083   : > { %12302 = vmatprep.subr.bf16.mxu1 %v17112_v48 }
0x1086   : > { %v5077_v1 = vpop.xlane.xlu0 %5076 }
0x1087   : > { %v5088_v63 = vmul.f32 0.0078125, %v5077_v1 }
0x1088   : > { %v5079_v0 = vpop.xlane.xlu1 %5078 }
0x1089   : > { %v5096_v18 = vadd.f32 1e-05, %v5088_v63  ;;  %v5089_v31 = vmul.f32 0.0078125, %v5079_v0 }
0x108a   : > { %v5081_v19 = vpop.xlane.xlu0 %5080 }
0x108b   : > { %13120 = vrsqrt.f32 %v5096_v18  ;;  %v5097_v10 = vadd.f32 1e-05, %v5089_v31  ;;  %v5090_v23 = vmul.f32 0.0078125, %v5081_v19 }
0x108c   : > { %v5083_v32 = vpop.xlane.xlu1 %5082 }
0x108d   : > { %13122 = vrsqrt.f32 %v5097_v10  ;;  %v5098_v25 = vadd.f32 1e-05, %v5090_v23  ;;  %v5091_v46 = vmul.f32 0.0078125, %v5083_v32 }
0x108f   : > { %13124 = vrsqrt.f32 %v5098_v25  ;;  %v5099_v37 = vadd.f32 1e-05, %v5091_v46 }
0x1091   : > { %13126 = vrsqrt.f32 %v5099_v37 }
0x1095   : > { %v13121_v29 = vpop.eup %13120 }
0x1096   : > { %v5112_v24 = vmul.f32 %v13121_v29, %v15199_v8 }
0x1097   : > { %v13123_v12 = vpop.eup %13122 }
0x1098   : > { %v5113_v56 = vmul.f32 %v13123_v12, %v15202_v49  ;;  %v5127_v55 = vmul.f32 %v15221_v40, %v5112_v24 }
0x1099   : > { %v13125_v20 = vpop.eup %13124 }
0x109a   : > { %v5128_v38 = vmul.f32 %v15221_v40, %v5113_v56  ;;  %v5142_v43 = vadd.f32 %v15227_v22, %v5127_v55  ;;  %v5114_v11 = vmul.f32 %v13125_v20, %v15207_v2 }
0x109b   : > { %v13127_v16 = vpop.eup %13126 }
0x109c   : > { %v5143_v50 = vadd.f32 %v15227_v22, %v5128_v38  ;;  %v5115_v27 = vmul.f32 %v13127_v16, %v15212_v5  ;;  %v5150_v54 = vadd.f32 %v15235_v42, %v5142_v43  ;;  %v5129_v49 = vmul.f32 %v15221_v40, %v5114_v11 }
0x109e   : > { %v5151_v8 = vadd.f32 %v15235_v42, %v5143_v50  ;;  %v5130_v53 = vmul.f32 %v15221_v40, %v5115_v27  ;;  %v5144_v34 = vadd.f32 %v15227_v22, %v5129_v49 }
0x10a0   : > { %v5156_v59 = vpack.c.bf16 %v5151_v8, %v5150_v54  ;;  %v5145_v7 = vadd.f32 %v15227_v22, %v5130_v53  ;;  %v5152_v5 = vadd.f32 %v15235_v42, %v5144_v34 }
0x10a2   : > { %5371 = vmatmul.mubr.bf16.gmra.mrb[144].mxu1 %v5156_v59  ;;  %v5153_v2 = vadd.f32 %v15235_v42, %v5145_v7 }
0x10a3   : > { %5380 = vmatprep.mubr.bf16.mxu1 %v17113_v61 }
0x10a4   : > { %v5157_v15 = vpack.c.bf16 %v5153_v2, %v5152_v5 }
0x10aa   : > { %5381 = vmatmul.mubr.bf16.gmra.mrb[148].mxu1 %v5157_v15 }
0x10ab   : > { %12294 = vmatprep.mubr.bf16.mxu1 %v15241_v14 }
0x10b2   : > { %12295 = vmatmul.mubr.bf16.vlgmr.msra.gmra.mrb[152].mxu1 %v5155_v35 }
0x10b3   : > { %12298 = vmatprep.mubr.bf16.mxu1 %v5156_v59 }
0x10ba   : > { %12299 = vmatmul.mubr.bf16.gmra.mrb[156].mxu1 %v5157_v15 }
0x10bb   : > { %12304 = vmatprep.mubr.msk.bf16.mxu1 %vm13663_vm0, %v17112_v48 }
0x1138   : > { %v5352_v40 = vpop.f32.mrb[136].mxu1 }
0x1139   : > { %v5354_v9 = vpop.f32.mrb[137].mxu1  ;;  %v15279_v17 = vpack.c.bf16 %v5352_v40, %v5352_v40 }
0x113a   : > { %v15272_v3 = vpack.c.bf16 %v5354_v9, %v5354_v9  ;;  %v5356_v22 = vpop.f32.mrb[138].mxu1 }
0x113b   : > { %v5358_v33 = vpop.f32.mrb[139].mxu1  ;;  %v15295_v30 = vpack.c.bf16 %v5356_v22, %v5356_v22 }
0x113c   : > { %v5484_v6 = vsel %vm1167_vm1, %v15272_v3, 0  ;;  %v15277_v42 = vpack.c.bf16 %v5358_v33, %v5358_v33 }
0x113d   : > { %12303 = vmatpush3.bf16.xpose.msra.mxu1 %v5484_v6 }
0x113e   : > { %12308 = vmatprep.subr.bf16.mxu1 %v17112_v48  ;;  %v5530_v62 = vsel %vm1167_vm1, %v15277_v42, 0 }
0x1140   : > { %v5362_v14 = vpop.f32.mrb[140].mxu1 }
0x1141   : > { %v5364_v58 = vpop.f32.mrb[141].mxu1  ;;  %v15297_v51 = vpack.c.bf16 %v5362_v14, %v5362_v14 }
0x1142   : > { %v15281_v13 = vpack.c.bf16 %v5364_v58, %v5364_v58  ;;  %v5366_v52 = vpop.f32.mrb[142].mxu1 }
0x1143   : > { %v5368_v41 = vpop.f32.mrb[143].mxu1  ;;  %v15310_v57 = vpack.c.bf16 %v5366_v52, %v5366_v52 }
0x1144   : > { %12305 = vmatmul.mubr.msk.bf16.vlgmr.msra.gmra.mrb[160].mxu1 %vm1167_vm1, %v15279_v17  ;;  %v5576_v35 = vsel %vm1167_vm1, %v15281_v13, 0  ;;  %v15293_v36 = vpack.c.bf16 %v5368_v41, %v5368_v41 }
0x1145   : > { %12309 = vmatpush3.bf16.xpose.msra.mxu1 %v5530_v62  ;;  %12315 = vmatpush3.bf16.xpose.msra.mxu0 %v5576_v35 }
0x1146   : > { %12310 = vmatprep.mubr.msk.bf16.mxu1 %vm13663_vm0, %v17112_v48  ;;  %12320 = vmatprep.subr.bf16.mxu1 %v17112_v48  ;;  %v5622_v44 = vsel %vm1167_vm1, %v15293_v36, 0 }
0x1147   : > { %12326 = vmatprep.subr.bf16.mxu0 %v17112_v48 }
0x114c   : > { %12311 = vmatmul.mubr.msk.bf16.vlgmr.msra.gmra.mrb[164].mxu1 %vm1167_vm1, %v15295_v30  ;;  %12317 = vmatmul.mubr.msk.bf16.vlgmr.msra.gmra.mrb[152].mxu0 %vm1167_vm1, %v15297_v51 }
0x114d   : > { %12321 = vmatpush3.bf16.xpose.msra.mxu1 %v5622_v44  ;;  %12322 = vmatprep.mubr.msk.bf16.mxu1 %vm13663_vm0, %v17112_v48 }
0x114e   : > { %12332 = vmatprep.subr.bf16.mxu1 %v17112_v48  ;;  %12328 = vmatprep.mubr.msk.bf16.mxu0 %vm13663_vm0, %v17112_v48 }
0x1154   : > { %12323 = vmatmul.mubr.msk.bf16.vlgmr.msra.gmra.mrb[168].mxu1 %vm1167_vm1, %v15310_v57 }
0x1155   : > { %12334 = vmatprep.mubr.msk.bf16.mxu1 %vm13663_vm0, %v17112_v48 }
0x1175   : > { %v5372_v1 = vpop.f32.mrb[144].mxu1 }
0x1176   : > { %v5374_v63 = vpop.f32.mrb[145].mxu1  ;;  %v15326_v46 = vpack.c.bf16 %v5372_v1, %v5372_v1 }
0x1177   : > { %v15316_v0 = vpack.c.bf16 %v5374_v63, %v5374_v63  ;;  %v5376_v18 = vpop.f32.mrb[146].mxu1 }
0x1178   : > { %v5378_v31 = vpop.f32.mrb[147].mxu1  ;;  %v15330_v12 = vpack.c.bf16 %v5376_v18, %v5376_v18 }
0x1179   : > { %v15318_v19 = vpack.c.bf16 %v5378_v31, %v5378_v31  ;;  %v5668_v10 = vsel %vm1167_vm1, %v15316_v0, 0 }
0x117a   : > { %12327 = vmatpush3.bf16.xpose.msra.mxu0 %v5668_v10 }
0x117b   : > { %v5714_v23 = vsel %vm1167_vm1, %v15318_v19, 0  ;;  %12338 = vmatprep.subr.bf16.mxu0 %v17112_v48 }
0x117c   : > { %12333 = vmatpush3.bf16.xpose.msra.mxu1 %v5714_v23 }
0x117d   : > { %v5382_v32 = vpop.f32.mrb[148].mxu1  ;;  %12344 = vmatprep.subr.bf16.mxu1 %v17112_v48 }
0x117e   : > { %v5384_v25 = vpop.f32.mrb[149].mxu1  ;;  %v15350_v11 = vpack.c.bf16 %v5382_v32, %v5382_v32 }
0x117f   : > { %v15328_v37 = vpack.c.bf16 %v5384_v25, %v5384_v25  ;;  %v5386_v29 = vpop.f32.mrb[150].mxu1 }
0x1180   : > { %v5388_v24 = vpop.f32.mrb[151].mxu1  ;;  %v15356_v54 = vpack.c.bf16 %v5386_v29, %v5386_v29 }
0x1181   : > { %v15332_v56 = vpack.c.bf16 %v5388_v24, %v5388_v24  ;;  %12329 = vmatmul.mubr.msk.bf16.vlgmr.msra.gmra.mrb[156].mxu0 %vm1167_vm1, %v15326_v46  ;;  %v5760_v55 = vsel %vm1167_vm1, %v15328_v37, 0 }
0x1182   : > { %12339 = vmatpush3.bf16.xpose.msra.mxu0 %v5760_v55  ;;  %12340 = vmatprep.mubr.msk.bf16.mxu0 %vm13663_vm0, %v17112_v48 }
0x1183   : > { %12335 = vmatmul.mubr.msk.bf16.vlgmr.msra.gmra.mrb[172].mxu1 %vm1167_vm1, %v15330_v12  ;;  %v5806_v20 = vsel %vm1167_vm1, %v15332_v56, 0  ;;  %12350 = vmatprep.subr.bf16.mxu0 %v17112_v48 }
0x1184   : > { %12345 = vmatpush3.bf16.xpose.msra.mxu1 %v5806_v20  ;;  %12346 = vmatprep.mubr.msk.bf16.mxu1 %vm13663_vm0, %v17112_v48 }
0x1185   : > { %v15347_v38 = vpop.f32.mrb[152].mxu1  ;;  %12356 = vmatprep.subr.bf16.mxu1 %v17112_v48 }
0x1186   : > { %v5425_v43 = vpop.f32.mrb[153].mxu1 }
0x1187   : > { %v15352_v16 = vpack.c.bf16 %v5425_v43, %v5425_v43  ;;  %v15354_v50 = vpop.f32.mrb[154].mxu1 }
0x1188   : > { %v5428_v27 = vpop.f32.mrb[155].mxu1 }
0x1189   : > { %v15358_v8 = vpack.c.bf16 %v5428_v27, %v5428_v27  ;;  %12341 = vmatmul.mubr.msk.bf16.vlgmr.msra.gmra.mrb[160].mxu0 %vm1167_vm1, %v15350_v11  ;;  %v5956_v49 = vsel %vm1644_vm2, %v15352_v16, 0 }
0x118a   : > { %12351 = vmatpush3.bf16.msra.mxu0 %v5956_v49  ;;  %12352 = vmatprep.mubr.msk.bf16.mxu0 %vm13663_vm0, %v17112_v48 }
0x118b   : > { %12347 = vmatmul.mubr.msk.bf16.vlgmr.msra.gmra.mrb[176].mxu1 %vm1167_vm1, %v15356_v54  ;;  %v6002_v53 = vsel %vm1644_vm2, %v15358_v8, 0  ;;  %12362 = vmatprep.subr.bf16.mxu0 %v17112_v48 }
0x118c   : > { %12357 = vmatpush3.bf16.msra.mxu1 %v6002_v53  ;;  %12358 = vmatprep.mubr.msk.bf16.mxu1 %vm13663_vm0, %v17112_v48 }
0x118d   : > { %v15373_v59 = vpop.f32.mrb[156].mxu1  ;;  %12368 = vmatprep.subr.bf16.mxu1 %v17112_v48 }
0x118e   : > { %v15376_v7 = vpop.f32.mrb[157].mxu1 }
0x118f   : > { %v15378_v34 = vpop.f32.mrb[158].mxu1 }
0x1190   : > { %v15380_v2 = vpop.f32.mrb[159].mxu1 }
0x1217   : > { %v5520_v5 = vpop.f32.mrb[160].mxu1 }
0x1218   : > { %v5848_v15 = vmul.f32 0.17677669, %v5520_v5  ;;  %v12306_v40 = vpop.f32.mrb[161].mxu1 }
0x1219   : > { %v5523_v9 = vpop.f32.mrb[162].mxu1 }
0x121a   : > { %v12307_v22 = vpop.f32.mrb[163].mxu1  ;;  %v5856_v33 = vsel %vm1544_vm3, %v5848_v15, -inf }
0x121b   : > { %5857 = vmax.xlane.f32.xlu0 %v5856_v33 }
0x121f   : > { %v5566_v6 = vpop.f32.mrb[164].mxu1  ;;  %v5612_v14 = vpop.f32.mrb[152].mxu0 }
0x1220   : > { %v5849_v58 = vmul.f32 0.17677669, %v5566_v6  ;;  %v5850_v52 = vmul.f32 0.17677669, %v5612_v14  ;;  %v12312_v41 = vpop.f32.mrb[165].mxu1  ;;  %v12318_v62 = vpop.f32.mrb[153].mxu0 }
0x1221   : > { %v5569_v35 = vpop.f32.mrb[166].mxu1  ;;  %v5615_v44 = vpop.f32.mrb[154].mxu0 }
0x1222   : > { %v12313_v1 = vpop.f32.mrb[167].mxu1  ;;  %v12319_v63 = vpop.f32.mrb[155].mxu0  ;;  %v5862_v18 = vsel %vm1544_vm3, %v5850_v52, -inf  ;;  %v5859_v31 = vsel %vm1544_vm3, %v5849_v58, -inf }
0x1223   : > { %5863 = vmax.xlane.f32.xlu0 %v5862_v18  ;;  %5860 = vmax.xlane.f32.xlu1 %v5859_v31 }
0x1227   : > { %v5658_v10 = vpop.f32.mrb[168].mxu1 }
0x1228   : > { %v5851_v23 = vmul.f32 0.17677669, %v5658_v10  ;;  %v12324_v32 = vpop.f32.mrb[169].mxu1 }
0x1229   : > { %v5661_v25 = vpop.f32.mrb[170].mxu1 }
0x122a   : > { %v12325_v29 = vpop.f32.mrb[171].mxu1  ;;  %v5865_v24 = vsel %vm1544_vm3, %v5851_v23, -inf }
0x122b   : > { %5866 = vmax.xlane.f32.xlu1 %v5865_v24 }
0x1254   : > { %v5704_v55 = vpop.f32.mrb[156].mxu0 }
0x1255   : > { %v5852_v20 = vmul.f32 0.17677669, %v5704_v55  ;;  %v12330_v43 = vpop.f32.mrb[157].mxu0 }
0x1256   : > { %v5707_v27 = vpop.f32.mrb[158].mxu0  ;;  %v5750_v49 = vpop.f32.mrb[172].mxu1 }
0x1257   : > { %v5853_v53 = vmul.f32 0.17677669, %v5750_v49  ;;  %v12331_v5 = vpop.f32.mrb[159].mxu0  ;;  %v12336_v40 = vpop.f32.mrb[173].mxu1  ;;  %v5868_v9 = vsel %vm1544_vm3, %v5852_v20, -inf }
0x1258   : > { %5869 = vmax.xlane.f32.xlu0 %v5868_v9  ;;  %v5753_v22 = vpop.f32.mrb[174].mxu1 }
0x1259   : > { %v12337_v33 = vpop.f32.mrb[175].mxu1  ;;  %v5871_v6 = vsel %vm1544_vm3, %v5853_v53, -inf }
0x125a   : > { %5872 = vmax.xlane.f32.xlu1 %v5871_v6 }
0x125c   : > { %v5796_v14 = vpop.f32.mrb[160].mxu0 }
0x125d   : > { %v5854_v41 = vmul.f32 0.17677669, %v5796_v14  ;;  %v12342_v62 = vpop.f32.mrb[161].mxu0 }
0x125e   : > { %v5799_v35 = vpop.f32.mrb[162].mxu0  ;;  %v5842_v44 = vpop.f32.mrb[176].mxu1 }
0x125f   : > { %v15388_v1 = vmul.f32 0.17677669, %v5842_v44  ;;  %v12343_v63 = vpop.f32.mrb[163].mxu0  ;;  %v12348_v18 = vpop.f32.mrb[177].mxu1  ;;  %v5874_v31 = vsel %vm1544_vm3, %v5854_v41, -inf }
0x1260   : > { %5875 = vmax.xlane.f32.xlu0 %v5874_v31  ;;  %v5845_v10 = vpop.f32.mrb[178].mxu1 }
0x1261   : > { %v12349_v32 = vpop.f32.mrb[179].mxu1  ;;  %v5877_v25 = vsel %vm1544_vm3, %v15388_v1, -inf }
0x1262   : > { %5878 = vmax.xlane.f32.xlu1 %v5877_v25 }
0x12a8   : > { %v5858_v29 = vpop.xlane.xlu0 %5857 }
0x12a9   : > { %v5880_v24 = vsub.f32 %v5848_v15, %v5858_v29 }
0x12ab   : > { %v5888_v55 = vmul.f32 1.442695, %v5880_v24 }
0x12ad   : > { %13128 = vpow2.f32 %v5888_v55 }
0x12b0   : > { %v5864_v43 = vpop.xlane.xlu0 %5863  ;;  %v5861_v27 = vpop.xlane.xlu1 %5860 }
0x12b1   : > { %v5882_v49 = vsub.f32 %v5850_v52, %v5864_v43  ;;  %v5881_v5 = vsub.f32 %v5849_v58, %v5861_v27 }
0x12b3   : > { %v5892_v40 = vmul.f32 1.442695, %v5882_v49  ;;  %v5890_v9 = vmul.f32 1.442695, %v5881_v5 }
0x12b5   : > { %13130 = vpow2.f32 %v5892_v40 }
0x12b6   : > { %13132 = vpow2.f32 %v5890_v9 }
0x12b7   : > { %v15393_v22 = vpop.eup %13128 }
0x12b8   : > { %v5867_v33 = vpop.xlane.xlu1 %5866  ;;  %v5904_v6 = vsel %vm1544_vm3, %v15393_v22, 0.0 }
0x12b9   : > { %v5883_v14 = vsub.f32 %v5851_v23, %v5867_v33  ;;  %5905 = vadd.xlane.f32.xlu0 %v5904_v6 }
0x12bb   : > { %v5894_v62 = vmul.f32 1.442695, %v5883_v14 }
0x12bd   : > { %13134 = vpow2.f32 %v5894_v62 }
0x12bf   : > { %v15397_v15 = vpop.eup %13130 }
0x12c0   : > { %v15399_v35 = vpop.eup %13132  ;;  %v5910_v58 = vsel %vm1544_vm3, %v15397_v15, 0.0 }
0x12c1   : > { %5911 = vadd.xlane.f32.xlu0 %v5910_v58  ;;  %v5907_v52 = vsel %vm1544_vm3, %v15399_v35, 0.0 }
0x12c2   : > { %5908 = vadd.xlane.f32.xlu1 %v5907_v52  ;;  %v15456_v52 = vpack.c.bf16 %v15347_v38, %v15347_v38 }
0x12c7   : > { %v15405_v44 = vpop.eup %13134 }
0x12c8   : > { %v5913_v23 = vsel %vm1544_vm3, %v15405_v44, 0.0 }
0x12c9   : > { %5914 = vadd.xlane.f32.xlu1 %v5913_v23 }
0x12e5   : > { %v5870_v63 = vpop.xlane.xlu0 %5869 }
0x12e6   : > { %v5884_v18 = vsub.f32 %v5852_v20, %v5870_v63 }
0x12e7   : > { %v5873_v31 = vpop.xlane.xlu1 %5872 }
0x12e8   : > { %v5896_v10 = vmul.f32 1.442695, %v5884_v18  ;;  %v5885_v32 = vsub.f32 %v5853_v53, %v5873_v31  ;;  %v6048_v18 = vsel %vm1644_vm2, %v15456_v52, 0 }
0x12ea   : > { %13136 = vpow2.f32 %v5896_v10  ;;  %v5898_v25 = vmul.f32 1.442695, %v5885_v32 }
0x12ec   : > { %13138 = vpow2.f32 %v5898_v25  ;;  %v15478_v25 = vpack.c.bf16 %v15354_v50, %v15354_v50 }
0x12ed   : > { %v5876_v29 = vpop.xlane.xlu0 %5875 }
0x12ee   : > { %v5886_v24 = vsub.f32 %v5854_v41, %v5876_v29 }
0x12ef   : > { %v5879_v41 = vpop.xlane.xlu1 %5878 }
0x12f0   : > { %v5900_v55 = vmul.f32 1.442695, %v5886_v24  ;;  %v5887_v40 = vsub.f32 %v15388_v1, %v5879_v41 }
0x12f2   : > { %13140 = vpow2.f32 %v5900_v55  ;;  %v5902_v9 = vmul.f32 1.442695, %v5887_v40 }
0x12f4   : > { %v15409_v43 = vpop.eup %13136  ;;  %13142 = vpow2.f32 %v5902_v9  ;;  %v15512_v9 = vpack.c.bf16 %v15373_v59, %v15373_v59 }
0x12f5   : > { %v5916_v27 = vsel %vm1544_vm3, %v15409_v43, 0.0 }
0x12f6   : > { %v15413_v49 = vpop.eup %13138  ;;  %5917 = vadd.xlane.f32.xlu0 %v5916_v27 }
0x12f7   : > { %v5919_v20 = vsel %vm1544_vm3, %v15413_v49, 0.0 }
0x12f8   : > { %5920 = vadd.xlane.f32.xlu1 %v5919_v20 }
0x12fc   : > { %v15417_v53 = vpop.eup %13140 }
0x12fd   : > { %v5922_v5 = vsel %vm1544_vm3, %v15417_v53, 0.0 }
0x12fe   : > { %5923 = vadd.xlane.f32.xlu0 %v5922_v5  ;;  %v15440_v33 = vpop.eup %13142 }
0x12ff   : > { %v5925_v1 = vsel %vm1544_vm3, %v15440_v33, 0.0 }
0x1309   : > { %6384 = vrot.lane.b32.xlu1 %v15277_v42, %s13664_s22 }
0x130d   : > { %6329 = vrot.lane.b32.xlu1 %v15279_v17, %s13664_s22 }
0x1314   : > { %6332 = vrot.lane.b32.xlu0 %v15272_v3, %s13664_s22 }
0x1318   : > { %6436 = vrot.lane.b32.xlu0 %v15281_v13, %s13664_s22 }
0x131c   : > { %6433 = vrot.lane.b32.xlu0 %v15297_v51, %s13664_s22 }
0x1320   : > { %6540 = vrot.lane.b32.xlu0 %v15316_v0, %s13664_s22 }
0x1324   : > { %6537 = vrot.lane.b32.xlu0 %v15326_v46, %s13664_s22 }
0x1328   : > { %6644 = vrot.lane.b32.xlu0 %v15328_v37, %s13664_s22 }
0x132c   : > { %6641 = vrot.lane.b32.xlu0 %v15350_v11, %s13664_s22 }
0x1330   : > { %6849 = vrot.lane.b32.xlu0 %v15352_v16, %s13664_s22 }
0x1331   : > { %5926 = vadd.xlane.f32.xlu1 %v5925_v1 }
0x1342   : > { %6381 = vrot.lane.b32.xlu1 %v15295_v30, %s13664_s22 }
0x1346   : > { %v5906_v6 = vpop.xlane.xlu0 %5905  ;;  %6488 = vrot.lane.b32.xlu1 %v15293_v36, %s13664_s22 }
0x1347   : > { %13144 = vrcp.f32 %v5906_v6 }
0x134a   : > { %6485 = vrot.lane.b32.xlu1 %v15310_v57, %s13664_s22 }
0x134e   : > { %v5912_v14 = vpop.xlane.xlu0 %5911  ;;  %6592 = vrot.lane.b32.xlu1 %v15318_v19, %s13664_s22 }
0x134f   : > { %13146 = vrcp.f32 %v5912_v14  ;;  %v5909_v62 = vpop.xlane.xlu1 %5908 }
0x1350   : > { %13148 = vrcp.f32 %v5909_v62  ;;  %v15517_v62 = vpack.c.bf16 %v15378_v34, %v15378_v34 }
0x1351   : > { %v13145_v58 = vpop.eup %13144 }
0x1352   : > { %6589 = vrot.lane.b32.xlu1 %v15330_v12, %s13664_s22  ;;  %v5929_v23 = vmul.f32 %v13145_v58, %v15393_v22  ;;  %v15471_v22 = vpack.c.bf16 %v15376_v7, %v15376_v7  ;;  %v6094_v7 = vsel %vm1644_vm2, %v15478_v25, 0  ;;  %v6278_v34 = vsel %vm1644_vm2, %v15517_v62, 0 }
0x1354   : > { %v5944_v63 = vpack.c.bf16 %v5929_v23, %v5929_v23  ;;  %v6140_v27 = vsel %vm1644_vm2, %v15471_v22, 0 }
0x1356   : > { %12353 = vmatmul.mubr.msk.bf16.vlgmr.msra.gmra.mrb[164].mxu0 %vm1544_vm3, %v5944_v63  ;;  %6696 = vrot.lane.b32.xlu1 %v15332_v56, %s13664_s22  ;;  %v5915_v31 = vpop.xlane.xlu1 %5914  ;;  %v6232_v63 = vsel %vm1644_vm2, %v15512_v9, 0 }
0x1357   : > { %12363 = vmatpush3.bf16.msra.mxu0 %v6048_v18  ;;  %13150 = vrcp.f32 %v5915_v31  ;;  %12364 = vmatprep.mubr.msk.bf16.mxu0 %vm13663_vm0, %v17112_v48 }
0x1358   : > { %12374 = vmatprep.subr.bf16.mxu0 %v17112_v48 }
0x1359   : > { %v13147_v38 = vpop.eup %13146 }
0x135a   : > { %v13149_v10 = vpop.eup %13148  ;;  %6693 = vrot.lane.b32.xlu1 %v15356_v54, %s13664_s22  ;;  %v5933_v32 = vmul.f32 %v13147_v38, %v15397_v15 }
0x135b   : > { %v5931_v29 = vmul.f32 %v13149_v10, %v15399_v35  ;;  %v15500_v35 = vpack.c.bf16 %v15380_v2, %v15380_v2 }
0x135c   : > { %v5946_v24 = vpack.c.bf16 %v5933_v32, %v5933_v32 }
0x135d   : > { %v5945_v55 = vpack.c.bf16 %v5931_v29, %v5931_v29  ;;  %v6186_v5 = vsel %vm1644_vm2, %v15500_v35, 0 }
0x135e   : > { %12365 = vmatmul.mubr.msk.bf16.vlgmr.msra.gmra.mrb[168].mxu0 %vm1544_vm3, %v5946_v24  ;;  %6898 = vrot.lane.b32.xlu1 %v15358_v8, %s13664_s22 }
0x135f   : > { %12375 = vmatpush3.bf16.msra.mxu0 %v6140_v27  ;;  %12359 = vmatmul.mubr.msk.bf16.vlgmr.msra.gmra.mrb[180].mxu1 %vm1544_vm3, %v5945_v55 }
0x1360   : > { %12369 = vmatpush3.bf16.msra.mxu1 %v6094_v7  ;;  %12370 = vmatprep.mubr.msk.bf16.mxu1 %vm13663_vm0, %v17112_v48 }
0x1361   : > { %v13151_v50 = vpop.eup %13150  ;;  %12380 = vmatprep.subr.bf16.mxu1 %v17112_v48  ;;  %12376 = vmatprep.mubr.msk.bf16.mxu0 %vm13663_vm0, %v17112_v48 }
0x1362   : > { %6947 = vrot.lane.b32.xlu1 %v15456_v52, %s13664_s22  ;;  %v5935_v15 = vmul.f32 %v13151_v50, %v15405_v44  ;;  %12386 = vmatprep.subr.bf16.mxu0 %v17112_v48 }
0x1364   : > { %v5947_v20 = vpack.c.bf16 %v5935_v15, %v5935_v15 }
0x1366   : > { %6996 = vrot.lane.b32.xlu1 %v15478_v25, %s13664_s22 }
0x1367   : > { %12371 = vmatmul.mubr.msk.bf16.vlgmr.msra.gmra.mrb[184].mxu1 %vm1544_vm3, %v5947_v20 }
0x1368   : > { %12381 = vmatpush3.bf16.msra.mxu1 %v6186_v5  ;;  %12382 = vmatprep.mubr.msk.bf16.mxu1 %vm13663_vm0, %v17112_v48 }
0x1369   : > { %12392 = vmatprep.subr.bf16.mxu1 %v17112_v48 }
0x1383   : > { %v5918_v44 = vpop.xlane.xlu0 %5917 }
0x1384   : > { %13152 = vrcp.f32 %v5918_v44 }
0x1385   : > { %v5921_v41 = vpop.xlane.xlu1 %5920 }
0x1386   : > { %13154 = vrcp.f32 %v5921_v41 }
0x1389   : > { %v6385_v32 = vpop.permute.xlu1 %6384 }
0x138b   : > { %v5924_v2 = vpop.xlane.xlu0 %5923 }
0x138c   : > { %13156 = vrcp.f32 %v5924_v2 }
0x138d   : > { %v6330_v24 = vpop.permute.xlu1 %6329 }
0x138e   : > { %v13153_v40 = vpop.eup %13152 }
0x138f   : > { %v6333_v1 = vpop.permute.xlu0 %6332  ;;  %v5937_v6 = vmul.f32 %v13153_v40, %v15409_v43 }
0x1390   : > { %v13155_v14 = vpop.eup %13154  ;;  %v6338_v10 = vsel %vm1167_vm1, %v6333_v1, 0 }
0x1391   : > { %v5948_v58 = vpack.c.bf16 %v5937_v6, %v5937_v6  ;;  %v5939_v23 = vmul.f32 %v13155_v14, %v15413_v49 }
0x1393   : > { %12377 = vmatmul.mubr.msk.bf16.vlgmr.msra.gmra.mrb[172].mxu0 %vm1544_vm3, %v5948_v58  ;;  %v5949_v18 = vpack.c.bf16 %v5939_v23, %v5939_v23  ;;  %v6437_v59 = vpop.permute.xlu0 %6436  ;;  %v6390_v58 = vsel %vm1167_vm1, %v6385_v32, 0 }
0x1394   : > { %12387 = vmatpush3.bf16.msra.mxu0 %v6232_v63  ;;  %12388 = vmatprep.mubr.msk.bf16.mxu0 %vm13663_vm0, %v17112_v48  ;;  %v6442_v55 = vsel %vm1167_vm1, %v6437_v59, 0 }
0x1395   : > { %12383 = vmatmul.mubr.msk.bf16.vlgmr.msra.gmra.mrb[188].mxu1 %vm1544_vm3, %v5949_v18  ;;  %12398 = vmatprep.subr.bf16.mxu0 %v17112_v48 }
0x1396   : > { %v13157_v43 = vpop.eup %13156  ;;  %12393 = vmatpush3.bf16.msra.mxu1 %v6278_v34  ;;  %12394 = vmatprep.mubr.msk.bf16.mxu1 %vm13663_vm0, %v17112_v48 }
0x1397   : > { %v5941_v49 = vmul.f32 %v13157_v43, %v15417_v53  ;;  %12404 = vmatprep.subr.bf16.mxu1 %v17112_v48  ;;  %v6434_v38 = vpop.permute.xlu0 %6433 }
0x1399   : > { %v5950_v31 = vpack.c.bf16 %v5941_v49, %v5941_v49 }
0x139b   : > { %12389 = vmatmul.mubr.msk.bf16.vlgmr.msra.gmra.mrb[176].mxu0 %vm1544_vm3, %v5950_v31  ;;  %v6541_v29 = vpop.permute.xlu0 %6540 }
0x139c   : > { %12400 = vmatprep.mubr.msk.bf16.mxu0 %vm13663_vm0, %v17112_v48  ;;  %v6546_v27 = vsel %vm1167_vm1, %v6541_v29, 0 }
0x139d   : > { %12399 = vmatpush3.bf16.xpose.msra.mxu0 %v6338_v10 }
0x139e   : > { %12410 = vmatprep.subr.bf16.mxu0 %v17112_v48 }
0x139f   : > { %v6538_v53 = vpop.permute.xlu0 %6537 }
0x13a3   : > { %v6645_v7 = vpop.permute.xlu0 %6644 }
0x13a4   : > { %12401 = vmatmul.mubr.msk.bf16.vlgmr.msra.gmra.mrb[180].mxu0 %vm1167_vm1, %v6330_v24  ;;  %v6650_v15 = vsel %vm1167_vm1, %v6645_v7, 0 }
0x13a5   : > { %12411 = vmatpush3.bf16.xpose.msra.mxu0 %v6442_v55  ;;  %12412 = vmatprep.mubr.msk.bf16.mxu0 %vm13663_vm0, %v17112_v48 }
0x13a6   : > { %12422 = vmatprep.subr.bf16.mxu0 %v17112_v48 }
0x13a7   : > { %v6642_v50 = vpop.permute.xlu0 %6641 }
0x13ab   : > { %v6850_v20 = vpop.permute.xlu0 %6849 }
0x13ac   : > { %12413 = vmatmul.mubr.msk.bf16.vlgmr.msra.gmra.mrb[184].mxu0 %vm1167_vm1, %v6434_v38  ;;  %v6855_v5 = vsel %vm1644_vm2, %v6850_v20, 0 }
0x13ad   : > { %12423 = vmatpush3.bf16.xpose.msra.mxu0 %v6546_v27  ;;  %12424 = vmatprep.mubr.msk.bf16.mxu0 %vm13663_vm0, %v17112_v48 }
0x13ae   : > { %12434 = vmatprep.subr.bf16.mxu0 %v17112_v48 }
0x13b4   : > { %12425 = vmatmul.mubr.msk.bf16.vlgmr.msra.gmra.mrb[188].mxu0 %vm1167_vm1, %v6538_v53 }
0x13b5   : > { %12435 = vmatpush3.bf16.xpose.msra.mxu0 %v6650_v15  ;;  %12436 = vmatprep.mubr.msk.bf16.mxu0 %vm13663_vm0, %v17112_v48 }
0x13b6   : > { %12446 = vmatprep.subr.bf16.mxu0 %v17112_v48 }
0x13bc   : > { %12437 = vmatmul.mubr.msk.bf16.vlgmr.msra.gmra.mrb[192].mxu0 %vm1167_vm1, %v6642_v50 }
0x13bd   : > { %12447 = vmatpush3.bf16.msra.mxu0 %v6855_v5  ;;  %12448 = vmatprep.mubr.msk.bf16.mxu0 %vm13663_vm0, %v17112_v48 }
0x13be   : > { %v5927_v44 = vpop.xlane.xlu1 %5926  ;;  %12458 = vmatprep.subr.bf16.mxu0 %v17112_v48 }
0x13bf   : > { %13158 = vrcp.f32 %v5927_v44 }
0x13c2   : > { %v6382_v41 = vpop.permute.xlu1 %6381 }
0x13c6   : > { %v6489_v2 = vpop.permute.xlu1 %6488 }
0x13c7   : > { %v6494_v63 = vsel %vm1167_vm1, %v6489_v2, 0 }
0x13c9   : > { %v13159_v40 = vpop.eup %13158 }
0x13ca   : > { %v5943_v1 = vmul.f32 %v13159_v40, %v15440_v33  ;;  %v6486_v14 = vpop.permute.xlu1 %6485 }
0x13cc   : > { %v5951_v6 = vpack.c.bf16 %v5943_v1, %v5943_v1 }
0x13ce   : > { %12395 = vmatmul.mubr.msk.bf16.vlgmr.msra.gmra.mrb[192].mxu1 %vm1544_vm3, %v5951_v6  ;;  %v6593_v23 = vpop.permute.xlu1 %6592 }
0x13cf   : > { %12405 = vmatpush3.bf16.xpose.msra.mxu1 %v6390_v58  ;;  %12406 = vmatprep.mubr.msk.bf16.mxu1 %vm13663_vm0, %v17112_v48  ;;  %v6598_v18 = vsel %vm1167_vm1, %v6593_v23, 0 }
0x13d0   : > { %12416 = vmatprep.subr.bf16.mxu1 %v17112_v48 }
0x13d2   : > { %v6590_v33 = vpop.permute.xlu1 %6589 }
0x13d6   : > { %12407 = vmatmul.mubr.msk.bf16.vlgmr.msra.gmra.mrb[196].mxu1 %vm1167_vm1, %v6382_v41  ;;  %v6697_v59 = vpop.permute.xlu1 %6696 }
0x13d7   : > { %12417 = vmatpush3.bf16.xpose.msra.mxu1 %v6494_v63  ;;  %12418 = vmatprep.mubr.msk.bf16.mxu1 %vm13663_vm0, %v17112_v48  ;;  %v6702_v43 = vsel %vm1167_vm1, %v6697_v59, 0 }
0x13d8   : > { %12428 = vmatprep.subr.bf16.mxu1 %v17112_v48 }
0x13da   : > { %v6694_v34 = vpop.permute.xlu1 %6693 }
0x13de   : > { %12419 = vmatmul.mubr.msk.bf16.vlgmr.msra.gmra.mrb[200].mxu1 %vm1167_vm1, %v6486_v14  ;;  %v6899_v49 = vpop.permute.xlu1 %6898 }
0x13df   : > { %12429 = vmatpush3.bf16.xpose.msra.mxu1 %v6598_v18  ;;  %12430 = vmatprep.mubr.msk.bf16.mxu1 %vm13663_vm0, %v17112_v48  ;;  %v6904_v31 = vsel %vm1644_vm2, %v6899_v49, 0 }
0x13e0   : > { %12440 = vmatprep.subr.bf16.mxu1 %v17112_v48 }
0x13e6   : > { %12431 = vmatmul.mubr.msk.bf16.vlgmr.msra.gmra.mrb[204].mxu1 %vm1167_vm1, %v6590_v33 }
0x13e7   : > { %12441 = vmatpush3.bf16.xpose.msra.mxu1 %v6702_v43  ;;  %12442 = vmatprep.mubr.msk.bf16.mxu1 %vm13663_vm0, %v17112_v48 }
0x13e8   : > { %12452 = vmatprep.subr.bf16.mxu1 %v17112_v48 }
0x13ee   : > { %12443 = vmatmul.mubr.msk.bf16.vlgmr.msra.gmra.mrb[208].mxu1 %vm1167_vm1, %v6694_v34 }
0x13ef   : > { %12453 = vmatpush3.bf16.msra.mxu1 %v6904_v31  ;;  %12454 = vmatprep.mubr.msk.bf16.mxu1 %vm13663_vm0, %v17112_v48 }
0x13f0   : > { %12464 = vmatprep.subr.bf16.mxu1 %v17112_v48 }
0x1429   : > { %v15584_v38 = vpop.f32.mrb[164].mxu0 }
0x142a   : > { %v12354_v10 = vpop.f32.mrb[165].mxu0 }
0x142b   : > { %v5995_v32 = vpop.f32.mrb[166].mxu0 }
0x142c   : > { %v12355_v29 = vpop.f32.mrb[167].mxu0 }
0x1431   : > { %v15586_v24 = vpop.f32.mrb[168].mxu0 }
0x1432   : > { %v15588_v55 = vpop.f32.mrb[180].mxu1  ;;  %v12366_v53 = vpop.f32.mrb[169].mxu0 }
0x1433   : > { %v12360_v27 = vpop.f32.mrb[181].mxu1  ;;  %v6087_v7 = vpop.f32.mrb[170].mxu0 }
0x1434   : > { %v6041_v50 = vpop.f32.mrb[182].mxu1  ;;  %v12367_v15 = vpop.f32.mrb[171].mxu0 }
0x1435   : > { %v12361_v20 = vpop.f32.mrb[183].mxu1 }
0x143a   : > { %v15590_v5 = vpop.f32.mrb[184].mxu1 }
0x143b   : > { %v12372_v44 = vpop.f32.mrb[185].mxu1 }
0x143c   : > { %v6133_v41 = vpop.f32.mrb[186].mxu1 }
0x143d   : > { %v12373_v2 = vpop.f32.mrb[187].mxu1 }
0x1466   : > { %v15592_v40 = vpop.f32.mrb[172].mxu0 }
0x1467   : > { %v12378_v1 = vpop.f32.mrb[173].mxu0 }
0x1468   : > { %v6179_v6 = vpop.f32.mrb[174].mxu0  ;;  %v15594_v14 = vpop.f32.mrb[188].mxu1 }
0x1469   : > { %v12379_v58 = vpop.f32.mrb[175].mxu0  ;;  %v12384_v23 = vpop.f32.mrb[189].mxu1 }
0x146a   : > { %v6225_v63 = vpop.f32.mrb[190].mxu1 }
0x146b   : > { %v12385_v33 = vpop.f32.mrb[191].mxu1 }
0x146e   : > { %v15596_v18 = vpop.f32.mrb[176].mxu0 }
0x146f   : > { %v12390_v59 = vpop.f32.mrb[177].mxu0 }
0x1470   : > { %v6271_v34 = vpop.f32.mrb[178].mxu0 }
0x1471   : > { %v12391_v43 = vpop.f32.mrb[179].mxu0 }
0x1477   : > { %v6374_v49 = vpop.f32.mrb[180].mxu0 }
0x1478   : > { %v15598_v31 = vmul.f32 0.17677669, %v6374_v49  ;;  %v12402_v10 = vpop.f32.mrb[181].mxu0 }
0x1479   : > { %v6377_v32 = vpop.f32.mrb[182].mxu0 }
0x147a   : > { %v12403_v29 = vpop.f32.mrb[183].mxu0  ;;  %v6752_v53 = vsel %vm1544_vm3, %v15598_v31, -inf }
0x147b   : > { %6753 = vmax.xlane.f32.xlu0 %v6752_v53 }
0x147f   : > { %v6478_v27 = vpop.f32.mrb[184].mxu0 }
0x1480   : > { %v6746_v7 = vmul.f32 0.17677669, %v6478_v27  ;;  %v12414_v50 = vpop.f32.mrb[185].mxu0 }
0x1481   : > { %v6481_v15 = vpop.f32.mrb[186].mxu0 }
0x1482   : > { %v12415_v20 = vpop.f32.mrb[187].mxu0  ;;  %v6758_v44 = vsel %vm1544_vm3, %v6746_v7, -inf }
0x1483   : > { %6759 = vmax.xlane.f32.xlu0 %v6758_v44 }
0x1487   : > { %v6582_v41 = vpop.f32.mrb[188].mxu0 }
0x1488   : > { %v12426_v2 = vpop.f32.mrb[189].mxu0 }
0x1489   : > { %v6585_v1 = vpop.f32.mrb[190].mxu0 }
0x148a   : > { %v12427_v6 = vpop.f32.mrb[191].mxu0  ;;  %v6748_v1 = vmul.f32 0.17677669, %v6582_v41 }
0x148f   : > { %v6686_v58 = vpop.f32.mrb[192].mxu0 }
0x1490   : > { %v12438_v23 = vpop.f32.mrb[193].mxu0 }
0x1491   : > { %v6689_v63 = vpop.f32.mrb[194].mxu0 }
0x1492   : > { %v12439_v33 = vpop.f32.mrb[195].mxu0  ;;  %v15607_v63 = vmul.f32 0.17677669, %v6686_v58 }
0x1493   : > { %v6764_v33 = vsel %vm1544_vm3, %v6748_v1, -inf }
0x14a1   : > { %v15603_v59 = vpop.f32.mrb[192].mxu1 }
0x14a2   : > { %v12396_v34 = vpop.f32.mrb[193].mxu1 }
0x14a3   : > { %v6317_v43 = vpop.f32.mrb[194].mxu1 }
0x14a4   : > { %v12397_v49 = vpop.f32.mrb[195].mxu1 }
0x14a9   : > { %v6426_v10 = vpop.f32.mrb[196].mxu1 }
0x14aa   : > { %v6745_v32 = vmul.f32 0.17677669, %v6426_v10  ;;  %v12408_v29 = vpop.f32.mrb[197].mxu1 }
0x14ab   : > { %v6429_v53 = vpop.f32.mrb[198].mxu1 }
0x14ac   : > { %v12409_v27 = vpop.f32.mrb[199].mxu1  ;;  %v6755_v50 = vsel %vm1544_vm3, %v6745_v32, -inf  ;;  %v6770_v53 = vsel %vm1544_vm3, %v15607_v63, -inf }
0x14ad   : > { %6756 = vmax.xlane.f32.xlu1 %v6755_v50 }
0x14b1   : > { %v6530_v15 = vpop.f32.mrb[200].mxu1 }
0x14b2   : > { %v6747_v20 = vmul.f32 0.17677669, %v6530_v15  ;;  %v12420_v44 = vpop.f32.mrb[201].mxu1 }
0x14b3   : > { %v6533_v2 = vpop.f32.mrb[202].mxu1 }
0x14b4   : > { %v12421_v6 = vpop.f32.mrb[203].mxu1  ;;  %v6761_v23 = vsel %vm1544_vm3, %v6747_v20, -inf }
0x14b5   : > { %6762 = vmax.xlane.f32.xlu0 %v6761_v23 }
0x14b9   : > { %6765 = vmax.xlane.f32.xlu0 %v6764_v33  ;;  %v6634_v34 = vpop.f32.mrb[204].mxu1 }
0x14ba   : > { %v6749_v43 = vmul.f32 0.17677669, %v6634_v34  ;;  %v12432_v49 = vpop.f32.mrb[205].mxu1 }
0x14bb   : > { %v6637_v10 = vpop.f32.mrb[206].mxu1 }
0x14bc   : > { %v12433_v29 = vpop.f32.mrb[207].mxu1  ;;  %v6767_v27 = vsel %vm1544_vm3, %v6749_v43, -inf }
0x14bd   : > { %6771 = vmax.xlane.f32.xlu0 %v6770_v53  ;;  %6768 = vmax.xlane.f32.xlu1 %v6767_v27 }
0x14c1   : > { %v6738_v41 = vpop.f32.mrb[208].mxu1 }
0x14c2   : > { %v12444_v50 = vpop.f32.mrb[209].mxu1  ;;  %v15617_v44 = vmul.f32 0.17677669, %v6738_v41 }
0x14c3   : > { %v6741_v15 = vpop.f32.mrb[210].mxu1  ;;  %v6948_v50 = vpop.permute.xlu1 %6947 }
0x14c4   : > { %v12445_v58 = vpop.f32.mrb[211].mxu1  ;;  %v6773_v2 = vsel %vm1544_vm3, %v15617_v44, -inf }
0x14c7   : > { %v15627_v15 = vpop.permute.xlu1 %6996 }
0x14ce   : > { %7094 = vrot.lane.b32.xlu1 %v15500_v35, %s13664_s22 }
0x14d3   : > { %7045 = vrot.lane.b32.xlu0 %v15471_v22, %s13664_s22 }
0x14f2   : > { %6774 = vmax.xlane.f32.xlu1 %v6773_v2 }
0x1508   : > { %v6754_v6 = vpop.xlane.xlu0 %6753 }
0x1509   : > { %v6776_v23 = vsub.f32 %v15598_v31, %v6754_v6 }
0x150b   : > { %v6784_v33 = vmul.f32 1.442695, %v6776_v23 }
0x150d   : > { %13160 = vpow2.f32 %v6784_v33 }
0x1510   : > { %v6760_v34 = vpop.xlane.xlu0 %6759 }
0x1511   : > { %v6778_v49 = vsub.f32 %v6746_v7, %v6760_v34 }
0x1513   : > { %v6788_v10 = vmul.f32 1.442695, %v6778_v49 }
0x1515   : > { %13162 = vpow2.f32 %v6788_v10 }
0x1517   : > { %v13161_v29 = vpop.eup %13160 }
0x1518   : > { %v6800_v53 = vsel %vm1544_vm3, %v13161_v29, 0.0 }
0x1519   : > { %6801 = vadd.xlane.f32.xlu0 %v6800_v53 }
0x151f   : > { %v15623_v27 = vpop.eup %13162 }
0x1520   : > { %v6806_v41 = vsel %vm1544_vm3, %v15623_v27, 0.0 }
0x1521   : > { %6807 = vadd.xlane.f32.xlu0 %v6806_v41 }
0x153a   : > { %v6757_v31 = vpop.xlane.xlu1 %6756 }
0x153b   : > { %v6777_v58 = vsub.f32 %v6745_v32, %v6757_v31 }
0x153d   : > { %v6786_v2 = vmul.f32 1.442695, %v6777_v58 }
0x153f   : > { %13164 = vpow2.f32 %v6786_v2 }
0x1542   : > { %v6763_v7 = vpop.xlane.xlu0 %6762 }
0x1543   : > { %v6779_v6 = vsub.f32 %v6747_v20, %v6763_v7 }
0x1545   : > { %v6790_v23 = vmul.f32 1.442695, %v6779_v6 }
0x1546   : > { %v6766_v33 = vpop.xlane.xlu0 %6765 }
0x1547   : > { %13166 = vpow2.f32 %v6790_v23  ;;  %v6780_v34 = vsub.f32 %v6748_v1, %v6766_v33 }
0x1549   : > { %v15629_v49 = vpop.eup %13164  ;;  %v6792_v10 = vmul.f32 1.442695, %v6780_v34 }
0x154a   : > { %v6803_v53 = vsel %vm1544_vm3, %v15629_v49, 0.0  ;;  %v6769_v1 = vpop.xlane.xlu1 %6768  ;;  %v6772_v2 = vpop.xlane.xlu0 %6771 }
0x154b   : > { %13168 = vpow2.f32 %v6792_v10  ;;  %6804 = vadd.xlane.f32.xlu1 %v6803_v53  ;;  %v6781_v58 = vsub.f32 %v6749_v43, %v6769_v1  ;;  %v6782_v7 = vsub.f32 %v15607_v63, %v6772_v2 }
0x154d   : > { %v6794_v6 = vmul.f32 1.442695, %v6781_v58  ;;  %v6796_v23 = vmul.f32 1.442695, %v6782_v7 }
0x154e   : > { %v15656_v63 = vpop.permute.xlu1 %7094  ;;  %v7046_v43 = vpop.permute.xlu0 %7045 }
0x154f   : > { %13170 = vpow2.f32 %v6794_v6 }
0x1550   : > { %13172 = vpow2.f32 %v6796_v23  ;;  %v6953_v23 = vsel %vm1644_vm2, %v6948_v50, 0 }
0x1551   : > { %v15633_v41 = vpop.eup %13166 }
0x1552   : > { %v6809_v32 = vsel %vm1544_vm3, %v15633_v41, 0.0 }
0x1553   : > { %6810 = vadd.xlane.f32.xlu1 %v6809_v32 }
0x1555   : > { %v15637_v31 = vpop.eup %13168 }
0x1556   : > { %v6812_v20 = vsel %vm1544_vm3, %v15637_v31, 0.0 }
0x1557   : > { %6813 = vadd.xlane.f32.xlu0 %v6812_v20 }
0x1559   : > { %v15646_v33 = vpop.eup %13170 }
0x155a   : > { %v6815_v34 = vsel %vm1544_vm3, %v15646_v33, 0.0  ;;  %v15650_v10 = vpop.eup %13172 }
0x155b   : > { %v6818_v53 = vsel %vm1544_vm3, %v15650_v10, 0.0 }
0x1564   : > { %7192 = vrot.lane.b32.xlu1 %v15517_v62, %s13664_s22 }
0x156d   : > { %7143 = vrot.lane.b32.xlu0 %v15512_v9, %s13664_s22 }
0x157f   : > { %v6775_v32 = vpop.xlane.xlu1 %6774 }
0x1580   : > { %v6783_v20 = vsub.f32 %v15617_v44, %v6775_v32 }
0x1582   : > { %v6798_v58 = vmul.f32 1.442695, %v6783_v20  ;;  %v7051_v20 = vsel %vm1644_vm2, %v7046_v43, 0 }
0x1588   : > { %6816 = vadd.xlane.f32.xlu1 %v6815_v34 }
0x158c   : > { %6819 = vadd.xlane.f32.xlu0 %v6818_v53 }
0x1599   : > { %7300 = vrot.lane.b32.xlu1 %v15277_v42, %s13665_s11 }
0x15a2   : > { %7250 = vrot.lane.b32.xlu0 %v15272_v3, %s13665_s11 }
0x15a6   : > { %v6802_v1 = vpop.xlane.xlu0 %6801  ;;  %7248 = vrot.lane.b32.xlu0 %v15279_v17, %s13665_s11 }
0x15a7   : > { %13174 = vrcp.f32 %v6802_v1 }
0x15a8   : > { %13176 = vpow2.f32 %v6798_v58 }
0x15aa   : > { %7350 = vrot.lane.b32.xlu0 %v15281_v13, %s13665_s11 }
0x15ae   : > { %v6808_v2 = vpop.xlane.xlu0 %6807  ;;  %7348 = vrot.lane.b32.xlu0 %v15297_v51, %s13665_s11 }
0x15af   : > { %13178 = vrcp.f32 %v6808_v2 }
0x15b1   : > { %v13175_v7 = vpop.eup %13174 }
0x15b2   : > { %7450 = vrot.lane.b32.xlu0 %v15316_v0, %s13665_s11  ;;  %v6825_v44 = vmul.f32 %v13175_v7, %v13161_v29  ;;  %v15675_v34 = vpop.eup %13176 }
0x15b3   : > { %v6821_v32 = vsel %vm1544_vm3, %v15675_v34, 0.0 }
0x15b4   : > { %v6840_v6 = vpack.c.bf16 %v6825_v44, %v6825_v44  ;;  %v7002_v44 = vsel %vm1644_vm2, %v15627_v15, 0  ;;  %v7100_v15 = vsel %vm1644_vm2, %v15656_v63, 0 }
0x15b6   : > { %12449 = vmatmul.mubr.msk.bf16.vlgmr.msra.gmra.mrb[196].mxu0 %vm1544_vm3, %v6840_v6  ;;  %7448 = vrot.lane.b32.xlu0 %v15326_v46, %s13665_s11 }
0x15b7   : > { %12459 = vmatpush3.bf16.msra.mxu0 %v6953_v23  ;;  %12460 = vmatprep.mubr.msk.bf16.mxu0 %vm13663_vm0, %v17112_v48 }
0x15b8   : > { %12470 = vmatprep.subr.bf16.mxu0 %v17112_v48 }
0x15b9   : > { %v13179_v53 = vpop.eup %13178 }
0x15ba   : > { %7550 = vrot.lane.b32.xlu0 %v15328_v37, %s13665_s11  ;;  %v6829_v29 = vmul.f32 %v13179_v53, %v15623_v27 }
0x15bc   : > { %v6842_v50 = vpack.c.bf16 %v6829_v29, %v6829_v29 }
0x15bd   : > { %6822 = vadd.xlane.f32.xlu1 %v6821_v32 }
0x15be   : > { %12461 = vmatmul.mubr.msk.bf16.vlgmr.msra.gmra.mrb[200].mxu0 %vm1544_vm3, %v6842_v50  ;;  %7548 = vrot.lane.b32.xlu0 %v15350_v11, %s13665_s11 }
0x15bf   : > { %12471 = vmatpush3.bf16.msra.mxu0 %v7051_v20  ;;  %12472 = vmatprep.mubr.msk.bf16.mxu0 %vm13663_vm0, %v17112_v48 }
0x15c0   : > { %12482 = vmatprep.subr.bf16.mxu0 %v17112_v48 }
0x15c2   : > { %7752 = vrot.lane.b32.xlu0 %v15352_v16, %s13665_s11 }
0x15ce   : > { %7298 = vrot.lane.b32.xlu1 %v15295_v30, %s13665_s11 }
0x15d2   : > { %7400 = vrot.lane.b32.xlu1 %v15293_v36, %s13665_s11 }
0x15d6   : > { %7398 = vrot.lane.b32.xlu1 %v15310_v57, %s13665_s11 }
0x15d8   : > { %v6805_v27 = vpop.xlane.xlu1 %6804 }
0x15d9   : > { %13180 = vrcp.f32 %v6805_v27 }
0x15da   : > { %7500 = vrot.lane.b32.xlu1 %v15318_v19, %s13665_s11 }
0x15de   : > { %7498 = vrot.lane.b32.xlu1 %v15330_v12, %s13665_s11 }
0x15e0   : > { %v6811_v43 = vpop.xlane.xlu1 %6810 }
0x15e1   : > { %13182 = vrcp.f32 %v6811_v43 }
0x15e2   : > { %7600 = vrot.lane.b32.xlu1 %v15332_v56, %s13665_s11 }
0x15e3   : > { %v13181_v1 = vpop.eup %13180 }
0x15e4   : > { %v6814_v58 = vpop.xlane.xlu0 %6813  ;;  %v6827_v2 = vmul.f32 %v13181_v1, %v15629_v49 }
0x15e5   : > { %13184 = vrcp.f32 %v6814_v58 }
0x15e6   : > { %7598 = vrot.lane.b32.xlu1 %v15356_v54, %s13665_s11  ;;  %v6841_v7 = vpack.c.bf16 %v6827_v2, %v6827_v2 }
0x15e8   : > { %12455 = vmatmul.mubr.msk.bf16.vlgmr.msra.gmra.mrb[212].mxu1 %vm1544_vm3, %v6841_v7  ;;  %v7144_v50 = vpop.permute.xlu0 %7143 }
0x15e9   : > { %12465 = vmatpush3.bf16.msra.mxu1 %v7002_v44  ;;  %12466 = vmatprep.mubr.msk.bf16.mxu1 %vm13663_vm0, %v17112_v48  ;;  %v7149_v32 = vsel %vm1644_vm2, %v7144_v50, 0 }
0x15ea   : > { %7800 = vrot.lane.b32.xlu1 %v15358_v8, %s13665_s11  ;;  %12476 = vmatprep.subr.bf16.mxu1 %v17112_v48 }
0x15eb   : > { %v13183_v49 = vpop.eup %13182 }
0x15ec   : > { %v6831_v6 = vmul.f32 %v13183_v49, %v15633_v41 }
0x15ee   : > { %7848 = vrot.lane.b32.xlu1 %v15456_v52, %s13665_s11  ;;  %v6843_v23 = vpack.c.bf16 %v6831_v6, %v6831_v6 }
0x15ef   : > { %v13185_v53 = vpop.eup %13184 }
0x15f0   : > { %12467 = vmatmul.mubr.msk.bf16.vlgmr.msra.gmra.mrb[216].mxu1 %vm1544_vm3, %v6843_v23  ;;  %v6833_v29 = vmul.f32 %v13185_v53, %v15637_v31  ;;  %v7193_v31 = vpop.permute.xlu1 %7192 }
0x15f1   : > { %12477 = vmatpush3.bf16.msra.mxu1 %v7100_v15  ;;  %12478 = vmatprep.mubr.msk.bf16.mxu1 %vm13663_vm0, %v17112_v48  ;;  %v7198_v44 = vsel %vm1644_vm2, %v7193_v31, 0 }
0x15f2   : > { %7896 = vrot.lane.b32.xlu1 %v15478_v25, %s13665_s11  ;;  %v6844_v41 = vpack.c.bf16 %v6833_v29, %v6833_v29  ;;  %12488 = vmatprep.subr.bf16.mxu1 %v17112_v48 }
0x15f4   : > { %12473 = vmatmul.mubr.msk.bf16.vlgmr.msra.gmra.mrb[204].mxu0 %vm1544_vm3, %v6844_v41 }
0x15f5   : > { %12483 = vmatpush3.bf16.msra.mxu0 %v7149_v32  ;;  %12484 = vmatprep.mubr.msk.bf16.mxu0 %vm13663_vm0, %v17112_v48 }
0x15f6   : > { %12494 = vmatprep.subr.bf16.mxu0 %v17112_v48 }
0x1615   : > { %v6817_v63 = vpop.xlane.xlu1 %6816 }
0x1616   : > { %13186 = vrcp.f32 %v6817_v63 }
0x1619   : > { %v6820_v20 = vpop.xlane.xlu0 %6819  ;;  %v7301_v63 = vpop.permute.xlu1 %7300 }
0x161a   : > { %13188 = vrcp.f32 %v6820_v20 }
0x161d   : > { %v7251_v27 = vpop.permute.xlu0 %7250 }
0x161e   : > { %v7256_v53 = vsel %vm1167_vm1, %v7251_v27, 0 }
0x1620   : > { %v13187_v43 = vpop.eup %13186 }
0x1621   : > { %v7249_v1 = vpop.permute.xlu0 %7248  ;;  %v6835_v58 = vmul.f32 %v13187_v43, %v15646_v33 }
0x1623   : > { %v6845_v2 = vpack.c.bf16 %v6835_v58, %v6835_v58 }
0x1624   : > { %v13189_v7 = vpop.eup %13188 }
0x1625   : > { %v7351_v49 = vpop.permute.xlu0 %7350  ;;  %12479 = vmatmul.mubr.msk.bf16.vlgmr.msra.gmra.mrb[220].mxu1 %vm1544_vm3, %v6845_v2  ;;  %v6837_v6 = vmul.f32 %v13189_v7, %v15650_v10 }
0x1626   : > { %12489 = vmatpush3.bf16.msra.mxu1 %v7198_v44  ;;  %12490 = vmatprep.mubr.msk.bf16.mxu1 %vm13663_vm0, %v17112_v48  ;;  %v7356_v10 = vsel %vm1167_vm1, %v7351_v49, 0 }
0x1627   : > { %v6846_v23 = vpack.c.bf16 %v6837_v6, %v6837_v6  ;;  %12500 = vmatprep.subr.bf16.mxu1 %v17112_v48  ;;  %v7306_v6 = vsel %vm1167_vm1, %v7301_v63, 0 }
0x1629   : > { %12485 = vmatmul.mubr.msk.bf16.vlgmr.msra.gmra.mrb[208].mxu0 %vm1544_vm3, %v6846_v23  ;;  %v7349_v33 = vpop.permute.xlu0 %7348 }
0x162a   : > { %12495 = vmatpush3.bf16.xpose.msra.mxu0 %v7256_v53  ;;  %12496 = vmatprep.mubr.msk.bf16.mxu0 %vm13663_vm0, %v17112_v48 }
0x162b   : > { %12506 = vmatprep.subr.bf16.mxu0 %v17112_v48 }
0x162d   : > { %v7451_v15 = vpop.permute.xlu0 %7450 }
0x162e   : > { %v7456_v50 = vsel %vm1167_vm1, %v7451_v15, 0 }
0x1631   : > { %12497 = vmatmul.mubr.msk.bf16.vlgmr.msra.gmra.mrb[212].mxu0 %vm1167_vm1, %v7249_v1  ;;  %v7449_v29 = vpop.permute.xlu0 %7448 }
0x1632   : > { %12507 = vmatpush3.bf16.xpose.msra.mxu0 %v7356_v10  ;;  %12508 = vmatprep.mubr.msk.bf16.mxu0 %vm13663_vm0, %v17112_v48 }
0x1633   : > { %12518 = vmatprep.subr.bf16.mxu0 %v17112_v48 }
0x1635   : > { %v7551_v41 = vpop.permute.xlu0 %7550 }
0x1636   : > { %v7556_v31 = vsel %vm1167_vm1, %v7551_v41, 0 }
0x1639   : > { %12509 = vmatmul.mubr.msk.bf16.vlgmr.msra.gmra.mrb[216].mxu0 %vm1167_vm1, %v7349_v33  ;;  %v7549_v32 = vpop.permute.xlu0 %7548 }
0x163a   : > { %12519 = vmatpush3.bf16.xpose.msra.mxu0 %v7456_v50  ;;  %12520 = vmatprep.mubr.msk.bf16.mxu0 %vm13663_vm0, %v17112_v48 }
0x163b   : > { %12530 = vmatprep.subr.bf16.mxu0 %v17112_v48 }
0x163d   : > { %v7753_v20 = vpop.permute.xlu0 %7752 }
0x163e   : > { %v7758_v27 = vsel %vm1644_vm2, %v7753_v20, 0 }
0x1641   : > { %12521 = vmatmul.mubr.msk.bf16.vlgmr.msra.gmra.mrb[220].mxu0 %vm1167_vm1, %v7449_v29 }
0x1642   : > { %12531 = vmatpush3.bf16.xpose.msra.mxu0 %v7556_v31  ;;  %12532 = vmatprep.mubr.msk.bf16.mxu0 %vm13663_vm0, %v17112_v48 }
0x1643   : > { %12542 = vmatprep.subr.bf16.mxu0 %v17112_v48 }
0x1649   : > { %12533 = vmatmul.mubr.msk.bf16.vlgmr.msra.gmra.mrb[224].mxu0 %vm1167_vm1, %v7549_v32 }
0x164a   : > { %12543 = vmatpush3.bf16.msra.mxu0 %v7758_v27  ;;  %v6823_v43 = vpop.xlane.xlu1 %6822  ;;  %12544 = vmatprep.mubr.msk.bf16.mxu0 %vm13663_vm0, %v17112_v48 }
0x164b   : > { %13190 = vrcp.f32 %v6823_v43  ;;  %12554 = vmatprep.subr.bf16.mxu0 %v17112_v48 }
0x164e   : > { %v7299_v1 = vpop.permute.xlu1 %7298 }
0x1652   : > { %v7401_v58 = vpop.permute.xlu1 %7400 }
0x1653   : > { %v7406_v53 = vsel %vm1167_vm1, %v7401_v58, 0 }
0x1655   : > { %v13191_v2 = vpop.eup %13190 }
0x1656   : > { %v6839_v7 = vmul.f32 %v13191_v2, %v15675_v34  ;;  %v7399_v49 = vpop.permute.xlu1 %7398 }
0x1658   : > { %v6847_v44 = vpack.c.bf16 %v6839_v7, %v6839_v7 }
0x165a   : > { %12491 = vmatmul.mubr.msk.bf16.vlgmr.msra.gmra.mrb[224].mxu1 %vm1544_vm3, %v6847_v44  ;;  %v7501_v23 = vpop.permute.xlu1 %7500 }
0x165b   : > { %12501 = vmatpush3.bf16.xpose.msra.mxu1 %v7306_v6  ;;  %12502 = vmatprep.mubr.msk.bf16.mxu1 %vm13663_vm0, %v17112_v48  ;;  %v7506_v33 = vsel %vm1167_vm1, %v7501_v23, 0 }
0x165c   : > { %12512 = vmatprep.subr.bf16.mxu1 %v17112_v48 }
0x165e   : > { %v7499_v34 = vpop.permute.xlu1 %7498 }
0x1662   : > { %12503 = vmatmul.mubr.msk.bf16.vlgmr.msra.gmra.mrb[228].mxu1 %vm1167_vm1, %v7299_v1  ;;  %v7601_v15 = vpop.permute.xlu1 %7600 }
0x1663   : > { %12513 = vmatpush3.bf16.xpose.msra.mxu1 %v7406_v53  ;;  %12514 = vmatprep.mubr.msk.bf16.mxu1 %vm13663_vm0, %v17112_v48  ;;  %v7606_v29 = vsel %vm1167_vm1, %v7601_v15, 0 }
0x1664   : > { %12524 = vmatprep.subr.bf16.mxu1 %v17112_v48 }
0x1666   : > { %v7599_v10 = vpop.permute.xlu1 %7598 }
0x166a   : > { %12515 = vmatmul.mubr.msk.bf16.vlgmr.msra.gmra.mrb[232].mxu1 %vm1167_vm1, %v7399_v49  ;;  %v7801_v50 = vpop.permute.xlu1 %7800 }
0x166b   : > { %12525 = vmatpush3.bf16.xpose.msra.mxu1 %v7506_v33  ;;  %12526 = vmatprep.mubr.msk.bf16.mxu1 %vm13663_vm0, %v17112_v48  ;;  %v7806_v41 = vsel %vm1644_vm2, %v7801_v50, 0 }
0x166c   : > { %12536 = vmatprep.subr.bf16.mxu1 %v17112_v48 }
0x1672   : > { %12527 = vmatmul.mubr.msk.bf16.vlgmr.msra.gmra.mrb[236].mxu1 %vm1167_vm1, %v7499_v34 }
0x1673   : > { %12537 = vmatpush3.bf16.xpose.msra.mxu1 %v7606_v29  ;;  %12538 = vmatprep.mubr.msk.bf16.mxu1 %vm13663_vm0, %v17112_v48 }
0x1674   : > { %12548 = vmatprep.subr.bf16.mxu1 %v17112_v48 }
0x167a   : > { %12539 = vmatmul.mubr.msk.bf16.vlgmr.msra.gmra.mrb[240].mxu1 %vm1167_vm1, %v7599_v10 }
0x167b   : > { %12549 = vmatpush3.bf16.msra.mxu1 %v7806_v41  ;;  %12550 = vmatprep.mubr.msk.bf16.mxu1 %vm13663_vm0, %v17112_v48 }
0x167c   : > { %12560 = vmatprep.subr.bf16.mxu1 %v17112_v48 }
0x1689   : > { %v15790_v32 = vpop.f32.mrb[196].mxu0 }
0x168a   : > { %v12450_v31 = vpop.f32.mrb[197].mxu0 }
0x168b   : > { %v6894_v63 = vpop.f32.mrb[198].mxu0 }
0x168c   : > { %v12451_v20 = vpop.f32.mrb[199].mxu0 }
0x1691   : > { %v15792_v27 = vpop.f32.mrb[200].mxu0 }
0x1692   : > { %v12462_v43 = vpop.f32.mrb[201].mxu0 }
0x1693   : > { %v6992_v1 = vpop.f32.mrb[202].mxu0 }
0x1694   : > { %v12463_v58 = vpop.f32.mrb[203].mxu0 }
0x16bb   : > { %v15794_v2 = vpop.f32.mrb[212].mxu1 }
0x16bc   : > { %v12456_v7 = vpop.f32.mrb[213].mxu1 }
0x16bd   : > { %v6943_v44 = vpop.f32.mrb[214].mxu1 }
0x16be   : > { %v12457_v49 = vpop.f32.mrb[215].mxu1 }
0x16c3   : > { %v15796_v6 = vpop.f32.mrb[216].mxu1 }
0x16c4   : > { %v12468_v23 = vpop.f32.mrb[217].mxu1 }
0x16c5   : > { %v7041_v53 = vpop.f32.mrb[218].mxu1 }
0x16c6   : > { %v12469_v34 = vpop.f32.mrb[219].mxu1 }
0x16c7   : > { %v15798_v33 = vpop.f32.mrb[204].mxu0 }
0x16c8   : > { %v12474_v15 = vpop.f32.mrb[205].mxu0 }
0x16c9   : > { %v7090_v10 = vpop.f32.mrb[206].mxu0 }
0x16ca   : > { %v12475_v29 = vpop.f32.mrb[207].mxu0 }
0x16f8   : > { %v15800_v50 = vpop.f32.mrb[220].mxu1 }
0x16f9   : > { %v12480_v41 = vpop.f32.mrb[221].mxu1 }
0x16fa   : > { %v7139_v31 = vpop.f32.mrb[222].mxu1 }
0x16fb   : > { %v12481_v63 = vpop.f32.mrb[223].mxu1 }
0x16fc   : > { %v15802_v20 = vpop.f32.mrb[208].mxu0 }
0x16fd   : > { %v12486_v43 = vpop.f32.mrb[209].mxu0 }
0x16fe   : > { %v7188_v1 = vpop.f32.mrb[210].mxu0 }
0x16ff   : > { %v12487_v58 = vpop.f32.mrb[211].mxu0 }
0x1704   : > { %v7292_v7 = vpop.f32.mrb[212].mxu0 }
0x1705   : > { %v15804_v44 = vmul.f32 0.17677669, %v7292_v7  ;;  %v12498_v49 = vpop.f32.mrb[213].mxu0 }
0x1706   : > { %v7295_v23 = vpop.f32.mrb[214].mxu0 }
0x1707   : > { %v12499_v53 = vpop.f32.mrb[215].mxu0  ;;  %v7656_v34 = vsel %vm1544_vm3, %v15804_v44, -inf }
0x1708   : > { %7657 = vmax.xlane.f32.xlu0 %v7656_v34 }
0x170c   : > { %v7392_v15 = vpop.f32.mrb[216].mxu0 }
0x170d   : > { %v7650_v10 = vmul.f32 0.17677669, %v7392_v15  ;;  %v12510_v29 = vpop.f32.mrb[217].mxu0 }
0x170e   : > { %v7395_v41 = vpop.f32.mrb[218].mxu0 }
0x170f   : > { %v12511_v31 = vpop.f32.mrb[219].mxu0  ;;  %v7662_v63 = vsel %vm1544_vm3, %v7650_v10, -inf }
0x1710   : > { %7663 = vmax.xlane.f32.xlu0 %v7662_v63 }
0x1714   : > { %v7492_v43 = vpop.f32.mrb[220].mxu0 }
0x1715   : > { %v12522_v1 = vpop.f32.mrb[221].mxu0 }
0x1716   : > { %v7495_v58 = vpop.f32.mrb[222].mxu0 }
0x1717   : > { %v12523_v7 = vpop.f32.mrb[223].mxu0 }
0x171c   : > { %v7592_v28 = vpop.f32.mrb[224].mxu0 }
0x171d   : > { %v12534_v49 = vpop.f32.mrb[225].mxu0 }
0x171e   : > { %v7595_v23 = vpop.f32.mrb[226].mxu0  ;;  %v7652_v49 = vmul.f32 0.17677669, %v7492_v43 }
0x171f   : > { %v12535_v53 = vpop.f32.mrb[227].mxu0 }
0x172d   : > { %v15809_v39 = vpop.f32.mrb[224].mxu1 }
0x172e   : > { %v12492_v47 = vpop.f32.mrb[225].mxu1 }
0x172f   : > { %v7237_v34 = vpop.f32.mrb[226].mxu1  ;;  %v15813_v47 = vmul.f32 0.17677669, %v7592_v28 }
0x1730   : > { %v12493_v21 = vpop.f32.mrb[227].mxu1 }
0x1731   : > { %v7668_v21 = vsel %vm1544_vm3, %v7652_v49, -inf }
0x1735   : > { %v7342_v15 = vpop.f32.mrb[228].mxu1 }
0x1736   : > { %v7649_v29 = vmul.f32 0.17677669, %v7342_v15  ;;  %v12504_v41 = vpop.f32.mrb[229].mxu1 }
0x1737   : > { %v7345_v31 = vpop.f32.mrb[230].mxu1 }
0x1738   : > { %v12505_v4 = vpop.f32.mrb[231].mxu1  ;;  %v7659_v63 = vsel %vm1544_vm3, %v7649_v29, -inf }
0x1739   : > { %7660 = vmax.xlane.f32.xlu1 %v7659_v63  ;;  %v7674_v63 = vsel %vm1544_vm3, %v15813_v47, -inf }
0x173d   : > { %v7442_v1 = vpop.f32.mrb[232].mxu1 }
0x173e   : > { %v7651_v58 = vmul.f32 0.17677669, %v7442_v1  ;;  %v12516_v7 = vpop.f32.mrb[233].mxu1 }
0x173f   : > { %v7445_v60 = vpop.f32.mrb[234].mxu1 }
0x1740   : > { %v12517_v23 = vpop.f32.mrb[235].mxu1  ;;  %v7665_v53 = vsel %vm1544_vm3, %v7651_v58, -inf }
0x1741   : > { %7666 = vmax.xlane.f32.xlu0 %v7665_v53 }
0x1745   : > { %7669 = vmax.xlane.f32.xlu0 %v7668_v21  ;;  %v7542_v34 = vpop.f32.mrb[236].mxu1 }
0x1746   : > { %v7653_v15 = vmul.f32 0.17677669, %v7542_v34  ;;  %v12528_v4 = vpop.f32.mrb[237].mxu1 }
0x1747   : > { %v7545_v41 = vpop.f32.mrb[238].mxu1 }
0x1748   : > { %v12529_v31 = vpop.f32.mrb[239].mxu1  ;;  %v7671_v60 = vsel %vm1544_vm3, %v7653_v15, -inf }
0x1749   : > { %7675 = vmax.xlane.f32.xlu0 %v7674_v63  ;;  %7672 = vmax.xlane.f32.xlu1 %v7671_v60 }
0x174d   : > { %v7642_v43 = vpop.f32.mrb[240].mxu1 }
0x174e   : > { %v12540_v1 = vpop.f32.mrb[241].mxu1  ;;  %v15823_v23 = vmul.f32 0.17677669, %v7642_v43 }
0x174f   : > { %v7645_v7 = vpop.f32.mrb[242].mxu1 }
0x1750   : > { %v12541_v28 = vpop.f32.mrb[243].mxu1  ;;  %v7677_v53 = vsel %vm1544_vm3, %v15823_v23, -inf }
0x1751   : > { %v7849_v28 = vpop.permute.xlu1 %7848 }
0x175a   : > { %7992 = vrot.lane.b32.xlu1 %v15500_v35, %s13665_s11 }
0x175f   : > { %7944 = vrot.lane.b32.xlu0 %v15471_v22, %s13665_s11 }
0x177e   : > { %7678 = vmax.xlane.f32.xlu1 %v7677_v53  ;;  %v15833_v53 = vpop.permute.xlu1 %7896 }
0x1795   : > { %v7658_v21 = vpop.xlane.xlu0 %7657 }
0x1796   : > { %v7680_v34 = vsub.f32 %v15804_v44, %v7658_v21 }
0x1798   : > { %v7688_v4 = vmul.f32 1.442695, %v7680_v34 }
0x179a   : > { %13192 = vpow2.f32 %v7688_v4 }
0x179d   : > { %v7664_v41 = vpop.xlane.xlu0 %7663 }
0x179e   : > { %v7682_v31 = vsub.f32 %v7650_v10, %v7664_v41 }
0x17a0   : > { %v7692_v63 = vmul.f32 1.442695, %v7682_v31 }
0x17a2   : > { %13194 = vpow2.f32 %v7692_v63 }
0x17a4   : > { %v13193_v60 = vpop.eup %13192 }
0x17a5   : > { %v7704_v1 = vsel %vm1544_vm3, %v13193_v60, 0.0 }
0x17a6   : > { %7705 = vadd.xlane.f32.xlu0 %v7704_v1 }
0x17ac   : > { %v15829_v7 = vpop.eup %13194 }
0x17ad   : > { %v7710_v43 = vsel %vm1544_vm3, %v15829_v7, 0.0 }
0x17ae   : > { %7711 = vadd.xlane.f32.xlu0 %v7710_v43 }
0x17c6   : > { %v7661_v44 = vpop.xlane.xlu1 %7660 }
0x17c7   : > { %v7681_v21 = vsub.f32 %v7649_v29, %v7661_v44 }
0x17c9   : > { %v7690_v34 = vmul.f32 1.442695, %v7681_v21 }
0x17cb   : > { %13196 = vpow2.f32 %v7690_v34 }
0x17ce   : > { %v7667_v10 = vpop.xlane.xlu0 %7666 }
0x17cf   : > { %v7683_v4 = vsub.f32 %v7651_v58, %v7667_v10 }
0x17d1   : > { %v7694_v41 = vmul.f32 1.442695, %v7683_v4 }
0x17d2   : > { %v7670_v31 = vpop.xlane.xlu0 %7669 }
0x17d3   : > { %13198 = vpow2.f32 %v7694_v41  ;;  %v7684_v63 = vsub.f32 %v7652_v49, %v7670_v31 }
0x17d5   : > { %v15835_v1 = vpop.eup %13196  ;;  %v7696_v26 = vmul.f32 1.442695, %v7684_v63 }
0x17d6   : > { %v7707_v45 = vsel %vm1544_vm3, %v15835_v1, 0.0  ;;  %v7676_v49 = vpop.xlane.xlu0 %7675 }
0x17d7   : > { %13200 = vpow2.f32 %v7696_v26  ;;  %7708 = vadd.xlane.f32.xlu1 %v7707_v45  ;;  %v7673_v26 = vpop.xlane.xlu1 %7672  ;;  %v7686_v21 = vsub.f32 %v15813_v47, %v7676_v49 }
0x17d8   : > { %v7685_v45 = vsub.f32 %v7653_v15, %v7673_v26 }
0x17d9   : > { %v7700_v10 = vmul.f32 1.442695, %v7686_v21 }
0x17da   : > { %v7698_v34 = vmul.f32 1.442695, %v7685_v45  ;;  %v7945_v15 = vpop.permute.xlu0 %7944 }
0x17db   : > { %v7993_v47 = vpop.permute.xlu1 %7992 }
0x17dc   : > { %13202 = vpow2.f32 %v7698_v34  ;;  %v7998_v34 = vsel %vm1644_vm2, %v7993_v47, 0 }
0x17dd   : > { %v15839_v43 = vpop.eup %13198  ;;  %13204 = vpow2.f32 %v7700_v10 }
0x17de   : > { %v7713_v29 = vsel %vm1544_vm3, %v15839_v43, 0.0 }
0x17df   : > { %7714 = vadd.xlane.f32.xlu1 %v7713_v29 }
0x17e1   : > { %v15843_v44 = vpop.eup %13200 }
0x17e2   : > { %v7716_v58 = vsel %vm1544_vm3, %v15843_v44, 0.0 }
0x17e3   : > { %7717 = vadd.xlane.f32.xlu0 %v7716_v58 }
0x17e6   : > { %v15852_v4 = vpop.eup %13202 }
0x17e7   : > { %v7719_v41 = vsel %vm1544_vm3, %v15852_v4, 0.0  ;;  %v15856_v31 = vpop.eup %13204 }
0x17e8   : > { %v7722_v63 = vsel %vm1544_vm3, %v15856_v31, 0.0 }
0x17f0   : > { %8088 = vrot.lane.b32.xlu1 %v15517_v62, %s13665_s11 }
0x17f9   : > { %8040 = vrot.lane.b32.xlu0 %v15512_v9, %s13665_s11 }
0x180b   : > { %v7679_v29 = vpop.xlane.xlu1 %7678 }
0x180c   : > { %v7687_v58 = vsub.f32 %v15823_v23, %v7679_v29  ;;  %v7854_v23 = vsel %vm1644_vm2, %v7849_v28, 0  ;;  %v7950_v28 = vsel %vm1644_vm2, %v7945_v15, 0 }
0x180e   : > { %v7702_v45 = vmul.f32 1.442695, %v7687_v58 }
0x1814   : > { %7720 = vadd.xlane.f32.xlu1 %v7719_v41 }
0x1818   : > { %7723 = vadd.xlane.f32.xlu0 %v7722_v63 }
0x1825   : > { %8196 = vrot.lane.b32.xlu1 %v15277_v42, %s13666_s24 }
0x182e   : > { %8146 = vrot.lane.b32.xlu0 %v15272_v3, %s13666_s24 }
0x1832   : > { %8144 = vrot.lane.b32.xlu0 %v15279_v17, %s13666_s24 }
0x1833   : > { %v7706_v26 = vpop.xlane.xlu0 %7705 }
0x1834   : > { %13206 = vrcp.f32 %v7706_v26 }
0x1835   : > { %13208 = vpow2.f32 %v7702_v45 }
0x1836   : > { %8246 = vrot.lane.b32.xlu0 %v15281_v13, %s13666_s24 }
0x183a   : > { %8244 = vrot.lane.b32.xlu0 %v15297_v51, %s13666_s24 }
0x183b   : > { %v7712_v42 = vpop.xlane.xlu0 %7711 }
0x183c   : > { %13210 = vrcp.f32 %v7712_v42 }
0x183e   : > { %v13207_v3 = vpop.eup %13206  ;;  %8346 = vrot.lane.b32.xlu0 %v15316_v0, %s13666_s24 }
0x183f   : > { %v7729_v49 = vmul.f32 %v13207_v3, %v13193_v60  ;;  %v15879_v13 = vpop.eup %13208 }
0x1841   : > { %v7744_v17 = vpack.c.bf16 %v7729_v49, %v7729_v49 }
0x1842   : > { %8344 = vrot.lane.b32.xlu0 %v15326_v46, %s13666_s24  ;;  %v7725_v46 = vsel %vm1544_vm3, %v15879_v13, 0.0 }
0x1843   : > { %12545 = vmatmul.mubr.msk.bf16.vlgmr.msra.gmra.mrb[228].mxu0 %vm1544_vm3, %v7744_v17 }
0x1844   : > { %12555 = vmatpush3.bf16.msra.mxu0 %v7854_v23  ;;  %12556 = vmatprep.mubr.msk.bf16.mxu0 %vm13663_vm0, %v17112_v48 }
0x1845   : > { %12566 = vmatprep.subr.bf16.mxu0 %v17112_v48 }
0x1846   : > { %v13211_v51 = vpop.eup %13210  ;;  %8446 = vrot.lane.b32.xlu0 %v15328_v37, %s13666_s24 }
0x1847   : > { %v7733_v0 = vmul.f32 %v13211_v51, %v15829_v7 }
0x1849   : > { %7726 = vadd.xlane.f32.xlu1 %v7725_v46  ;;  %v7746_v60 = vpack.c.bf16 %v7733_v0, %v7733_v0 }
0x184a   : > { %8444 = vrot.lane.b32.xlu0 %v15350_v11, %s13666_s24 }
0x184b   : > { %12557 = vmatmul.mubr.msk.bf16.vlgmr.msra.gmra.mrb[232].mxu0 %vm1544_vm3, %v7746_v60 }
0x184c   : > { %12567 = vmatpush3.bf16.msra.mxu0 %v7950_v28  ;;  %12568 = vmatprep.mubr.msk.bf16.mxu0 %vm13663_vm0, %v17112_v48 }
0x184d   : > { %12578 = vmatprep.subr.bf16.mxu0 %v17112_v48 }
0x185a   : > { %8194 = vrot.lane.b32.xlu1 %v15295_v30, %s13666_s24 }
0x185e   : > { %8296 = vrot.lane.b32.xlu1 %v15293_v36, %s13666_s24 }
0x1862   : > { %8294 = vrot.lane.b32.xlu1 %v15310_v57, %s13666_s24 }
0x1864   : > { %v7709_v37 = vpop.xlane.xlu1 %7708 }
0x1865   : > { %13212 = vrcp.f32 %v7709_v37 }
0x1866   : > { %8396 = vrot.lane.b32.xlu1 %v15318_v19, %s13666_s24  ;;  %v7902_v19 = vsel %vm1644_vm2, %v15833_v53, 0 }
0x186a   : > { %8394 = vrot.lane.b32.xlu1 %v15330_v12, %s13666_s24 }
0x186c   : > { %v7715_v11 = vpop.xlane.xlu1 %7714 }
0x186d   : > { %13214 = vrcp.f32 %v7715_v11 }
0x186e   : > { %8496 = vrot.lane.b32.xlu1 %v15332_v56, %s13666_s24 }
0x186f   : > { %v13213_v30 = vpop.eup %13212 }
0x1870   : > { %v7731_v7 = vmul.f32 %v13213_v30, %v15835_v1  ;;  %v7718_v36 = vpop.xlane.xlu0 %7717 }
0x1871   : > { %13216 = vrcp.f32 %v7718_v36 }
0x1872   : > { %8494 = vrot.lane.b32.xlu1 %v15356_v54, %s13666_s24  ;;  %v7745_v57 = vpack.c.bf16 %v7731_v7, %v7731_v7 }
0x1874   : > { %12551 = vmatmul.mubr.msk.bf16.vlgmr.msra.gmra.mrb[244].mxu1 %vm1544_vm3, %v7745_v57  ;;  %v8041_v53 = vpop.permute.xlu0 %8040 }
0x1875   : > { %12561 = vmatpush3.bf16.msra.mxu1 %v7902_v19  ;;  %12562 = vmatprep.mubr.msk.bf16.mxu1 %vm13663_vm0, %v17112_v48  ;;  %v8046_v41 = vsel %vm1644_vm2, %v8041_v53, 0 }
0x1876   : > { %12572 = vmatprep.subr.bf16.mxu1 %v17112_v48 }
0x1877   : > { %v13215_v12 = vpop.eup %13214 }
0x1878   : > { %v7735_v56 = vmul.f32 %v13215_v12, %v15839_v43  ;;  %v8089_v43 = vpop.permute.xlu1 %8088 }
0x1879   : > { %v8094_v42 = vsel %vm1644_vm2, %v8089_v43, 0 }
0x187a   : > { %v7747_v1 = vpack.c.bf16 %v7735_v56, %v7735_v56 }
0x187b   : > { %v13217_v21 = vpop.eup %13216 }
0x187c   : > { %v7737_v54 = vmul.f32 %v13217_v21, %v15843_v44  ;;  %12563 = vmatmul.mubr.msk.bf16.vlgmr.msra.gmra.mrb[248].mxu1 %vm1544_vm3, %v7747_v1 }
0x187d   : > { %12573 = vmatpush3.bf16.msra.mxu1 %v7998_v34  ;;  %12574 = vmatprep.mubr.msk.bf16.mxu1 %vm13663_vm0, %v17112_v48 }
0x187e   : > { %v7748_v10 = vpack.c.bf16 %v7737_v54, %v7737_v54  ;;  %12584 = vmatprep.subr.bf16.mxu1 %v17112_v48 }
0x1880   : > { %12569 = vmatmul.mubr.msk.bf16.vlgmr.msra.gmra.mrb[236].mxu0 %vm1544_vm3, %v7748_v10 }
0x1881   : > { %12579 = vmatpush3.bf16.msra.mxu0 %v8046_v41  ;;  %12580 = vmatprep.mubr.msk.bf16.mxu0 %vm13663_vm0, %v17112_v48 }
0x1882   : > { %12590 = vmatprep.subr.bf16.mxu0 %v17112_v48 }
0x18a1   : > { %v7721_v44 = vpop.xlane.xlu1 %7720 }
0x18a2   : > { %13218 = vrcp.f32 %v7721_v44 }
0x18a5   : > { %v7724_v63 = vpop.xlane.xlu0 %7723  ;;  %v8197_v37 = vpop.permute.xlu1 %8196 }
0x18a6   : > { %13220 = vrcp.f32 %v7724_v63  ;;  %v8202_v56 = vsel %vm1167_vm1, %v8197_v37, 0 }
0x18a9   : > { %v8147_v47 = vpop.permute.xlu0 %8146 }
0x18aa   : > { %v8152_v23 = vsel %vm1167_vm1, %v8147_v47, 0 }
0x18ac   : > { %v13219_v15 = vpop.eup %13218 }
0x18ad   : > { %v7739_v29 = vmul.f32 %v13219_v15, %v15852_v4  ;;  %v8145_v58 = vpop.permute.xlu0 %8144 }
0x18af   : > { %v7749_v26 = vpack.c.bf16 %v7739_v29, %v7739_v29 }
0x18b0   : > { %v13221_v45 = vpop.eup %13220 }
0x18b1   : > { %v7741_v3 = vmul.f32 %v13221_v45, %v15856_v31  ;;  %12575 = vmatmul.mubr.msk.bf16.vlgmr.msra.gmra.mrb[252].mxu1 %vm1544_vm3, %v7749_v26  ;;  %v8247_v49 = vpop.permute.xlu0 %8246 }
0x18b2   : > { %12585 = vmatpush3.bf16.msra.mxu1 %v8094_v42  ;;  %12586 = vmatprep.mubr.msk.bf16.mxu1 %vm13663_vm0, %v17112_v48  ;;  %v8252_v31 = vsel %vm1167_vm1, %v8247_v49, 0 }
0x18b3   : > { %v7750_v17 = vpack.c.bf16 %v7741_v3, %v7741_v3  ;;  %12596 = vmatprep.subr.bf16.mxu1 %v17112_v48 }
0x18b5   : > { %12581 = vmatmul.mubr.msk.bf16.vlgmr.msra.gmra.mrb[240].mxu0 %vm1544_vm3, %v7750_v17  ;;  %v8245_v4 = vpop.permute.xlu0 %8244 }
0x18b6   : > { %12591 = vmatpush3.bf16.xpose.msra.mxu0 %v8152_v23  ;;  %12592 = vmatprep.mubr.msk.bf16.mxu0 %vm13663_vm0, %v17112_v48 }
0x18b7   : > { %12602 = vmatprep.subr.bf16.mxu0 %v17112_v48 }
0x18b9   : > { %v8347_v51 = vpop.permute.xlu0 %8346 }
0x18ba   : > { %v8352_v46 = vsel %vm1167_vm1, %v8347_v51, 0 }
0x18bd   : > { %12593 = vmatmul.mubr.msk.bf16.vlgmr.msra.gmra.mrb[244].mxu0 %vm1167_vm1, %v8145_v58  ;;  %v8345_v0 = vpop.permute.xlu0 %8344 }
0x18be   : > { %12603 = vmatpush3.bf16.xpose.msra.mxu0 %v8252_v31  ;;  %12604 = vmatprep.mubr.msk.bf16.mxu0 %vm13663_vm0, %v17112_v48 }
0x18bf   : > { %12614 = vmatprep.subr.bf16.mxu0 %v17112_v48 }
0x18c1   : > { %v8447_v60 = vpop.permute.xlu0 %8446 }
0x18c2   : > { %v8452_v28 = vsel %vm1167_vm1, %v8447_v60, 0 }
0x18c5   : > { %12605 = vmatmul.mubr.msk.bf16.vlgmr.msra.gmra.mrb[248].mxu0 %vm1167_vm1, %v8245_v4  ;;  %v8445_v11 = vpop.permute.xlu0 %8444 }
0x18c6   : > { %12615 = vmatpush3.bf16.xpose.msra.mxu0 %v8352_v46  ;;  %12616 = vmatprep.mubr.msk.bf16.mxu0 %vm13663_vm0, %v17112_v48 }
0x18c7   : > { %12626 = vmatprep.subr.bf16.mxu0 %v17112_v48 }
0x18cd   : > { %12617 = vmatmul.mubr.msk.bf16.vlgmr.msra.gmra.mrb[252].mxu0 %vm1167_vm1, %v8345_v0 }
0x18ce   : > { %12627 = vmatpush3.bf16.xpose.msra.mxu0 %v8452_v28  ;;  %12628 = vmatprep.mubr.msk.bf16.mxu0 %vm13663_vm0, %v17112_v48 }
0x18cf   : > { %12638 = vmatprep.subr.bf16.mxu0 %v17112_v48 }
0x18d5   : > { %12629 = vmatmul.mubr.msk.bf16.vlgmr.msra.gmra.mrb[0].mxu0 %vm1167_vm1, %v8445_v11 }
0x18d6   : > { %v7727_v30 = vpop.xlane.xlu1 %7726  ;;  %12640 = vmatprep.mubr.msk.bf16.mxu0 %vm13663_vm0, %v17112_v48 }
0x18d7   : > { %13222 = vrcp.f32 %v7727_v30 }
0x18da   : > { %v8195_v7 = vpop.permute.xlu1 %8194 }
0x18de   : > { %v8297_v19 = vpop.permute.xlu1 %8296 }
0x18df   : > { %v8302_v21 = vsel %vm1167_vm1, %v8297_v19, 0 }
0x18e1   : > { %v13223_v36 = vpop.eup %13222 }
0x18e2   : > { %v7743_v57 = vmul.f32 %v13223_v36, %v15879_v13  ;;  %v8295_v1 = vpop.permute.xlu1 %8294 }
0x18e4   : > { %v7751_v12 = vpack.c.bf16 %v7743_v57, %v7743_v57 }
0x18e6   : > { %12587 = vmatmul.mubr.msk.bf16.vlgmr.msra.gmra.mrb[0].mxu1 %vm1544_vm3, %v7751_v12  ;;  %v8397_v34 = vpop.permute.xlu1 %8396 }
0x18e7   : > { %12597 = vmatpush3.bf16.xpose.msra.mxu1 %v8202_v56  ;;  %12598 = vmatprep.mubr.msk.bf16.mxu1 %vm13663_vm0, %v17112_v48  ;;  %v8402_v54 = vsel %vm1167_vm1, %v8397_v34, 0 }
0x18e8   : > { %12608 = vmatprep.subr.bf16.mxu1 %v17112_v48 }
0x18ea   : > { %v8395_v13 = vpop.permute.xlu1 %8394 }
0x18ee   : > { %12599 = vmatmul.mubr.msk.bf16.vlgmr.msra.gmra.mrb[4].mxu1 %vm1167_vm1, %v8195_v7  ;;  %v8497_v53 = vpop.permute.xlu1 %8496 }
0x18ef   : > { %12609 = vmatpush3.bf16.xpose.msra.mxu1 %v8302_v21  ;;  %12610 = vmatprep.mubr.msk.bf16.mxu1 %vm13663_vm0, %v17112_v48  ;;  %v8502_v10 = vsel %vm1167_vm1, %v8497_v53, 0 }
0x18f0   : > { %12620 = vmatprep.subr.bf16.mxu1 %v17112_v48 }
0x18f2   : > { %v8495_v41 = vpop.permute.xlu1 %8494 }
0x18f6   : > { %12611 = vmatmul.mubr.msk.bf16.vlgmr.msra.gmra.mrb[8].mxu1 %vm1167_vm1, %v8295_v1 }
0x18f7   : > { %12621 = vmatpush3.bf16.xpose.msra.mxu1 %v8402_v54  ;;  %12622 = vmatprep.mubr.msk.bf16.mxu1 %vm13663_vm0, %v17112_v48 }
0x18f8   : > { %12632 = vmatprep.subr.bf16.mxu1 %v17112_v48 }
0x18fe   : > { %12623 = vmatmul.mubr.msk.bf16.vlgmr.msra.gmra.mrb[12].mxu1 %vm1167_vm1, %v8395_v13 }
0x18ff   : > { %12633 = vmatpush3.bf16.xpose.msra.mxu1 %v8502_v10  ;;  %12634 = vmatprep.mubr.msk.bf16.mxu1 %vm13663_vm0, %v17112_v48 }
0x1900   : > { %12644 = vmatprep.subr.bf16.mxu1 %v17112_v48 }
0x1906   : > { %12635 = vmatmul.mubr.msk.bf16.vlgmr.msra.gmra.mrb[16].mxu1 %vm1167_vm1, %v8495_v41 }
0x1907   : > { %12646 = vmatprep.mubr.msk.bf16.mxu1 %vm13663_vm0, %v17112_v48 }
0x1916   : > { %v15981_v43 = vpop.f32.mrb[228].mxu0 }
0x1917   : > { %v12546_v44 = vpop.f32.mrb[229].mxu0 }
0x1918   : > { %v7797_v63 = vpop.f32.mrb[230].mxu0 }
0x1919   : > { %v12547_v47 = vpop.f32.mrb[231].mxu0 }
0x191e   : > { %v15983_v15 = vpop.f32.mrb[232].mxu0 }
0x191f   : > { %v12558_v29 = vpop.f32.mrb[233].mxu0 }
0x1920   : > { %v7893_v58 = vpop.f32.mrb[234].mxu0 }
0x1921   : > { %v12559_v26 = vpop.f32.mrb[235].mxu0 }
0x1947   : > { %v15985_v45 = vpop.f32.mrb[244].mxu1 }
0x1948   : > { %v12552_v42 = vpop.f32.mrb[245].mxu1 }
0x1949   : > { %v7845_v3 = vpop.f32.mrb[246].mxu1 }
0x194a   : > { %v12553_v49 = vpop.f32.mrb[247].mxu1 }
0x194f   : > { %v15987_v17 = vpop.f32.mrb[248].mxu1 }
0x1950   : > { %v12564_v23 = vpop.f32.mrb[249].mxu1 }
0x1951   : > { %v7941_v4 = vpop.f32.mrb[250].mxu1 }
0x1952   : > { %v12565_v31 = vpop.f32.mrb[251].mxu1 }
0x1953   : > { %v15989_v51 = vpop.f32.mrb[236].mxu0 }
0x1954   : > { %v12570_v0 = vpop.f32.mrb[237].mxu0 }
0x1955   : > { %v7989_v46 = vpop.f32.mrb[238].mxu0 }
0x1956   : > { %v12571_v60 = vpop.f32.mrb[239].mxu0 }
0x1984   : > { %v15991_v28 = vpop.f32.mrb[252].mxu1 }
0x1985   : > { %v12576_v37 = vpop.f32.mrb[253].mxu1 }
0x1986   : > { %v8037_v11 = vpop.f32.mrb[254].mxu1 }
0x1987   : > { %v12577_v30 = vpop.f32.mrb[255].mxu1 }
0x1988   : > { %v15993_v7 = vpop.f32.mrb[240].mxu0 }
0x1989   : > { %v12582_v36 = vpop.f32.mrb[241].mxu0 }
0x198a   : > { %v8085_v57 = vpop.f32.mrb[242].mxu0 }
0x198b   : > { %v12583_v19 = vpop.f32.mrb[243].mxu0 }
0x1990   : > { %v8188_v12 = vpop.f32.mrb[244].mxu0 }
0x1991   : > { %v15995_v56 = vmul.f32 0.17677669, %v8188_v12  ;;  %v12594_v1 = vpop.f32.mrb[245].mxu0 }
0x1992   : > { %v8191_v21 = vpop.f32.mrb[246].mxu0 }
0x1993   : > { %v12595_v34 = vpop.f32.mrb[247].mxu0  ;;  %v8552_v13 = vsel %vm1544_vm3, %v15995_v56, -inf }
0x1994   : > { %8553 = vmax.xlane.f32.xlu0 %v8552_v13 }
0x1998   : > { %v8288_v54 = vpop.f32.mrb[248].mxu0 }
0x1999   : > { %v8546_v53 = vmul.f32 0.17677669, %v8288_v54  ;;  %v12606_v10 = vpop.f32.mrb[249].mxu0 }
0x199a   : > { %v8291_v41 = vpop.f32.mrb[250].mxu0 }
0x199b   : > { %v12607_v44 = vpop.f32.mrb[251].mxu0  ;;  %v8558_v63 = vsel %vm1544_vm3, %v8546_v53, -inf }
0x199c   : > { %8559 = vmax.xlane.f32.xlu0 %v8558_v63 }
0x19a0   : > { %v8388_v47 = vpop.f32.mrb[252].mxu0 }
0x19a1   : > { %v12618_v29 = vpop.f32.mrb[253].mxu0  ;;  %v8548_v34 = vmul.f32 0.17677669, %v8388_v47 }
0x19a2   : > { %v8391_v58 = vpop.f32.mrb[254].mxu0 }
0x19a3   : > { %v12619_v26 = vpop.f32.mrb[255].mxu0  ;;  %v8564_v41 = vsel %vm1544_vm3, %v8548_v34, -inf }
0x19a8   : > { %v8488_v42 = vpop.f32.mrb[0].mxu0 }
0x19a9   : > { %v12630_v3 = vpop.f32.mrb[1].mxu0  ;;  %v8550_v10 = vmul.f32 0.17677669, %v8488_v42 }
0x19aa   : > { %v8491_v49 = vpop.f32.mrb[2].mxu0 }
0x19ab   : > { %v12631_v23 = vpop.f32.mrb[3].mxu0  ;;  %v8570_v3 = vsel %vm1544_vm3, %v8550_v10, -inf }
0x19b9   : > { %v16000_v4 = vpop.f32.mrb[0].mxu1 }
0x19ba   : > { %v12588_v31 = vpop.f32.mrb[1].mxu1 }
0x19bb   : > { %v8133_v0 = vpop.f32.mrb[2].mxu1 }
0x19bc   : > { %v12589_v46 = vpop.f32.mrb[3].mxu1 }
0x19c1   : > { %v8238_v60 = vpop.f32.mrb[4].mxu1 }
0x19c2   : > { %v8545_v37 = vmul.f32 0.17677669, %v8238_v60  ;;  %v12600_v11 = vpop.f32.mrb[5].mxu1 }
0x19c3   : > { %v8241_v30 = vpop.f32.mrb[6].mxu1 }
0x19c4   : > { %v12601_v36 = vpop.f32.mrb[7].mxu1  ;;  %v8555_v57 = vsel %vm1544_vm3, %v8545_v37, -inf }
0x19c5   : > { %8556 = vmax.xlane.f32.xlu1 %v8555_v57 }
0x19c9   : > { %v8338_v19 = vpop.f32.mrb[8].mxu1 }
0x19ca   : > { %v16003_v12 = vmul.f32 0.17677669, %v8338_v19  ;;  %v12612_v1 = vpop.f32.mrb[9].mxu1 }
0x19cb   : > { %v8341_v21 = vpop.f32.mrb[10].mxu1 }
0x19cc   : > { %v12613_v13 = vpop.f32.mrb[11].mxu1  ;;  %v8561_v54 = vsel %vm1544_vm3, %v16003_v12, -inf }
0x19cd   : > { %8562 = vmax.xlane.f32.xlu0 %v8561_v54 }
0x19d1   : > { %8565 = vmax.xlane.f32.xlu0 %v8564_v41  ;;  %v8438_v44 = vpop.f32.mrb[12].mxu1 }
0x19d2   : > { %v16008_v63 = vmul.f32 0.17677669, %v8438_v44  ;;  %v12624_v29 = vpop.f32.mrb[13].mxu1 }
0x19d3   : > { %v8441_v58 = vpop.f32.mrb[14].mxu1 }
0x19d4   : > { %v12625_v26 = vpop.f32.mrb[15].mxu1  ;;  %v8567_v47 = vsel %vm1544_vm3, %v16008_v63, -inf }
0x19d5   : > { %8571 = vmax.xlane.f32.xlu0 %v8570_v3  ;;  %8568 = vmax.xlane.f32.xlu1 %v8567_v47 }
0x19d9   : > { %v8538_v49 = vpop.f32.mrb[16].mxu1 }
0x19da   : > { %v12636_v23 = vpop.f32.mrb[17].mxu1  ;;  %v16019_v0 = vmul.f32 0.17677669, %v8538_v49 }
0x19db   : > { %v8541_v31 = vpop.f32.mrb[18].mxu1 }
0x19dc   : > { %v12637_v42 = vpop.f32.mrb[19].mxu1  ;;  %v8573_v46 = vsel %vm1544_vm3, %v16019_v0, -inf }
0x19e6   : > { %8696 = vrot.lane.b32.xlu1 %v15358_v8, %s13666_s24 }
0x19ea   : > { %8744 = vrot.lane.b32.xlu1 %v15456_v52, %s13666_s24 }
0x19eb   : > { %8648 = vrot.lane.b32.xlu0 %v15352_v16, %s13666_s24 }
0x1a0e   : > { %8574 = vmax.xlane.f32.xlu1 %v8573_v46 }
0x1a1f   : > { %8792 = vrot.lane.b32.xlu1 %v15478_v25, %s13666_s24 }
0x1a21   : > { %v8554_v60 = vpop.xlane.xlu0 %8553 }
0x1a22   : > { %v8576_v11 = vsub.f32 %v15995_v56, %v8554_v60 }
0x1a24   : > { %v8584_v30 = vmul.f32 1.442695, %v8576_v11 }
0x1a26   : > { %13224 = vpow2.f32 %v8584_v30 }
0x1a29   : > { %v8560_v8 = vpop.xlane.xlu0 %8559 }
0x1a2a   : > { %v8578_v36 = vsub.f32 %v8546_v53, %v8560_v8  ;;  %v7240_v8 = vpack.c.bf16 %v15790_v32, %v15790_v32 }
0x1a2c   : > { %v8588_v52 = vmul.f32 1.442695, %v8578_v36  ;;  %v7242_v36 = vpack.c.bf16 %v15792_v27, %v15792_v27  ;;  %v7244_v27 = vpack.c.bf16 %v15798_v33, %v15798_v33 }
0x1a2e   : > { %13226 = vpow2.f32 %v8588_v52 }
0x1a30   : > { %v16026_v57 = vpop.eup %13224 }
0x1a31   : > { %v8600_v16 = vsel %vm1544_vm3, %v16026_v57, 0.0 }
0x1a32   : > { %8601 = vadd.xlane.f32.xlu0 %v8600_v16 }
0x1a38   : > { %v16030_v19 = vpop.eup %13226 }
0x1a39   : > { %v8606_v25 = vsel %vm1544_vm3, %v16030_v19, 0.0 }
0x1a3a   : > { %8607 = vadd.xlane.f32.xlu0 %v8606_v25 }
0x1a50   : > { %8840 = vrot.lane.b32.xlu0 %v15471_v22, %s13666_s24 }
0x1a52   : > { %v8557_v56 = vpop.xlane.xlu1 %8556 }
0x1a53   : > { %v8577_v1 = vsub.f32 %v8545_v37, %v8557_v56  ;;  %v7246_v56 = vpack.c.bf16 %v15802_v20, %v15802_v20  ;;  %v7243_v20 = vpack.c.bf16 %v15796_v6, %v15796_v6  ;;  %v7245_v6 = vpack.c.bf16 %v15800_v50, %v15800_v50 }
0x1a55   : > { %v8586_v53 = vmul.f32 1.442695, %v8577_v1 }
0x1a57   : > { %13228 = vpow2.f32 %v8586_v53 }
0x1a5a   : > { %v8563_v21 = vpop.xlane.xlu0 %8562 }
0x1a5b   : > { %v8579_v46 = vsub.f32 %v16003_v12, %v8563_v21  ;;  %v8137_v21 = vpack.c.bf16 %v15985_v45, %v15985_v45 }
0x1a5d   : > { %v8590_v60 = vmul.f32 1.442695, %v8579_v46 }
0x1a5e   : > { %v8566_v13 = vpop.xlane.xlu0 %8565 }
0x1a5f   : > { %v8580_v54 = vsub.f32 %v8548_v34, %v8566_v13 }
0x1a61   : > { %v16036_v41 = vpop.eup %13228  ;;  %v8592_v44 = vmul.f32 1.442695, %v8580_v54 }
0x1a62   : > { %v8572_v29 = vpop.xlane.xlu0 %8571  ;;  %v8569_v58 = vpop.xlane.xlu1 %8568  ;;  %v8603_v26 = vsel %vm1544_vm3, %v16036_v41, 0.0 }
0x1a63   : > { %13230 = vpow2.f32 %v8592_v44  ;;  %v8582_v3 = vsub.f32 %v8550_v10, %v8572_v29  ;;  %8604 = vadd.xlane.f32.xlu1 %v8603_v26  ;;  %v8581_v11 = vsub.f32 %v16008_v63, %v8569_v58 }
0x1a65   : > { %v8596_v47 = vmul.f32 1.442695, %v8582_v3  ;;  %v8594_v30 = vmul.f32 1.442695, %v8581_v11 }
0x1a66   : > { %v8649_v22 = vpop.permute.xlu0 %8648  ;;  %v8697_v49 = vpop.permute.xlu1 %8696 }
0x1a67   : > { %13232 = vpow2.f32 %v8596_v47  ;;  %v8654_v37 = vsel %vm1644_vm2, %v8649_v22, 0  ;;  %v8702_v23 = vsel %vm1644_vm2, %v8697_v49, 0 }
0x1a68   : > { %12639 = vmatpush3.bf16.msra.mxu0 %v8654_v37  ;;  %12645 = vmatpush3.bf16.msra.mxu1 %v8702_v23  ;;  %13234 = vpow2.f32 %v8590_v60 }
0x1a69   : > { %12650 = vmatprep.subr.bf16.mxu0 %v17112_v48  ;;  %12656 = vmatprep.subr.bf16.mxu1 %v17112_v48  ;;  %13236 = vpow2.f32 %v8594_v30  ;;  %v6322_v30 = vpack.c.bf16 %v15586_v24, %v15586_v24 }
0x1a6a   : > { %v8745_v63 = vpop.permute.xlu1 %8744 }
0x1a6b   : > { %v8750_v29 = vsel %vm1644_vm2, %v8745_v63, 0 }
0x1a6d   : > { %v16044_v34 = vpop.eup %13230 }
0x1a6e   : > { %v8612_v10 = vsel %vm1544_vm3, %v16044_v34, 0.0 }
0x1a6f   : > { %8613 = vadd.xlane.f32.xlu0 %v8612_v10 }
0x1a71   : > { %v16048_v31 = vpop.eup %13232 }
0x1a72   : > { %v8618_v42 = vsel %vm1544_vm3, %v16048_v31, 0.0  ;;  %v16066_v12 = vpop.eup %13234 }
0x1a73   : > { %8619 = vadd.xlane.f32.xlu0 %v8618_v42  ;;  %v8609_v32 = vsel %vm1544_vm3, %v16066_v12, 0.0  ;;  %v16073_v52 = vpop.eup %13236 }
0x1a74   : > { %8888 = vrot.lane.b32.xlu1 %v15500_v35, %s13666_s24  ;;  %v8136_v35 = vpack.c.bf16 %v15981_v43, %v15981_v43  ;;  %v8615_v16 = vsel %vm1544_vm3, %v16073_v52, 0.0 }
0x1a89   : > { %8936 = vrot.lane.b32.xlu0 %v15512_v9, %s13666_s24  ;;  %v8138_v9 = vpack.c.bf16 %v15983_v15, %v15983_v15 }
0x1a8d   : > { %9048 = vrot.lane.b32.xlu0 %v7240_v8, %s13666_s24 }
0x1a91   : > { %9052 = vrot.lane.b32.xlu0 %v7242_v36, %s13666_s24 }
0x1a95   : > { %9072 = vrot.lane.b32.xlu0 %v8136_v35, %s13665_s11 }
0x1a98   : > { %8610 = vadd.xlane.f32.xlu1 %v8609_v32 }
0x1a99   : > { %9076 = vrot.lane.b32.xlu0 %v8138_v9, %s13665_s11 }
0x1a9b   : > { %v8575_v43 = vpop.xlane.xlu1 %8574 }
0x1a9c   : > { %v8583_v25 = vsub.f32 %v16019_v0, %v8575_v43  ;;  %8616 = vadd.xlane.f32.xlu1 %v8615_v16  ;;  %v7241_v0 = vpack.c.bf16 %v15794_v2, %v15794_v2  ;;  %v8139_v2 = vpack.c.bf16 %v15987_v17, %v15987_v17  ;;  %v7247_v17 = vpack.c.bf16 %v15809_v39, %v15809_v39 }
0x1a9d   : > { %9056 = vrot.lane.b32.xlu0 %v7244_v27, %s13666_s24  ;;  %v6324_v27 = vpack.c.bf16 %v15592_v40, %v15592_v40 }
0x1a9e   : > { %v8598_v15 = vmul.f32 1.442695, %v8583_v25 }
0x1a9f   : > { %v8793_v3 = vpop.permute.xlu1 %8792 }
0x1aa0   : > { %13238 = vpow2.f32 %v8598_v15  ;;  %v8798_v37 = vsel %vm1644_vm2, %v8793_v3, 0 }
0x1aa1   : > { %9060 = vrot.lane.b32.xlu0 %v7246_v56, %s13666_s24 }
0x1aaa   : > { %v16085_v1 = vpop.eup %13238 }
0x1aab   : > { %v8621_v33 = vsel %vm1544_vm3, %v16085_v1, 0.0 }
0x1aac   : > { %8622 = vadd.xlane.f32.xlu1 %v8621_v33 }
0x1abd   : > { %8984 = vrot.lane.b32.xlu1 %v15517_v62, %s13666_s24 }
0x1abf   : > { %v8602_v53 = vpop.xlane.xlu0 %8601 }
0x1ac0   : > { %13240 = vrcp.f32 %v8602_v53 }
0x1ac1   : > { %9050 = vrot.lane.b32.xlu1 %v7241_v0, %s13666_s24 }
0x1ac5   : > { %9054 = vrot.lane.b32.xlu1 %v7243_v20, %s13666_s24 }
0x1ac7   : > { %v8608_v13 = vpop.xlane.xlu0 %8607 }
0x1ac8   : > { %13242 = vrcp.f32 %v8608_v13 }
0x1ac9   : > { %9074 = vrot.lane.b32.xlu1 %v8137_v21, %s13665_s11 }
0x1aca   : > { %v13241_v62 = vpop.eup %13240 }
0x1acb   : > { %v8625_v54 = vmul.f32 %v13241_v62, %v16026_v57  ;;  %v8841_v58 = vpop.permute.xlu0 %8840 }
0x1acc   : > { %v8846_v26 = vsel %vm1644_vm2, %v8841_v58, 0  ;;  %v6325_v58 = vpack.c.bf16 %v15594_v14, %v15594_v14  ;;  %v8140_v14 = vpack.c.bf16 %v15989_v51, %v15989_v51 }
0x1acd   : > { %v8640_v44 = vpack.c.bf16 %v8625_v54, %v8625_v54  ;;  %9078 = vrot.lane.b32.xlu1 %v8139_v2, %s13665_s11 }
0x1acf   : > { %12641 = vmatmul.mubr.msk.bf16.vlgmr.msra.gmra.mrb[4].mxu0 %vm1544_vm3, %v8640_v44 }
0x1ad0   : > { %12651 = vmatpush3.bf16.msra.mxu0 %v8750_v29  ;;  %12652 = vmatprep.mubr.msk.bf16.mxu0 %vm13663_vm0, %v17112_v48 }
0x1ad1   : > { %9058 = vrot.lane.b32.xlu1 %v7245_v6, %s13666_s24  ;;  %12662 = vmatprep.subr.bf16.mxu0 %v17112_v48 }
0x1ad2   : > { %v13243_v45 = vpop.eup %13242 }
0x1ad3   : > { %v8629_v57 = vmul.f32 %v13243_v45, %v16030_v19 }
0x1ad5   : > { %v8642_v50 = vpack.c.bf16 %v8629_v57, %v8629_v57  ;;  %9062 = vrot.lane.b32.xlu1 %v7247_v17, %s13666_s24  ;;  %s17145_s24 = sld [smem:[#allocation67_spill]] }
0x1ad7   : > { %12653 = vmatmul.mubr.msk.bf16.vlgmr.msra.gmra.mrb[8].mxu0 %vm1544_vm3, %v8642_v50 }
0x1ad8   : > { %12663 = vmatpush3.bf16.msra.mxu0 %v8846_v26  ;;  %12664 = vmatprep.mubr.msk.bf16.mxu0 %vm13663_vm0, %v17112_v48 }
0x1ad9   : > { %12674 = vmatprep.subr.bf16.mxu0 %v17112_v48 }
0x1af0   : > { %v8605_v47 = vpop.xlane.xlu1 %8604 }
0x1af1   : > { %13244 = vrcp.f32 %v8605_v47 }
0x1af4   : > { %v8889_v25 = vpop.permute.xlu1 %8888 }
0x1af5   : > { %v8894_v20 = vsel %vm1644_vm2, %v8889_v25, 0 }
0x1afb   : > { %v13245_v39 = vpop.eup %13244 }
0x1afc   : > { %v8627_v19 = vmul.f32 %v13245_v39, %v16036_v41  ;;  %v8614_v22 = vpop.xlane.xlu0 %8613 }
0x1afd   : > { %13246 = vrcp.f32 %v8614_v22 }
0x1afe   : > { %v8641_v49 = vpack.c.bf16 %v8627_v19, %v8627_v19 }
0x1b00   : > { %v8620_v23 = vpop.xlane.xlu0 %8619  ;;  %12647 = vmatmul.mubr.msk.bf16.vlgmr.msra.gmra.mrb[20].mxu1 %vm1544_vm3, %v8641_v49 }
0x1b01   : > { %13248 = vrcp.f32 %v8620_v23  ;;  %12657 = vmatpush3.bf16.msra.mxu1 %v8798_v37  ;;  %12658 = vmatprep.mubr.msk.bf16.mxu1 %vm13663_vm0, %v17112_v48 }
0x1b02   : > { %12668 = vmatprep.subr.bf16.mxu1 %v17112_v48 }
0x1b04   : > { %v8937_v10 = vpop.permute.xlu0 %8936 }
0x1b05   : > { %v8942_v8 = vsel %vm1644_vm2, %v8937_v10, 0  ;;  %v8142_v10 = vpack.c.bf16 %v15993_v7, %v15993_v7 }
0x1b07   : > { %v13247_v42 = vpop.eup %13246 }
0x1b08   : > { %v8633_v46 = vmul.f32 %v13247_v42, %v16044_v34  ;;  %v16128_v41 = vpop.permute.xlu0 %9048 }
0x1b0a   : > { %v8644_v60 = vpack.c.bf16 %v8633_v46, %v8633_v46 }
0x1b0b   : > { %v13249_v11 = vpop.eup %13248 }
0x1b0c   : > { %v9053_v36 = vpop.permute.xlu0 %9052  ;;  %12665 = vmatmul.mubr.msk.bf16.vlgmr.msra.gmra.mrb[12].mxu0 %vm1544_vm3, %v8644_v60  ;;  %v8637_v34 = vmul.f32 %v13249_v11, %v16048_v31 }
0x1b0d   : > { %v9120_v35 = vsel %vm1167_vm1, %v6322_v30, %v9053_v36  ;;  %12675 = vmatpush3.bf16.msra.mxu0 %v8942_v8  ;;  %12676 = vmatprep.mubr.msk.bf16.mxu0 %vm13663_vm0, %v17112_v48  ;;  %v12928_v8 = vld [vmem:[#allocation11] sm:$0xff]   ;;  %v12929_v36 = vld [vmem:[#allocation11 + $0x8] sm:$0xff]  }
0x1b0e   : > { %v8646_v63 = vpack.c.bf16 %v8637_v34, %v8637_v34  ;;  %12686 = vmatprep.subr.bf16.mxu0 %v12928_v8 }
0x1b10   : > { %v16138_v9 = vpop.permute.xlu0 %9072 }
0x1b14   : > { %v9077_v32 = vpop.permute.xlu0 %9076  ;;  %12677 = vmatmul.mubr.msk.bf16.vlgmr.msra.gmra.mrb[16].mxu0 %vm1544_vm3, %v8646_v63 }
0x1b15   : > { %v16142_v24 = vsel %vm4826_vm4, %v9120_v35, %v9077_v32  ;;  %12687 = vmatpush3.bf16.msra.mxu0 %v12928_v8  ;;  %v12930_v32 = vld [vmem:[#allocation11 + $0x10] sm:$0xff]  }
0x1b16   : > { %12688 = vmatprep.subr.bf16.mxu0 %v12929_v36 }
0x1b18   : > { %v9057_v43 = vpop.permute.xlu0 %9056 }
0x1b19   : > { %v16147_v16 = vsel %vm1167_vm1, %v6324_v27, %v9057_v43  ;;  %12689 = vmatpush3.bf16.msra.mxu0 %v12929_v36  ;;  %v12931_v27 = vld [vmem:[#allocation11 + $0x18] sm:$0xff]  }
0x1b1a   : > { %12690 = vmatprep.subr.bf16.mxu0 %v12930_v32 }
0x1b1d   : > { %12691 = vmatpush3.bf16.msra.mxu0 %v12930_v32  ;;  %v6327_v32 = vpack.c.bf16 %v15603_v59, %v15603_v59 }
0x1b1e   : > { %12692 = vmatprep.subr.bf16.mxu0 %v12931_v27 }
0x1b21   : > { %12693 = vmatpush3.bf16.msra.mxu0 %v12931_v27 }
0x1b25   : > { %v8611_v15 = vpop.xlane.xlu1 %8610 }
0x1b26   : > { %13250 = vrcp.f32 %v8611_v15 }
0x1b29   : > { %v8617_v31 = vpop.xlane.xlu1 %8616 }
0x1b2a   : > { %13252 = vrcp.f32 %v8617_v31 }
0x1b30   : > { %v13251_v56 = vpop.eup %13250 }
0x1b31   : > { %v8631_v33 = vmul.f32 %v13251_v56, %v16066_v12  ;;  %v12932_v56 = vld [vmem:[#allocation11 + $0x20] sm:$0xff]  }
0x1b32   : > { %12694 = vmatprep.subr.bf16.mxu0 %v12932_v56 }
0x1b33   : > { %v8643_v0 = vpack.c.bf16 %v8631_v33, %v8631_v33  ;;  %12695 = vmatpush3.bf16.msra.mxu0 %v12932_v56 }
0x1b34   : > { %v13253_v53 = vpop.eup %13252 }
0x1b35   : > { %12659 = vmatmul.mubr.msk.bf16.vlgmr.msra.gmra.mrb[24].mxu1 %vm1544_vm3, %v8643_v0  ;;  %v8635_v40 = vmul.f32 %v13253_v53, %v16073_v52  ;;  %v6323_v52 = vpack.c.bf16 %v15590_v5, %v15590_v5  ;;  %v12933_v0 = vld [vmem:[#allocation11 + $0x28] sm:$0xff]   ;;  %v12934_v53 = vld [vmem:[#allocation11 + $0x30] sm:$0xff]  }
0x1b36   : > { %12669 = vmatpush3.bf16.msra.mxu1 %v8894_v20  ;;  %12670 = vmatprep.mubr.msk.bf16.mxu1 %vm13663_vm0, %v17112_v48  ;;  %v12935_v20 = vld [vmem:[#allocation11 + $0x38] sm:$0xff]  }
0x1b37   : > { %12680 = vmatprep.subr.bf16.mxu1 %v17112_v48  ;;  %v8645_v13 = vpack.c.bf16 %v8635_v40, %v8635_v40  ;;  %12696 = vmatprep.subr.bf16.mxu0 %v12933_v0 }
0x1b38   : > { %12697 = vmatpush3.bf16.msra.mxu0 %v12933_v0 }
0x1b39   : > { %v8623_v21 = vpop.xlane.xlu1 %8622  ;;  %12698 = vmatprep.subr.bf16.mxu0 %v12934_v53 }
0x1b3a   : > { %13254 = vrcp.f32 %v8623_v21 }
0x1b3c   : > { %12699 = vmatpush3.bf16.msra.mxu0 %v12934_v53 }
0x1b3d   : > { %12671 = vmatmul.mubr.msk.bf16.vlgmr.msra.gmra.mrb[28].mxu1 %vm1544_vm3, %v8645_v13  ;;  %v8985_v12 = vpop.permute.xlu1 %8984  ;;  %12700 = vmatprep.subr.bf16.mxu0 %v12935_v20 }
0x1b3e   : > { %v8990_v62 = vsel %vm1644_vm2, %v8985_v12, 0  ;;  %12682 = vmatprep.mubr.msk.bf16.mxu1 %vm13663_vm0, %v17112_v48 }
0x1b3f   : > { %12681 = vmatpush3.bf16.msra.mxu1 %v8990_v62 }
0x1b40   : > { %12701 = vmatpush3.bf16.msra.mxu0 %v12935_v20 }
0x1b41   : > { %v16160_v2 = vpop.permute.xlu1 %9050 }
0x1b44   : > { %v13255_v54 = vpop.eup %13254 }
0x1b45   : > { %v8639_v44 = vmul.f32 %v13255_v54, %v16085_v1  ;;  %v9055_v6 = vpop.permute.xlu1 %9054  ;;  %v8141_v54 = vpack.c.bf16 %v15991_v28, %v15991_v28 }
0x1b46   : > { %v9123_v29 = vsel %vm1167_vm1, %v6323_v52, %v9055_v6 }
0x1b47   : > { %v8647_v45 = vpack.c.bf16 %v8639_v44, %v8639_v44  ;;  %v8143_v44 = vpack.c.bf16 %v16000_v4, %v16000_v4  ;;  %v6320_v4 = vpack.c.bf16 %v15584_v38, %v15584_v38 }
0x1b49   : > { %12683 = vmatmul.mubr.msk.bf16.vlgmr.msra.gmra.mrb[32].mxu1 %vm1544_vm3, %v8647_v45  ;;  %v16167_v17 = vpop.permute.xlu1 %9074 }
0x1b4a   : > { %9704 = vmatprep.mubr.bf16.mxu1 %v17113_v61 }
0x1b4d   : > { %v9079_v48 = vpop.permute.xlu1 %9078 }
0x1b4e   : > { %v16171_v57 = vsel %vm4826_vm4, %v9123_v29, %v9079_v48 }
0x1b51   : > { %v9059_v5 = vpop.permute.xlu1 %9058 }
0x1b52   : > { %v16176_v1 = vsel %vm1167_vm1, %v6325_v58, %v9059_v5 }
0x1ba2   : > { %v8690_v50 = vpop.f32.mrb[4].mxu0 }
0x1ba3   : > { %v9032_v26 = vpack.c.bf16 %v8690_v50, %v8690_v50  ;;  %v12642_v3 = vpop.f32.mrb[5].mxu0 }
0x1ba4   : > { %v8693_v47 = vpop.f32.mrb[6].mxu0  ;;  %v9061_v3 = vpop.permute.xlu0 %9060 }
0x1ba5   : > { %9096 = vrot.lane.b32.xlu0 %v9032_v26, %s13664_s22  ;;  %v12643_v39 = vpop.f32.mrb[7].mxu0  ;;  %v9063_v47 = vpop.permute.xlu1 %9062 }
0x1ba6   : > { %v6321_v39 = vpack.c.bf16 %v15588_v55, %v15588_v55 }
0x1baa   : > { %v8786_v19 = vpop.f32.mrb[8].mxu0 }
0x1bab   : > { %v9034_v22 = vpack.c.bf16 %v8786_v19, %v8786_v19  ;;  %v12654_v49 = vpop.f32.mrb[9].mxu0 }
0x1bac   : > { %v8789_v37 = vpop.f32.mrb[10].mxu0  ;;  %v9117_v49 = vsel %vm1167_vm1, %v6321_v39, %v16160_v2 }
0x1bad   : > { %9100 = vrot.lane.b32.xlu0 %v9034_v22, %s13664_s22  ;;  %v12655_v23 = vpop.f32.mrb[11].mxu0  ;;  %v9114_v22 = vsel %vm1167_vm1, %v6320_v4, %v16128_v41 }
0x1bae   : > { %v9137_v37 = vsel %vm4826_vm4, %v9114_v22, %v16138_v9  ;;  %v9139_v23 = vsel %vm4826_vm4, %v9117_v49, %v16167_v17  ;;  %v17141_v49 = vld [vmem:[#allocation27_spill] sm:$0xff] }
0x1bb1   : > { %9080 = vrot.lane.b32.xlu0 %v8140_v14, %s13665_s11 }
0x1bb5   : > { %9084 = vrot.lane.b32.xlu0 %v8142_v10, %s13665_s11 }
0x1bd3   : > { %v8738_v42 = vpop.f32.mrb[20].mxu1 }
0x1bd4   : > { %v9033_v46 = vpack.c.bf16 %v8738_v42, %v8738_v42  ;;  %v12648_v60 = vpop.f32.mrb[21].mxu1 }
0x1bd5   : > { %v8741_v11 = vpop.f32.mrb[22].mxu1 }
0x1bd6   : > { %9098 = vrot.lane.b32.xlu1 %v9033_v46, %s13664_s22  ;;  %v12649_v30 = vpop.f32.mrb[23].mxu1 }
0x1bdf   : > { %v8882_v35 = vpop.f32.mrb[12].mxu0 }
0x1be0   : > { %v9036_v34 = vpack.c.bf16 %v8882_v35, %v8882_v35  ;;  %v12666_v51 = vpop.f32.mrb[13].mxu0 }
0x1be1   : > { %v8885_v63 = vpop.f32.mrb[14].mxu0 }
0x1be2   : > { %9104 = vrot.lane.b32.xlu0 %v9036_v34, %s13664_s22  ;;  %v12667_v7 = vpop.f32.mrb[15].mxu0 }
0x1be7   : > { %v8978_v43 = vpop.f32.mrb[16].mxu0 }
0x1be8   : > { %v9038_v25 = vpack.c.bf16 %v8978_v43, %v8978_v43  ;;  %v12678_v15 = vpop.f32.mrb[17].mxu0 }
0x1be9   : > { %v8981_v31 = vpop.f32.mrb[18].mxu0 }
0x1bea   : > { %9108 = vrot.lane.b32.xlu0 %v9038_v25, %s13664_s22  ;;  %v12679_v33 = vpop.f32.mrb[19].mxu0 }
0x1c08   : > { %v8834_v40 = vpop.f32.mrb[24].mxu1 }
0x1c09   : > { %v9035_v21 = vpack.c.bf16 %v8834_v40, %v8834_v40  ;;  %v12660_v13 = vpop.f32.mrb[25].mxu1 }
0x1c0a   : > { %v8837_v12 = vpop.f32.mrb[26].mxu1 }
0x1c0b   : > { %9102 = vrot.lane.b32.xlu1 %v9035_v21, %s13664_s22  ;;  %v12661_v62 = vpop.f32.mrb[27].mxu1  ;;  %v17129_v21 = vld [vmem:[#allocation29_spill] sm:$0xff] }
0x1c0c   : > { %v17131_v62 = vld [vmem:[#allocation30_spill] sm:$0xff] }
0x1c0f   : > { %9082 = vrot.lane.b32.xlu1 %v8141_v54, %s13665_s11 }
0x1c10   : > { %v8930_v52 = vpop.f32.mrb[28].mxu1 }
0x1c11   : > { %v12672_v6 = vpop.f32.mrb[29].mxu1  ;;  %v9037_v48 = vpack.c.bf16 %v8930_v52, %v8930_v52  ;;  %v17133_v52 = vld [vmem:[#allocation23_spill] sm:$0xff] }
0x1c12   : > { %v8933_v29 = vpop.f32.mrb[30].mxu1 }
0x1c13   : > { %9086 = vrot.lane.b32.xlu1 %v8143_v44, %s13665_s11  ;;  %v12673_v45 = vpop.f32.mrb[31].mxu1  ;;  %v17135_v29 = vld [vmem:[#allocation24_spill] sm:$0xff] }
0x1c17   : > { %9106 = vrot.lane.b32.xlu1 %v9037_v48, %s13664_s22  ;;  %v9097_v19 = vpop.permute.xlu0 %9096 }
0x1c18   : > { %v9153_v10 = vsel %vm4843_vm5, %v9137_v37, %v9097_v19  ;;  %v17139_v19 = vld [vmem:[#allocation26_spill] sm:$0xff] }
0x1c1c   : > { %v9026_v58 = vpop.f32.mrb[32].mxu1 }
0x1c1d   : > { %v9039_v5 = vpack.c.bf16 %v9026_v58, %v9026_v58  ;;  %v12684_v50 = vpop.f32.mrb[33].mxu1 }
0x1c1e   : > { %v9029_v26 = vpop.f32.mrb[34].mxu1 }
0x1c1f   : > { %9110 = vrot.lane.b32.xlu1 %v9039_v5, %s13664_s22  ;;  %v12685_v28 = vpop.f32.mrb[35].mxu1  ;;  %v9101_v55 = vpop.permute.xlu0 %9100  ;;  %s17207_s22 = sld [smem:[#allocation70_spill]] }
0x1c20   : > { %v9157_v41 = vsel %vm4843_vm5, %v16142_v24, %v9101_v55 }
0x1c23   : > { %v9081_v46 = vpop.permute.xlu0 %9080 }
0x1c24   : > { %v9145_v36 = vsel %vm4826_vm4, %v16147_v16, %v9081_v46  ;;  %v9135_v16 = vsel %vm1167_vm1, %v6327_v32, %v9063_v47 }
0x1c27   : > { %v9085_v17 = vpop.permute.xlu0 %9084 }
0x1c48   : > { %v9099_v14 = vpop.permute.xlu1 %9098 }
0x1c49   : > { %v9155_v38 = vsel %vm4843_vm5, %v9139_v23, %v9099_v14  ;;  %v17143_v23 = vld [vmem:[#allocation28_spill] sm:$0xff] }
0x1c4a   : > { %v11302_v42 = vcombine.low %v9153_v10, %v9155_v38  ;;  %v9458_v10 = vld [vmem:[#allocation13] sm:$0xff] }
0x1c4b   : > { %v9460_v38 = vld [vmem:[#allocation13 + $0x20] sm:$0xff] }
0x1c4c   : > { %12702 = vmatprep.mubr.bf16.mxu0 %v11302_v42  ;;  %v9459_v42 = vld [vmem:[#allocation13 + $0x8] sm:$0xff]  ;;  %v11316_v55 = vcombine.low %v9458_v10, %v9460_v38  ;;  %v11317_v46 = vcombine.high %v9458_v10, %v9460_v38 }
0x1c4e   : > { %9672 = vmatprep.subr.bf16.mxu1 %v11317_v46 }
0x1c4f   : > { %9673 = vmatpush1.bf16.msra.mxu1 %v11316_v55 }
0x1c54   : > { %v9105_v8 = vpop.permute.xlu0 %9104 }
0x1c55   : > { %v9161_v51 = vsel %vm4843_vm5, %v9145_v36, %v9105_v8  ;;  %v9465_v8 = vld [vmem:[#allocation13 + $0x68] sm:$0xff] }
0x1c5c   : > { %v9109_v7 = vpop.permute.xlu0 %9108 }
0x1c7d   : > { %v9103_v60 = vpop.permute.xlu1 %9102 }
0x1c7e   : > { %v9159_v2 = vsel %vm4843_vm5, %v16171_v57, %v9103_v60  ;;  %v6326_v57 = vpack.c.bf16 %v15596_v18, %v15596_v18  ;;  %v11301_v18 = vld [vmem:[%s17128_s15] ss:$0 sm:$0xff]  ;;  %v9461_v60 = vld [vmem:[#allocation13 + $0x28] sm:$0xff]  ;;  %s13567_s15 = sshll.u32 %s13667_s1, 4  ;;  %s13568_s15 = int_to_ptr.vmem [resolvable:$false] %s13567_s15 }
0x1c7f   : > { %v11303_v9 = vcombine.low %v9157_v41, %v9159_v2  ;;  %v9462_v41 = vld [vmem:[#allocation13 + $0x40] sm:$0xff]  ;;  %s13569_s26 = scalar_lea.vmem %s13568_s15, 1024 }
0x1c80   : > { %v9132_v27 = vsel %vm1167_vm1, %v6326_v57, %v9061_v3  ;;  %v17137_v3 = vld [vmem:[#allocation25_spill] sm:$0xff]  ;;  %v9464_v2 = vld [vmem:[#allocation13 + $0x60] sm:$0xff] }
0x1c81   : > { %12703 = vmatmul.mubr.bf16.vlgmr.msra.gmra.mrb[20].mxu0 %v11303_v9  ;;  %v9083_v11 = vpop.permute.xlu1 %9082  ;;  %v11318_v9 = vcombine.low %v9459_v42, %v9461_v60 }
0x1c82   : > { %v9147_v35 = vsel %vm4826_vm4, %v16176_v1, %v9083_v11  ;;  %v9149_v1 = vsel %vm4826_vm4, %v9132_v27, %v9085_v17  ;;  %v11319_v11 = vcombine.high %v9459_v42, %v9461_v60  ;;  %v11321_v17 = vcombine.high %v9462_v41, %v9464_v2  ;;  %v9473_v42 = vld [vmem:[#allocation13 + $0xe8] sm:$0xff] }
0x1c83   : > { %v9165_v15 = vsel %vm4843_vm5, %v9149_v1, %v9109_v7 }
0x1c84   : > { %9745 = vmatprep.subr.bf16.mxu0 %v11319_v11  ;;  %9674 = vmatprep.subr.bf16.mxu1 %v11321_v17  ;;  %v9476_v11 = vld [vmem:[#allocation13 + $0x120] sm:$0xff]  ;;  %v9475_v17 = vld [vmem:[#allocation13 + $0x108] sm:$0xff] }
0x1c85   : > { %v9087_v30 = vpop.permute.xlu1 %9086  ;;  %9746 = vmatpush1.bf16.msra.mxu0 %v11318_v9  ;;  %v9474_v9 = vld [vmem:[#allocation13 + $0x100] sm:$0xff] }
0x1c86   : > { %v9151_v43 = vsel %vm4826_vm4, %v9135_v16, %v9087_v30  ;;  %v9463_v30 = vld [vmem:[#allocation13 + $0x48] sm:$0xff] }
0x1c87   : > { %v11323_v36 = vcombine.high %v9463_v30, %v9465_v8 }
0x1c89   : > { %v9107_v34 = vpop.permute.xlu1 %9106  ;;  %9747 = vmatprep.subr.bf16.mxu0 %v11323_v36  ;;  %v9477_v36 = vld [vmem:[#allocation13 + $0x128] sm:$0xff] }
0x1c8a   : > { %v9163_v24 = vsel %vm4843_vm5, %v9147_v35, %v9107_v34  ;;  %v11320_v35 = vcombine.low %v9462_v41, %v9464_v2  ;;  %v11322_v34 = vcombine.low %v9463_v30, %v9465_v8  ;;  %v11333_v8 = vcombine.high %v9474_v9, %v9476_v11 }
0x1c8b   : > { %v11304_v63 = vcombine.low %v9161_v51, %v9163_v24 }
0x1c8c   : > { %9675 = vmatpush1.bf16.msra.mxu1 %v11320_v35  ;;  %9748 = vmatpush1.bf16.msra.mxu0 %v11322_v34  ;;  %v11332_v35 = vcombine.low %v9474_v9, %v9476_v11  ;;  %v11334_v34 = vcombine.low %v9475_v17, %v9477_v36 }
0x1c8d   : > { %12706 = vmatprep.mubr.bf16.mxu0 %v11304_v63 }
0x1c91   : > { %v9111_v25 = vpop.permute.xlu1 %9110 }
0x1c92   : > { %v9167_v31 = vsel %vm4843_vm5, %v9151_v43, %v9111_v25 }
0x1c93   : > { %v11305_v56 = vcombine.low %v9165_v15, %v9167_v31 }
0x1c95   : > { %12707 = vmatmul.mubr.bf16.gmra.mrb[24].mxu0 %v11305_v56 }
0x1c96   : > { %9777 = vmatprep.mubr.bf16.mxu0 %v17113_v61 }
0x1d54   : > { %v12704_v59 = vpop.f32.mrb[20].mxu0 }
0x1d55   : > { %v9297_v33 = vpop.f32.mrb[21].mxu0  ;;  %v9306_v40 = vadd.f32 %v12704_v59, %v11301_v18 }
0x1d56   : > { %v9298_v0 = vadd.f32 %v11301_v18, %v9297_v33  ;;  %v12705_v53 = vpop.f32.mrb[22].mxu0 }
0x1d57   : > { %v9300_v20 = vpop.f32.mrb[23].mxu0  ;;  %v16244_v44 = vadd.f32 %v9306_v40, %v17133_v52  ;;  %v9309_v6 = vadd.f32 %v12705_v53, %v11301_v18  ;;  %v9468_v40 = vld [vmem:[#allocation13 + $0xa0] sm:$0xff] }
0x1d58   : > { %v16237_v13 = vadd.f32 %v9298_v0, %v17129_v21  ;;  %v9301_v12 = vadd.f32 %v11301_v18, %v9300_v20  ;;  %v9466_v20 = vld [vmem:[#allocation13 + $0x80] sm:$0xff]  ;;  %v9467_v21 = vld [vmem:[#allocation13 + $0x88] sm:$0xff] }
0x1d59   : > { %17134 = vst [vmem:[#allocation23_spill] sm:$0xff] %v16244_v44  ;;  %v16249_v45 = vadd.f32 %v9309_v6, %v17135_v29  ;;  %v11325_v52 = vcombine.high %v9466_v20, %v9468_v40  ;;  %v9469_v6 = vld [vmem:[#allocation13 + $0xa8] sm:$0xff] }
0x1d5a   : > { %17130 = vst [vmem:[#allocation29_spill] sm:$0xff] %v16237_v13  ;;  %v16240_v54 = vadd.f32 %v9301_v12, %v17131_v62  ;;  %9336 = vadd.xlane.f32.xlu0 %v16237_v13 }
0x1d5b   : > { %17136 = vst [vmem:[#allocation24_spill] sm:$0xff] %v16249_v45  ;;  %9676 = vmatprep.subr.bf16.mxu1 %v11325_v52  ;;  %v9487_v52 = vld [vmem:[#allocation13 + $0x1c8] sm:$0xff] }
0x1d5c   : > { %17132 = vst [vmem:[#allocation30_spill] sm:$0xff] %v16240_v54  ;;  %9338 = vadd.xlane.f32.xlu1 %v16240_v54 }
0x1d5e   : > { %9340 = vadd.xlane.f32.xlu0 %v16244_v44 }
0x1d62   : > { %9342 = vadd.xlane.f32.xlu0 %v16249_v45 }
0x1d68   : > { %v12708_v48 = vpop.f32.mrb[24].mxu0 }
0x1d69   : > { %v9313_v58 = vpop.f32.mrb[25].mxu0  ;;  %v9322_v28 = vadd.f32 %v12708_v48, %v11301_v18  ;;  %v11324_v48 = vcombine.low %v9466_v20, %v9468_v40 }
0x1d6a   : > { %v9314_v5 = vadd.f32 %v11301_v18, %v9313_v58  ;;  %v12709_v50 = vpop.f32.mrb[26].mxu0  ;;  %v11326_v58 = vcombine.low %v9467_v21, %v9469_v6 }
0x1d6b   : > { %v9316_v26 = vpop.f32.mrb[27].mxu0  ;;  %v9325_v39 = vadd.f32 %v12709_v50, %v11301_v18  ;;  %v16260_v37 = vadd.f32 %v9322_v28, %v17141_v49  ;;  %9677 = vmatpush1.bf16.msra.mxu1 %v11324_v48 }
0x1d6c   : > { %v16253_v47 = vadd.f32 %v9314_v5, %v17137_v3  ;;  %v9317_v4 = vadd.f32 %v11301_v18, %v9316_v26  ;;  %v11327_v5 = vcombine.high %v9467_v21, %v9469_v6  ;;  %v9486_v21 = vld [vmem:[#allocation13 + $0x1c0] sm:$0xff] }
0x1d6d   : > { %17142 = vst [vmem:[#allocation27_spill] sm:$0xff] %v16260_v37  ;;  %v16264_v14 = vadd.f32 %v9325_v39, %v17143_v23  ;;  %v9472_v39 = vld [vmem:[#allocation13 + $0xe0] sm:$0xff] }
0x1d6e   : > { %17138 = vst [vmem:[#allocation25_spill] sm:$0xff] %v16253_v47  ;;  %v16256_v22 = vadd.f32 %v9317_v4, %v17139_v19  ;;  %9344 = vadd.xlane.f32.xlu0 %v16253_v47  ;;  %9749 = vmatprep.subr.bf16.mxu0 %v11327_v5  ;;  %v9470_v4 = vld [vmem:[#allocation13 + $0xc0] sm:$0xff]  ;;  %v9471_v19 = vld [vmem:[#allocation13 + $0xc8] sm:$0xff] }
0x1d6f   : > { %17144 = vst [vmem:[#allocation28_spill] sm:$0xff] %v16264_v14  ;;  %9750 = vmatpush1.bf16.msra.mxu0 %v11326_v58  ;;  %v11329_v38 = vcombine.high %v9470_v4, %v9472_v39  ;;  %v11328_v55 = vcombine.low %v9470_v4, %v9472_v39  ;;  %v11330_v46 = vcombine.low %v9471_v19, %v9473_v42  ;;  %v16316_v39 = vld [vmem:[#allocation13 + $0x38] sm:$0xff] }
0x1d70   : > { %17140 = vst [vmem:[#allocation26_spill] sm:$0xff] %v16256_v22  ;;  %9346 = vadd.xlane.f32.xlu1 %v16256_v22  ;;  %v11331_v60 = vcombine.high %v9471_v19, %v9473_v42 }
0x1d71   : > { %9678 = vmatprep.subr.bf16.mxu1 %v11329_v38 }
0x1d72   : > { %9348 = vadd.xlane.f32.xlu0 %v16260_v37  ;;  %9751 = vmatprep.subr.bf16.mxu0 %v11331_v60 }
0x1d73   : > { %9679 = vmatpush1.bf16.msra.mxu1 %v11328_v55  ;;  %9752 = vmatpush1.bf16.msra.mxu0 %v11330_v46 }
0x1d74   : > { %9350 = vadd.xlane.f32.xlu1 %v16264_v14  ;;  %9680 = vmatprep.subr.bf16.mxu1 %v11333_v8 }
0x1d77   : > { %9681 = vmatpush1.bf16.msra.mxu1 %v11332_v35 }
0x1de7   : > { %v9337_v51 = vpop.xlane.xlu0 %9336 }
0x1de8   : > { %v9352_v24 = vmul.f32 0.0078125, %v9337_v51  ;;  %v11335_v51 = vcombine.high %v9475_v17, %v9477_v36 }
0x1de9   : > { %v9339_v63 = vpop.xlane.xlu1 %9338 }
0x1dea   : > { %v16269_v57 = vsub.f32 %v16237_v13, %v9352_v24  ;;  %v9353_v32 = vmul.f32 0.0078125, %v9339_v63  ;;  %9753 = vmatprep.subr.bf16.mxu0 %v11335_v51  ;;  %v9478_v24 = vld [vmem:[#allocation13 + $0x140] sm:$0xff] }
0x1deb   : > { %v9341_v7 = vpop.xlane.xlu0 %9340  ;;  %v9480_v63 = vld [vmem:[#allocation13 + $0x160] sm:$0xff]  ;;  %9754 = vmatpush1.bf16.msra.mxu0 %v11334_v34  ;;  %v16327_v34 = vld [vmem:[%s17145_s24] ss:$0 sm:$0xff]  ;;  %s16933_s24 = scalar_lea.vmem [#allocation16], %s11099_s25 }
0x1dec   : > { %v16272_v27 = vsub.f32 %v16240_v54, %v9353_v32  ;;  %v9354_v16 = vmul.f32 0.0078125, %v9341_v7  ;;  %v9368_v1 = vmul.f32 %v16269_v57, %v16269_v57  ;;  %v9479_v32 = vld [vmem:[#allocation13 + $0x148] sm:$0xff]  ;;  %v11337_v7 = vcombine.high %v9478_v24, %v9480_v63  ;;  %s10945_s25 = sshll.u32 %s16933_s24, 4  ;;  %s16950_s25 = int_to_ptr.vmem [resolvable:$true] %s10945_s25 }
0x1ded   : > { %s13563_s20 = scalar_lea.vmem %s16950_s25, 512  ;;  %p13570_p3 = scmp.lt.s32.totalorder %s16950_s25, %s13568_s15 }
0x1dee   : > { %v16277_v43 = vsub.f32 %v16244_v44, %v9354_v16  ;;  %9376 = vadd.xlane.f32.xlu0 %v9368_v1  ;;  %v9369_v25 = vmul.f32 %v16272_v27, %v16272_v27  ;;  %v9481_v16 = vld [vmem:[#allocation13 + $0x168] sm:$0xff]  ;;  %v11336_v1 = vcombine.low %v9478_v24, %v9480_v63  ;;  %9682 = vmatprep.subr.bf16.mxu1 %v11337_v7  ;;  %p13564_p4 = scmp.ne.s32.totalorder %s16950_s25, %s13563_s20  ;;  %p13571_p7 = scmp.lt.s32.totalorder %s13569_s26, %s13563_s20 }
0x1def   : > { %v9343_v15 = vpop.xlane.xlu0 %9342 }
0x1df0   : > { %v9355_v31 = vmul.f32 0.0078125, %v9343_v15  ;;  %9378 = vadd.xlane.f32.xlu1 %v9369_v25  ;;  %v9370_v56 = vmul.f32 %v16277_v43, %v16277_v43  ;;  %v11338_v25 = vcombine.low %v9479_v32, %v9481_v16  ;;  %v11339_v15 = vcombine.high %v9479_v32, %v9481_v16  ;;  %9683 = vmatpush1.bf16.msra.mxu1 %v11336_v1  ;;  %v16335_v16 = vld [vmem:[%s17146_s17] ss:$0 sm:$0xff]  ;;  %p13565_p9 = pnand %p13564_p4, %p17217_p6  ;;  %p13572_p5 = por %p13571_p7, %p13570_p3 }
0x1df2   : > { %v16284_v18 = vsub.f32 %v16249_v45, %v9355_v31  ;;  %9380 = vadd.xlane.f32.xlu0 %v9370_v56  ;;  %9755 = vmatprep.subr.bf16.mxu0 %v11339_v15  ;;  %v9482_v31 = vld [vmem:[#allocation13 + $0x180] sm:$0xff]  ;;  %p13566_p1 = pneg %p13565_p9 }
0x1df3   : > { %v9484_v56 = vld [vmem:[#allocation13 + $0x1a0] sm:$0xff]  ;;  %9756 = vmatpush1.bf16.msra.mxu0 %v11338_v25 }
0x1df4   : > { %v9371_v59 = vmul.f32 %v16284_v18, %v16284_v18  ;;  %p13573_p0 = pnand %p13572_p5, %p13566_p1 }
0x1df6   : > { %9382 = vadd.xlane.f32.xlu1 %v9371_v59  ;;  %v9483_v59 = vld [vmem:[#allocation13 + $0x188] sm:$0xff] }
0x1dfb   : > { %v9345_v33 = vpop.xlane.xlu0 %9344 }
0x1dfc   : > { %v9356_v0 = vmul.f32 0.0078125, %v9345_v33  ;;  %v11341_v33 = vcombine.high %v9482_v31, %v9484_v56 }
0x1dfd   : > { %v9347_v53 = vpop.xlane.xlu1 %9346 }
0x1dfe   : > { %v16289_v12 = vsub.f32 %v16253_v47, %v9356_v0  ;;  %v9357_v62 = vmul.f32 0.0078125, %v9347_v53  ;;  %v9485_v0 = vld [vmem:[#allocation13 + $0x1a8] sm:$0xff]  ;;  %v11340_v53 = vcombine.low %v9482_v31, %v9484_v56  ;;  %9684 = vmatprep.subr.bf16.mxu1 %v11341_v33  ;;  %v9822_v31 = vld [vmem:[#allocation13 + $0x50] sm:$0xff] }
0x1dff   : > { %v9349_v29 = vpop.xlane.xlu0 %9348  ;;  %v11342_v20 = vcombine.low %v9483_v59, %v9485_v0  ;;  %v11343_v40 = vcombine.high %v9483_v59, %v9485_v0  ;;  %v9824_v56 = vld [vmem:[#allocation13 + $0x70] sm:$0xff] }
0x1e00   : > { %v16292_v50 = vsub.f32 %v16256_v22, %v9357_v62  ;;  %v9358_v26 = vmul.f32 0.0078125, %v9349_v29  ;;  %v9372_v28 = vmul.f32 %v16289_v12, %v16289_v12  ;;  %9685 = vmatpush1.bf16.msra.mxu1 %v11340_v53  ;;  %v9488_v62 = vld [vmem:[#allocation13 + $0x1e0] sm:$0xff]  ;;  %v9489_v29 = vld [vmem:[#allocation13 + $0x1e8] sm:$0xff]  ;;  %v9825_v53 = vld [vmem:[#allocation13 + $0x78] sm:$0xff] }
0x1e01   : > { %v9351_v3 = vpop.xlane.xlu1 %9350  ;;  %9757 = vmatprep.subr.bf16.mxu0 %v11343_v40  ;;  %v11345_v6 = vcombine.high %v9486_v21, %v9488_v62  ;;  %v11344_v48 = vcombine.low %v9486_v21, %v9488_v62  ;;  %v11346_v58 = vcombine.low %v9487_v52, %v9489_v29  ;;  %v11347_v5 = vcombine.high %v9487_v52, %v9489_v29 }
0x1e02   : > { %v16297_v49 = vsub.f32 %v16260_v37, %v9358_v26  ;;  %v9359_v23 = vmul.f32 0.0078125, %v9351_v3  ;;  %9384 = vadd.xlane.f32.xlu0 %v9372_v28  ;;  %v9373_v10 = vmul.f32 %v16292_v50, %v16292_v50  ;;  %9758 = vmatpush1.bf16.msra.mxu0 %v11342_v20  ;;  %v16308_v26 = vld [vmem:[#allocation13 + $0x10] sm:$0xff]  ;;  %v16312_v3 = vld [vmem:[#allocation13 + $0x18] sm:$0xff]  ;;  %v11353_v29 = vcombine.high %v9822_v31, %v9824_v56 }
0x1e03   : > { %9686 = vmatprep.subr.bf16.mxu1 %v11345_v6  ;;  %9759 = vmatprep.subr.bf16.mxu0 %v11347_v5  ;;  %v16310_v28 = vld [vmem:[#allocation13 + $0x30] sm:$0xff] }
0x1e04   : > { %v16302_v41 = vsub.f32 %v16264_v14, %v9359_v23  ;;  %9386 = vadd.xlane.f32.xlu1 %v9373_v10  ;;  %v9374_v2 = vmul.f32 %v16297_v49, %v16297_v49  ;;  %9687 = vmatpush1.bf16.msra.mxu1 %v11344_v48  ;;  %v11349_v4 = vcombine.high %v16308_v26, %v16310_v28  ;;  %v9826_v48 = vld [vmem:[#allocation13 + $0x90] sm:$0xff] }
0x1e05   : > { %v11348_v19 = vcombine.low %v16308_v26, %v16310_v28  ;;  %v11350_v23 = vcombine.low %v16312_v3, %v16316_v39  ;;  %v11351_v10 = vcombine.high %v16312_v3, %v16316_v39  ;;  %v9832_v26 = vld [vmem:[#allocation13 + $0xf0] sm:$0xff]  ;;  %v9831_v28 = vld [vmem:[#allocation13 + $0xd8] sm:$0xff] }
0x1e06   : > { %9388 = vadd.xlane.f32.xlu0 %v9374_v2  ;;  %v9375_v30 = vmul.f32 %v16302_v41, %v16302_v41  ;;  %9760 = vmatpush1.bf16.msra.mxu0 %v11346_v58 }
0x1e07   : > { %10032 = vmatprep.subr.bf16.mxu1 %v11349_v4  ;;  %10105 = vmatprep.subr.bf16.mxu0 %v11351_v10  ;;  %v9828_v10 = vld [vmem:[#allocation13 + $0xb0] sm:$0xff] }
0x1e08   : > { %9390 = vadd.xlane.f32.xlu1 %v9375_v30  ;;  %v11356_v39 = vcombine.low %v9826_v48, %v9828_v10 }
0x1e7b   : > { %v9377_v38 = vpop.xlane.xlu0 %9376 }
0x1e7c   : > { %v9392_v42 = vmul.f32 0.0078125, %v9377_v38  ;;  %v9827_v38 = vld [vmem:[#allocation13 + $0x98] sm:$0xff] }
0x1e7d   : > { %v9379_v55 = vpop.xlane.xlu1 %9378 }
0x1e7e   : > { %v9400_v46 = vadd.f32 1e-05, %v9392_v42  ;;  %v9393_v60 = vmul.f32 0.0078125, %v9379_v55 }
0x1e7f   : > { %v9381_v2 = vpop.xlane.xlu0 %9380 }
0x1e80   : > { %13256 = vrsqrt.f32 %v9400_v46  ;;  %v9401_v9 = vadd.f32 1e-05, %v9393_v60  ;;  %v9394_v11 = vmul.f32 0.0078125, %v9381_v2 }
0x1e82   : > { %13258 = vrsqrt.f32 %v9401_v9  ;;  %v9402_v17 = vadd.f32 1e-05, %v9394_v11 }
0x1e83   : > { %v9383_v30 = vpop.xlane.xlu1 %9382 }
0x1e84   : > { %13260 = vrsqrt.f32 %v9402_v17  ;;  %v9395_v8 = vmul.f32 0.0078125, %v9383_v30  ;;  %v11357_v17 = vcombine.high %v9826_v48, %v9828_v10 }
0x1e86   : > { %v9403_v36 = vadd.f32 1e-05, %v9395_v8  ;;  %v9830_v8 = vld [vmem:[#allocation13 + $0xd0] sm:$0xff] }
0x1e88   : > { %13262 = vrsqrt.f32 %v9403_v36 }
0x1e8a   : > { %v13257_v35 = vpop.eup %13256 }
0x1e8b   : > { %v9416_v51 = vmul.f32 %v13257_v35, %v16269_v57 }
0x1e8c   : > { %v13259_v24 = vpop.eup %13258 }
0x1e8d   : > { %v9431_v63 = vmul.f32 %v16327_v34, %v9416_v51  ;;  %v9417_v32 = vmul.f32 %v13259_v24, %v16272_v27  ;;  %v9823_v27 = vld [vmem:[#allocation13 + $0x58] sm:$0xff]  ;;  %v11361_v51 = vcombine.high %v9830_v8, %v9832_v26 }
0x1e8e   : > { %v13261_v7 = vpop.eup %13260  ;;  %v11355_v4 = vcombine.high %v9823_v27, %v9825_v53  ;;  %v11354_v9 = vcombine.low %v9823_v27, %v9825_v53  ;;  %v9840_v27 = vld [vmem:[#allocation13 + $0x170] sm:$0xff]  ;;  %v9839_v53 = vld [vmem:[#allocation13 + $0x158] sm:$0xff] }
0x1e8f   : > { %v9432_v1 = vmul.f32 %v16327_v34, %v9417_v32  ;;  %v9385_v25 = vpop.xlane.xlu0 %9384  ;;  %v9446_v59 = vadd.f32 %v16335_v16, %v9431_v63  ;;  %v9418_v33 = vmul.f32 %v13261_v7, %v16277_v43  ;;  %v9829_v43 = vld [vmem:[#allocation13 + $0xb8] sm:$0xff]  ;;  %v9834_v63 = vld [vmem:[#allocation13 + $0x110] sm:$0xff] }
0x1e90   : > { %v9396_v15 = vmul.f32 0.0078125, %v9385_v25  ;;  %v11359_v30 = vcombine.high %v9827_v38, %v9829_v43  ;;  %v9836_v32 = vld [vmem:[#allocation13 + $0x130] sm:$0xff]  ;;  %v9835_v7 = vld [vmem:[#allocation13 + $0x118] sm:$0xff] }
0x1e91   : > { %v9447_v57 = vadd.f32 %v16335_v16, %v9432_v1  ;;  %v9387_v0 = vpop.xlane.xlu1 %9386  ;;  %v9433_v42 = vmul.f32 %v16327_v34, %v9418_v33  ;;  %v9837_v1 = vld [vmem:[#allocation13 + $0x138] sm:$0xff]  ;;  %v9838_v33 = vld [vmem:[#allocation13 + $0x150] sm:$0xff] }
0x1e92   : > { %v13263_v20 = vpop.eup %13262  ;;  %v9404_v40 = vadd.f32 1e-05, %v9396_v15  ;;  %v9397_v21 = vmul.f32 0.0078125, %v9387_v0  ;;  %v11360_v15 = vcombine.low %v9830_v8, %v9832_v26  ;;  %v11369_v48 = vcombine.high %v9838_v33, %v9840_v27  ;;  %v9848_v8 = vld [vmem:[#allocation13 + $0x1f0] sm:$0xff] }
0x1e93   : > { %v16341_v62 = vpack.c.bf16 %v9447_v57, %v9446_v59  ;;  %v9419_v52 = vmul.f32 %v13263_v20, %v16284_v18  ;;  %v9389_v6 = vpop.xlane.xlu0 %9388  ;;  %v11352_v18 = vcombine.low %v9822_v31, %v9824_v56  ;;  %v9448_v3 = vadd.f32 %v16335_v16, %v9433_v42  ;;  %v9841_v20 = vld [vmem:[#allocation13 + $0x178] sm:$0xff]  ;;  %v9844_v42 = vld [vmem:[#allocation13 + $0x1b0] sm:$0xff] }
0x1e94   : > { %13264 = vrsqrt.f32 %v9404_v40  ;;  %v9405_v58 = vadd.f32 1e-05, %v9397_v21  ;;  %v9398_v5 = vmul.f32 0.0078125, %v9389_v6  ;;  %v11365_v59 = vcombine.high %v9834_v63, %v9836_v32 }
0x1e95   : > { %v9434_v55 = vmul.f32 %v16327_v34, %v9419_v52  ;;  %9705 = vmatmul.mubr.bf16.vlgmr.msra.gmra.mrb[36].mxu1 %v16341_v62  ;;  %9778 = vmatmul.mubr.bf16.vlgmr.msra.gmra.mrb[28].mxu0 %v16341_v62  ;;  %v9391_v46 = vpop.xlane.xlu1 %9390  ;;  %v11367_v57 = vcombine.high %v9835_v7, %v9837_v1  ;;  %v11366_v6 = vcombine.low %v9835_v7, %v9837_v1  ;;  %v12941_v7 = vld [vmem:[#allocation14 + $0xc8] sm:$0xff]  }
0x1e96   : > { %13266 = vrsqrt.f32 %v9405_v58  ;;  %v9406_v60 = vadd.f32 1e-05, %v9398_v5  ;;  %v9399_v2 = vmul.f32 0.0078125, %v9391_v46  ;;  %10033 = vmatpush1.bf16.msra.mxu1 %v11348_v19  ;;  %10106 = vmatpush1.bf16.msra.mxu0 %v11350_v23  ;;  %v9833_v19 = vld [vmem:[#allocation13 + $0xf8] sm:$0xff]  ;;  %v11358_v23 = vcombine.low %v9827_v38, %v9829_v43  ;;  %v12942_v1 = vld [vmem:[#allocation14 + $0x8] sm:$0xff]  }
0x1e97   : > { %v9449_v11 = vadd.f32 %v16335_v16, %v9434_v55  ;;  %9714 = vmatprep.mubr.bf16.mxu1 %v17113_v61  ;;  %9787 = vmatprep.mubr.bf16.mxu0 %v17113_v61  ;;  %v11363_v24 = vcombine.high %v9831_v28, %v9833_v19  ;;  %v11362_v31 = vcombine.low %v9831_v28, %v9833_v19  ;;  %v9843_v55 = vld [vmem:[#allocation13 + $0x198] sm:$0xff] }
0x1e98   : > { %13268 = vrsqrt.f32 %v9406_v60  ;;  %v9407_v36 = vadd.f32 1e-05, %v9399_v2  ;;  %10034 = vmatprep.subr.bf16.mxu1 %v11353_v29  ;;  %10107 = vmatprep.subr.bf16.mxu0 %v11355_v4  ;;  %v11371_v58 = vcombine.high %v9839_v53, %v9841_v20  ;;  %v9842_v4 = vld [vmem:[#allocation13 + $0x190] sm:$0xff]  ;;  %v9845_v46 = vld [vmem:[#allocation13 + $0x1b8] sm:$0xff]  ;;  %v11370_v60 = vcombine.low %v9839_v53, %v9841_v20  ;;  %v12953_v53 = vld [vmem:[#allocation14 + $0xe0] sm:$0xff]  }
0x1e99   : > { %v16358_v35 = vpack.c.bf16 %v9449_v11, %v9448_v3  ;;  %v9846_v11 = vld [vmem:[#allocation13 + $0x1d0] sm:$0xff]  ;;  %v11372_v26 = vcombine.low %v9842_v4, %v9844_v42  ;;  %v11374_v28 = vcombine.low %v9843_v55, %v9845_v46  ;;  %v12954_v20 = vld [vmem:[#allocation14 + $0x20] sm:$0xff]  }
0x1e9a   : > { %13270 = vrsqrt.f32 %v9407_v36  ;;  %10035 = vmatpush1.bf16.msra.mxu1 %v11352_v18  ;;  %10108 = vmatpush1.bf16.msra.mxu0 %v11354_v9  ;;  %v11368_v18 = vcombine.low %v9838_v33, %v9840_v27  ;;  %v9847_v36 = vld [vmem:[#allocation13 + $0x1d8] sm:$0xff]  ;;  %v11377_v3 = vcombine.high %v9846_v11, %v9848_v8  ;;  %v12952_v27 = vld [vmem:[#allocation14 + $0x60] sm:$0xff]  }
0x1e9b   : > { %10036 = vmatprep.subr.bf16.mxu1 %v11357_v17  ;;  %10109 = vmatprep.subr.bf16.mxu0 %v11359_v30  ;;  %v11373_v17 = vcombine.high %v9842_v4, %v9844_v42  ;;  %v11375_v30 = vcombine.high %v9843_v55, %v9845_v46  ;;  %v12950_v33 = vld [vmem:[#allocation14 + $0x18] sm:$0xff]  }
0x1e9c   : > { %v12964_v4 = vld [vmem:[#allocation14 + $0x78] sm:$0xff]  }
0x1e9d   : > { %9715 = vmatmul.mubr.bf16.gmra.mrb[40].mxu1 %v16358_v35  ;;  %9788 = vmatmul.mubr.bf16.gmra.mrb[32].mxu0 %v16358_v35 }
0x1e9e   : > { %v13265_v25 = vpop.eup %13264  ;;  %10037 = vmatpush1.bf16.msra.mxu1 %v11356_v39  ;;  %10110 = vmatpush1.bf16.msra.mxu0 %v11358_v23 }
0x1e9f   : > { %v9420_v56 = vmul.f32 %v13265_v25, %v16289_v12  ;;  %10038 = vmatprep.subr.bf16.mxu1 %v11361_v51  ;;  %10111 = vmatprep.subr.bf16.mxu0 %v11363_v24  ;;  %v11364_v12 = vcombine.low %v9834_v63, %v9836_v32  ;;  %v12938_v63 = vld [vmem:[#allocation14] sm:$0xff]   ;;  %v12943_v25 = vld [vmem:[#allocation14 + $0x88] sm:$0xff]  }
0x1ea0   : > { %v13267_v0 = vpop.eup %13266  ;;  %9724 = vmatprep.mubr.bf16.mxu1 %v17113_v61  ;;  %9797 = vmatprep.mubr.bf16.mxu0 %v17113_v61  ;;  %v12939_v32 = vld [vmem:[#allocation14 + $0x80] sm:$0xff]  }
0x1ea1   : > { %v9435_v40 = vmul.f32 %v16327_v34, %v9420_v56  ;;  %v9421_v21 = vmul.f32 %v13267_v0, %v16292_v50  ;;  %v12947_v56 = vld [vmem:[#allocation14 + $0x90] sm:$0xff]   ;;  %v12951_v0 = vld [vmem:[#allocation14 + $0x98] sm:$0xff]  }
0x1ea2   : > { %v13269_v52 = vpop.eup %13268  ;;  %10039 = vmatpush1.bf16.msra.mxu1 %v11360_v15  ;;  %10112 = vmatpush1.bf16.msra.mxu0 %v11362_v31  ;;  %v12944_v15 = vld [vmem:[#allocation14 + $0x50] sm:$0xff]  }
0x1ea3   : > { %v9436_v29 = vmul.f32 %v16327_v34, %v9421_v21  ;;  %10040 = vmatprep.subr.bf16.mxu1 %v11365_v59  ;;  %10113 = vmatprep.subr.bf16.mxu0 %v11367_v57  ;;  %v9450_v10 = vadd.f32 %v16335_v16, %v9435_v40  ;;  %v9422_v43 = vmul.f32 %v13269_v52, %v16297_v49  ;;  %v9849_v49 = vld [vmem:[#allocation13 + $0x1f8] sm:$0xff]  ;;  %v12946_v31 = vld [vmem:[#allocation14 + $0x10] sm:$0xff]   ;;  %v12955_v40 = vld [vmem:[#allocation14 + $0xa0] sm:$0xff]  }
0x1ea4   : > { %v13271_v5 = vpop.eup %13270  ;;  %v11379_v39 = vcombine.high %v9847_v36, %v9849_v49  ;;  %v11378_v51 = vcombine.low %v9847_v36, %v9849_v49  ;;  %v12948_v59 = vld [vmem:[#allocation14 + $0x58] sm:$0xff]   ;;  %v12956_v21 = vld [vmem:[#allocation14 + $0x68] sm:$0xff]  }
0x1ea5   : > { %v9451_v38 = vadd.f32 %v16335_v16, %v9436_v29  ;;  %v9423_v50 = vmul.f32 %v13271_v5, %v16302_v41  ;;  %v9437_v41 = vmul.f32 %v16327_v34, %v9422_v43  ;;  %v12949_v57 = vld [vmem:[#allocation14 + $0xd8] sm:$0xff]   ;;  %v12957_v52 = vld [vmem:[#allocation14 + $0xe8] sm:$0xff]   ;;  %v12960_v29 = vld [vmem:[#allocation14 + $0x70] sm:$0xff]  }
0x1ea6   : > { %10041 = vmatpush1.bf16.msra.mxu1 %v11364_v12  ;;  %10114 = vmatpush1.bf16.msra.mxu0 %v11366_v6  ;;  %v12958_v12 = vld [vmem:[#allocation14 + $0x28] sm:$0xff]   ;;  %v12963_v5 = vld [vmem:[#allocation14 + $0xb0] sm:$0xff]   ;;  %v12967_v43 = vld [vmem:[#allocation14 + $0xb8] sm:$0xff]  }
0x1ea7   : > { %v9456_v2 = vpack.c.bf16 %v9451_v38, %v9450_v10  ;;  %v9438_v9 = vmul.f32 %v16327_v34, %v9423_v50  ;;  %10042 = vmatprep.subr.bf16.mxu1 %v11369_v48  ;;  %10115 = vmatprep.subr.bf16.mxu0 %v11371_v58  ;;  %v9452_v23 = vadd.f32 %v16335_v16, %v9437_v41  ;;  %v12959_v6 = vld [vmem:[#allocation14 + $0xa8] sm:$0xff]   ;;  %v12961_v48 = vld [vmem:[#allocation14 + $0xf0] sm:$0xff]   ;;  %v12965_v10 = vld [vmem:[#allocation14 + $0xf8] sm:$0xff]  }
0x1ea8   : > { %v11376_v34 = vcombine.low %v9846_v11, %v9848_v8  ;;  %v12962_v58 = vld [vmem:[#allocation14 + $0x30] sm:$0xff]   ;;  %v12966_v38 = vld [vmem:[#allocation14 + $0x38] sm:$0xff]  }
0x1ea9   : > { %9725 = vmatmul.mubr.bf16.gmra.mrb[44].mxu1 %v9456_v2  ;;  %9798 = vmatmul.mubr.bf16.gmra.mrb[36].mxu0 %v9456_v2  ;;  %v9453_v19 = vadd.f32 %v16335_v16, %v9438_v9  ;;  %v12936_v16 = vld [vmem:[#allocation14 + $0x40] sm:$0xff]  }
0x1eaa   : > { %10043 = vmatpush1.bf16.msra.mxu1 %v11368_v18  ;;  %10116 = vmatpush1.bf16.msra.mxu0 %v11370_v60 }
0x1eab   : > { %9734 = vmatprep.mubr.bf16.mxu1 %v17113_v61  ;;  %9807 = vmatprep.mubr.bf16.mxu0 %v17113_v61  ;;  %v9457_v24 = vpack.c.bf16 %v9453_v19, %v9452_v23 }
0x1eac   : > { %10044 = vmatprep.subr.bf16.mxu1 %v11373_v17  ;;  %10117 = vmatprep.subr.bf16.mxu0 %v11375_v30 }
0x1eae   : > { %10045 = vmatpush1.bf16.msra.mxu1 %v11372_v26  ;;  %10118 = vmatpush1.bf16.msra.mxu0 %v11374_v28  ;;  %v9492_v28 = vlaneseq }
0x1eaf   : > { %10046 = vmatprep.subr.bf16.mxu1 %v11377_v3  ;;  %10119 = vmatprep.subr.bf16.mxu0 %v11379_v39 }
0x1eb0   : > { %v9493_v19 = vshrl.u32 %v9492_v28, 7 }
0x1eb1   : > { %9735 = vmatmul.mubr.bf16.gmra.mrb[48].mxu1 %v9457_v24  ;;  %9808 = vmatmul.mubr.bf16.gmra.mrb[40].mxu0 %v9457_v24 }
0x1eb2   : > { %10047 = vmatpush1.bf16.msra.mxu1 %v11376_v34  ;;  %10120 = vmatpush1.bf16.msra.mxu0 %v11378_v51  ;;  %v9490_v51 = vld [vmem:[%s17147_s4] sm:$0xf] }
0x1eb3   : > { %10064 = vmatprep.mubr.bf16.mxu1 %v17113_v61  ;;  %10137 = vmatprep.mubr.bf16.mxu0 %v17113_v61 }
0x1eb4   : > { %11766 = vmatprep.subr.bf16.mxu1 %v12936_v16 }
0x1eb9   : > { %10065 = vmatmul.mubr.bf16.vlgmr.msra.gmra.mrb[52].mxu1 %v16341_v62  ;;  %10138 = vmatmul.mubr.bf16.vlgmr.msra.gmra.mrb[44].mxu0 %v16341_v62  ;;  %v12937_v62 = vld [vmem:[#allocation14 + $0xc0] sm:$0xff]  }
0x1eba   : > { %10074 = vmatprep.mubr.bf16.mxu1 %v17113_v61  ;;  %10147 = vmatprep.mubr.bf16.mxu0 %v17113_v61 }
0x1ebb   : > { %11806 = vmatprep.subr.bf16.mxu0 %v12937_v62  ;;  %11767 = vmatpush3.bf16.msra.mxu1 %v12938_v63  ;;  %v9502_v63 = vsub.s32 2, %v9493_v19 }
0x1ebc   : > { %11807 = vmatpush3.bf16.msra.mxu0 %v12939_v32  ;;  %v9498_v32 = vsub.s32 1, %v9493_v19 }
0x1ebd   : > { %11808 = vmatprep.subr.bf16.mxu0 %v12941_v7 }
0x1ec0   : > { %11809 = vmatpush3.bf16.msra.mxu0 %v12943_v25 }
0x1ec1   : > { %10075 = vmatmul.mubr.bf16.gmra.mrb[56].mxu1 %v16358_v35  ;;  %10148 = vmatmul.mubr.bf16.gmra.mrb[48].mxu0 %v16358_v35  ;;  %v12940_v35 = vld [vmem:[#allocation14 + $0x48] sm:$0xff]  }
0x1ec2   : > { %10084 = vmatprep.mubr.bf16.mxu1 %v17113_v61  ;;  %10157 = vmatprep.mubr.bf16.mxu0 %v17113_v61 }
0x1ec3   : > { %11768 = vmatprep.subr.bf16.mxu1 %v12940_v35  ;;  %v9506_v35 = vsub.s32 3, %v9493_v19 }
0x1ec4   : > { %11769 = vmatpush3.bf16.msra.mxu1 %v12942_v1 }
0x1ec5   : > { %11770 = vmatprep.subr.bf16.mxu1 %v12944_v15  ;;  %v9850_v15 = vld [vmem:[%s17147_s4 + $0x4] sm:$0xf] }
0x1ec8   : > { %11771 = vmatpush3.bf16.msra.mxu1 %v12946_v31  ;;  %v16396_v31 = vrot.slane %v9490_v51, %v9498_v32 }
0x1ec9   : > { %10085 = vmatmul.mubr.bf16.gmra.mrb[60].mxu1 %v9456_v2  ;;  %10158 = vmatmul.mubr.bf16.gmra.mrb[52].mxu0 %v9456_v2 }
0x1eca   : > { %10094 = vmatprep.mubr.bf16.mxu1 %v17113_v61  ;;  %10167 = vmatprep.mubr.bf16.mxu0 %v17113_v61  ;;  %v12945_v61 = vld [vmem:[#allocation14 + $0xd0] sm:$0xff]   ;;  %17148 = vst [vmem:[#allocation31_spill] sm:$0xff] %v16396_v31 }
0x1ecb   : > { %11810 = vmatprep.subr.bf16.mxu0 %v12945_v61  ;;  %11772 = vmatprep.subr.bf16.mxu1 %v12948_v59  ;;  %v9503_v61 = vrot.slane %v9490_v51, %v9502_v63 }
0x1ecc   : > { %11811 = vmatpush3.bf16.msra.mxu0 %v12947_v56  ;;  %11773 = vmatpush3.bf16.msra.mxu1 %v12950_v33  ;;  %v16398_v56 = vrot.slane %v9490_v51, %v9506_v35 }
0x1ecd   : > { %11812 = vmatprep.subr.bf16.mxu0 %v12949_v57  ;;  %11774 = vmatprep.subr.bf16.mxu1 %v12952_v27 }
0x1ece   : > { %17149 = vst [vmem:[#allocation32_spill] sm:$0xff] %v16398_v56 }
0x1ed0   : > { %11813 = vmatpush3.bf16.msra.mxu0 %v12951_v0  ;;  %11775 = vmatpush3.bf16.msra.mxu1 %v12954_v20 }
0x1ed1   : > { %10095 = vmatmul.mubr.bf16.gmra.mrb[64].mxu1 %v9457_v24  ;;  %10168 = vmatmul.mubr.bf16.gmra.mrb[56].mxu0 %v9457_v24  ;;  %v9494_v24 = vsub.s32 0, %v9493_v19 }
0x1ed2   : > { %11814 = vmatprep.subr.bf16.mxu0 %v12953_v53  ;;  %11776 = vmatprep.subr.bf16.mxu1 %v12956_v21  ;;  %v16406_v21 = vrot.slane %v9850_v15, %v9502_v63 }
0x1ed3   : > { %v9495_v25 = vrot.slane %v9490_v51, %v9494_v24  ;;  %v16402_v27 = vrot.slane %v9850_v15, %v9494_v24 }
0x1ed4   : > { %11815 = vmatpush3.bf16.msra.mxu0 %v12955_v40  ;;  %11777 = vmatpush3.bf16.msra.mxu1 %v12958_v12  ;;  %v16410_v12 = vrot.slane %v9850_v15, %v9506_v35 }
0x1ed5   : > { %11816 = vmatprep.subr.bf16.mxu0 %v12957_v52  ;;  %11778 = vmatprep.subr.bf16.mxu1 %v12960_v29  ;;  %v16408_v52 = vrot.slane %v9850_v15, %v9498_v32 }
0x1ed8   : > { %11817 = vmatpush3.bf16.msra.mxu0 %v12959_v6  ;;  %11779 = vmatpush3.bf16.msra.mxu1 %v12962_v58 }
0x1ed9   : > { %11818 = vmatprep.subr.bf16.mxu0 %v12961_v48  ;;  %11780 = vmatprep.subr.bf16.mxu1 %v12964_v4 }
0x1edc   : > { %11819 = vmatpush3.bf16.msra.mxu0 %v12963_v5  ;;  %11781 = vmatpush3.bf16.msra.mxu1 %v12966_v38 }
0x1edd   : > { %11820 = vmatprep.subr.bf16.mxu0 %v12965_v10 }
0x1ee0   : > { %11821 = vmatpush3.bf16.msra.mxu0 %v12967_v43 }
0x1f68   : > { %v9706_v50 = vpop.f32.mrb[36].mxu1  ;;  %v9779_v42 = vpop.f32.mrb[28].mxu0 }
0x1f69   : > { %v9708_v55 = vpop.f32.mrb[37].mxu1  ;;  %v9781_v46 = vpop.f32.mrb[29].mxu0  ;;  %v16404_v53 = vadd.f32 %v9706_v50, %v9495_v25  ;;  %v16412_v6 = vadd.f32 %v9779_v42, %v9503_v61 }
0x1f6a   : > { %v9710_v18 = vpop.f32.mrb[38].mxu1  ;;  %v9783_v60 = vpop.f32.mrb[30].mxu0  ;;  %v16415_v29 = vadd.f32 %v9708_v55, %v16396_v31  ;;  %v16418_v48 = vadd.f32 %v9781_v46, %v16398_v56 }
0x1f6b   : > { %v9712_v2 = vpop.f32.mrb[39].mxu1  ;;  %v9785_v9 = vpop.f32.mrb[31].mxu0  ;;  %v16420_v58 = vadd.f32 %v9710_v18, %v9495_v25  ;;  %v16426_v10 = vadd.f32 %v9783_v60, %v9503_v61 }
0x1f6c   : > { %17151 = vst [vmem:[#allocation34_spill] sm:$0xff] %v16415_v29  ;;  %17152 = vst [vmem:[#allocation35_spill] sm:$0xff] %v16418_v48  ;;  %v16429_v38 = vadd.f32 %v9712_v2, %v16396_v31  ;;  %v16432_v43 = vadd.f32 %v9785_v9, %v16398_v56 }
0x1f6e   : > { %17155 = vst [vmem:[#allocation38_spill] sm:$0xff] %v16429_v38  ;;  %17156 = vst [vmem:[#allocation39_spill] sm:$0xff] %v16432_v43 }
0x1f70   : > { %v9716_v11 = vpop.f32.mrb[40].mxu1  ;;  %v9789_v17 = vpop.f32.mrb[32].mxu0 }
0x1f71   : > { %v9718_v30 = vpop.f32.mrb[41].mxu1  ;;  %v9791_v8 = vpop.f32.mrb[33].mxu0  ;;  %v16434_v50 = vadd.f32 %v9716_v11, %v9495_v25  ;;  %v16436_v42 = vadd.f32 %v9789_v17, %v9503_v61 }
0x1f72   : > { %v9720_v36 = vpop.f32.mrb[42].mxu1  ;;  %v9793_v49 = vpop.f32.mrb[34].mxu0  ;;  %v16439_v55 = vadd.f32 %v9718_v30, %v16396_v31  ;;  %v16442_v46 = vadd.f32 %v9791_v8, %v16398_v56 }
0x1f73   : > { %v9722_v41 = vpop.f32.mrb[43].mxu1  ;;  %v9795_v26 = vpop.f32.mrb[35].mxu0  ;;  %v16444_v18 = vadd.f32 %v9720_v36, %v9495_v25  ;;  %v16446_v60 = vadd.f32 %v9793_v49, %v9503_v61 }
0x1f74   : > { %17157 = vst [vmem:[#allocation40_spill] sm:$0xff] %v16439_v55  ;;  %17158 = vst [vmem:[#allocation41_spill] sm:$0xff] %v16442_v46  ;;  %v16449_v2 = vadd.f32 %v9722_v41, %v16396_v31  ;;  %v16452_v9 = vadd.f32 %v9795_v26, %v16398_v56 }
0x1f76   : > { %17159 = vst [vmem:[#allocation42_spill] sm:$0xff] %v16449_v2  ;;  %17160 = vst [vmem:[#allocation43_spill] sm:$0xff] %v16452_v9 }
0x1f7c   : > { %v9726_v3 = vpop.f32.mrb[44].mxu1  ;;  %v9799_v39 = vpop.f32.mrb[36].mxu0 }
0x1f7d   : > { %v9728_v23 = vpop.f32.mrb[45].mxu1  ;;  %v9801_v34 = vpop.f32.mrb[37].mxu0  ;;  %v16454_v11 = vadd.f32 %v9726_v3, %v9495_v25  ;;  %v16456_v17 = vadd.f32 %v9799_v39, %v9503_v61 }
0x1f7e   : > { %v9730_v16 = vpop.f32.mrb[46].mxu1  ;;  %v9803_v62 = vpop.f32.mrb[38].mxu0  ;;  %v16459_v30 = vadd.f32 %v9728_v23, %v16396_v31  ;;  %v16462_v8 = vadd.f32 %v9801_v34, %v16398_v56 }
0x1f7f   : > { %v9732_v7 = vpop.f32.mrb[47].mxu1  ;;  %v9805_v1 = vpop.f32.mrb[39].mxu0  ;;  %v16464_v36 = vadd.f32 %v9730_v16, %v9495_v25  ;;  %v16466_v49 = vadd.f32 %v9803_v62, %v9503_v61 }
0x1f80   : > { %17161 = vst [vmem:[#allocation44_spill] sm:$0xff] %v16459_v30  ;;  %17162 = vst [vmem:[#allocation45_spill] sm:$0xff] %v16462_v8  ;;  %v16469_v41 = vadd.f32 %v9732_v7, %v16396_v31  ;;  %v16472_v26 = vadd.f32 %v9805_v1, %v16398_v56 }
0x1f82   : > { %17163 = vst [vmem:[#allocation46_spill] sm:$0xff] %v16469_v41  ;;  %17164 = vst [vmem:[#allocation47_spill] sm:$0xff] %v16472_v26 }
0x1f84   : > { %v9736_v59 = vpop.f32.mrb[48].mxu1  ;;  %v9809_v57 = vpop.f32.mrb[40].mxu0 }
0x1f85   : > { %v9738_v33 = vpop.f32.mrb[49].mxu1  ;;  %v16400_v0 = vpop.f32.mrb[41].mxu0  ;;  %v16474_v28 = vadd.f32 %v9736_v59, %v9495_v25  ;;  %v16476_v39 = vadd.f32 %v9809_v57, %v9503_v61 }
0x1f86   : > { %17150 = vst [vmem:[#allocation33_spill] sm:$0xff] %v16400_v0  ;;  %v9740_v20 = vpop.f32.mrb[50].mxu1  ;;  %v9813_v40 = vpop.f32.mrb[42].mxu0  ;;  %v16479_v23 = vadd.f32 %v9738_v33, %v16396_v31 }
0x1f87   : > { %v16422_v5 = vpop.f32.mrb[51].mxu1  ;;  %v16424_v4 = vpop.f32.mrb[43].mxu0  ;;  %17165 = vst [vmem:[#allocation48_spill] sm:$0xff] %v16474_v28  ;;  %17166 = vst [vmem:[#allocation49_spill] sm:$0xff] %v16476_v39  ;;  %v16487_v62 = vadd.f32 %v9740_v20, %v9495_v25  ;;  %v16489_v63 = vadd.f32 %v9813_v40, %v9503_v61 }
0x1f88   : > { %17153 = vst [vmem:[#allocation36_spill] sm:$0xff] %v16422_v5  ;;  %17154 = vst [vmem:[#allocation37_spill] sm:$0xff] %v16424_v4 }
0x1f89   : > { %17167 = vst [vmem:[#allocation50_spill] sm:$0xff] %v16479_v23  ;;  %17168 = vst [vmem:[#allocation51_spill] sm:$0xff] %v16487_v62 }
0x1f8a   : > { %17169 = vst [vmem:[#allocation52_spill] sm:$0xff] %v16489_v63 }
0x1f8c   : > { %v10066_v19 = vpop.f32.mrb[52].mxu1  ;;  %v10139_v3 = vpop.f32.mrb[44].mxu0 }
0x1f8d   : > { %v16482_v34 = vadd.f32 %v10066_v19, %v16402_v27  ;;  %v16485_v51 = vadd.f32 %v10139_v3, %v16406_v21  ;;  %v10068_v24 = vpop.f32.mrb[53].mxu1  ;;  %v10141_v16 = vpop.f32.mrb[45].mxu0 }
0x1f8e   : > { %v16492_v32 = vadd.f32 %v10068_v24, %v16408_v52  ;;  %v16495_v35 = vadd.f32 %v10141_v16, %v16410_v12  ;;  %v10070_v7 = vpop.f32.mrb[54].mxu1  ;;  %v10143_v1 = vpop.f32.mrb[46].mxu0 }
0x1f8f   : > { %v10178_v15 = vmul.f32 %v16482_v34, %v16482_v34  ;;  %v10180_v59 = vmul.f32 %v16485_v51, %v16485_v51  ;;  %v16502_v57 = vadd.f32 %v10070_v7, %v16402_v27  ;;  %v16505_v25 = vadd.f32 %v10143_v1, %v16406_v21  ;;  %v10072_v61 = vpop.f32.mrb[55].mxu1  ;;  %v10145_v33 = vpop.f32.mrb[47].mxu0 }
0x1f90   : > { %17170 = vst [vmem:[#allocation53_spill] sm:$0xff] %v16495_v35  ;;  %v10179_v20 = vmul.f32 %v16492_v32, %v16492_v32  ;;  %v10181_v40 = vmul.f32 %v16495_v35, %v16495_v35  ;;  %v16512_v19 = vadd.f32 %v10072_v61, %v16408_v52  ;;  %v16515_v3 = vadd.f32 %v10145_v33, %v16410_v12 }
0x1f91   : > { %v10210_v24 = vmul.f32 %v10178_v15, %v16482_v34  ;;  %v10212_v16 = vmul.f32 %v10180_v59, %v16485_v51  ;;  %v10182_v7 = vmul.f32 %v16502_v57, %v16502_v57  ;;  %v10184_v1 = vmul.f32 %v16505_v25, %v16505_v25 }
0x1f92   : > { %17171 = vst [vmem:[#allocation54_spill] sm:$0xff] %v16515_v3  ;;  %v10211_v14 = vmul.f32 %v10179_v20, %v16492_v32  ;;  %v10213_v37 = vmul.f32 %v10181_v40, %v16495_v35  ;;  %v10183_v61 = vmul.f32 %v16512_v19, %v16512_v19  ;;  %v10185_v33 = vmul.f32 %v16515_v3, %v16515_v3 }
0x1f93   : > { %v10242_v22 = vmul.f32 0.044715, %v10210_v24  ;;  %v10244_v15 = vmul.f32 0.044715, %v10212_v16  ;;  %v10214_v59 = vmul.f32 %v10182_v7, %v16502_v57  ;;  %v10216_v47 = vmul.f32 %v10184_v1, %v16505_v25 }
0x1f94   : > { %v10243_v45 = vmul.f32 0.044715, %v10211_v14  ;;  %v10245_v44 = vmul.f32 0.044715, %v10213_v37  ;;  %v10215_v54 = vmul.f32 %v10183_v61, %v16512_v19  ;;  %v10217_v20 = vmul.f32 %v10185_v33, %v16515_v3  ;;  %v10076_v13 = vpop.f32.mrb[56].mxu1  ;;  %v10149_v40 = vpop.f32.mrb[48].mxu0 }
0x1f95   : > { %v10274_v4 = vadd.f32 %v10242_v22, %v16482_v34  ;;  %v10276_v23 = vadd.f32 %v10244_v15, %v16485_v51  ;;  %v10246_v0 = vmul.f32 0.044715, %v10214_v59  ;;  %v10248_v56 = vmul.f32 0.044715, %v10216_v47  ;;  %v10078_v24 = vpop.f32.mrb[57].mxu1  ;;  %v10151_v16 = vpop.f32.mrb[49].mxu0 }
0x1f96   : > { %v10275_v7 = vadd.f32 %v10243_v45, %v16492_v32  ;;  %v10277_v1 = vadd.f32 %v10245_v44, %v16495_v35  ;;  %v10247_v14 = vmul.f32 0.044715, %v10215_v54  ;;  %v10249_v37 = vmul.f32 0.044715, %v10217_v20  ;;  %v10080_v5 = vpop.f32.mrb[58].mxu1  ;;  %v10153_v61 = vpop.f32.mrb[50].mxu0 }
0x1f97   : > { %v10306_v31 = vmul.f32 0.7978846, %v10274_v4  ;;  %v10308_v33 = vmul.f32 0.7978846, %v10276_v23  ;;  %v10278_v26 = vadd.f32 %v10246_v0, %v16502_v57  ;;  %v10280_v22 = vadd.f32 %v10248_v56, %v16505_v25  ;;  %v10082_v8 = vpop.f32.mrb[59].mxu1  ;;  %v10155_v15 = vpop.f32.mrb[51].mxu0 }
0x1f98   : > { %v10307_v59 = vmul.f32 0.7978846, %v10275_v7  ;;  %v10309_v47 = vmul.f32 0.7978846, %v10277_v1  ;;  %v10279_v63 = vadd.f32 %v10247_v14, %v16512_v19  ;;  %v10281_v45 = vadd.f32 %v10249_v37, %v16515_v3 }
0x1f99   : > { %13272 = vtanh.f32 %v10306_v31  ;;  %v10310_v44 = vmul.f32 0.7978846, %v10278_v26  ;;  %v10312_v54 = vmul.f32 0.7978846, %v10280_v22  ;;  %v16542_v20 = vadd.f32 %v10076_v13, %v16402_v27 }
0x1f9a   : > { %13274 = vtanh.f32 %v10308_v33  ;;  %v10311_v4 = vmul.f32 0.7978846, %v10279_v63  ;;  %v10313_v23 = vmul.f32 0.7978846, %v10281_v45  ;;  %v16545_v0 = vadd.f32 %v10149_v40, %v16406_v21 }
0x1f9b   : > { %13276 = vtanh.f32 %v10307_v59  ;;  %v10186_v56 = vmul.f32 %v16542_v20, %v16542_v20  ;;  %v16550_v7 = vadd.f32 %v10078_v24, %v16408_v52  ;;  %v16553_v31 = vadd.f32 %v10151_v16, %v16410_v12 }
0x1f9c   : > { %13278 = vtanh.f32 %v10309_v47  ;;  %v10188_v13 = vmul.f32 %v16545_v0, %v16545_v0  ;;  %v16558_v26 = vadd.f32 %v10080_v5, %v16402_v27  ;;  %v16561_v63 = vadd.f32 %v10153_v61, %v16406_v21  ;;  %v16563_v40 = vpop.f32.mrb[60].mxu1  ;;  %v16565_v1 = vpop.f32.mrb[52].mxu0 }
0x1f9d   : > { %17172 = vst [vmem:[#allocation55_spill] sm:$0xff] %v16550_v7  ;;  %17173 = vst [vmem:[#allocation56_spill] sm:$0xff] %v16553_v31  ;;  %13280 = vtanh.f32 %v10310_v44  ;;  %v10218_v24 = vmul.f32 %v10186_v56, %v16542_v20  ;;  %v10187_v16 = vmul.f32 %v16550_v7, %v16550_v7  ;;  %v10189_v14 = vmul.f32 %v16553_v31, %v16553_v31  ;;  %v16572_v37 = vpop.f32.mrb[61].mxu1  ;;  %v16574_v5 = vpop.f32.mrb[53].mxu0 }
0x1f9e   : > { %13282 = vtanh.f32 %v10312_v54  ;;  %v10220_v61 = vmul.f32 %v10188_v13, %v16545_v0  ;;  %v10190_v33 = vmul.f32 %v16558_v26, %v16558_v26  ;;  %v10192_v22 = vmul.f32 %v16561_v63, %v16561_v63  ;;  %v16581_v59 = vpop.f32.mrb[62].mxu1  ;;  %v16583_v47 = vpop.f32.mrb[54].mxu0 }
0x1f9f   : > { %13284 = vtanh.f32 %v10311_v4  ;;  %v10250_v45 = vmul.f32 0.044715, %v10218_v24  ;;  %v10219_v44 = vmul.f32 %v10187_v16, %v16550_v7  ;;  %v10221_v56 = vmul.f32 %v10189_v14, %v16553_v31  ;;  %v16587_v62 = vpop.f32.mrb[63].mxu1  ;;  %v16589_v54 = vpop.f32.mrb[55].mxu0 }
0x1fa0   : > { %13286 = vtanh.f32 %v10313_v23  ;;  %v10252_v13 = vmul.f32 0.044715, %v10220_v61  ;;  %v10222_v41 = vmul.f32 %v10190_v33, %v16558_v26  ;;  %v10224_v30 = vmul.f32 %v10192_v22, %v16561_v63 }
0x1fa1   : > { %v10282_v9 = vadd.f32 %v10250_v45, %v16542_v20  ;;  %v10251_v46 = vmul.f32 0.044715, %v10219_v44  ;;  %v10253_v2 = vmul.f32 0.044715, %v10221_v56  ;;  %v16595_v4 = vadd.f32 %v10082_v8, %v16408_v52 }
0x1fa2   : > { %v10284_v24 = vadd.f32 %v10252_v13, %v16545_v0  ;;  %v10254_v16 = vmul.f32 0.044715, %v10222_v41  ;;  %v10256_v14 = vmul.f32 0.044715, %v10224_v30  ;;  %v16599_v55 = vadd.f32 %v10155_v15, %v16410_v12 }
0x1fa3   : > { %v13273_v23 = vpop.eup %13272  ;;  %v10314_v61 = vmul.f32 0.7978846, %v10282_v9  ;;  %v10283_v33 = vadd.f32 %v10251_v46, %v16550_v7  ;;  %v10285_v22 = vadd.f32 %v10253_v2, %v16553_v31  ;;  %v10191_v45 = vmul.f32 %v16595_v4, %v16595_v4 }
0x1fa4   : > { %17174 = vst [vmem:[#allocation57_spill] sm:$0xff] %v16599_v55  ;;  %v13275_v44 = vpop.eup %13274  ;;  %v10370_v56 = vadd.f32 1.0, %v13273_v23  ;;  %v10316_v8 = vmul.f32 0.7978846, %v10284_v24  ;;  %v10286_v43 = vadd.f32 %v10254_v16, %v16558_v26  ;;  %v10288_v41 = vadd.f32 %v10256_v14, %v16561_v63  ;;  %v16607_v30 = vpop.f32.mrb[64].mxu1 }
0x1fa5   : > { %v16609_v15 = vpop.f32.mrb[56].mxu0  ;;  %v16611_v13 = vpop.eup %13276  ;;  %v10372_v9 = vadd.f32 1.0, %v13275_v44  ;;  %13288 = vtanh.f32 %v10314_v61  ;;  %v10315_v46 = vmul.f32 0.7978846, %v10283_v33  ;;  %v10317_v2 = vmul.f32 0.7978846, %v10285_v22 }
0x1fa6   : > { %v16613_v31 = vpop.f32.mrb[65].mxu1  ;;  %v16615_v7 = vpop.eup %13278  ;;  %v10402_v23 = vmul.f32 0.5, %v10370_v56  ;;  %13290 = vtanh.f32 %v10316_v8  ;;  %v10318_v24 = vmul.f32 0.7978846, %v10286_v43  ;;  %v10320_v16 = vmul.f32 0.7978846, %v10288_v41 }
0x1fa7   : > { %v16617_v48 = vpop.f32.mrb[57].mxu0  ;;  %v13281_v14 = vpop.eup %13280  ;;  %v10404_v3 = vmul.f32 0.5, %v10372_v9  ;;  %13292 = vtanh.f32 %v10315_v46  ;;  %v10223_v35 = vmul.f32 %v10191_v45, %v16595_v4  ;;  %v10193_v61 = vmul.f32 %v16599_v55, %v16599_v55 }
0x1fa8   : > { %v16622_v33 = vpop.f32.mrb[66].mxu1  ;;  %v16624_v22 = vpop.f32.mrb[58].mxu0  ;;  %v10434_v56 = vmul.f32 %v10402_v23, %v16482_v34  ;;  %v10374_v8 = vadd.f32 1.0, %v13281_v14  ;;  %13294 = vtanh.f32 %v10317_v2  ;;  %v16629_v43 = vadd.f32 %v16563_v40, %v16402_v27 }
0x1fa9   : > { %v13283_v44 = vpop.eup %13282  ;;  %v16631_v41 = vpop.f32.mrb[67].mxu1  ;;  %v10436_v46 = vmul.f32 %v10404_v3, %v16485_v51  ;;  %13296 = vtanh.f32 %v10318_v24  ;;  %v10255_v28 = vmul.f32 0.044715, %v10223_v35  ;;  %v10225_v40 = vmul.f32 %v10193_v61, %v16599_v55 }
0x1faa   : > { %v16633_v9 = vpop.f32.mrb[59].mxu0  ;;  %v16635_v45 = vpop.eup %13284  ;;  %v10376_v39 = vadd.f32 1.0, %v13283_v44  ;;  %v16641_v34 = vmul.f32 %v10434_v56, %v16404_v53  ;;  %v10406_v2 = vmul.f32 0.5, %v10374_v8  ;;  %13298 = vtanh.f32 %v10320_v16 }
0x1fab   : > { %v16638_v38 = vpop.eup %13286  ;;  %v16645_v23 = vmul.f32 %v10436_v46, %v16412_v6  ;;  %v10287_v29 = vadd.f32 %v10255_v28, %v16595_v4  ;;  %v10194_v51 = vmul.f32 %v16629_v43, %v16629_v43  ;;  %v10257_v3 = vmul.f32 0.044715, %v10225_v40 }
0x1fac   : > { %v10408_v14 = vmul.f32 0.5, %v10376_v39  ;;  %v10438_v35 = vmul.f32 %v10406_v2, %v16502_v57  ;;  %v16653_v53 = vadd.f32 %v16565_v1, %v16406_v21  ;;  %v16657_v24 = vadd.f32 %v16572_v37, %v16408_v52 }
0x1fad   : > { %17175 = vst [vmem:[#allocation58_spill] sm:$0xff] %v16645_v23  ;;  %v10319_v16 = vmul.f32 0.7978846, %v10287_v29  ;;  %v10226_v39 = vmul.f32 %v10194_v51, %v16629_v43  ;;  %v16663_v28 = vadd.f32 %v16574_v5, %v16410_v12  ;;  %v10289_v61 = vadd.f32 %v10257_v3, %v16599_v55 }
0x1fae   : > { %v10440_v6 = vmul.f32 %v10408_v14, %v16505_v25  ;;  %v16666_v57 = vmul.f32 %v10438_v35, %v16420_v58  ;;  %v10196_v1 = vmul.f32 %v16653_v53, %v16653_v53  ;;  %v10195_v37 = vmul.f32 %v16657_v24, %v16657_v24 }
0x1faf   : > { %v13289_v44 = vpop.eup %13288  ;;  %13300 = vtanh.f32 %v10319_v16  ;;  %v10258_v25 = vmul.f32 0.044715, %v10226_v39  ;;  %v10197_v5 = vmul.f32 %v16663_v28, %v16663_v28  ;;  %v10321_v46 = vmul.f32 0.7978846, %v10289_v61 }
0x1fb0   : > { %v16674_v29 = vmul.f32 %v10440_v6, %v16426_v10  ;;  %v13291_v56 = vpop.eup %13290  ;;  %v10378_v8 = vadd.f32 1.0, %v13289_v44  ;;  %v10228_v2 = vmul.f32 %v10196_v1, %v16653_v53  ;;  %v10227_v35 = vmul.f32 %v10195_v37, %v16657_v24 }
0x1fb1   : > { %v16681_v40 = vpop.eup %13292  ;;  %v10380_v10 = vadd.f32 1.0, %v13291_v56  ;;  %v10290_v51 = vadd.f32 %v10258_v25, %v16629_v43  ;;  %13302 = vtanh.f32 %v10321_v46  ;;  %v10229_v39 = vmul.f32 %v10197_v5, %v16663_v28 }
0x1fb2   : > { %v16687_v3 = vpop.eup %13294  ;;  %v10410_v6 = vmul.f32 0.5, %v10378_v8  ;;  %v10260_v16 = vmul.f32 0.044715, %v10228_v2  ;;  %v10259_v58 = vmul.f32 0.044715, %v10227_v35  ;;  %v16692_v55 = vadd.f32 %v16581_v59, %v16402_v27 }
0x1fb3   : > { %v13297_v61 = vpop.eup %13296  ;;  %v10412_v44 = vmul.f32 0.5, %v10380_v10  ;;  %v10322_v1 = vmul.f32 0.7978846, %v10290_v51  ;;  %v10261_v23 = vmul.f32 0.044715, %v10229_v39 }
0x1fb4   : > { %v13299_v56 = vpop.eup %13298  ;;  %v10442_v25 = vmul.f32 %v10410_v6, %v16542_v20  ;;  %v10382_v14 = vadd.f32 1.0, %v13297_v61  ;;  %v10292_v37 = vadd.f32 %v10260_v16, %v16653_v53  ;;  %v10291_v5 = vadd.f32 %v10259_v58, %v16657_v24 }
0x1fb5   : > { %v10444_v8 = vmul.f32 %v10412_v44, %v16545_v0  ;;  %v10384_v46 = vadd.f32 1.0, %v13299_v56  ;;  %13304 = vtanh.f32 %v10322_v1  ;;  %v10293_v59 = vadd.f32 %v10261_v23, %v16663_v28 }
0x1fb6   : > { %v16699_v2 = vmul.f32 %v10442_v25, %v16434_v50  ;;  %v10414_v10 = vmul.f32 0.5, %v10382_v14  ;;  %v10324_v51 = vmul.f32 0.7978846, %v10292_v37  ;;  %v10323_v6 = vmul.f32 0.7978846, %v10291_v5 }
0x1fb7   : > { %v16703_v35 = vmul.f32 %v10444_v8, %v16436_v42  ;;  %v10416_v20 = vmul.f32 0.5, %v10384_v46  ;;  %v10198_v16 = vmul.f32 %v16692_v55, %v16692_v55  ;;  %v10325_v39 = vmul.f32 0.7978846, %v10293_v59 }
0x1fb8   : > { %v10446_v0 = vmul.f32 %v10414_v10, %v16558_v26  ;;  %13306 = vtanh.f32 %v10324_v51  ;;  %v16710_v50 = vadd.f32 %v16583_v47, %v16406_v21  ;;  %v16718_v14 = vadd.f32 %v16587_v62, %v16408_v52 }
0x1fb9   : > { %v16712_v58 = vpop.eup %13300  ;;  %v10448_v23 = vmul.f32 %v10416_v20, %v16561_v63  ;;  %13308 = vtanh.f32 %v10323_v6  ;;  %v10230_v42 = vmul.f32 %v10198_v16, %v16692_v55  ;;  %v16727_v47 = vadd.f32 %v16589_v54, %v16410_v12 }
0x1fba   : > { %v16721_v61 = vmul.f32 %v10446_v0, %v16444_v18  ;;  %13310 = vtanh.f32 %v10325_v39  ;;  %v10200_v26 = vmul.f32 %v16710_v50, %v16710_v50  ;;  %v10199_v1 = vmul.f32 %v16718_v14, %v16718_v14 }
0x1fbb   : > { %v16730_v63 = vmul.f32 %v10448_v23, %v16446_v60  ;;  %v10262_v44 = vmul.f32 0.044715, %v10230_v42  ;;  %v16736_v62 = vadd.f32 %v16607_v30, %v16402_v27  ;;  %v16738_v18 = vpop.eup %13302  ;;  %v10201_v54 = vmul.f32 %v16727_v47, %v16727_v47 }
0x1fbc   : > { %v10502_v56 = vpack.c.bf16 %v16721_v61, %v16699_v2  ;;  %v10232_v25 = vmul.f32 %v10200_v26, %v16710_v50  ;;  %v16747_v60 = vadd.f32 %v16609_v15, %v16406_v21  ;;  %v10231_v8 = vmul.f32 %v10199_v1, %v16718_v14  ;;  %v17199_v61 = vld [vmem:[#allocation47_spill] sm:$0xff] }
0x1fbd   : > { %v10294_v30 = vadd.f32 %v10262_v44, %v16692_v55  ;;  %v10202_v46 = vmul.f32 %v16736_v62, %v16736_v62  ;;  %v10233_v10 = vmul.f32 %v10201_v54, %v16727_v47  ;;  %v16760_v15 = vadd.f32 %v16613_v31, %v16408_v52 }
0x1fbe   : > { %v10264_v5 = vmul.f32 0.044715, %v10232_v25  ;;  %v10204_v51 = vmul.f32 %v16747_v60, %v16747_v60  ;;  %v10263_v6 = vmul.f32 0.044715, %v10231_v8  ;;  %v16765_v0 = vadd.f32 %v16617_v48, %v16410_v12 }
0x1fbf   : > { %v13305_v59 = vpop.eup %13304  ;;  %v10326_v20 = vmul.f32 0.7978846, %v10294_v30  ;;  %v10234_v16 = vmul.f32 %v10202_v46, %v16736_v62  ;;  %v10265_v42 = vmul.f32 0.044715, %v10233_v10  ;;  %v10203_v1 = vmul.f32 %v16760_v15, %v16760_v15 }
0x1fc0   : > { %v10386_v39 = vadd.f32 1.0, %v13305_v59  ;;  %v10296_v23 = vadd.f32 %v10264_v5, %v16710_v50  ;;  %v10236_v26 = vmul.f32 %v10204_v51, %v16747_v60  ;;  %v10295_v44 = vadd.f32 %v10263_v6, %v16718_v14 }
0x1fc1   : > { %13312 = vtanh.f32 %v10326_v20  ;;  %v10266_v31 = vmul.f32 0.044715, %v10234_v16  ;;  %v10297_v8 = vadd.f32 %v10265_v42, %v16727_v47  ;;  %v10235_v51 = vmul.f32 %v10203_v1, %v16760_v15 }
0x1fc2   : > { %v13307_v25 = vpop.eup %13306  ;;  %v10418_v54 = vmul.f32 0.5, %v10386_v39  ;;  %v10328_v30 = vmul.f32 0.7978846, %v10296_v23  ;;  %v10268_v48 = vmul.f32 0.044715, %v10236_v26 }
0x1fc3   : > { %v16773_v46 = vpop.eup %13308  ;;  %v10388_v59 = vadd.f32 1.0, %v13307_v25  ;;  %v10327_v5 = vmul.f32 0.7978846, %v10295_v44  ;;  %v10298_v10 = vadd.f32 %v10266_v31, %v16736_v62  ;;  %v10329_v16 = vmul.f32 0.7978846, %v10297_v8 }
0x1fc4   : > { %v16777_v20 = vpop.eup %13310  ;;  %v10450_v6 = vmul.f32 %v10418_v54, %v16629_v43  ;;  %13314 = vtanh.f32 %v10328_v30  ;;  %v10300_v39 = vadd.f32 %v10268_v48, %v16747_v60  ;;  %v10267_v26 = vmul.f32 0.044715, %v10235_v51 }
0x1fc5   : > { %v10420_v23 = vmul.f32 0.5, %v10388_v59  ;;  %13316 = vtanh.f32 %v10327_v5  ;;  %v10330_v42 = vmul.f32 0.7978846, %v10298_v10  ;;  %v10205_v31 = vmul.f32 %v16765_v0, %v16765_v0 }
0x1fc6   : > { %v16782_v37 = vmul.f32 %v10450_v6, %v16454_v11  ;;  %13318 = vtanh.f32 %v10329_v16  ;;  %v10332_v44 = vmul.f32 0.7978846, %v10300_v39  ;;  %v10299_v43 = vadd.f32 %v10267_v26, %v16760_v15 }
0x1fc7   : > { %v10452_v1 = vmul.f32 %v10420_v23, %v16653_v53  ;;  %13320 = vtanh.f32 %v10330_v42  ;;  %v16790_v25 = vadd.f32 %v16622_v33, %v16402_v27  ;;  %v10237_v54 = vmul.f32 %v10205_v31, %v16765_v0 }
0x1fc8   : > { %13322 = vtanh.f32 %v10332_v44  ;;  %v16795_v11 = vadd.f32 %v16624_v22, %v16406_v21  ;;  %v16799_v30 = vadd.f32 %v16631_v41, %v16408_v52  ;;  %v10331_v8 = vmul.f32 0.7978846, %v10299_v43 }
0x1fc9   : > { %v16802_v53 = vmul.f32 %v10452_v1, %v16456_v17  ;;  %v10206_v48 = vmul.f32 %v16790_v25, %v16790_v25  ;;  %v16808_v27 = vadd.f32 %v16633_v9, %v16410_v12  ;;  %v10269_v33 = vmul.f32 0.044715, %v10237_v54 }
0x1fca   : > { %v10208_v21 = vmul.f32 %v16795_v11, %v16795_v11  ;;  %v10207_v22 = vmul.f32 %v16799_v30, %v16799_v30  ;;  %v10371_v52 = vadd.f32 1.0, %v16611_v13  ;;  %13324 = vtanh.f32 %v10331_v8 }
0x1fcb   : > { %v13313_v41 = vpop.eup %13312  ;;  %v10238_v17 = vmul.f32 %v10206_v48, %v16790_v25  ;;  %v10209_v59 = vmul.f32 %v16808_v27, %v16808_v27  ;;  %v10375_v5 = vadd.f32 1.0, %v16635_v45  ;;  %v10301_v9 = vadd.f32 %v10269_v33, %v16765_v0 }
0x1fcc   : > { %v10390_v12 = vadd.f32 1.0, %v13313_v41  ;;  %v10240_v10 = vmul.f32 %v10208_v21, %v16795_v11  ;;  %v10239_v51 = vmul.f32 %v10207_v22, %v16799_v30  ;;  %v10403_v13 = vmul.f32 0.5, %v10371_v52 }
0x1fcd   : > { %v10270_v6 = vmul.f32 0.044715, %v10238_v17  ;;  %v10241_v16 = vmul.f32 %v10209_v59, %v16808_v27  ;;  %v10407_v39 = vmul.f32 0.5, %v10375_v5  ;;  %v10333_v26 = vmul.f32 0.7978846, %v10301_v9 }
0x1fce   : > { %v13315_v23 = vpop.eup %13314  ;;  %v10422_v42 = vmul.f32 0.5, %v10390_v12  ;;  %v10272_v44 = vmul.f32 0.044715, %v10240_v10  ;;  %v10373_v31 = vadd.f32 1.0, %v16615_v7  ;;  %v10271_v54 = vmul.f32 0.044715, %v10239_v51 }
0x1fcf   : > { %v13317_v1 = vpop.eup %13316  ;;  %v10392_v45 = vadd.f32 1.0, %v13315_v23  ;;  %v10302_v43 = vadd.f32 %v10270_v6, %v16790_v25  ;;  %v10273_v8 = vmul.f32 0.044715, %v10241_v16  ;;  %13326 = vtanh.f32 %v10333_v26 }
0x1fd0   : > { %v16825_v48 = vpop.eup %13318  ;;  %v10454_v33 = vmul.f32 %v10422_v42, %v16692_v55  ;;  %v10304_v21 = vadd.f32 %v10272_v44, %v16795_v11  ;;  %v10435_v22 = vmul.f32 %v10403_v13, %v16492_v32  ;;  %v10303_v7 = vadd.f32 %v10271_v54, %v16799_v30  ;;  %v17176_v44 = vld [vmem:[#allocation34_spill] sm:$0xff] }
0x1fd1   : > { %v13321_v52 = vpop.eup %13320  ;;  %v10424_v41 = vmul.f32 0.5, %v10392_v45  ;;  %v10334_v17 = vmul.f32 0.7978846, %v10302_v43  ;;  %v10305_v59 = vadd.f32 %v10273_v8, %v16808_v27  ;;  %v10439_v55 = vmul.f32 %v10407_v39, %v16512_v19  ;;  %v17177_v39 = vld [vmem:[#allocation38_spill] sm:$0xff] }
0x1fd2   : > { %v13323_v5 = vpop.eup %13322  ;;  %v16833_v12 = vmul.f32 %v10454_v33, %v16464_v36  ;;  %v10394_v9 = vadd.f32 1.0, %v13321_v52  ;;  %v10336_v10 = vmul.f32 0.7978846, %v10304_v21  ;;  %v10335_v32 = vmul.f32 0.7978846, %v10303_v7  ;;  %v17178_v21 = vld [vmem:[#allocation48_spill] sm:$0xff] }
0x1fd3   : > { %v10456_v51 = vmul.f32 %v10424_v41, %v16710_v50  ;;  %v10396_v6 = vadd.f32 1.0, %v13323_v5  ;;  %13328 = vtanh.f32 %v10334_v17  ;;  %v10337_v23 = vmul.f32 0.7978846, %v10305_v59  ;;  %v17179_v17 = vld [vmem:[#allocation49_spill] sm:$0xff] }
0x1fd4   : > { %v10506_v16 = vpack.c.bf16 %v16833_v12, %v16782_v37  ;;  %v10426_v13 = vmul.f32 0.5, %v10394_v9  ;;  %13330 = vtanh.f32 %v10336_v10  ;;  %v16839_v42 = vpop.eup %13324  ;;  %v10467_v19 = vmul.f32 %v10435_v22, %v17176_v44  ;;  %v17180_v59 = vld [vmem:[#allocation53_spill] sm:$0xff]  ;;  %v16923_v37 = vld [vmem:[%s17207_s22] ss:$0 sm:$0xff] }
0x1fd5   : > { %v16842_v36 = vmul.f32 %v10456_v51, %v16466_v49  ;;  %v10428_v26 = vmul.f32 0.5, %v10396_v6  ;;  %13332 = vtanh.f32 %v10335_v32  ;;  %v10471_v45 = vmul.f32 %v10439_v55, %v17177_v39  ;;  %v17182_v6 = vld [vmem:[#allocation35_spill] sm:$0xff] }
0x1fd6   : > { %v10458_v50 = vmul.f32 %v10426_v13, %v16736_v62  ;;  %13334 = vtanh.f32 %v10337_v23  ;;  %v10377_v43 = vadd.f32 1.0, %v16638_v38  ;;  %v10405_v33 = vmul.f32 0.5, %v10373_v31  ;;  %v17184_v13 = vld [vmem:[#allocation55_spill] sm:$0xff] }
0x1fd7   : > { %v10508_v54 = vpack.c.bf16 %v16842_v36, %v16802_v53  ;;  %v10460_v8 = vmul.f32 %v10428_v26, %v16747_v60  ;;  %v10379_v49 = vadd.f32 1.0, %v16681_v40  ;;  %v10499_v41 = vpack.c.bf16 %v10471_v45, %v10467_v19  ;;  %v17181_v60 = vld [vmem:[#allocation54_spill] sm:$0xff] }
0x1fd8   : > { %v16853_v52 = vmul.f32 %v10458_v50, %v17178_v21  ;;  %v10409_v22 = vmul.f32 0.5, %v10377_v43  ;;  %v10383_v62 = vadd.f32 1.0, %v16712_v58  ;;  %v10437_v38 = vmul.f32 %v10405_v33, %v17180_v59 }
0x1fd9   : > { %v16857_v7 = vmul.f32 %v10460_v8, %v17179_v17  ;;  %v10411_v5 = vmul.f32 0.5, %v10379_v49  ;;  %v10381_v9 = vadd.f32 1.0, %v16687_v3  ;;  %v13327_v10 = vpop.eup %13326  ;;  %10809 = vmatprep.mubr.bf16.mxu1 %v10499_v41  ;;  %v10385_v55 = vadd.f32 1.0, %v16738_v18  ;;  %v17185_v3 = vld [vmem:[#allocation39_spill] sm:$0xff]  ;;  %v17186_v18 = vld [vmem:[#allocation40_spill] sm:$0xff] }
0x1fda   : > { %v10441_v31 = vmul.f32 %v10409_v22, %v17181_v60  ;;  %v10415_v40 = vmul.f32 0.5, %v10383_v62  ;;  %v10387_v51 = vadd.f32 1.0, %v16773_v46  ;;  %v10469_v32 = vmul.f32 %v10437_v38, %v17182_v6  ;;  %v17187_v46 = vld [vmem:[#allocation56_spill] sm:$0xff]  ;;  %v17188_v22 = vld [vmem:[#allocation42_spill] sm:$0xff] }
0x1fdb   : > { %v17183_v58 = vpack.c.bf16 %v16666_v57, %v16641_v34  ;;  %v10443_v23 = vmul.f32 %v10411_v5, %v17184_v13  ;;  %v10413_v26 = vmul.f32 0.5, %v10381_v9  ;;  %v10391_v44 = vadd.f32 1.0, %v13317_v1  ;;  %v17189_v1 = vld [vmem:[#allocation57_spill] sm:$0xff] }
0x1fdc   : > { %v10473_v19 = vmul.f32 %v10441_v31, %v17185_v3  ;;  %v10447_v50 = vmul.f32 %v10415_v40, %v16595_v4  ;;  %v10417_v39 = vmul.f32 0.5, %v10385_v55  ;;  %v10419_v45 = vmul.f32 0.5, %v10387_v51  ;;  %v17190_v4 = vld [vmem:[#allocation41_spill] sm:$0xff] }
0x1fdd   : > { %10810 = vmatmul.mubr.bf16.vlgmr.msra.gmra.mrb[68].mxu1 %v17183_v58  ;;  %v13329_v43 = vpop.eup %13328  ;;  %v10475_v8 = vmul.f32 %v10443_v23, %v17186_v18  ;;  %v10445_v33 = vmul.f32 %v10413_v26, %v17187_v46  ;;  %v10423_v49 = vmul.f32 0.5, %v10391_v44  ;;  %v10389_v21 = vadd.f32 1.0, %v16777_v20  ;;  %v17191_v20 = vld [vmem:[#allocation43_spill] sm:$0xff]  ;;  %v17192_v58 = vld [vmem:[#allocation58_spill] sm:$0xff]  ;;  %v17194_v23 = vld [vmem:[#allocation44_spill] sm:$0xff] }
0x1fde   : > { %v13331_v34 = vpop.eup %13330  ;;  %v10398_v57 = vadd.f32 1.0, %v13329_v43  ;;  %v10501_v41 = vpack.c.bf16 %v10473_v19, %v10469_v32  ;;  %v10479_v62 = vmul.f32 %v10447_v50, %v17188_v22  ;;  %v10449_v17 = vmul.f32 %v10417_v39, %v17189_v1  ;;  %v17195_v44 = vld [vmem:[#allocation46_spill] sm:$0xff]  ;;  %v17196_v18 = vld [vmem:[#allocation51_spill] sm:$0xff] }
0x1fdf   : > { %v13333_v59 = vpop.eup %13332  ;;  %v10400_v38 = vadd.f32 1.0, %v13331_v34  ;;  %v10477_v5 = vmul.f32 %v10445_v33, %v17190_v4  ;;  %v10451_v9 = vmul.f32 %v10419_v45, %v16657_v24  ;;  %v10455_v60 = vmul.f32 %v10423_v49, %v16718_v14  ;;  %v17197_v49 = vld [vmem:[#allocation52_spill] sm:$0xff]  ;;  %v17200_v22 = vld [vmem:[#allocation31_spill] sm:$0xff] }
0x1fe0   : > { %v13335_v31 = vpop.eup %13334  ;;  %v10430_v40 = vmul.f32 0.5, %v10398_v57  ;;  %10874 = vmatprep.mubr.bf16.mxu0 %v10501_v41  ;;  %v10503_v55 = vpack.c.bf16 %v10479_v62, %v10475_v8  ;;  %v10481_v51 = vmul.f32 %v10449_v17, %v17191_v20  ;;  %v10393_v6 = vadd.f32 1.0, %v16825_v48  ;;  %v17201_v62 = vld [vmem:[#allocation36_spill] sm:$0xff] }
0x1fe1   : > { %v10432_v32 = vmul.f32 0.5, %v10400_v38  ;;  %v17193_v13 = vpack.c.bf16 %v16674_v29, %v17192_v58  ;;  %v10483_v26 = vmul.f32 %v10451_v9, %v17194_v23  ;;  %v10487_v3 = vmul.f32 %v10455_v60, %v17195_v44  ;;  %v17203_v38 = vld [vmem:[#allocation33_spill] sm:$0xff]  ;;  %v17204_v9 = vld [vmem:[#allocation50_spill] sm:$0xff] }
0x1fe2   : > { %v10421_v24 = vmul.f32 0.5, %v10389_v21  ;;  %v10462_v14 = vmul.f32 %v10430_v40, %v16790_v25  ;;  %10817 = vmatprep.mubr.bf16.mxu1 %v10503_v55  ;;  %v10505_v19 = vpack.c.bf16 %v10481_v51, %v10477_v5  ;;  %v10425_v50 = vmul.f32 0.5, %v10393_v6 }
0x1fe3   : > { %10875 = vmatmul.mubr.bf16.vlgmr.msra.gmra.mrb[60].mxu0 %v17193_v13  ;;  %v10395_v39 = vadd.f32 1.0, %v16839_v42  ;;  %v10464_v45 = vmul.f32 %v10432_v32, %v16795_v11  ;;  %v10507_v29 = vpack.c.bf16 %v10487_v3, %v10483_v26  ;;  %v10399_v43 = vadd.f32 1.0, %v13333_v59  ;;  %v17198_v42 = vld [vmem:[#allocation45_spill] sm:$0xff]  ;;  %v17202_v59 = vld [vmem:[#allocation32_spill] sm:$0xff] }
0x1fe4   : > { %v10453_v48 = vmul.f32 %v10421_v24, %v16663_v28  ;;  %v10494_v8 = vmul.f32 %v10462_v14, %v17196_v18  ;;  %10882 = vmatprep.mubr.bf16.mxu0 %v10505_v19  ;;  %v10457_v25 = vmul.f32 %v10425_v50, %v16727_v47  ;;  %v10397_v33 = vadd.f32 1.0, %v13327_v10 }
0x1fe5   : > { %10818 = vmatmul.mubr.bf16.gmra.mrb[72].mxu1 %v10502_v56  ;;  %v10427_v46 = vmul.f32 0.5, %v10395_v39  ;;  %v10496_v21 = vmul.f32 %v10464_v45, %v17197_v49  ;;  %v10431_v34 = vmul.f32 0.5, %v10399_v43  ;;  %v10401_v57 = vadd.f32 1.0, %v13335_v31  ;;  %v17205_v31 = vld [vmem:[#allocation37_spill] sm:$0xff]  ;;  %v17209_v43 = vld [vmem:[#allocation30_spill] sm:$0xff] }
0x1fe6   : > { %10825 = vmatprep.mubr.bf16.mxu1 %v10507_v29  ;;  %v10485_v11 = vmul.f32 %v10453_v48, %v17198_v42  ;;  %v10510_v2 = vpack.c.bf16 %v10494_v8, %v16853_v52  ;;  %v10489_v56 = vmul.f32 %v10457_v25, %v17199_v61  ;;  %v10429_v41 = vmul.f32 0.5, %v10397_v33  ;;  %v17208_v29 = vld [vmem:[#allocation29_spill] sm:$0xff] }
0x1fe7   : > { %v10459_v28 = vmul.f32 %v10427_v46, %v16760_v15  ;;  %v9743_v1 = vadd.f32 %v17201_v62, %v17200_v22  ;;  %v10512_v47 = vpack.c.bf16 %v10496_v21, %v16857_v7  ;;  %v10463_v10 = vmul.f32 %v10431_v34, %v16799_v30 }
0x1fe8   : > { %v10433_v17 = vmul.f32 0.5, %v10401_v57  ;;  %v9812_v4 = vadd.f32 %v17203_v38, %v17202_v59  ;;  %v10509_v5 = vpack.c.bf16 %v10489_v56, %v10485_v11  ;;  %v10461_v52 = vmul.f32 %v10429_v41, %v16765_v0 }
0x1fe9   : > { %v10491_v60 = vmul.f32 %v10459_v28, %v17204_v9  ;;  %v9816_v15 = vadd.f32 %v17205_v31, %v17202_v59  ;;  %v17206_v40 = vpack.c.bf16 %v16730_v63, %v16703_v35  ;;  %v10495_v55 = vmul.f32 %v10463_v10, %v9743_v1  ;;  %v17210_v1 = vld [vmem:[#allocation23_spill] sm:$0xff]  ;;  %v17211_v10 = vld [vmem:[#allocation24_spill] sm:$0xff] }
0x1fea   : > { %v10465_v7 = vmul.f32 %v10433_v17, %v16808_v27  ;;  %v10493_v30 = vmul.f32 %v10461_v52, %v9812_v4 }
0x1feb   : > { %10883 = vmatmul.mubr.bf16.gmra.mrb[64].mxu0 %v17206_v40  ;;  %v10511_v20 = vpack.c.bf16 %v10495_v55, %v10491_v60 }
0x1fec   : > { %10890 = vmatprep.mubr.bf16.mxu0 %v10509_v5  ;;  %v10497_v51 = vmul.f32 %v10465_v7, %v9816_v15 }
0x1fed   : > { %10826 = vmatmul.mubr.bf16.gmra.mrb[76].mxu1 %v10506_v16 }
0x1fee   : > { %10833 = vmatprep.mubr.bf16.mxu1 %v10511_v20  ;;  %v10513_v0 = vpack.c.bf16 %v10497_v51, %v10493_v30 }
0x1ff3   : > { %10891 = vmatmul.mubr.bf16.gmra.mrb[68].mxu0 %v10508_v54 }
0x1ff4   : > { %10898 = vmatprep.mubr.bf16.mxu0 %v10513_v0 }
0x1ff5   : > { %10834 = vmatmul.mubr.bf16.gmra.mrb[80].mxu1 %v10510_v2 }
0x1ffb   : > { %10899 = vmatmul.mubr.bf16.gmra.mrb[72].mxu0 %v10512_v47 }
0x20b0   : > { %v11782_v35 = vpop.f32.mrb[68].mxu1 }
0x20b1   : > { %v11783_v63 = vpop.f32.mrb[69].mxu1 }
0x20b2   : > { %v11784_v27 = vadd.f32 %v11783_v63, %v11782_v35  ;;  %v11785_v6 = vpop.f32.mrb[70].mxu1  ;;  %v17212_v63 = vld [vmem:[#allocation25_spill] sm:$0xff] }
0x20b3   : > { %v11786_v12 = vpop.f32.mrb[71].mxu1 }
0x20b4   : > { %v11787_v16 = vadd.f32 %v11786_v12, %v11785_v6  ;;  %v10812_v58 = vadd.f32 %v11784_v27, %v16923_v37  ;;  %v17213_v6 = vld [vmem:[#allocation26_spill] sm:$0xff] }
0x20b6   : > { %v11822_v32 = vpop.f32.mrb[60].mxu0  ;;  %v10815_v54 = vadd.f32 %v11787_v16, %v16923_v37 }
0x20b7   : > { %v11823_v13 = vpop.f32.mrb[61].mxu0 }
0x20b8   : > { %v11824_v53 = vadd.f32 %v11823_v13, %v11822_v32  ;;  %v11825_v36 = vpop.f32.mrb[62].mxu0  ;;  %v11788_v23 = vpop.f32.mrb[72].mxu1 }
0x20b9   : > { %v11826_v26 = vpop.f32.mrb[63].mxu0  ;;  %v11789_v44 = vpop.f32.mrb[73].mxu1 }
0x20ba   : > { %v10877_v3 = vadd.f32 %v11824_v53, %v10812_v58  ;;  %v11827_v24 = vadd.f32 %v11826_v26, %v11825_v36  ;;  %v11790_v14 = vadd.f32 %v11789_v44, %v11788_v23  ;;  %v11791_v19 = vpop.f32.mrb[74].mxu1 }
0x20bb   : > { %v11792_v50 = vpop.f32.mrb[75].mxu1 }
0x20bc   : > { %v10880_v39 = vadd.f32 %v11827_v24, %v10815_v54  ;;  %v11793_v45 = vadd.f32 %v11792_v50, %v11791_v19  ;;  %v10907_v48 = vadd.f32 %v10877_v3, %v17208_v29  ;;  %v10820_v25 = vadd.f32 %v11790_v14, %v16923_v37  ;;  %v17214_v24 = vld [vmem:[#allocation27_spill] sm:$0xff]  ;;  %v17215_v19 = vld [vmem:[#allocation28_spill] sm:$0xff] }
0x20be   : > { %v10908_v18 = vadd.f32 %v10880_v39, %v17209_v43  ;;  %v11828_v8 = vpop.f32.mrb[64].mxu0  ;;  %v10823_v42 = vadd.f32 %v11793_v45, %v16923_v37 }
0x20bf   : > { %v11829_v46 = vpop.f32.mrb[65].mxu0 }
0x20c0   : > { %v11439_v33 = vpack.c.bf16 %v10908_v18, %v10907_v48  ;;  %v11830_v49 = vadd.f32 %v11829_v46, %v11828_v8  ;;  %v11831_v21 = vpop.f32.mrb[66].mxu0  ;;  %v11794_v11 = vpop.f32.mrb[76].mxu1 }
0x20c1   : > { %v11832_v34 = vpop.f32.mrb[67].mxu0  ;;  %v11795_v57 = vpop.f32.mrb[77].mxu1 }
0x20c2   : > { %11440 = vst [vmem:[%s16933_s24] sm:$0xff] %v11439_v33   ;;  %v10885_v2 = vadd.f32 %v11830_v49, %v10820_v25  ;;  %v11833_v61 = vadd.f32 %v11832_v34, %v11831_v21  ;;  %v11796_v56 = vadd.f32 %v11795_v57, %v11794_v11  ;;  %v11797_v28 = vpop.f32.mrb[78].mxu1 }
0x20c3   : > { %v11798_v41 = vpop.f32.mrb[79].mxu1 }
0x20c4   : > { %v10888_v22 = vadd.f32 %v11833_v61, %v10823_v42  ;;  %v11799_v62 = vadd.f32 %v11798_v41, %v11797_v28  ;;  %v10909_v47 = vadd.f32 %v10885_v2, %v17210_v1  ;;  %v10828_v38 = vadd.f32 %v11796_v56, %v16923_v37 }
0x20c6   : > { %v10910_v17 = vadd.f32 %v10888_v22, %v17211_v10  ;;  %v11834_v59 = vpop.f32.mrb[68].mxu0  ;;  %v10831_v52 = vadd.f32 %v11799_v62, %v16923_v37 }
0x20c7   : > { %v11835_v4 = vpop.f32.mrb[69].mxu0 }
0x20c8   : > { %v11444_v5 = vpack.c.bf16 %v10910_v17, %v10909_v47  ;;  %v11836_v9 = vadd.f32 %v11835_v4, %v11834_v59  ;;  %v11837_v60 = vpop.f32.mrb[70].mxu0  ;;  %v11800_v31 = vpop.f32.mrb[80].mxu1 }
0x20c9   : > { %v11838_v15 = vpop.f32.mrb[71].mxu0  ;;  %v11801_v40 = vpop.f32.mrb[81].mxu1 }
0x20ca   : > { %11459 = vst [vmem:[%s16933_s24 + $0x8] sm:$0xff] %v11444_v5   ;;  %v10893_v55 = vadd.f32 %v11836_v9, %v10828_v38  ;;  %v11839_v7 = vadd.f32 %v11838_v15, %v11837_v60  ;;  %v11802_v30 = vadd.f32 %v11801_v40, %v11800_v31  ;;  %v11803_v20 = vpop.f32.mrb[82].mxu1 }
0x20cb   : > { %v11804_v51 = vpop.f32.mrb[83].mxu1 }
0x20cc   : > { %v10896_v0 = vadd.f32 %v11839_v7, %v10831_v52  ;;  %v11805_v35 = vadd.f32 %v11804_v51, %v11803_v20  ;;  %v10911_v27 = vadd.f32 %v10893_v55, %v17212_v63  ;;  %v10836_v32 = vadd.f32 %v11802_v30, %v16923_v37 }
0x20ce   : > { %v10912_v12 = vadd.f32 %v10896_v0, %v17213_v6  ;;  %v11840_v16 = vpop.f32.mrb[72].mxu0  ;;  %v10839_v54 = vadd.f32 %v11805_v35, %v16923_v37 }
0x20cf   : > { %v11841_v58 = vpop.f32.mrb[73].mxu0 }
0x20d0   : > { %v11449_v13 = vpack.c.bf16 %v10912_v12, %v10911_v27  ;;  %v11842_v53 = vadd.f32 %v11841_v58, %v11840_v16  ;;  %v11843_v36 = vpop.f32.mrb[74].mxu0 }
0x20d1   : > { %v11844_v23 = vpop.f32.mrb[75].mxu0 }
0x20d2   : > { %11460 = vst [vmem:[%s16933_s24 + $0x10] sm:$0xff] %v11449_v13   ;;  %v10901_v26 = vadd.f32 %v11842_v53, %v10836_v32  ;;  %v11845_v44 = vadd.f32 %v11844_v23, %v11843_v36 }
0x20d4   : > { %v10904_v3 = vadd.f32 %v11845_v44, %v10839_v54  ;;  %v10913_v14 = vadd.f32 %v10901_v26, %v17214_v24 }
0x20d6   : > { %v10914_v50 = vadd.f32 %v10904_v3, %v17215_v19 }
0x20d8   : > { %v11454_v39 = vpack.c.bf16 %v10914_v50, %v10913_v14 }
0x20da   : > { %11461 = vst [vmem:[%s16933_s24 + $0x18] sm:$0xff] %v11454_v39  }
0x20db   : > { %13576 = shalt.err (!%p13573_p0)
}
0x20dc   : > { %s13577_s22 = scalar_lea.hbm %s16955_s2, 512  ;;  %s13581_s0 = scalar_lea.hbm %s17216_s23, 2048 }
0x20dd   : > { %p13578_p2 = scmp.ne.s32.totalorder %s16955_s2, %s13577_s22  ;;  %p13582_p12 = scmp.lt.u32.totalorder %s16955_s2, %s17216_s23 }
0x20de   : > { %p13583_p11 = scmp.lt.u32.totalorder %s13581_s0, %s13577_s22  ;;  %p13585_p4 = scmp.lt.u32.totalorder %s13577_s22, %s16955_s2 }
0x20df   : > { %p13579_p8 = pnand %p13578_p2, %p17217_p6 }
0x20e0   : > { %p13584_p13 = por %p13583_p11, %p13582_p12 }
0x20e1   : > { %p13580_p10 = pneg %p13579_p8 }
0x20e2   : > { %p13586_p9 = por %p13585_p4, %p13584_p13 }
0x20e4   : > { %p13587_p1 = pnand %p13586_p9, %p13580_p10 }
0x20e6   : > { %13590 = shalt.err (!%p13587_p1)
}
0x20e7   : > { %s13668_s20 = smov 4  }
0x20e8   : > { %12756 = dma.vmem_to_hbm [thread:$0]  (%p17217_p6), %s16950_s25, 512, %s16955_s2, %s10932_s9, %s13665_s11, %s13665_s11, %s13668_s20  }
0x20e9 PF: > { %p12803_p3 = scmp.ge.s32.totalorder %s13645_s30, 2  ;;  %s10960_s15 = sand.u32 1, %s13633_s27  }
0x20ea   : > { %p17218_p7 = scmp.ne.s32.totalorder %s17093_s5, 0  ;;  %s10961_s26 = scalar_lea.sflag [#allocation4], %s10960_s15 }
0x20ec   : > { %p12785_p5 = pnand %p12803_p3, %p17218_p7 }
0x20ee   : > { %13628 = dma.done.wait (!%p12785_p5), %s10961_s26, 512  }
0x20ef   : > { %13630 = vsyncadd (!%p12785_p5), %s10961_s26, 4294966784  ;;  %p35_p0 = scmp.ge.s32.totalorder %s13966_s21, 6   ;;  %s17219_s27 = smov %s13637_s28 }
0x20f0   : > { %s17220_s28 = smov %s13641_s29  ;;  %s17221_s29 = smov %s13978_s19 }
0x20f1   : > { %s17222_s30 = smov %s13966_s21  ;;  %37 = sbr.rel (!%p35_p0) target bundleno = 23 (0x17), region = 165 }
0x20f8   :  { %10966 = vsyncpa [#allocation3], 1 }
0x20f9   :  { %10968 = vsyncpa [#allocation3 + $0x1], 1 }
0x20fa   :  { %10969 = vsyncpa [#allocation6], 1 }
0x20fb   :  { %10970 = vsyncpa [#allocation9], 1 }
0x20fc   :  { %10971 = vsyncpa [#allocation12], 1 }
0x20fd   :  { %10972 = vsyncpa [#allocation15], 1 }
0x20fe   :  { %10973 = vsyncpa [#allocation4], 1 }
0x20ff   :  { %10975 = vsyncpa [#allocation4 + $0x1], 1 }

</bundles_post_ra>
